<compile_context>
chip_gen: v5e
topology: v5e:2x2
jax: 0.10.0
libtpu: 0.0.40
codegen_flags: <defaults>
</compile_context>

<pallas_src>
import functools
import math

import numpy as np
import jax
import jax.numpy as jnp
from jax.experimental import pallas as pl
from jax.experimental.pallas import tpu as pltpu


def _rup(x, m):
    return ((x + m - 1) // m) * m


# ---------------------------------------------------------------------------
# Per-generation VMEM budget / core count for tile planning
# ---------------------------------------------------------------------------
@functools.lru_cache(maxsize=None)
def _tpu_env():
    """(planning budget bytes, vmem_limit_bytes, TensorCores per device)."""
    cap = None
    cores = None
    try:
        info = pltpu.get_tpu_info()
        cap = int(getattr(info, "vmem_capacity_bytes", 0) or 0) or None
        for attr in ("num_cores", "core_count", "tensorcore_count",
                     "num_tensorcores", "cores_per_chip"):
            v = getattr(info, attr, None)
            if v:
                cores = int(v)
                break
    except Exception:
        pass
    kind = ""
    try:
        kind = jax.devices()[0].device_kind.lower()
    except Exception:
        pass
    if cap is None:                              # per-generation fallback
        if "v7" in kind:
            cap = 64 * 1024 * 1024
        elif any(t in kind for t in ("v4", "v5", "v6")):
            cap = 128 * 1024 * 1024
        else:
            cap = 64 * 1024 * 1024
    if cores is None:
        cores = 2 if any(t in kind for t in ("v7", "v4", "v3")) else 1
    budget = int(cap * 0.75)                     # weight-resident full-K plans
    limit = min(cap, max(budget + 8 * 1024 * 1024, int(cap * 0.9)))
    return budget, limit, max(1, cores)


# ---------------------------------------------------------------------------
# Pallas kernel: conv as (optionally row-tapped) matmul
#                + fused bias + LeakyReLU + optional residual add
# ---------------------------------------------------------------------------
def _conv_kernel(*refs, taps, stride, m_out, alpha, multi_k, has_res):
    a_ref, w_ref, b_ref = refs[0], refs[1], refs[2]
    i = 3
    r_ref = None
    if has_res:
        r_ref = refs[i]
        i += 1
    o_ref = refs[i]
    i += 1
    acc_ref = refs[i] if multi_k else None

    def tap_matmuls(acc):
        # NOTE: when not multi_k the tap adds ride the VPU while the MXU is
        # busy with the next tap's contraction (add chain kept; see review).
        for t in range(taps):
            if taps > 1:
                # static, tile-aligned row slice (stride is a multiple of 16)
                lhs = a_ref[0, 0, t * stride:t * stride + m_out, :]
            else:
                lhs = a_ref[0, 0]
            d = jnp.dot(lhs, w_ref[t], preferred_element_type=jnp.float32)
            acc = d if acc is None else acc + d
        return acc

    def epilogue(acc):
        y = acc + b_ref[...]
        y = jnp.where(y >= 0, y, alpha * y)
        if has_res:
            y = y + r_ref[0, 0].astype(jnp.float32)
        o_ref[0, 0] = y.astype(o_ref.dtype)

    if multi_k:
        kk = pl.program_id(3)

        @pl.when(kk == 0)
        def _():
            acc_ref[...] = jnp.zeros_like(acc_ref)

        acc_ref[...] = tap_matmuls(acc_ref[...])

        @pl.when(kk == pl.num_programs(3) - 1)
        def _():
            epilogue(acc_ref[...])
    else:
        epilogue(tap_matmuls(None))


def _plan_conv(n, h, wdt, cin, cout, k, has_res):
    """Pick (variant_f, taps, rows-per-chunk, K-chunk, cout-chunk, padded K)."""
    budget, _, cores = _tpu_env()
    variant_f = (wdt % 16 == 0)            # tile-aligned in-kernel row taps
    if variant_f:
        K, taps = k * cin, k
    else:
        K, taps = k * k * cin, 1
    # Zero-pad tiny contractions (cin=3 first VGG conv, 16/32-ch tail) up to a
    # full 128-lane tile so the input DMA is not descriptor-bound.
    K_pad = 128 if (variant_f and K < 128) else K

    # cout split only when >1 TensorCore: small-spatial 512-ch layers then get
    # a parallel grid axis for megacore without duplicating DMA on 1-core parts.
    if cores > 1 and n == 1 and h * wdt <= 1024 and cout >= 256:
        cblk = cout // 2
    else:
        cblk = cout
    cb_l = _rup(cblk, 128)

    def bytes_needed(rc, kc):
        m_out = rc * wdt
        m_in = m_out + (k - 1) * wdt if variant_f else m_out
        kc_l = _rup(kc, 128)
        total = 2 * _rup(m_in, 16) * kc_l * 2          # input, double-buffered bf16
        total += 2 * taps * _rup(kc, 16) * cb_l * 2    # weights
        total += 2 * _rup(m_out, 16) * cb_l * 2        # output
        total += 2 * 8 * cb_l * 4                      # bias
        if has_res:
            total += 2 * _rup(m_out, 16) * cb_l * 2    # fused residual
        if kc < K_pad:
            total += _rup(m_out, 8) * cb_l * 4         # f32 accumulator scratch
        return total + (2 << 20)                       # margin

    kcs = [K_pad] + [c * 128 for c in range(K_pad // 128, 0, -1)
                     if c * 128 < K_pad and K_pad % (c * 128) == 0]
    if variant_f:
        # On multi-core parts keep NC >= 2 so both TensorCores get grid steps.
        max_rc = h // 2 if (cores > 1 and h >= 2) else h
        rcs = [d for d in range(max_rc, 0, -1) if h % d == 0 and d * wdt <= 32768]
        rcs = rcs or [1]
    else:
        rcs = [h]

    best = None
    for kc in kcs:
        for rc in rcs:
            b = bytes_needed(rc, kc)
            if b <= budget:
                return variant_f, taps, rc, kc, cblk, K_pad
            if best is None or b < best[0]:
                best = (b, rc, kc)
    # Nothing met the budget: smallest-footprint plan (budget sits well below
    # vmem_limit_bytes, so this degrades gracefully instead of OOMing).
    return variant_f, taps, best[1], best[2], cblk, K_pad


@functools.partial(jax.jit, static_argnames=("ksize", "pad", "alpha", "pad_mode"))
def conv2d_bn_act(x, w, bias, residual=None, *, ksize, pad, alpha, pad_mode):
    """Stride-1 conv + (folded BN) + LeakyReLU [+ fused residual add].

    x: (N,H,W,Cin), w: (k,k,Cin,Cout) bf16 (BN scale pre-folded),
    bias: (1,Cout) f32, residual: optional (N,H,W,Cout) (only fused when
    Cout >= 128 so the store stays lane-dense).
    """
    n, h, wdt, cin = x.shape
    cout = w.shape[-1]
    k = ksize
    has_res = residual is not None

    # Lane-dense store for the narrow tail convs (32/16/3 channels): pad the
    # output channels to 128 inside the kernel, slice back outside.
    cout_p = 128 if cout < 64 else cout
    assert not (has_res and cout_p != cout)

    variant_f, taps, rc, kc, cblk, K_pad = _plan_conv(
        n, h, wdt, cin, cout_p, k, has_res)
    K = k * cin if variant_f else k * k * cin

    # TODO(synk): reflect padding is still a separate HBM copy per conv; not
    #             yet folded into the im2col/halo construction.
    xp = jnp.pad(x, ((0, 0), (pad, pad), (pad, pad), (0, 0)),
                 mode=pad_mode).astype(jnp.bfloat16)

    if variant_f:
        # kw-only im2col; kh taps handled inside the kernel.  Rows are
        # pre-chunked with a (k-1)-row halo so every block is self-contained.
        NC = h // rc
        chunks = []
        for c in range(NC):
            rows = xp[:, c * rc:c * rc + rc + (k - 1), :, :]
            chunks.append(jnp.concatenate(
                [rows[:, :, kw:kw + wdt, :] for kw in range(k)], axis=-1))
        a = jnp.stack(chunks, axis=1).reshape(n, NC, (rc + k - 1) * wdt, K)
        stride = wdt
        m_out = rc * wdt
        m_in = (rc + k - 1) * wdt
    else:
        # tiny-spatial fallback: full k*k im2col (negligible bytes here).
        NC = 1
        tl = [xp[:, kh:kh + h, kw:kw + wdt, :]
              for kh in range(k) for kw in range(k)]
        a = jnp.concatenate(tl, axis=-1).reshape(n, 1, h * wdt, K)
        stride = 0
        m_out = m_in = h * wdt

    wmat = w.reshape(taps, K, cout).astype(jnp.bfloat16)
    bmat = bias
    if K_pad != K:
        a = jnp.pad(a, ((0, 0), (0, 0), (0, 0), (0, K_pad - K)))
        wmat = jnp.pad(wmat, ((0, 0), (0, K_pad - K), (0, 0)))
    if cout_p != cout:
        wmat = jnp.pad(wmat, ((0, 0), (0, 0), (0, cout_p - cout)))
        bmat = jnp.pad(bias, ((0, 0), (0, cout_p - cout)))

    nj = cout_p // cblk
    nk = K_pad // kc
    multi_k = nk > 1

    in_specs = [
        pl.BlockSpec((1, 1, m_in, kc), lambda ni, ci, ji, ki: (ni, ci, 0, ki)),
        pl.BlockSpec((taps, kc, cblk), lambda ni, ci, ji, ki: (0, ki, ji)),
        pl.BlockSpec((1, cblk), lambda ni, ci, ji, ki: (0, ji)),
    ]
    args = [a, wmat, bmat]
    if has_res:
        r = residual.astype(jnp.bfloat16).reshape(n, NC, m_out, cout_p)
        in_specs.append(pl.BlockSpec((1, 1, m_out, cblk),
                                     lambda ni, ci, ji, ki: (ni, ci, 0, ji)))
        args.append(r)

    scratch = [pltpu.VMEM((m_out, cblk), jnp.float32)] if multi_k else []
    kern = functools.partial(_conv_kernel, taps=taps, stride=stride,
                             m_out=m_out, alpha=alpha, multi_k=multi_k,
                             has_res=has_res)
    out = pl.pallas_call(
        kern,
        out_shape=jax.ShapeDtypeStruct((n, NC, m_out, cout_p), jnp.bfloat16),
        grid=(n, NC, nj, nk),
        in_specs=in_specs,
        out_specs=pl.BlockSpec((1, 1, m_out, cblk),
                               lambda ni, ci, ji, ki: (ni, ci, 0, ji)),
        scratch_shapes=scratch,
        compiler_params=pltpu.CompilerParams(
            dimension_semantics=("parallel", "parallel", "parallel", "arbitrary"),
            vmem_limit_bytes=_tpu_env()[1]),
    )(*args)
    if cout_p != cout:
        out = out[..., :cout]
    return out.reshape(n, h, wdt, cout)


# ---------------------------------------------------------------------------
# Plain-JAX glue: bicubic upsample (PyTorch semantics), maxpool 2x2
# ---------------------------------------------------------------------------
@functools.lru_cache(maxsize=None)
def _bicubic_matrix(in_size, factor):
    # PyTorch bicubic: cubic conv kernel a=-0.75, align_corners=False,
    # source coord = (dst+0.5)/scale - 0.5, border-clamped taps.
    a = -0.75
    out_size = in_size * factor
    mat = np.zeros((out_size, in_size), np.float32)
    for o in range(out_size):
        src = (o + 0.5) / factor - 0.5
        f = math.floor(src)
        t = src - f
        for kk in range(-1, 3):
            d = abs(t - kk)
            if d <= 1.0:
                wgt = (a + 2) * d ** 3 - (a + 3) * d ** 2 + 1.0
            elif d < 2.0:
                wgt = a * d ** 3 - 5 * a * d ** 2 + 8 * a * d - 4 * a
            else:
                wgt = 0.0
            idx = min(max(f + kk, 0), in_size - 1)
            mat[o, idx] += wgt
    return jnp.asarray(mat)


def bicubic_upsample(x, factor):
    _, h, w, _ = x.shape
    mh = _bicubic_matrix(h, factor).astype(x.dtype)
    mw = _bicubic_matrix(w, factor).astype(x.dtype)
    y = jnp.einsum('oh,nhwc->nowc', mh, x)
    y = jnp.einsum('pw,nowc->nopc', mw, y)
    return y


def maxpool2x2(x):
    n, h, w, c = x.shape
    return x.reshape(n, h // 2, 2, w // 2, 2, c).max(axis=(2, 4))


# ---------------------------------------------------------------------------
# Parameter initialization (deterministic, synthetic, kernel-ready layout)
# ---------------------------------------------------------------------------
def _init_conv_block(key, cin, cout, k):
    k1, k2, k3, k4, k5 = jax.random.split(key, 5)
    w = jax.random.normal(k1, (k, k, cin, cout), jnp.float32) * (2.0 / (cin * k * k)) ** 0.5
    b = 0.01 * jax.random.normal(k2, (cout,), jnp.float32)
    gamma = 1.0 + 0.1 * jax.random.normal(k3, (cout,), jnp.float32)
    beta = 0.1 * jax.random.normal(k4, (cout,), jnp.float32)
    running_mean = 0.01 * jax.random.normal(k5, (cout,), jnp.float32)
    running_var = jnp.ones((cout,), jnp.float32)
    scale = gamma / jnp.sqrt(running_var + 1e-5)          # fold BN (eval mode)
    wf = (w * scale).astype(jnp.bfloat16)                 # scale folded into W
    bias = (beta + (b - running_mean) * scale).reshape(1, cout).astype(jnp.float32)
    return {'w': wf, 'b': bias}


def init_params(key):
    keys = iter(jax.random.split(key, 200))

    # VGG19 features up to relu5_4 (16 convs, pools after convs 2,4,8,12)
    vgg_channels = [3, 64, 64, 128, 128, 256, 256, 256, 256,
                    512, 512, 512, 512, 512, 512, 512, 512]
    vgg = []
    for i in range(16):
        cin, cout = vgg_channels[i], vgg_channels[i + 1]
        w = jax.random.normal(next(keys), (3, 3, cin, cout), jnp.float32) * (2.0 / (cin * 9)) ** 0.5
        b = 0.01 * jax.random.normal(next(keys), (cout,), jnp.float32)
        vgg.append({'w': w.astype(jnp.bfloat16), 'b': b.reshape(1, cout)})

    def cb(cin, cout, k):
        return _init_conv_block(next(keys), cin, cout, k)

    def decode(cin, cout):
        return [cb(cin, cout, 5)] + [cb(cout, cout, 5) for _ in range(5)]

    return {
        'vgg': vgg,
        'p0': [cb(512, 512, 5) for _ in range(4)],
        's2': decode(512, 512), 's1': decode(512, 512),
        'd4': decode(512, 512), 'd3': decode(512, 256),
        'd2': decode(256, 128), 'd1': decode(128, 64),
        'e': [cb(64, 64, 3) for _ in range(5)]
             + [cb(64, 32, 3), cb(32, 16, 3), cb(16, 3, 3)],
    }


# ---------------------------------------------------------------------------
# Model forward (NHWC)
# ---------------------------------------------------------------------------
def _apply_conv_block(p, x, ksize, pad, residual=None):
    cout = p['w'].shape[-1]
    fuse = residual is not None and cout >= 128   # fuse only lane-dense outputs
    y = conv2d_bn_act(x, p['w'], p['b'], residual if fuse else None,
                      ksize=ksize, pad=pad, alpha=0.2, pad_mode='reflect')
    if residual is not None and not fuse:
        # Post-activation skip add, done in f32 outside the kernel (matches
        # PyTorch's  act(conv(x)) + residual; keeps the f32 lr4x skip exact).
        y = (y.astype(jnp.float32) + residual.astype(jnp.float32)).astype(jnp.bfloat16)
    return y


def _apply_decode(blocks, x, residual=None):
    x = bicubic_upsample(x, 2)
    last = len(blocks) - 1
    for i, p in enumerate(blocks):
        r = residual if i == last else None
        x = _apply_conv_block(p, x, 5, 2, residual=r)
    return x


def _vgg_features(x, vgg_params):
    """Returns relu1_2, relu2_2, relu3_4, relu4_4, relu5_4 activations."""
    taps = {2: 'r1', 4: 'r2', 8: 'r3', 12: 'r4', 16: 'r5'}
    pool_after = {2, 4, 8, 12}
    feats = {}
    for i in range(16):
        p = vgg_params[i]
        x = conv2d_bn_act(x, p['w'], p['b'], None, ksize=3, pad=1,
                          alpha=0.0, pad_mode='constant')   # conv + ReLU
        if (i + 1) in taps:
            feats[taps[i + 1]] = x
        if (i + 1) in pool_after:
            x = maxpool2x2(x)
    return feats


def sr_v5_forward(params, x):
    lr_img = x
    lr2x = bicubic_upsample(x, 2)
    lr4x = bicubic_upsample(x, 4)

    # The five vgg_* encoders share (pretrained) weights, so each pyramid level
    # is computed once and its intermediate relu taps reused.
    f_lr = _vgg_features(lr_img, params['vgg'])
    f_lr2 = _vgg_features(lr2x, params['vgg'])
    f_lr4 = _vgg_features(lr4x, params['vgg'])

    x = f_lr['r5']
    for i, p in enumerate(params['p0']):
        r = f_lr['r5'] if i == len(params['p0']) - 1 else None    # fused add
        x = _apply_conv_block(p, x, 5, 2, residual=r)
    x6 = x
    x = _apply_decode(params['s2'], x, f_lr2['r5']); x5 = x
    x = _apply_decode(params['s1'], x, f_lr4['r5']); x4 = x
    x = _apply_decode(params['d4'], x, f_lr4['r4']); x3 = x
    x = _apply_decode(params['d3'], x, f_lr4['r3']); x2 = x
    x = _apply_decode(params['d2'], x, f_lr4['r2']); x1 = x
    x = _apply_decode(params['d1'], x, f_lr4['r1']); x0 = x
    last = len(params['e']) - 1
    for i, p in enumerate(params['e']):
        r = lr4x if i == last else None            # final +lr4x (f32, external)
        x = _apply_conv_block(p, x, 3, 1, residual=r)
    return x, (x0, x1, x2, x3, x4, x5, x6)


# ---------------------------------------------------------------------------
if __name__ == "__main__":
    params = init_params(jax.random.PRNGKey(0))

    # Smallest spatial size consistent with the module: reflect pad=2 at the
    # 1/16-scale VGG feature map requires H/16 >= 3  ->  H = 48.
    x_nchw = jax.random.uniform(jax.random.PRNGKey(0), (1, 3, 48, 48), jnp.float32)
    x_nhwc = jnp.transpose(x_nchw, (0, 2, 3, 1))

    out_nhwc, feats_nhwc = sr_v5_forward(params, x_nhwc)
    out = jnp.transpose(out_nhwc.astype(jnp.float32), (0, 3, 1, 2))
    feats = tuple(jnp.transpose(f.astype(jnp.float32), (0, 3, 1, 2))
                  for f in feats_nhwc)
    jax.block_until_ready((out, feats))

    assert out.shape == (1, 3, 192, 192), out.shape
    expected = [(1, 64, 192, 192), (1, 128, 96, 96), (1, 256, 48, 48),
                (1, 512, 24, 24), (1, 512, 12, 12), (1, 512, 6, 6), (1, 512, 3, 3)]
    for f, s in zip(feats, expected):
        assert f.shape == s, (f.shape, s)
    assert bool(jnp.all(jnp.isfinite(out)))
    print("KERNEL_OK")
</pallas_src>

<mosaic_0001>
module attributes {stable_mosaic.version = 11 : i64} {
  func.func @_conv_kernel(%arg0: i32, %arg1: i32, %arg2: i32, %arg3: i32, %arg4: memref<1x1x2400x128xbf16, #tpu.memory_space<vmem>>, %arg5: memref<3x128x64xbf16, #tpu.memory_space<vmem>>, %arg6: memref<1x64xf32, #tpu.memory_space<vmem>>, %arg7: memref<1x1x2304x64xbf16, #tpu.memory_space<vmem>>) attributes {dimension_semantics = [#tpu.dimension_semantics<parallel>, #tpu.dimension_semantics<parallel>, #tpu.dimension_semantics<parallel>, #tpu.dimension_semantics<arbitrary>], iteration_bounds = array<i64: 1, 1, 1, 1>, scalar_prefetch = 0 : i64, scratch_operands = 0 : i64, tpu.core_type = #tpu.core_type<tc>, window_params = [{transform_indices = @transform_0, window_bounds = array<i64: 1, 1, 2400, 128>}, {transform_indices = @transform_1, window_bounds = array<i64: 3, 128, 64>}, {transform_indices = @transform_2, window_bounds = array<i64: 1, 64>}, {transform_indices = @transform_3, window_bounds = array<i64: 1, 1, 2304, 64>}]} {
    %c0 = arith.constant 0 : index
    %c0_0 = arith.constant 0 : index
    %c0_1 = arith.constant 0 : index
    %c0_2 = arith.constant 0 : index
    %0 = vector.load %arg4[%c0, %c0_0, %c0_1, %c0_2] : memref<1x1x2400x128xbf16, #tpu.memory_space<vmem>>, vector<1x1x2304x128xbf16>
    %1 = vector.shape_cast %0 : vector<1x1x2304x128xbf16> to vector<2304x128xbf16>
    %c0_3 = arith.constant 0 : index
    %c0_4 = arith.constant 0 : index
    %c0_5 = arith.constant 0 : index
    %2 = vector.load %arg5[%c0_3, %c0_4, %c0_5] : memref<3x128x64xbf16, #tpu.memory_space<vmem>>, vector<1x128x64xbf16>
    %3 = vector.shape_cast %2 : vector<1x128x64xbf16> to vector<128x64xbf16>
    %cst = arith.constant dense<0.000000e+00> : vector<2304x64xf32>
    %4 = tpu.matmul %1, %3, %cst {dimension_numbers = #tpu.dot_dimension_numbers<[1], [0], [0], [1], [0, 0, 1, 1], [], []>} : vector<2304x128xbf16>, vector<128x64xbf16>, vector<2304x64xf32> -> vector<2304x64xf32>
    %c0_6 = arith.constant 0 : index
    %c0_7 = arith.constant 0 : index
    %c48 = arith.constant 48 : index
    %c0_8 = arith.constant 0 : index
    %5 = vector.load %arg4[%c0_6, %c0_7, %c48, %c0_8] : memref<1x1x2400x128xbf16, #tpu.memory_space<vmem>>, vector<1x1x2304x128xbf16>
    %6 = vector.shape_cast %5 : vector<1x1x2304x128xbf16> to vector<2304x128xbf16>
    %c1 = arith.constant 1 : index
    %c0_9 = arith.constant 0 : index
    %c0_10 = arith.constant 0 : index
    %7 = vector.load %arg5[%c1, %c0_9, %c0_10] : memref<3x128x64xbf16, #tpu.memory_space<vmem>>, vector<1x128x64xbf16>
    %8 = vector.shape_cast %7 : vector<1x128x64xbf16> to vector<128x64xbf16>
    %cst_11 = arith.constant dense<0.000000e+00> : vector<2304x64xf32>
    %9 = tpu.matmul %6, %8, %cst_11 {dimension_numbers = #tpu.dot_dimension_numbers<[1], [0], [0], [1], [0, 0, 1, 1], [], []>} : vector<2304x128xbf16>, vector<128x64xbf16>, vector<2304x64xf32> -> vector<2304x64xf32>
    %10 = arith.addf %4, %9 : vector<2304x64xf32>
    %c0_12 = arith.constant 0 : index
    %c0_13 = arith.constant 0 : index
    %c96 = arith.constant 96 : index
    %c0_14 = arith.constant 0 : index
    %11 = vector.load %arg4[%c0_12, %c0_13, %c96, %c0_14] : memref<1x1x2400x128xbf16, #tpu.memory_space<vmem>>, vector<1x1x2304x128xbf16>
    %12 = vector.shape_cast %11 : vector<1x1x2304x128xbf16> to vector<2304x128xbf16>
    %c2 = arith.constant 2 : index
    %c0_15 = arith.constant 0 : index
    %c0_16 = arith.constant 0 : index
    %13 = vector.load %arg5[%c2, %c0_15, %c0_16] : memref<3x128x64xbf16, #tpu.memory_space<vmem>>, vector<1x128x64xbf16>
    %14 = vector.shape_cast %13 : vector<1x128x64xbf16> to vector<128x64xbf16>
    %cst_17 = arith.constant dense<0.000000e+00> : vector<2304x64xf32>
    %15 = tpu.matmul %12, %14, %cst_17 {dimension_numbers = #tpu.dot_dimension_numbers<[1], [0], [0], [1], [0, 0, 1, 1], [], []>} : vector<2304x128xbf16>, vector<128x64xbf16>, vector<2304x64xf32> -> vector<2304x64xf32>
    %16 = arith.addf %10, %15 : vector<2304x64xf32>
    %c0_18 = arith.constant 0 : index
    %c0_19 = arith.constant 0 : index
    %17 = vector.load %arg6[%c0_18, %c0_19] : memref<1x64xf32, #tpu.memory_space<vmem>>, vector<1x64xf32>
    %18 = vector.broadcast %17 : vector<1x64xf32> to vector<2304x64xf32>
    %19 = arith.addf %16, %18 : vector<2304x64xf32>
    %cst_20 = arith.constant 0.000000e+00 : f32
    %20 = vector.broadcast %cst_20 : f32 to vector<2304x64xf32>
    %21 = arith.cmpf oge, %19, %20 : vector<2304x64xf32>
    %cst_21 = arith.constant 0.000000e+00 : f32
    %22 = vector.broadcast %cst_21 : f32 to vector<2304x64xf32>
    %23 = arith.mulf %22, %19 : vector<2304x64xf32>
    %24 = arith.select %21, %19, %23 : vector<2304x64xi1>, vector<2304x64xf32>
    %25 = arith.truncf %24 : vector<2304x64xf32> to vector<2304x64xbf16>
    %c0_22 = arith.constant 0 : index
    %c0_23 = arith.constant 0 : index
    %c0_24 = arith.constant 0 : index
    %c0_25 = arith.constant 0 : index
    %26 = vector.load %arg7[%c0_22, %c0_23, %c0_24, %c0_25] : memref<1x1x2304x64xbf16, #tpu.memory_space<vmem>>, vector<1x1x2304x64xbf16>
    %27 = vector.shape_cast %26 : vector<1x1x2304x64xbf16> to vector<2304x64xbf16>
    %28 = vector.shape_cast %25 : vector<2304x64xbf16> to vector<1x1x2304x64xbf16>
    tpu.vector_store %arg7[%c0_22, %c0_23, %c0_24, %c0_25], %28 {strides = array<i32>} : memref<1x1x2304x64xbf16, #tpu.memory_space<vmem>>, vector<1x1x2304x64xbf16>,
    return
  }
  func.func @transform_0(%arg0: i32, %arg1: i32, %arg2: i32, %arg3: i32) -> (i32, i32, i32, i32) {
    %c0_i32 = arith.constant 0 : i32
    %c0_i32_0 = arith.constant 0 : i32
    return %arg0, %arg1, %c0_i32, %arg3 : i32, i32, i32, i32
  }
  func.func @transform_1(%arg0: i32, %arg1: i32, %arg2: i32, %arg3: i32) -> (i32, i32, i32) {
    %c0_i32 = arith.constant 0 : i32
    %c0_i32_0 = arith.constant 0 : i32
    return %c0_i32, %arg3, %arg2 : i32, i32, i32
  }
  func.func @transform_2(%arg0: i32, %arg1: i32, %arg2: i32, %arg3: i32) -> (i32, i32) {
    %c0_i32 = arith.constant 0 : i32
    %c0_i32_0 = arith.constant 0 : i32
    return %c0_i32, %arg2 : i32, i32
  }
  func.func @transform_3(%arg0: i32, %arg1: i32, %arg2: i32, %arg3: i32) -> (i32, i32, i32, i32) {
    %c0_i32 = arith.constant 0 : i32
    %c0_i32_0 = arith.constant 0 : i32
    return %arg0, %arg1, %c0_i32, %arg2 : i32, i32, i32, i32
  }
}

</mosaic_0001>

<bundles_post_ra>
// kernel: conv2d_bn_act.1
= control target key start
LH: loop header
LB: loop body
LE: loop exit
PB: predicated region body
PF: predicated region fallthrough
CT: control target
= control target key end

     0   :  { %s11006_s0 = inlined_call_operand.vmem [shape: bf16[1,1,2400,128], index: 0, kind: input, shape index: {}]   ;;  %s11007_s1 = inlined_call_operand.vmem [shape: bf16[3,128,64], index: 1, kind: input, shape index: {}]   ;;  %s11008_s2 = inlined_call_operand.vmem [shape: f32[1,64], index: 2, kind: input, shape index: {}]   ;;  %s11009_s3 = inlined_call_operand.hbm [shape: bf16[1,1,2304,64], index: 3, kind: output, shape index: {}]  }
   0x1   :  { %v8217_v0 = vld [vmem:[%s11007_s1 + $0x78] sm:$0xff]  ;;  %v8216_v3 = vld [vmem:[%s11007_s1 + $0x70] sm:$0xff]  ;;  %v8215_v6 = vld [vmem:[%s11007_s1 + $0x68] sm:$0xff] }
   0x2   :  { %v8206_v1 = vld [vmem:[%s11007_s1 + $0x38] sm:$0xff]  ;;  %1254 = vmatpush.bf16.msra.mxu0 %v8217_v0  ;;  %8370 = vmatpush.bf16.msra.mxu3 %v8217_v0  ;;  %v8205_v4 = vld [vmem:[%s11007_s1 + $0x30] sm:$0xff]  ;;  %v8204_v7 = vld [vmem:[%s11007_s1 + $0x28] sm:$0xff] }
   0x3   :  { %v8499_v2 = vld [vmem:[%s11007_s1 + $0xb8] sm:$0xff]  ;;  %2049 = vmatpush.bf16.msra.mxu1 %v8206_v1  ;;  %v8511_v5 = vld [vmem:[%s11007_s1 + $0xb0] sm:$0xff]  ;;  %v8523_v8 = vld [vmem:[%s11007_s1 + $0xa8] sm:$0xff] }
   0x4   :  { %3995 = vmatpush.bf16.msra.mxu2 %v8499_v2  ;;  %v8214_v9 = vld [vmem:[%s11007_s1 + $0x60] sm:$0xff] }
   0x6   :  { %1255 = vmatpush.bf16.msra.mxu0 %v8216_v3  ;;  %8371 = vmatpush.bf16.msra.mxu3 %v8216_v3 }
   0x7   :  { %2050 = vmatpush.bf16.msra.mxu1 %v8205_v4 }
   0x8   :  { %3996 = vmatpush.bf16.msra.mxu2 %v8511_v5 }
   0xa   :  { %1256 = vmatpush.bf16.msra.mxu0 %v8215_v6  ;;  %8372 = vmatpush.bf16.msra.mxu3 %v8215_v6 }
   0xb   :  { %8 = vsyncpa [#allocation3], 0  ;;  %2051 = vmatpush.bf16.msra.mxu1 %v8204_v7  ;;  %v8203_v10 = vld [vmem:[%s11007_s1 + $0x20] sm:$0xff]  ;;  %v8213_v12 = vld [vmem:[%s11007_s1 + $0x58] sm:$0xff]  ;;  %vm6456_vm1 = vcmask 519168   ;;  %s6751_s6 = sshll.u32 %s11009_s3, 4  ;;  %s6752_s6 = int_to_ptr.hbm [resolvable:$true] %s6751_s6 }
   0xc   :  { %3997 = vmatpush.bf16.msra.mxu2 %v8523_v8  ;;  %v8535_v11 = vld [vmem:[%s11007_s1 + $0xa0] sm:$0xff]  ;;  %v8202_v13 = vld [vmem:[%s11007_s1 + $0x18] sm:$0xff]  ;;  %v8212_v15 = vld [vmem:[%s11007_s1 + $0x50] sm:$0xff]  ;;  %s8468_s7 = smov 64   ;;  %s8469_s8 = smov 4  }
   0xd   :  { %v8547_v14 = vld [vmem:[%s11007_s1 + $0x98] sm:$0xff]  ;;  %v8201_v16 = vld [vmem:[%s11007_s1 + $0x10] sm:$0xff]  ;;  %v8211_v18 = vld [vmem:[%s11007_s1 + $0x48] sm:$0xff] }
   0xe   :  { %1257 = vmatpush.bf16.msra.mxu0 %v8214_v9  ;;  %8373 = vmatpush.bf16.msra.mxu3 %v8214_v9  ;;  %v8364_v17 = vld [vmem:[%s11007_s1 + $0x90] sm:$0xff]  ;;  %v8200_v19 = vld [vmem:[%s11007_s1 + $0x8] sm:$0xff]  ;;  %v8210_v21 = vld [vmem:[%s11007_s1 + $0x40] sm:$0xff] }
   0xf   :  { %2052 = vmatpush.bf16.msra.mxu1 %v8203_v10  ;;  %v8363_v20 = vld [vmem:[%s11007_s1 + $0x88] sm:$0xff]  ;;  %v8199_v22 = vld [vmem:[%s11007_s1] sm:$0xff]  ;;  %v8058_v24 = vld [vmem:[%s11006_s0 + $0x18] sm:$0xff] }
  0x10   :  { %3998 = vmatpush.bf16.msra.mxu2 %v8535_v11  ;;  %v8362_v23 = vld [vmem:[%s11007_s1 + $0x80] sm:$0xff]  ;;  %v8166_v25 = vld [vmem:[%s11006_s0 + $0x378] sm:$0xff]  ;;  %v8218_v27 = vld [vmem:[%s11006_s0 + $0x30] sm:$0xff] }
  0x11   :  { %v8055_v26 = vld [vmem:[%s11006_s0] sm:$0xff]  ;;  %v8056_v30 = vld [vmem:[%s11006_s0 + $0x8] sm:$0xff]  ;;  %v8219_v31 = vld [vmem:[%s11006_s0 + $0x38] sm:$0xff] }
  0x12   :  { %1258 = vmatpush.bf16.msra.mxu0 %v8213_v12  ;;  %8374 = vmatpush.bf16.msra.mxu3 %v8213_v12  ;;  %v8059_v28 = vld [vmem:[%s11006_s0 + $0x20] sm:$0xff]  ;;  %v8060_v32 = vld [vmem:[%s11006_s0 + $0x28] sm:$0xff]  ;;  %v8057_v34 = vld [vmem:[%s11006_s0 + $0x10] sm:$0xff] }
  0x13   :  { %2053 = vmatpush.bf16.msra.mxu1 %v8202_v13  ;;  %v8167_v29 = vld [vmem:[%s11006_s0 + $0x380] sm:$0xff]  ;;  %v8168_v33 = vld [vmem:[%s11006_s0 + $0x388] sm:$0xff]  ;;  %v8061_v36 = vld [vmem:[%s11006_s0 + $0x30] sm:$0xff] }
  0x14   :  { %3999 = vmatpush.bf16.msra.mxu2 %v8547_v14  ;;  %v8220_v35 = vld [vmem:[%s11006_s0 + $0x40] sm:$0xff]  ;;  %v8169_v37 = vld [vmem:[%s11006_s0 + $0x390] sm:$0xff]  ;;  %v8221_v38 = vld [vmem:[%s11006_s0 + $0x48] sm:$0xff] }
  0x15   :  { %v8062_v39 = vld [vmem:[%s11006_s0 + $0x38] sm:$0xff]  ;;  %v8222_v41 = vld [vmem:[%s11006_s0 + $0x50] sm:$0xff]  ;;  %v8063_v42 = vld [vmem:[%s11006_s0 + $0x40] sm:$0xff] }
  0x16   :  { %1259 = vmatpush.bf16.msra.mxu0 %v8212_v15  ;;  %8375 = vmatpush.bf16.msra.mxu3 %v8212_v15  ;;  %v8170_v40 = vld [vmem:[%s11006_s0 + $0x398] sm:$0xff]  ;;  %v8171_v43 = vld [vmem:[%s11006_s0 + $0x3a0] sm:$0xff]  ;;  %v8064_v45 = vld [vmem:[%s11006_s0 + $0x48] sm:$0xff] }
  0x17   :  { %2054 = vmatpush.bf16.msra.mxu1 %v8201_v16  ;;  %v8223_v44 = vld [vmem:[%s11006_s0 + $0x58] sm:$0xff]  ;;  %v8172_v46 = vld [vmem:[%s11006_s0 + $0x3a8] sm:$0xff]  ;;  %v8224_v47 = vld [vmem:[%s11006_s0 + $0x60] sm:$0xff] }
  0x18   :  { %4000 = vmatpush.bf16.msra.mxu2 %v8364_v17  ;;  %v8657_v48 = vld [vmem:[%s11006_s0 + $0x50] sm:$0xff]  ;;  %v8225_v50 = vld [vmem:[%s11006_s0 + $0x68] sm:$0xff]  ;;  %v8669_v51 = vld [vmem:[%s11006_s0 + $0x58] sm:$0xff] }
  0x19   :  { %v8173_v49 = vld [vmem:[%s11006_s0 + $0x3b0] sm:$0xff]  ;;  %v8174_v52 = vld [vmem:[%s11006_s0 + $0x3b8] sm:$0xff]  ;;  %v8683_v58 = vld [vmem:[%s11008_s2] ss:$0 sm:$0xff] }
  0x1a   :  { %1260 = vmatpush.bf16.msra.mxu0 %v8211_v18  ;;  %8376 = vmatpush.bf16.msra.mxu3 %v8211_v18  ;;  %v8226_v54 = vld [vmem:[%s11006_s0 + $0x70] sm:$0xff]  ;;  %v8691_v6 = vld [vmem:[%s11006_s0 + $0x60] sm:$0xff] }
  0x1b   :  { %2055 = vmatpush.bf16.msra.mxu1 %v8200_v19 }
  0x1c   :  { %4001 = vmatpush.bf16.msra.mxu2 %v8363_v20 }
  0x1e   :  { %1261 = vmatpush.bf16.msra.mxu0 %v8210_v21  ;;  %8377 = vmatpush.bf16.msra.mxu3 %v8210_v21 }
  0x1f   :  { %2056 = vmatpush.bf16.msra.mxu1 %v8199_v22 }
  0x20   :  { %4002 = vmatpush.bf16.msra.mxu2 %v8362_v23 }
  0x21   :  { %1262 = vmatmul.bf16.vlgmr.msra.gmra.mxu0 %v8058_v24  ;;  %1802 = vmatmul.bf16.vlgmr.msra.gmra.mxu3 %v8166_v25 }
  0x22   :  { %8378 = vmatpush.bf16.msrb.mxu3 %v8206_v1  ;;  %2057 = vmatmul.bf16.vlgmr.msra.gmra.mxu1 %v8055_v26 }
  0x23   :  { %4003 = vmatmul.bf16.vlgmr.msra.gmra.mxu2 %v8218_v27 }
  0x26   :  { %8379 = vmatpush.bf16.msrb.mxu3 %v8205_v4 }
  0x2a   :  { %8380 = vmatpush.bf16.msrb.mxu3 %v8204_v7  ;;  %v8175_v7 = vld [vmem:[%s11006_s0 + $0x3c0] sm:$0xff] }
  0x2e   :  { %8381 = vmatpush.bf16.msrb.mxu3 %v8203_v10  ;;  %v8227_v10 = vld [vmem:[%s11006_s0 + $0x78] sm:$0xff] }
  0x31   :  { %1267 = vmatmul.bf16.gmra.mxu0 %v8059_v28  ;;  %1807 = vmatmul.bf16.gmra.mxu3 %v8167_v29  ;;  %v8711_v29 = vld [vmem:[%s11006_s0 + $0x68] sm:$0xff] }
  0x32   :  { %8382 = vmatpush.bf16.msrb.mxu3 %v8202_v13  ;;  %2062 = vmatmul.bf16.gmra.mxu1 %v8056_v30  ;;  %v8176_v30 = vld [vmem:[%s11006_s0 + $0x3c8] sm:$0xff] }
  0x33   :  { %4008 = vmatmul.bf16.gmra.mxu2 %v8219_v31 }
  0x36   :  { %8383 = vmatpush.bf16.msrb.mxu3 %v8201_v16 }
  0x3a   :  { %8384 = vmatpush.bf16.msrb.mxu3 %v8200_v19 }
  0x3e   :  { %8385 = vmatpush.bf16.msrb.mxu3 %v8199_v22 }
  0x41   :  { %1272 = vmatmul.bf16.gmra.mxu0 %v8060_v32  ;;  %1812 = vmatmul.bf16.gmra.mxu3 %v8168_v33  ;;  %v8228_v33 = vld [vmem:[%s11006_s0 + $0x80] sm:$0xff] }
  0x42   :  { %8386 = vmatpush.bf16.msra.mxu3 %v8499_v2  ;;  %2067 = vmatmul.bf16.gmra.mxu1 %v8057_v34 }
  0x43   :  { %4013 = vmatmul.bf16.gmra.mxu2 %v8220_v35 }
  0x46   :  { %8387 = vmatpush.bf16.msra.mxu3 %v8511_v5 }
  0x4a   :  { %8388 = vmatpush.bf16.msra.mxu3 %v8523_v8 }
  0x4e   :  { %8389 = vmatpush.bf16.msra.mxu3 %v8535_v11 }
  0x51   :  { %1277 = vmatmul.bf16.gmra.mxu0 %v8061_v36  ;;  %1817 = vmatmul.bf16.gmra.mxu3 %v8169_v37 }
  0x52   :  { %8390 = vmatpush.bf16.msra.mxu3 %v8547_v14  ;;  %2072 = vmatmul.bf16.gmra.mxu1 %v8058_v24 }
  0x53   :  { %4018 = vmatmul.bf16.gmra.mxu2 %v8221_v38 }
  0x56   :  { %8391 = vmatpush.bf16.msra.mxu3 %v8364_v17 }
  0x5a   :  { %8392 = vmatpush.bf16.msra.mxu3 %v8363_v20 }
  0x5e   :  { %8393 = vmatpush.bf16.msra.mxu3 %v8362_v23 }
  0x61   :  { %1282 = vmatmul.bf16.gmra.mxu0 %v8062_v39  ;;  %1822 = vmatmul.bf16.gmra.mxu3 %v8170_v40 }
  0x62   :  { %2077 = vmatmul.bf16.gmra.mxu1 %v8059_v28 }
  0x63   :  { %4023 = vmatmul.bf16.gmra.mxu2 %v8222_v41 }
  0x71   :  { %1287 = vmatmul.bf16.gmra.mxu0 %v8063_v42  ;;  %1827 = vmatmul.bf16.gmra.mxu3 %v8171_v43 }
  0x72   :  { %2082 = vmatmul.bf16.gmra.mxu1 %v8060_v32 }
  0x73   :  { %4028 = vmatmul.bf16.gmra.mxu2 %v8223_v44 }
  0x81   :  { %1292 = vmatmul.bf16.gmra.mxu0 %v8064_v45  ;;  %1832 = vmatmul.bf16.gmra.mxu3 %v8172_v46 }
  0x82   :  { %2087 = vmatmul.bf16.gmra.mxu1 %v8061_v36 }
  0x83   :  { %4033 = vmatmul.bf16.gmra.mxu2 %v8224_v47 }
  0x91   :  { %1297 = vmatmul.bf16.gmra.mxu0 %v8657_v48  ;;  %1837 = vmatmul.bf16.gmra.mxu3 %v8173_v49 }
  0x92   :  { %2092 = vmatmul.bf16.gmra.mxu1 %v8062_v39 }
  0x93   :  { %4038 = vmatmul.bf16.gmra.mxu2 %v8225_v50 }
  0x9e   :  { %v1263_v53 = vpop.f32.mrf.mxu0 }
  0x9f   :  { %v2058_v55 = vpop.f32.mrf.mxu1 }
  0xa0   :  { %v2059_v56 = vadd.f32 %v2058_v55, %v1263_v53  ;;  %v8732_v53 = vld [vmem:[%s11006_s0 + $0x70] sm:$0xff] }
  0xa1   :  { %1302 = vmatmul.bf16.gmra.mxu0 %v8669_v51  ;;  %1842 = vmatmul.bf16.gmra.mxu3 %v8174_v52 }
  0xa2   :  { %2097 = vmatmul.bf16.gmra.mxu1 %v8063_v42 }
  0xa3   :  { %4043 = vmatmul.bf16.gmra.mxu2 %v8226_v54  ;;  %v8177_v54 = vld [vmem:[%s11006_s0 + $0x3d0] sm:$0xff] }
  0xa4   :  { %v8678_v57 = vpop.f32.mrf.mxu3 }
  0xa6   :  { %v4004_v59 = vpop.f32.mrf.mxu2  ;;  %v1265_v61 = vpop.f32.mrf.mxu0 }
  0xa7   :  { %v4724_v60 = vadd.f32 %v4004_v59, %v2059_v56  ;;  %v2060_v62 = vpop.f32.mrf.mxu1  ;;  %v8229_v59 = vld [vmem:[%s11006_s0 + $0x88] sm:$0xff] }
  0xa8   :  { %v2061_v2 = vadd.f32 %v2060_v62, %v1265_v61 }
  0xa9   :  { %v5016_v63 = vadd.f32 %v8683_v58, %v4724_v60 }
  0xab   :  { %vm5304_vm0 = vcmp.ge.f32.partialorder %v5016_v63, 0.0  ;;  %v5592_v0 = vmul.f32 0.0, %v5016_v63 }
  0xac   :  { %v8686_v3 = vpop.f32.mrf.mxu3 }
  0xad   :  { %v5880_v1 = vsel %vm5304_vm0, %v5016_v63, %v5592_v0 }
  0xae   :  { %v6168_v4 = vpack.c.bf16 %v5880_v1, %v5880_v1  ;;  %v4006_v5 = vpop.f32.mrf.mxu2  ;;  %v1268_v9 = vpop.f32.mrf.mxu0 }
  0xaf   :  { %v4725_v8 = vadd.f32 %v4006_v5, %v2061_v2  ;;  %v2063_v11 = vpop.f32.mrf.mxu1 }
  0xb0   :  { %6457 = vst.msk [vmem:[#allocation2] sm:$0xf] %vm6456_vm1, %v6168_v4  ;;  %v2064_v14 = vadd.f32 %v2063_v11, %v1268_v9 }
  0xb1   :  { %v5017_v12 = vadd.f32 %v8683_v58, %v4725_v8  ;;  %1307 = vmatmul.bf16.gmra.mxu0 %v8691_v6  ;;  %1847 = vmatmul.bf16.gmra.mxu3 %v8175_v7 }
  0xb2   :  { %2102 = vmatmul.bf16.gmra.mxu1 %v8064_v45 }
  0xb3   :  { %vm5305_vm2 = vcmp.ge.f32.partialorder %v5017_v12, 0.0  ;;  %v5593_v13 = vmul.f32 0.0, %v5017_v12  ;;  %4048 = vmatmul.bf16.gmra.mxu2 %v8227_v10 }
  0xb4   :  { %v8702_v16 = vpop.f32.mrf.mxu3 }
  0xb5   :  { %v5881_v15 = vsel %vm5305_vm2, %v5017_v12, %v5593_v13 }
  0xb6   :  { %v6169_v17 = vpack.c.bf16 %v5881_v15, %v5881_v15  ;;  %v4009_v18 = vpop.f32.mrf.mxu2  ;;  %v1270_v20 = vpop.f32.mrf.mxu0  ;;  %v8753_v15 = vld [vmem:[%s11006_s0 + $0x78] sm:$0xff] }
  0xb7   :  { %v4726_v19 = vadd.f32 %v4009_v18, %v2064_v14  ;;  %v2065_v21 = vpop.f32.mrf.mxu1 }
  0xb8   :  { %6458 = vst.msk [vmem:[#allocation2 + $0x4] sm:$0xf] %vm6456_vm1, %v6169_v17  ;;  %v2066_v25 = vadd.f32 %v2065_v21, %v1270_v20  ;;  %v8178_v17 = vld [vmem:[%s11006_s0 + $0x3d8] sm:$0xff]  ;;  %v8230_v20 = vld [vmem:[%s11006_s0 + $0x90] sm:$0xff] }
  0xb9   :  { %v5018_v22 = vadd.f32 %v8683_v58, %v4726_v19 }
  0xbb   :  { %vm5306_vm3 = vcmp.ge.f32.partialorder %v5018_v22, 0.0  ;;  %v5594_v23 = vmul.f32 0.0, %v5018_v22 }
  0xbc   :  { %v8706_v26 = vpop.f32.mrf.mxu3 }
  0xbd   :  { %v5882_v24 = vsel %vm5306_vm3, %v5018_v22, %v5594_v23 }
  0xbe   :  { %v6170_v27 = vpack.c.bf16 %v5882_v24, %v5882_v24  ;;  %v4011_v28 = vpop.f32.mrf.mxu2  ;;  %v1273_v32 = vpop.f32.mrf.mxu0 }
  0xbf   :  { %v4727_v31 = vadd.f32 %v4011_v28, %v2066_v25  ;;  %v2068_v34 = vpop.f32.mrf.mxu1 }
  0xc0   :  { %6459 = vst.msk [vmem:[#allocation2 + $0x8] sm:$0xf] %vm6456_vm1, %v6170_v27  ;;  %v2069_v37 = vadd.f32 %v2068_v34, %v1273_v32 }
  0xc1   :  { %v5019_v35 = vadd.f32 %v8683_v58, %v4727_v31  ;;  %1312 = vmatmul.bf16.gmra.mxu0 %v8711_v29  ;;  %1852 = vmatmul.bf16.gmra.mxu3 %v8176_v30 }
  0xc2   :  { %2107 = vmatmul.bf16.gmra.mxu1 %v8657_v48 }
  0xc3   :  { %vm5307_vm4 = vcmp.ge.f32.partialorder %v5019_v35, 0.0  ;;  %v5595_v36 = vmul.f32 0.0, %v5019_v35  ;;  %4053 = vmatmul.bf16.gmra.mxu2 %v8228_v33 }
  0xc4   :  { %v8723_v39 = vpop.f32.mrf.mxu3 }
  0xc5   :  { %v5883_v38 = vsel %vm5307_vm4, %v5019_v35, %v5595_v36 }
  0xc6   :  { %v6171_v40 = vpack.c.bf16 %v5883_v38, %v5883_v38  ;;  %v4014_v41 = vpop.f32.mrf.mxu2  ;;  %v1275_v43 = vpop.f32.mrf.mxu0 }
  0xc7   :  { %v4728_v42 = vadd.f32 %v4014_v41, %v2069_v37  ;;  %v2070_v44 = vpop.f32.mrf.mxu1  ;;  %v8774_v41 = vld [vmem:[%s11006_s0 + $0x80] sm:$0xff] }
  0xc8   :  { %6460 = vst.msk [vmem:[#allocation2 + $0xc] sm:$0xf] %vm6456_vm1, %v6171_v40  ;;  %v2071_v49 = vadd.f32 %v2070_v44, %v1275_v43 }
  0xc9   :  { %v5020_v45 = vadd.f32 %v8683_v58, %v4728_v42  ;;  %v8179_v42 = vld [vmem:[%s11006_s0 + $0x3e0] sm:$0xff] }
  0xcb   :  { %vm5308_vm5 = vcmp.ge.f32.partialorder %v5020_v45, 0.0  ;;  %v5596_v46 = vmul.f32 0.0, %v5020_v45 }
  0xcc   :  { %v8727_v50 = vpop.f32.mrf.mxu3 }
  0xcd   :  { %v5884_v47 = vsel %vm5308_vm5, %v5020_v45, %v5596_v46  ;;  %v8231_v45 = vld [vmem:[%s11006_s0 + $0x98] sm:$0xff] }
  0xce   :  { %v6172_v48 = vpack.c.bf16 %v5884_v47, %v5884_v47  ;;  %v4016_v52 = vpop.f32.mrf.mxu2  ;;  %v1278_v56 = vpop.f32.mrf.mxu0 }
  0xcf   :  { %v4729_v55 = vadd.f32 %v4016_v52, %v2071_v49  ;;  %v2073_v60 = vpop.f32.mrf.mxu1 }
  0xd0   :  { %6461 = vst.msk [vmem:[#allocation2 + $0x10] sm:$0xf] %vm6456_vm1, %v6172_v48  ;;  %v2074_v63 = vadd.f32 %v2073_v60, %v1278_v56 }
  0xd1   :  { %v5021_v61 = vadd.f32 %v8683_v58, %v4729_v55  ;;  %1317 = vmatmul.bf16.gmra.mxu0 %v8732_v53  ;;  %1857 = vmatmul.bf16.gmra.mxu3 %v8177_v54 }
  0xd2   :  { %2112 = vmatmul.bf16.gmra.mxu1 %v8669_v51 }
  0xd3   :  { %vm5309_vm6 = vcmp.ge.f32.partialorder %v5021_v61, 0.0  ;;  %v5597_v62 = vmul.f32 0.0, %v5021_v61  ;;  %4058 = vmatmul.bf16.gmra.mxu2 %v8229_v59 }
  0xd4   :  { %v8744_v1 = vpop.f32.mrf.mxu3 }
  0xd5   :  { %v5885_v0 = vsel %vm5309_vm6, %v5021_v61, %v5597_v62 }
  0xd6   :  { %v6173_v2 = vpack.c.bf16 %v5885_v0, %v5885_v0  ;;  %v4019_v4 = vpop.f32.mrf.mxu2  ;;  %v1280_v7 = vpop.f32.mrf.mxu0 }
  0xd7   :  { %v4730_v5 = vadd.f32 %v4019_v4, %v2074_v63  ;;  %v2075_v8 = vpop.f32.mrf.mxu1 }
  0xd8   :  { %6462 = vst.msk [vmem:[#allocation2 + $0x14] sm:$0xf] %vm6456_vm1, %v6173_v2  ;;  %v2076_v12 = vadd.f32 %v2075_v8, %v1280_v7  ;;  %v8795_v7 = vld [vmem:[%s11006_s0 + $0x88] sm:$0xff] }
  0xd9   :  { %v5022_v9 = vadd.f32 %v8683_v58, %v4730_v5  ;;  %v8180_v8 = vld [vmem:[%s11006_s0 + $0x3e8] sm:$0xff] }
  0xdb   :  { %vm5310_vm7 = vcmp.ge.f32.partialorder %v5022_v9, 0.0  ;;  %v5598_v10 = vmul.f32 0.0, %v5022_v9 }
  0xdc   :  { %v8748_v13 = vpop.f32.mrf.mxu3 }
  0xdd   :  { %v5886_v11 = vsel %vm5310_vm7, %v5022_v9, %v5598_v10 }
  0xde   :  { %v6174_v51 = vpack.c.bf16 %v5886_v11, %v5886_v11  ;;  %v4021_v14 = vpop.f32.mrf.mxu2  ;;  %v1283_v19 = vpop.f32.mrf.mxu0  ;;  %v8232_v11 = vld [vmem:[%s11006_s0 + $0xa0] sm:$0xff] }
  0xdf   :  { %v4731_v18 = vadd.f32 %v4021_v14, %v2076_v12  ;;  %v2078_v21 = vpop.f32.mrf.mxu1 }
  0xe0   :  { %6463 = vst.msk [vmem:[#allocation2 + $0x18] sm:$0xf] %vm6456_vm1, %v6174_v51  ;;  %v2079_v24 = vadd.f32 %v2078_v21, %v1283_v19 }
  0xe1   :  { %v5023_v22 = vadd.f32 %v8683_v58, %v4731_v18  ;;  %1322 = vmatmul.bf16.gmra.mxu0 %v8753_v15  ;;  %1862 = vmatmul.bf16.gmra.mxu3 %v8178_v17 }
  0xe2   :  { %2117 = vmatmul.bf16.gmra.mxu1 %v8691_v6 }
  0xe3   :  { %vm5311_vm8 = vcmp.ge.f32.partialorder %v5023_v22, 0.0  ;;  %v5599_v23 = vmul.f32 0.0, %v5023_v22  ;;  %4063 = vmatmul.bf16.gmra.mxu2 %v8230_v20 }
  0xe4   :  { %v8765_v27 = vpop.f32.mrf.mxu3 }
  0xe5   :  { %v5887_v25 = vsel %vm5311_vm8, %v5023_v22, %v5599_v23 }
  0xe6   :  { %v6175_v28 = vpack.c.bf16 %v5887_v25, %v5887_v25  ;;  %v4024_v30 = vpop.f32.mrf.mxu2  ;;  %v1285_v32 = vpop.f32.mrf.mxu0 }
  0xe7   :  { %v4732_v31 = vadd.f32 %v4024_v30, %v2079_v24  ;;  %v2080_v33 = vpop.f32.mrf.mxu1 }
  0xe8   :  { %6464 = vst.msk [vmem:[#allocation2 + $0x1c] sm:$0xf] %vm6456_vm1, %v6175_v28  ;;  %v2081_v37 = vadd.f32 %v2080_v33, %v1285_v32 }
  0xe9   :  { %v5024_v34 = vadd.f32 %v8683_v58, %v4732_v31 }
  0xeb   :  { %vm5312_vm9 = vcmp.ge.f32.partialorder %v5024_v34, 0.0  ;;  %v5600_v35 = vmul.f32 0.0, %v5024_v34 }
  0xec   :  { %v8769_v38 = vpop.f32.mrf.mxu3 }
  0xed   :  { %v5888_v36 = vsel %vm5312_vm9, %v5024_v34, %v5600_v35  ;;  %v8816_v34 = vld [vmem:[%s11006_s0 + $0x90] sm:$0xff] }
  0xee   :  { %v6176_v6 = vpack.c.bf16 %v5888_v36, %v5888_v36  ;;  %v4026_v40 = vpop.f32.mrf.mxu2  ;;  %v1288_v44 = vpop.f32.mrf.mxu0  ;;  %v8181_v35 = vld [vmem:[%s11006_s0 + $0x3f0] sm:$0xff] }
  0xef   :  { %v4733_v43 = vadd.f32 %v4026_v40, %v2081_v37  ;;  %v2083_v46 = vpop.f32.mrf.mxu1 }
  0xf0   :  { %6465 = vst.msk [vmem:[#allocation2 + $0x20] sm:$0xf] %vm6456_vm1, %v6176_v6  ;;  %v2084_v48 = vadd.f32 %v2083_v46, %v1288_v44  ;;  %v8233_v6 = vld [vmem:[%s11006_s0 + $0xa8] sm:$0xff] }
  0xf1   :  { %v5025_v47 = vadd.f32 %v8683_v58, %v4733_v43  ;;  %1327 = vmatmul.bf16.gmra.mxu0 %v8774_v41  ;;  %1867 = vmatmul.bf16.gmra.mxu3 %v8179_v42 }
  0xf2   :  { %2122 = vmatmul.bf16.gmra.mxu1 %v8711_v29 }
  0xf3   :  { %vm5313_vm10 = vcmp.ge.f32.partialorder %v5025_v47, 0.0  ;;  %v5601_v49 = vmul.f32 0.0, %v5025_v47  ;;  %4068 = vmatmul.bf16.gmra.mxu2 %v8231_v45 }
  0xf4   :  { %v8786_v54 = vpop.f32.mrf.mxu3 }
  0xf5   :  { %v5889_v52 = vsel %vm5313_vm10, %v5025_v47, %v5601_v49 }
  0xf6   :  { %v6177_v55 = vpack.c.bf16 %v5889_v52, %v5889_v52  ;;  %v4029_v56 = vpop.f32.mrf.mxu2  ;;  %v1290_v60 = vpop.f32.mrf.mxu0 }
  0xf7   :  { %v4734_v59 = vadd.f32 %v4029_v56, %v2084_v48  ;;  %v2085_v61 = vpop.f32.mrf.mxu1 }
  0xf8   :  { %6466 = vst.msk [vmem:[#allocation2 + $0x24] sm:$0xf] %vm6456_vm1, %v6177_v55  ;;  %v2086_v2 = vadd.f32 %v2085_v61, %v1290_v60 }
  0xf9   :  { %v5026_v62 = vadd.f32 %v8683_v58, %v4734_v59 }
  0xfb   :  { %vm5314_vm11 = vcmp.ge.f32.partialorder %v5026_v62, 0.0  ;;  %v5602_v63 = vmul.f32 0.0, %v5026_v62 }
  0xfc   :  { %v8790_v4 = vpop.f32.mrf.mxu3 }
  0xfd   :  { %v5890_v0 = vsel %vm5314_vm11, %v5026_v62, %v5602_v63 }
  0xfe   :  { %v6178_v29 = vpack.c.bf16 %v5890_v0, %v5890_v0  ;;  %v4031_v5 = vpop.f32.mrf.mxu2  ;;  %v1293_v10 = vpop.f32.mrf.mxu0  ;;  %v8837_v0 = vld [vmem:[%s11006_s0 + $0x98] sm:$0xff] }
  0xff   :  { %v4735_v9 = vadd.f32 %v4031_v5, %v2086_v2  ;;  %v2088_v12 = vpop.f32.mrf.mxu1  ;;  %v8182_v2 = vld [vmem:[%s11006_s0 + $0x3f8] sm:$0xff] }
 0x100   :  { %6467 = vst.msk [vmem:[#allocation2 + $0x28] sm:$0xf] %vm6456_vm1, %v6178_v29  ;;  %v2089_v17 = vadd.f32 %v2088_v12, %v1293_v10 }
 0x101   :  { %v5027_v51 = vadd.f32 %v8683_v58, %v4735_v9  ;;  %1332 = vmatmul.bf16.gmra.mxu0 %v8795_v7  ;;  %1872 = vmatmul.bf16.gmra.mxu3 %v8180_v8  ;;  %v8234_v8 = vld [vmem:[%s11006_s0 + $0xb0] sm:$0xff] }
 0x102   :  { %2127 = vmatmul.bf16.gmra.mxu1 %v8732_v53 }
 0x103   :  { %vm5315_vm12 = vcmp.ge.f32.partialorder %v5027_v51, 0.0  ;;  %v5603_v14 = vmul.f32 0.0, %v5027_v51  ;;  %4073 = vmatmul.bf16.gmra.mxu2 %v8232_v11 }
 0x104   :  { %v8807_v19 = vpop.f32.mrf.mxu3 }
 0x105   :  { %v5891_v18 = vsel %vm5315_vm12, %v5027_v51, %v5603_v14 }
 0x106   :  { %v6179_v20 = vpack.c.bf16 %v5891_v18, %v5891_v18  ;;  %v4034_v21 = vpop.f32.mrf.mxu2  ;;  %v1295_v23 = vpop.f32.mrf.mxu0 }
 0x107   :  { %v4736_v22 = vadd.f32 %v4034_v21, %v2089_v17  ;;  %v2090_v24 = vpop.f32.mrf.mxu1 }
 0x108   :  { %6468 = vst.msk [vmem:[#allocation2 + $0x2c] sm:$0xf] %vm6456_vm1, %v6179_v20  ;;  %v2091_v31 = vadd.f32 %v2090_v24, %v1295_v23 }
 0x109   :  { %v5028_v25 = vadd.f32 %v8683_v58, %v4736_v22 }
 0x10b   :  { %vm5316_vm13 = vcmp.ge.f32.partialorder %v5028_v25, 0.0  ;;  %v5604_v28 = vmul.f32 0.0, %v5028_v25 }
 0x10c   :  { %v8811_v32 = vpop.f32.mrf.mxu3 }
 0x10d   :  { %v5892_v30 = vsel %vm5316_vm13, %v5028_v25, %v5604_v28 }
 0x10e   :  { %v6180_v53 = vpack.c.bf16 %v5892_v30, %v5892_v30  ;;  %v4036_v33 = vpop.f32.mrf.mxu2  ;;  %v1298_v37 = vpop.f32.mrf.mxu0 }
 0x10f   :  { %v4737_v36 = vadd.f32 %v4036_v33, %v2091_v31  ;;  %v2093_v40 = vpop.f32.mrf.mxu1  ;;  %v8183_v33 = vld [vmem:[%s11006_s0 + $0x400] sm:$0xff] }
 0x110   :  { %6469 = vst.msk [vmem:[#allocation2 + $0x30] sm:$0xf] %vm6456_vm1, %v6180_v53  ;;  %v2094_v44 = vadd.f32 %v2093_v40, %v1298_v37  ;;  %v8858_v53 = vld [vmem:[%s11006_s0 + $0xa0] sm:$0xff]  ;;  %v8235_v37 = vld [vmem:[%s11006_s0 + $0xb8] sm:$0xff] }
 0x111   :  { %v5029_v42 = vadd.f32 %v8683_v58, %v4737_v36  ;;  %1337 = vmatmul.bf16.gmra.mxu0 %v8816_v34  ;;  %1877 = vmatmul.bf16.gmra.mxu3 %v8181_v35 }
 0x112   :  { %2132 = vmatmul.bf16.gmra.mxu1 %v8753_v15 }
 0x113   :  { %vm5317_vm14 = vcmp.ge.f32.partialorder %v5029_v42, 0.0  ;;  %v5605_v43 = vmul.f32 0.0, %v5029_v42  ;;  %4078 = vmatmul.bf16.gmra.mxu2 %v8233_v6 }
 0x114   :  { %v8828_v46 = vpop.f32.mrf.mxu3 }
 0x115   :  { %v5893_v45 = vsel %vm5317_vm14, %v5029_v42, %v5605_v43 }
 0x116   :  { %v6181_v47 = vpack.c.bf16 %v5893_v45, %v5893_v45  ;;  %v4039_v49 = vpop.f32.mrf.mxu2  ;;  %v1300_v52 = vpop.f32.mrf.mxu0 }
 0x117   :  { %v4738_v48 = vadd.f32 %v4039_v49, %v2094_v44  ;;  %v2095_v55 = vpop.f32.mrf.mxu1 }
 0x118   :  { %6470 = vst.msk [vmem:[#allocation2 + $0x34] sm:$0xf] %vm6456_vm1, %v6181_v47  ;;  %v2096_v61 = vadd.f32 %v2095_v55, %v1300_v52 }
 0x119   :  { %v5030_v56 = vadd.f32 %v8683_v58, %v4738_v48 }
 0x11b   :  { %vm5318_vm15 = vcmp.ge.f32.partialorder %v5030_v56, 0.0  ;;  %v5606_v59 = vmul.f32 0.0, %v5030_v56 }
 0x11c   :  { %v8832_v62 = vpop.f32.mrf.mxu3 }
 0x11d   :  { %v5894_v60 = vsel %vm5318_vm15, %v5030_v56, %v5606_v59 }
 0x11e   :  { %v6182_v15 = vpack.c.bf16 %v5894_v60, %v5894_v60  ;;  %v4041_v63 = vpop.f32.mrf.mxu2  ;;  %v1303_v5 = vpop.f32.mrf.mxu0 }
 0x11f   :  { %v4739_v29 = vadd.f32 %v4041_v63, %v2096_v61  ;;  %v2098_v9 = vpop.f32.mrf.mxu1 }
 0x120   :  { %6471 = vst.msk [vmem:[#allocation2 + $0x38] sm:$0xf] %vm6456_vm1, %v6182_v15  ;;  %v2099_v12 = vadd.f32 %v2098_v9, %v1303_v5  ;;  %v8236_v9 = vld [vmem:[%s11006_s0 + $0xc0] sm:$0xff] }
 0x121   :  { %v5031_v10 = vadd.f32 %v8683_v58, %v4739_v29  ;;  %1342 = vmatmul.bf16.gmra.mxu0 %v8837_v0  ;;  %1882 = vmatmul.bf16.gmra.mxu3 %v8182_v2  ;;  %v8879_v2 = vld [vmem:[%s11006_s0 + $0xa8] sm:$0xff] }
 0x122   :  { %2137 = vmatmul.bf16.gmra.mxu1 %v8774_v41  ;;  %v8184_v29 = vld [vmem:[%s11006_s0 + $0x408] sm:$0xff] }
 0x123   :  { %vm5319_vm0 = vcmp.ge.f32.partialorder %v5031_v10, 0.0  ;;  %v5607_v11 = vmul.f32 0.0, %v5031_v10  ;;  %4083 = vmatmul.bf16.gmra.mxu2 %v8234_v8 }
 0x124   :  { %v8849_v14 = vpop.f32.mrf.mxu3 }
 0x125   :  { %v5895_v51 = vsel %vm5319_vm0, %v5031_v10, %v5607_v11 }
 0x126   :  { %v6183_v17 = vpack.c.bf16 %v5895_v51, %v5895_v51  ;;  %v4044_v18 = vpop.f32.mrf.mxu2  ;;  %v1305_v21 = vpop.f32.mrf.mxu0 }
 0x127   :  { %v4740_v20 = vadd.f32 %v4044_v18, %v2099_v12  ;;  %v2100_v22 = vpop.f32.mrf.mxu1 }
 0x128   :  { %6472 = vst.msk [vmem:[#allocation2 + $0x3c] sm:$0xf] %vm6456_vm1, %v6183_v17  ;;  %v2101_v28 = vadd.f32 %v2100_v22, %v1305_v21 }
 0x129   :  { %v5032_v23 = vadd.f32 %v8683_v58, %v4740_v20 }
 0x12b   :  { %vm5320_vm2 = vcmp.ge.f32.partialorder %v5032_v23, 0.0  ;;  %v5608_v24 = vmul.f32 0.0, %v5032_v23 }
 0x12c   :  { %v8853_v30 = vpop.f32.mrf.mxu3 }
 0x12d   :  { %v5896_v25 = vsel %vm5320_vm2, %v5032_v23, %v5608_v24 }
 0x12e   :  { %v6184_v41 = vpack.c.bf16 %v5896_v25, %v5896_v25  ;;  %v4046_v31 = vpop.f32.mrf.mxu2  ;;  %v1308_v36 = vpop.f32.mrf.mxu0 }
 0x12f   :  { %v4741_v35 = vadd.f32 %v4046_v31, %v2101_v28  ;;  %v2103_v6 = vpop.f32.mrf.mxu1 }
 0x130   :  { %6473 = vst.msk [vmem:[#allocation2 + $0x40] sm:$0xf] %vm6456_vm1, %v6184_v41  ;;  %v2104_v43 = vadd.f32 %v2103_v6, %v1308_v36  ;;  %v8900_v36 = vld [vmem:[%s11006_s0 + $0xb0] sm:$0xff] }
 0x131   :  { %v5033_v40 = vadd.f32 %v8683_v58, %v4741_v35  ;;  %1347 = vmatmul.bf16.gmra.mxu0 %v8858_v53  ;;  %1887 = vmatmul.bf16.gmra.mxu3 %v8183_v33 }
 0x132   :  { %2142 = vmatmul.bf16.gmra.mxu1 %v8795_v7 }
 0x133   :  { %vm5321_vm3 = vcmp.ge.f32.partialorder %v5033_v40, 0.0  ;;  %v5609_v42 = vmul.f32 0.0, %v5033_v40  ;;  %4088 = vmatmul.bf16.gmra.mxu2 %v8235_v37  ;;  %v8185_v37 = vld [vmem:[%s11006_s0 + $0x410] sm:$0xff] }
 0x134   :  { %v8870_v45 = vpop.f32.mrf.mxu3 }
 0x135   :  { %v5897_v44 = vsel %vm5321_vm3, %v5033_v40, %v5609_v42  ;;  %v8237_v42 = vld [vmem:[%s11006_s0 + $0xc8] sm:$0xff] }
 0x136   :  { %v6185_v47 = vpack.c.bf16 %v5897_v44, %v5897_v44  ;;  %v4049_v49 = vpop.f32.mrf.mxu2  ;;  %v1310_v52 = vpop.f32.mrf.mxu0 }
 0x137   :  { %v4742_v48 = vadd.f32 %v4049_v49, %v2104_v43  ;;  %v2105_v55 = vpop.f32.mrf.mxu1 }
 0x138   :  { %6474 = vst.msk [vmem:[#allocation2 + $0x44] sm:$0xf] %vm6456_vm1, %v6185_v47  ;;  %v2106_v61 = vadd.f32 %v2105_v55, %v1310_v52 }
 0x139   :  { %v5034_v56 = vadd.f32 %v8683_v58, %v4742_v48 }
 0x13b   :  { %vm5322_vm4 = vcmp.ge.f32.partialorder %v5034_v56, 0.0  ;;  %v5610_v59 = vmul.f32 0.0, %v5034_v56 }
 0x13c   :  { %v8874_v15 = vpop.f32.mrf.mxu3 }
 0x13d   :  { %v5898_v60 = vsel %vm5322_vm4, %v5034_v56, %v5610_v59 }
 0x13e   :  { %v6186_v7 = vpack.c.bf16 %v5898_v60, %v5898_v60  ;;  %v4051_v63 = vpop.f32.mrf.mxu2  ;;  %v1313_v8 = vpop.f32.mrf.mxu0 }
 0x13f   :  { %v4743_v5 = vadd.f32 %v4051_v63, %v2106_v61  ;;  %v2108_v10 = vpop.f32.mrf.mxu1 }
 0x140   :  { %6475 = vst.msk [vmem:[#allocation2 + $0x48] sm:$0xf] %vm6456_vm1, %v6186_v7  ;;  %v2109_v51 = vadd.f32 %v2108_v10, %v1313_v8  ;;  %v8921_v10 = vld [vmem:[%s11006_s0 + $0xb8] sm:$0xff] }
 0x141   :  { %v5035_v11 = vadd.f32 %v8683_v58, %v4743_v5  ;;  %1352 = vmatmul.bf16.gmra.mxu0 %v8879_v2  ;;  %1892 = vmatmul.bf16.gmra.mxu3 %v8184_v29 }
 0x142   :  { %2147 = vmatmul.bf16.gmra.mxu1 %v8816_v34 }
 0x143   :  { %vm5323_vm5 = vcmp.ge.f32.partialorder %v5035_v11, 0.0  ;;  %v5611_v12 = vmul.f32 0.0, %v5035_v11  ;;  %4093 = vmatmul.bf16.gmra.mxu2 %v8236_v9 }
 0x144   :  { %v8891_v18 = vpop.f32.mrf.mxu3 }
 0x145   :  { %v5899_v17 = vsel %vm5323_vm5, %v5035_v11, %v5611_v12  ;;  %v8186_v11 = vld [vmem:[%s11006_s0 + $0x418] sm:$0xff] }
 0x146   :  { %v6187_v20 = vpack.c.bf16 %v5899_v17, %v5899_v17  ;;  %v4054_v21 = vpop.f32.mrf.mxu2  ;;  %v1315_v23 = vpop.f32.mrf.mxu0  ;;  %v8238_v17 = vld [vmem:[%s11006_s0 + $0xd0] sm:$0xff] }
 0x147   :  { %v4744_v22 = vadd.f32 %v4054_v21, %v2109_v51  ;;  %v2110_v24 = vpop.f32.mrf.mxu1 }
 0x148   :  { %6476 = vst.msk [vmem:[#allocation2 + $0x4c] sm:$0xf] %vm6456_vm1, %v6187_v20  ;;  %v2111_v31 = vadd.f32 %v2110_v24, %v1315_v23 }
 0x149   :  { %v5036_v25 = vadd.f32 %v8683_v58, %v4744_v22 }
 0x14b   :  { %vm5324_vm6 = vcmp.ge.f32.partialorder %v5036_v25, 0.0  ;;  %v5612_v28 = vmul.f32 0.0, %v5036_v25 }
 0x14c   :  { %v8895_v33 = vpop.f32.mrf.mxu3 }
 0x14d   :  { %v5900_v41 = vsel %vm5324_vm6, %v5036_v25, %v5612_v28  ;;  %11010 = vst [vmem:[#allocation5_spill] sm:$0xff] %v8895_v33 }
 0x14e   :  { %v6188_v34 = vpack.c.bf16 %v5900_v41, %v5900_v41  ;;  %v4056_v35 = vpop.f32.mrf.mxu2  ;;  %v1318_v40 = vpop.f32.mrf.mxu0 }
 0x14f   :  { %v4745_v6 = vadd.f32 %v4056_v35, %v2111_v31  ;;  %v2113_v43 = vpop.f32.mrf.mxu1 }
 0x150   :  { %6477 = vst.msk [vmem:[#allocation2 + $0x50] sm:$0xf] %vm6456_vm1, %v6188_v34  ;;  %v2114_v49 = vadd.f32 %v2113_v43, %v1318_v40 }
 0x151   :  { %v5037_v44 = vadd.f32 %v8683_v58, %v4745_v6  ;;  %1357 = vmatmul.bf16.gmra.mxu0 %v8900_v36  ;;  %1897 = vmatmul.bf16.gmra.mxu3 %v8185_v37 }
 0x152   :  { %2152 = vmatmul.bf16.gmra.mxu1 %v8837_v0 }
 0x153   :  { %vm5325_vm7 = vcmp.ge.f32.partialorder %v5037_v44, 0.0  ;;  %v5613_v47 = vmul.f32 0.0, %v5037_v44  ;;  %4098 = vmatmul.bf16.gmra.mxu2 %v8237_v42 }
 0x154   :  { %v8912_v52 = vpop.f32.mrf.mxu3 }
 0x155   :  { %v5901_v48 = vsel %vm5325_vm7, %v5037_v44, %v5613_v47  ;;  %11011 = vst [vmem:[#allocation6_spill] sm:$0xff] %v8912_v52  ;;  %v8942_v47 = vld [vmem:[%s11006_s0 + $0xc0] sm:$0xff] }
 0x156   :  { %v6189_v55 = vpack.c.bf16 %v5901_v48, %v5901_v48  ;;  %v4059_v56 = vpop.f32.mrf.mxu2  ;;  %v1320_v60 = vpop.f32.mrf.mxu0 }
 0x157   :  { %v4746_v59 = vadd.f32 %v4059_v56, %v2114_v49  ;;  %v2115_v61 = vpop.f32.mrf.mxu1  ;;  %v8187_v49 = vld [vmem:[%s11006_s0 + $0x420] sm:$0xff]  ;;  %v8239_v56 = vld [vmem:[%s11006_s0 + $0xd8] sm:$0xff] }
 0x158   :  { %6478 = vst.msk [vmem:[#allocation2 + $0x54] sm:$0xf] %vm6456_vm1, %v6189_v55  ;;  %v2116_v5 = vadd.f32 %v2115_v61, %v1320_v60 }
 0x159   :  { %v5038_v7 = vadd.f32 %v8683_v58, %v4746_v59 }
 0x15b   :  { %vm5326_vm8 = vcmp.ge.f32.partialorder %v5038_v7, 0.0  ;;  %v5614_v63 = vmul.f32 0.0, %v5038_v7 }
 0x15c   :  { %v8916_v8 = vpop.f32.mrf.mxu3 }
 0x15d   :  { %v5902_v29 = vsel %vm5326_vm8, %v5038_v7, %v5614_v63  ;;  %11012 = vst [vmem:[#allocation7_spill] sm:$0xff] %v8916_v8 }
 0x15e   :  { %v6190_v0 = vpack.c.bf16 %v5902_v29, %v5902_v29  ;;  %v4061_v9 = vpop.f32.mrf.mxu2  ;;  %v1323_v51 = vpop.f32.mrf.mxu0 }
 0x15f   :  { %v4747_v12 = vadd.f32 %v4061_v9, %v2116_v5  ;;  %v2118_v20 = vpop.f32.mrf.mxu1 }
 0x160   :  { %6479 = vst.msk [vmem:[#allocation2 + $0x58] sm:$0xf] %vm6456_vm1, %v6190_v0  ;;  %v2119_v23 = vadd.f32 %v2118_v20, %v1323_v51 }
 0x161   :  { %v5039_v21 = vadd.f32 %v8683_v58, %v4747_v12  ;;  %1362 = vmatmul.bf16.gmra.mxu0 %v8921_v10  ;;  %1902 = vmatmul.bf16.gmra.mxu3 %v8186_v11 }
 0x162   :  { %2157 = vmatmul.bf16.gmra.mxu1 %v8858_v53 }
 0x163   :  { %vm5327_vm9 = vcmp.ge.f32.partialorder %v5039_v21, 0.0  ;;  %v5615_v22 = vmul.f32 0.0, %v5039_v21  ;;  %4103 = vmatmul.bf16.gmra.mxu2 %v8238_v17 }
 0x164   :  { %v8933_v25 = vpop.f32.mrf.mxu3 }
 0x165   :  { %v5903_v24 = vsel %vm5327_vm9, %v5039_v21, %v5615_v22  ;;  %11013 = vst [vmem:[#allocation8_spill] sm:$0xff] %v8933_v25 }
 0x166   :  { %v6191_v28 = vpack.c.bf16 %v5903_v24, %v5903_v24  ;;  %v4064_v41 = vpop.f32.mrf.mxu2  ;;  %v1325_v34 = vpop.f32.mrf.mxu0  ;;  %v8963_v24 = vld [vmem:[%s11006_s0 + $0xc8] sm:$0xff] }
 0x167   :  { %v4748_v31 = vadd.f32 %v4064_v41, %v2119_v23  ;;  %v2120_v35 = vpop.f32.mrf.mxu1 }
 0x168   :  { %6480 = vst.msk [vmem:[#allocation2 + $0x5c] sm:$0xf] %vm6456_vm1, %v6191_v28  ;;  %v2121_v42 = vadd.f32 %v2120_v35, %v1325_v34  ;;  %v8188_v28 = vld [vmem:[%s11006_s0 + $0x428] sm:$0xff]  ;;  %v8240_v34 = vld [vmem:[%s11006_s0 + $0xe0] sm:$0xff] }
 0x169   :  { %v5040_v37 = vadd.f32 %v8683_v58, %v4748_v31 }
 0x16b   :  { %vm5328_vm10 = vcmp.ge.f32.partialorder %v5040_v37, 0.0  ;;  %v5616_v6 = vmul.f32 0.0, %v5040_v37 }
 0x16c   :  { %v8937_v43 = vpop.f32.mrf.mxu3 }
 0x16d   :  { %v5904_v40 = vsel %vm5328_vm10, %v5040_v37, %v5616_v6  ;;  %11014 = vst [vmem:[#allocation9_spill] sm:$0xff] %v8937_v43 }
 0x16e   :  { %v6192_v53 = vpack.c.bf16 %v5904_v40, %v5904_v40  ;;  %v4066_v44 = vpop.f32.mrf.mxu2  ;;  %v1328_v55 = vpop.f32.mrf.mxu0 }
 0x16f   :  { %v4749_v48 = vadd.f32 %v4066_v44, %v2121_v42  ;;  %v2123_v59 = vpop.f32.mrf.mxu1 }
 0x170   :  { %6481 = vst.msk [vmem:[#allocation2 + $0x60] sm:$0xf] %vm6456_vm1, %v6192_v53  ;;  %v2124_v7 = vadd.f32 %v2123_v59, %v1328_v55 }
 0x171   :  { %v5041_v60 = vadd.f32 %v8683_v58, %v4749_v48  ;;  %1367 = vmatmul.bf16.gmra.mxu0 %v8942_v47  ;;  %1907 = vmatmul.bf16.gmra.mxu3 %v8187_v49 }
 0x172   :  { %2162 = vmatmul.bf16.gmra.mxu1 %v8879_v2 }
 0x173   :  { %vm5329_vm11 = vcmp.ge.f32.partialorder %v5041_v60, 0.0  ;;  %v5617_v61 = vmul.f32 0.0, %v5041_v60  ;;  %4108 = vmatmul.bf16.gmra.mxu2 %v8239_v56 }
 0x174   :  { %v8954_v29 = vpop.f32.mrf.mxu3 }
 0x175   :  { %v5905_v63 = vsel %vm5329_vm11, %v5041_v60, %v5617_v61  ;;  %11015 = vst [vmem:[#allocation10_spill] sm:$0xff] %v8954_v29 }
 0x176   :  { %v6193_v5 = vpack.c.bf16 %v5905_v63, %v5905_v63  ;;  %v4069_v0 = vpop.f32.mrf.mxu2  ;;  %v1330_v11 = vpop.f32.mrf.mxu0 }
 0x177   :  { %v4750_v9 = vadd.f32 %v4069_v0, %v2124_v7  ;;  %v2125_v12 = vpop.f32.mrf.mxu1  ;;  %v8984_v0 = vld [vmem:[%s11006_s0 + $0xd0] sm:$0xff] }
 0x178   :  { %6482 = vst.msk [vmem:[#allocation2 + $0x64] sm:$0xf] %vm6456_vm1, %v6193_v5  ;;  %v2126_v21 = vadd.f32 %v2125_v12, %v1330_v11 }
 0x179   :  { %v5042_v51 = vadd.f32 %v8683_v58, %v4750_v9  ;;  %v8189_v9 = vld [vmem:[%s11006_s0 + $0x430] sm:$0xff] }
 0x17b   :  { %vm5330_vm12 = vcmp.ge.f32.partialorder %v5042_v51, 0.0  ;;  %v5618_v17 = vmul.f32 0.0, %v5042_v51 }
 0x17c   :  { %v8958_v22 = vpop.f32.mrf.mxu3 }
 0x17d   :  { %v5906_v20 = vsel %vm5330_vm12, %v5042_v51, %v5618_v17  ;;  %11016 = vst [vmem:[#allocation11_spill] sm:$0xff] %v8958_v22  ;;  %v8241_v51 = vld [vmem:[%s11006_s0 + $0xe8] sm:$0xff] }
 0x17e   :  { %v6194_v2 = vpack.c.bf16 %v5906_v20, %v5906_v20  ;;  %v4071_v23 = vpop.f32.mrf.mxu2  ;;  %v1333_v31 = vpop.f32.mrf.mxu0 }
 0x17f   :  { %v4751_v41 = vadd.f32 %v4071_v23, %v2126_v21  ;;  %v2128_v35 = vpop.f32.mrf.mxu1 }
 0x180   :  { %6483 = vst.msk [vmem:[#allocation2 + $0x68] sm:$0xf] %vm6456_vm1, %v6194_v2  ;;  %v2129_v40 = vadd.f32 %v2128_v35, %v1333_v31 }
 0x181   :  { %v5043_v37 = vadd.f32 %v8683_v58, %v4751_v41  ;;  %1372 = vmatmul.bf16.gmra.mxu0 %v8963_v24  ;;  %1912 = vmatmul.bf16.gmra.mxu3 %v8188_v28 }
 0x182   :  { %2167 = vmatmul.bf16.gmra.mxu1 %v8900_v36 }
 0x183   :  { %vm5331_vm13 = vcmp.ge.f32.partialorder %v5043_v37, 0.0  ;;  %v5619_v6 = vmul.f32 0.0, %v5043_v37  ;;  %4113 = vmatmul.bf16.gmra.mxu2 %v8240_v34 }
 0x184   :  { %v8975_v53 = vpop.f32.mrf.mxu3 }
 0x185   :  { %v5907_v42 = vsel %vm5331_vm13, %v5043_v37, %v5619_v6  ;;  %11017 = vst [vmem:[#allocation12_spill] sm:$0xff] %v8975_v53 }
 0x186   :  { %v6195_v44 = vpack.c.bf16 %v5907_v42, %v5907_v42  ;;  %v4074_v49 = vpop.f32.mrf.mxu2  ;;  %v1335_v55 = vpop.f32.mrf.mxu0 }
 0x187   :  { %v4752_v48 = vadd.f32 %v4074_v49, %v2129_v40  ;;  %v2130_v56 = vpop.f32.mrf.mxu1 }
 0x188   :  { %6484 = vst.msk [vmem:[#allocation2 + $0x6c] sm:$0xf] %vm6456_vm1, %v6195_v44  ;;  %v2131_v7 = vadd.f32 %v2130_v56, %v1335_v55  ;;  %v9005_v55 = vld [vmem:[%s11006_s0 + $0xd8] sm:$0xff] }
 0x189   :  { %v5044_v59 = vadd.f32 %v8683_v58, %v4752_v48  ;;  %v8190_v56 = vld [vmem:[%s11006_s0 + $0x438] sm:$0xff] }
 0x18b   :  { %vm5332_vm14 = vcmp.ge.f32.partialorder %v5044_v59, 0.0  ;;  %v5620_v60 = vmul.f32 0.0, %v5044_v59 }
 0x18c   :  { %v8979_v63 = vpop.f32.mrf.mxu3 }
 0x18d   :  { %v5908_v61 = vsel %vm5332_vm14, %v5044_v59, %v5620_v60  ;;  %11018 = vst [vmem:[#allocation13_spill] sm:$0xff] %v8979_v63 }
 0x18e   :  { %v6196_v36 = vpack.c.bf16 %v5908_v61, %v5908_v61  ;;  %v4076_v5 = vpop.f32.mrf.mxu2  ;;  %v1338_v12 = vpop.f32.mrf.mxu0  ;;  %v8242_v61 = vld [vmem:[%s11006_s0 + $0xf0] sm:$0xff] }
 0x18f   :  { %v4753_v11 = vadd.f32 %v4076_v5, %v2131_v7  ;;  %v2133_v17 = vpop.f32.mrf.mxu1 }
 0x190   :  { %6485 = vst.msk [vmem:[#allocation2 + $0x70] sm:$0xf] %vm6456_vm1, %v6196_v36  ;;  %v2134_v2 = vadd.f32 %v2133_v17, %v1338_v12 }
 0x191   :  { %v5045_v20 = vadd.f32 %v8683_v58, %v4753_v11  ;;  %1377 = vmatmul.bf16.gmra.mxu0 %v8984_v0  ;;  %1917 = vmatmul.bf16.gmra.mxu3 %v8189_v9 }
 0x192   :  { %2172 = vmatmul.bf16.gmra.mxu1 %v8921_v10 }
 0x193   :  { %vm5333_vm15 = vcmp.ge.f32.partialorder %v5045_v20, 0.0  ;;  %v5621_v21 = vmul.f32 0.0, %v5045_v20  ;;  %4118 = vmatmul.bf16.gmra.mxu2 %v8241_v51 }
 0x194   :  { %v8996_v28 = vpop.f32.mrf.mxu3 }
 0x195   :  { %v5909_v23 = vsel %vm5333_vm15, %v5045_v20, %v5621_v21  ;;  %11019 = vst [vmem:[#allocation14_spill] sm:$0xff] %v8996_v28 }
 0x196   :  { %v6197_v41 = vpack.c.bf16 %v5909_v23, %v5909_v23  ;;  %v4079_v31 = vpop.f32.mrf.mxu2  ;;  %v1340_v35 = vpop.f32.mrf.mxu0 }
 0x197   :  { %v4754_v34 = vadd.f32 %v4079_v31, %v2134_v2  ;;  %v2135_v37 = vpop.f32.mrf.mxu1 }
 0x198   :  { %6486 = vst.msk [vmem:[#allocation2 + $0x74] sm:$0xf] %vm6456_vm1, %v6197_v41  ;;  %v2136_v44 = vadd.f32 %v2135_v37, %v1340_v35 }
 0x199   :  { %v5046_v6 = vadd.f32 %v8683_v58, %v4754_v34 }
 0x19b   :  { %vm5334_vm0 = vcmp.ge.f32.partialorder %v5046_v6, 0.0  ;;  %v5622_v40 = vmul.f32 0.0, %v5046_v6 }
 0x19c   :  { %v9000_v49 = vpop.f32.mrf.mxu3 }
 0x19d   :  { %v5910_v42 = vsel %vm5334_vm0, %v5046_v6, %v5622_v40  ;;  %11020 = vst [vmem:[#allocation15_spill] sm:$0xff] %v9000_v49  ;;  %v9026_v6 = vld [vmem:[%s11006_s0 + $0xe0] sm:$0xff] }
 0x19e   :  { %v6198_v10 = vpack.c.bf16 %v5910_v42, %v5910_v42  ;;  %v4081_v48 = vpop.f32.mrf.mxu2  ;;  %v1343_v60 = vpop.f32.mrf.mxu0  ;;  %v8191_v40 = vld [vmem:[%s11006_s0 + $0x440] sm:$0xff] }
 0x19f   :  { %v4755_v59 = vadd.f32 %v4081_v48, %v2136_v44  ;;  %v2138_v7 = vpop.f32.mrf.mxu1  ;;  %v9038_v48 = vld [vmem:[%s11008_s2] ss:$0 sm:$0xff] }
 0x1a0   :  { %6487 = vst.msk [vmem:[#allocation2 + $0x78] sm:$0xf] %vm6456_vm1, %v6198_v10  ;;  %v2139_v9 = vadd.f32 %v2138_v7, %v1343_v60 }
 0x1a1   :  { %v5047_v36 = vadd.f32 %v8683_v58, %v4755_v59  ;;  %1382 = vmatmul.bf16.gmra.mxu0 %v9005_v55  ;;  %1922 = vmatmul.bf16.gmra.mxu3 %v8190_v56 }
 0x1a2   :  { %2177 = vmatmul.bf16.gmra.mxu1 %v8942_v47 }
 0x1a3   :  { %vm5335_vm2 = vcmp.ge.f32.partialorder %v5047_v36, 0.0  ;;  %v5623_v5 = vmul.f32 0.0, %v5047_v36  ;;  %4123 = vmatmul.bf16.gmra.mxu2 %v8242_v61 }
 0x1a4   :  { %v9017_v12 = vpop.f32.mrf.mxu3 }
 0x1a5   :  { %v5911_v11 = vsel %vm5335_vm2, %v5047_v36, %v5623_v5  ;;  %11021 = vst [vmem:[#allocation16_spill] sm:$0xff] %v9017_v12 }
 0x1a6   :  { %v6199_v51 = vpack.c.bf16 %v5911_v11, %v5911_v11  ;;  %v4084_v17 = vpop.f32.mrf.mxu2  ;;  %v1345_v21 = vpop.f32.mrf.mxu0 }
 0x1a7   :  { %v4756_v20 = vadd.f32 %v4084_v17, %v2139_v9  ;;  %v2140_v2 = vpop.f32.mrf.mxu1 }
 0x1a8   :  { %6488 = vst.msk [vmem:[#allocation2 + $0x7c] sm:$0xf] %vm6456_vm1, %v6199_v51  ;;  %v2141_v34 = vadd.f32 %v2140_v2, %v1345_v21 }
 0x1a9   :  { %v5048_v23 = vadd.f32 %v8683_v58, %v4756_v20  ;;  %v8243_v58 = vld [vmem:[%s11006_s0 + $0xf8] sm:$0xff] }
 0x1ab   :  { %vm5336_vm3 = vcmp.ge.f32.partialorder %v5048_v23, 0.0  ;;  %v5624_v41 = vmul.f32 0.0, %v5048_v23 }
 0x1ac   :  { %v9021_v35 = vpop.f32.mrf.mxu3 }
 0x1ad   :  { %v5912_v31 = vsel %vm5336_vm3, %v5048_v23, %v5624_v41  ;;  %11022 = vst [vmem:[#allocation17_spill] sm:$0xff] %v9021_v35 }
 0x1ae   :  { %v6200_v47 = vpack.c.bf16 %v5912_v31, %v5912_v31  ;;  %v4086_v37 = vpop.f32.mrf.mxu2  ;;  %v1348_v44 = vpop.f32.mrf.mxu0  ;;  %v9052_v31 = vld [vmem:[%s11006_s0 + $0xe8] sm:$0xff] }
 0x1af   :  { %v4757_v42 = vadd.f32 %v4086_v37, %v2141_v34  ;;  %v2143_v10 = vpop.f32.mrf.mxu1  ;;  %v8192_v34 = vld [vmem:[%s11006_s0 + $0x448] sm:$0xff] }
 0x1b0   :  { %6489 = vst.msk [vmem:[#allocation2 + $0x80] sm:$0xf] %vm6456_vm1, %v6200_v47  ;;  %v2144_v60 = vadd.f32 %v2143_v10, %v1348_v44 }
 0x1b1   :  { %v5049_v56 = vadd.f32 %v9038_v48, %v4757_v42  ;;  %1387 = vmatmul.bf16.gmra.mxu0 %v9026_v6  ;;  %1927 = vmatmul.bf16.gmra.mxu3 %v8191_v40  ;;  %v8244_v40 = vld [vmem:[%s11006_s0 + $0x100] sm:$0xff] }
 0x1b2   :  { %2182 = vmatmul.bf16.gmra.mxu1 %v8963_v24 }
 0x1b3   :  { %vm5337_vm4 = vcmp.ge.f32.partialorder %v5049_v56, 0.0  ;;  %v5625_v59 = vmul.f32 0.0, %v5049_v56  ;;  %4128 = vmatmul.bf16.gmra.mxu2 %v8243_v58 }
 0x1b4   :  { %v9043_v7 = vpop.f32.mrf.mxu3 }
 0x1b5   :  { %v5913_v61 = vsel %vm5337_vm4, %v5049_v56, %v5625_v59  ;;  %11023 = vst [vmem:[#allocation18_spill] sm:$0xff] %v9043_v7 }
 0x1b6   :  { %v6201_v36 = vpack.c.bf16 %v5913_v61, %v5913_v61  ;;  %v4089_v5 = vpop.f32.mrf.mxu2  ;;  %v1350_v11 = vpop.f32.mrf.mxu0 }
 0x1b7   :  { %v4758_v9 = vadd.f32 %v4089_v5, %v2144_v60  ;;  %v2145_v51 = vpop.f32.mrf.mxu1 }
 0x1b8   :  { %6490 = vst.msk [vmem:[#allocation2 + $0x84] sm:$0xf] %vm6456_vm1, %v6201_v36  ;;  %v2146_v2 = vadd.f32 %v2145_v51, %v1350_v11 }
 0x1b9   :  { %v5050_v17 = vadd.f32 %v9038_v48, %v4758_v9 }
 0x1bb   :  { %vm5338_vm5 = vcmp.ge.f32.partialorder %v5050_v17, 0.0  ;;  %v5626_v20 = vmul.f32 0.0, %v5050_v17 }
 0x1bc   :  { %v9047_v23 = vpop.f32.mrf.mxu3 }
 0x1bd   :  { %v5914_v21 = vsel %vm5338_vm5, %v5050_v17, %v5626_v20  ;;  %11024 = vst [vmem:[#allocation19_spill] sm:$0xff] %v9047_v23 }
 0x1be   :  { %v6202_v24 = vpack.c.bf16 %v5914_v21, %v5914_v21  ;;  %v4091_v41 = vpop.f32.mrf.mxu2  ;;  %v1353_v37 = vpop.f32.mrf.mxu0 }
 0x1bf   :  { %v4759_v47 = vadd.f32 %v4091_v41, %v2146_v2  ;;  %v2148_v42 = vpop.f32.mrf.mxu1  ;;  %v8193_v41 = vld [vmem:[%s11006_s0 + $0x450] sm:$0xff] }
 0x1c0   :  { %6491 = vst.msk [vmem:[#allocation2 + $0x88] sm:$0xf] %vm6456_vm1, %v6202_v24  ;;  %v2149_v10 = vadd.f32 %v2148_v42, %v1353_v37  ;;  %v9073_v24 = vld [vmem:[%s11006_s0 + $0xf0] sm:$0xff]  ;;  %v8245_v37 = vld [vmem:[%s11006_s0 + $0x108] sm:$0xff] }
 0x1c1   :  { %v5051_v44 = vadd.f32 %v9038_v48, %v4759_v47  ;;  %1392 = vmatmul.bf16.gmra.mxu0 %v9052_v31  ;;  %1932 = vmatmul.bf16.gmra.mxu3 %v8192_v34 }
 0x1c2   :  { %2187 = vmatmul.bf16.gmra.mxu1 %v8984_v0 }
 0x1c3   :  { %vm5339_vm6 = vcmp.ge.f32.partialorder %v5051_v44, 0.0  ;;  %v5627_v58 = vmul.f32 0.0, %v5051_v44  ;;  %4133 = vmatmul.bf16.gmra.mxu2 %v8244_v40 }
 0x1c4   :  { %v9064_v59 = vpop.f32.mrf.mxu3 }
 0x1c5   :  { %v5915_v56 = vsel %vm5339_vm6, %v5051_v44, %v5627_v58  ;;  %11025 = vst [vmem:[#allocation20_spill] sm:$0xff] %v9064_v59 }
 0x1c6   :  { %v6203_v60 = vpack.c.bf16 %v5915_v56, %v5915_v56  ;;  %v4094_v61 = vpop.f32.mrf.mxu2  ;;  %v1355_v5 = vpop.f32.mrf.mxu0 }
 0x1c7   :  { %v4760_v36 = vadd.f32 %v4094_v61, %v2149_v10  ;;  %v2150_v9 = vpop.f32.mrf.mxu1 }
 0x1c8   :  { %6492 = vst.msk [vmem:[#allocation2 + $0x8c] sm:$0xf] %vm6456_vm1, %v6203_v60  ;;  %v2151_v20 = vadd.f32 %v2150_v9, %v1355_v5 }
 0x1c9   :  { %v5052_v11 = vadd.f32 %v9038_v48, %v4760_v36 }
 0x1cb   :  { %vm5340_vm7 = vcmp.ge.f32.partialorder %v5052_v11, 0.0  ;;  %v5628_v51 = vmul.f32 0.0, %v5052_v11 }
 0x1cc   :  { %v9068_v21 = vpop.f32.mrf.mxu3 }
 0x1cd   :  { %v5916_v17 = vsel %vm5340_vm7, %v5052_v11, %v5628_v51  ;;  %11026 = vst [vmem:[#allocation21_spill] sm:$0xff] %v9068_v21 }
 0x1ce   :  { %v6204_v0 = vpack.c.bf16 %v5916_v17, %v5916_v17  ;;  %v4096_v2 = vpop.f32.mrf.mxu2  ;;  %v1358_v47 = vpop.f32.mrf.mxu0 }
 0x1cf   :  { %v4761_v34 = vadd.f32 %v4096_v2, %v2151_v20  ;;  %v2153_v40 = vpop.f32.mrf.mxu1 }
 0x1d0   :  { %6493 = vst.msk [vmem:[#allocation2 + $0x90] sm:$0xf] %vm6456_vm1, %v6204_v0  ;;  %v2154_v58 = vadd.f32 %v2153_v40, %v1358_v47  ;;  %v8246_v40 = vld [vmem:[%s11006_s0 + $0x110] sm:$0xff] }
 0x1d1   :  { %v5053_v42 = vadd.f32 %v9038_v48, %v4761_v34  ;;  %1397 = vmatmul.bf16.gmra.mxu0 %v9073_v24  ;;  %1937 = vmatmul.bf16.gmra.mxu3 %v8193_v41  ;;  %v9094_v41 = vld [vmem:[%s11006_s0 + $0xf8] sm:$0xff] }
 0x1d2   :  { %2192 = vmatmul.bf16.gmra.mxu1 %v9005_v55  ;;  %v8194_v34 = vld [vmem:[%s11006_s0 + $0x458] sm:$0xff] }
 0x1d3   :  { %vm5341_vm8 = vcmp.ge.f32.partialorder %v5053_v42, 0.0  ;;  %v5629_v44 = vmul.f32 0.0, %v5053_v42  ;;  %4138 = vmatmul.bf16.gmra.mxu2 %v8245_v37 }
 0x1d4   :  { %v9085_v56 = vpop.f32.mrf.mxu3 }
 0x1d5   :  { %v5917_v10 = vsel %vm5341_vm8, %v5053_v42, %v5629_v44  ;;  %11027 = vst [vmem:[#allocation22_spill] sm:$0xff] %v9085_v56 }
 0x1d6   :  { %v6205_v60 = vpack.c.bf16 %v5917_v10, %v5917_v10  ;;  %v4099_v61 = vpop.f32.mrf.mxu2  ;;  %v1360_v5 = vpop.f32.mrf.mxu0 }
 0x1d7   :  { %v4762_v36 = vadd.f32 %v4099_v61, %v2154_v58  ;;  %v2155_v9 = vpop.f32.mrf.mxu1 }
 0x1d8   :  { %6494 = vst.msk [vmem:[#allocation2 + $0x94] sm:$0xf] %vm6456_vm1, %v6205_v60  ;;  %v2156_v20 = vadd.f32 %v2155_v9, %v1360_v5 }
 0x1d9   :  { %v5054_v11 = vadd.f32 %v9038_v48, %v4762_v36 }
 0x1db   :  { %vm5342_vm9 = vcmp.ge.f32.partialorder %v5054_v11, 0.0  ;;  %v5630_v51 = vmul.f32 0.0, %v5054_v11 }
 0x1dc   :  { %v9089_v0 = vpop.f32.mrf.mxu3 }
 0x1dd   :  { %v5918_v17 = vsel %vm5342_vm9, %v5054_v11, %v5630_v51  ;;  %11028 = vst [vmem:[#allocation23_spill] sm:$0xff] %v9089_v0 }
 0x1de   :  { %v6206_v55 = vpack.c.bf16 %v5918_v17, %v5918_v17  ;;  %v4101_v2 = vpop.f32.mrf.mxu2  ;;  %v1363_v37 = vpop.f32.mrf.mxu0 }
 0x1df   :  { %v4763_v47 = vadd.f32 %v4101_v2, %v2156_v20  ;;  %v2158_v42 = vpop.f32.mrf.mxu1 }
 0x1e0   :  { %6495 = vst.msk [vmem:[#allocation2 + $0x98] sm:$0xf] %vm6456_vm1, %v6206_v55  ;;  %v2159_v10 = vadd.f32 %v2158_v42, %v1363_v37  ;;  %v9115_v37 = vld [vmem:[%s11006_s0 + $0x100] sm:$0xff] }
 0x1e1   :  { %v5055_v44 = vadd.f32 %v9038_v48, %v4763_v47  ;;  %1402 = vmatmul.bf16.gmra.mxu0 %v9094_v41  ;;  %1942 = vmatmul.bf16.gmra.mxu3 %v8194_v34 }
 0x1e2   :  { %2197 = vmatmul.bf16.gmra.mxu1 %v9026_v6 }
 0x1e3   :  { %vm5343_vm10 = vcmp.ge.f32.partialorder %v5055_v44, 0.0  ;;  %v5631_v58 = vmul.f32 0.0, %v5055_v44  ;;  %4143 = vmatmul.bf16.gmra.mxu2 %v8246_v40  ;;  %v8195_v40 = vld [vmem:[%s11006_s0 + $0x460] sm:$0xff] }
 0x1e4   :  { %v9106_v61 = vpop.f32.mrf.mxu3 }
 0x1e5   :  { %v5919_v60 = vsel %vm5343_vm10, %v5055_v44, %v5631_v58  ;;  %11029 = vst [vmem:[#allocation24_spill] sm:$0xff] %v9106_v61  ;;  %v8247_v58 = vld [vmem:[%s11006_s0 + $0x118] sm:$0xff] }
 0x1e6   :  { %v6207_v36 = vpack.c.bf16 %v5919_v60, %v5919_v60  ;;  %v4104_v5 = vpop.f32.mrf.mxu2  ;;  %v1365_v11 = vpop.f32.mrf.mxu0 }
 0x1e7   :  { %v4764_v9 = vadd.f32 %v4104_v5, %v2159_v10  ;;  %v2160_v51 = vpop.f32.mrf.mxu1 }
 0x1e8   :  { %6496 = vst.msk [vmem:[#allocation2 + $0x9c] sm:$0xf] %vm6456_vm1, %v6207_v36  ;;  %v2161_v2 = vadd.f32 %v2160_v51, %v1365_v11 }
 0x1e9   :  { %v5056_v17 = vadd.f32 %v9038_v48, %v4764_v9 }
 0x1eb   :  { %vm5344_vm11 = vcmp.ge.f32.partialorder %v5056_v17, 0.0  ;;  %v5632_v20 = vmul.f32 0.0, %v5056_v17 }
 0x1ec   :  { %v9110_v34 = vpop.f32.mrf.mxu3 }
 0x1ed   :  { %v5920_v55 = vsel %vm5344_vm11, %v5056_v17, %v5632_v20  ;;  %11030 = vst [vmem:[#allocation25_spill] sm:$0xff] %v9110_v34 }
 0x1ee   :  { %v6208_v6 = vpack.c.bf16 %v5920_v55, %v5920_v55  ;;  %v4106_v47 = vpop.f32.mrf.mxu2  ;;  %v1368_v44 = vpop.f32.mrf.mxu0 }
 0x1ef   :  { %v4765_v42 = vadd.f32 %v4106_v47, %v2161_v2  ;;  %v2163_v10 = vpop.f32.mrf.mxu1 }
 0x1f0   :  { %6497 = vst.msk [vmem:[#allocation2 + $0xa0] sm:$0xf] %vm6456_vm1, %v6208_v6  ;;  %v2164_v5 = vadd.f32 %v2163_v10, %v1368_v44  ;;  %v9136_v10 = vld [vmem:[%s11006_s0 + $0x108] sm:$0xff] }
 0x1f1   :  { %v5057_v60 = vadd.f32 %v9038_v48, %v4765_v42  ;;  %1407 = vmatmul.bf16.gmra.mxu0 %v9115_v37  ;;  %1947 = vmatmul.bf16.gmra.mxu3 %v8195_v40 }
 0x1f2   :  { %2202 = vmatmul.bf16.gmra.mxu1 %v9052_v31 }
 0x1f3   :  { %vm5345_vm12 = vcmp.ge.f32.partialorder %v5057_v60, 0.0  ;;  %v5633_v36 = vmul.f32 0.0, %v5057_v60  ;;  %4148 = vmatmul.bf16.gmra.mxu2 %v8247_v58 }
 0x1f4   :  { %v9127_v11 = vpop.f32.mrf.mxu3 }
 0x1f5   :  { %v5921_v9 = vsel %vm5345_vm12, %v5057_v60, %v5633_v36  ;;  %11031 = vst [vmem:[#allocation26_spill] sm:$0xff] %v9127_v11  ;;  %v8196_v60 = vld [vmem:[%s11006_s0 + $0x468] sm:$0xff] }
 0x1f6   :  { %v6209_v51 = vpack.c.bf16 %v5921_v9, %v5921_v9  ;;  %v4109_v17 = vpop.f32.mrf.mxu2  ;;  %v1370_v55 = vpop.f32.mrf.mxu0  ;;  %v8248_v9 = vld [vmem:[%s11006_s0 + $0x120] sm:$0xff] }
 0x1f7   :  { %v4766_v20 = vadd.f32 %v4109_v17, %v2164_v5  ;;  %v2165_v2 = vpop.f32.mrf.mxu1 }
 0x1f8   :  { %6498 = vst.msk [vmem:[#allocation2 + $0xa4] sm:$0xf] %vm6456_vm1, %v6209_v51  ;;  %v2166_v42 = vadd.f32 %v2165_v2, %v1370_v55 }
 0x1f9   :  { %v5058_v6 = vadd.f32 %v9038_v48, %v4766_v20 }
 0x1fb   :  { %vm5346_vm13 = vcmp.ge.f32.partialorder %v5058_v6, 0.0  ;;  %v5634_v47 = vmul.f32 0.0, %v5058_v6 }
 0x1fc   :  { %v9131_v44 = vpop.f32.mrf.mxu3 }
 0x1fd   :  { %v5922_v40 = vsel %vm5346_vm13, %v5058_v6, %v5634_v47  ;;  %11032 = vst [vmem:[#allocation27_spill] sm:$0xff] %v9131_v44 }
 0x1fe   :  { %v6210_v31 = vpack.c.bf16 %v5922_v40, %v5922_v40  ;;  %v4111_v58 = vpop.f32.mrf.mxu2  ;;  %v1373_v5 = vpop.f32.mrf.mxu0 }
 0x1ff   :  { %v4767_v36 = vadd.f32 %v4111_v58, %v2166_v42  ;;  %v2168_v51 = vpop.f32.mrf.mxu1 }
 0x200   :  { %6499 = vst.msk [vmem:[#allocation2 + $0xa8] sm:$0xf] %vm6456_vm1, %v6210_v31  ;;  %v2169_v55 = vadd.f32 %v2168_v51, %v1373_v5  ;;  %v9157_v51 = vld [vmem:[%s11006_s0 + $0x110] sm:$0xff] }
 0x201   :  { %v5059_v17 = vadd.f32 %v9038_v48, %v4767_v36  ;;  %1412 = vmatmul.bf16.gmra.mxu0 %v9136_v10  ;;  %1952 = vmatmul.bf16.gmra.mxu3 %v8196_v60 }
 0x202   :  { %2207 = vmatmul.bf16.gmra.mxu1 %v9073_v24 }
 0x203   :  { %vm5347_vm14 = vcmp.ge.f32.partialorder %v5059_v17, 0.0  ;;  %v5635_v20 = vmul.f32 0.0, %v5059_v17  ;;  %4153 = vmatmul.bf16.gmra.mxu2 %v8248_v9 }
 0x204   :  { %v9148_v6 = vpop.f32.mrf.mxu3 }
 0x205   :  { %v5923_v2 = vsel %vm5347_vm14, %v5059_v17, %v5635_v20  ;;  %11033 = vst [vmem:[#allocation28_spill] sm:$0xff] %v9148_v6  ;;  %v8197_v17 = vld [vmem:[%s11006_s0 + $0x470] sm:$0xff] }
 0x206   :  { %v6211_v47 = vpack.c.bf16 %v5923_v2, %v5923_v2  ;;  %v4114_v40 = vpop.f32.mrf.mxu2  ;;  %v1375_v58 = vpop.f32.mrf.mxu0  ;;  %v8249_v2 = vld [vmem:[%s11006_s0 + $0x128] sm:$0xff] }
 0x207   :  { %v4768_v42 = vadd.f32 %v4114_v40, %v2169_v55  ;;  %v2170_v31 = vpop.f32.mrf.mxu1 }
 0x208   :  { %6500 = vst.msk [vmem:[#allocation2 + $0xac] sm:$0xf] %vm6456_vm1, %v6211_v47  ;;  %v2171_v11 = vadd.f32 %v2170_v31, %v1375_v58 }
 0x209   :  { %v5060_v36 = vadd.f32 %v9038_v48, %v4768_v42 }
 0x20b   :  { %vm5348_vm15 = vcmp.ge.f32.partialorder %v5060_v36, 0.0  ;;  %v5636_v60 = vmul.f32 0.0, %v5060_v36 }
 0x20c   :  { %v9152_v5 = vpop.f32.mrf.mxu3 }
 0x20d   :  { %v5924_v44 = vsel %vm5348_vm15, %v5060_v36, %v5636_v60  ;;  %11034 = vst [vmem:[#allocation29_spill] sm:$0xff] %v9152_v5 }
 0x20e   :  { %v6212_v24 = vpack.c.bf16 %v5924_v44, %v5924_v44  ;;  %v4116_v9 = vpop.f32.mrf.mxu2  ;;  %v1378_v55 = vpop.f32.mrf.mxu0 }
 0x20f   :  { %v4769_v20 = vadd.f32 %v4116_v9, %v2171_v11  ;;  %v2173_v47 = vpop.f32.mrf.mxu1 }
 0x210   :  { %6501 = vst.msk [vmem:[#allocation2 + $0xb0] sm:$0xf] %vm6456_vm1, %v6212_v24  ;;  %v2174_v42 = vadd.f32 %v2173_v47, %v1378_v55  ;;  %v9178_v47 = vld [vmem:[%s11006_s0 + $0x118] sm:$0xff] }
 0x211   :  { %v5061_v44 = vadd.f32 %v9038_v48, %v4769_v20  ;;  %1417 = vmatmul.bf16.gmra.mxu0 %v9157_v51  ;;  %1957 = vmatmul.bf16.gmra.mxu3 %v8197_v17 }
 0x212   :  { %2212 = vmatmul.bf16.gmra.mxu1 %v9094_v41 }
 0x213   :  { %vm5349_vm0 = vcmp.ge.f32.partialorder %v5061_v44, 0.0  ;;  %v5637_v40 = vmul.f32 0.0, %v5061_v44  ;;  %4158 = vmatmul.bf16.gmra.mxu2 %v8249_v2 }
 0x214   :  { %v9169_v58 = vpop.f32.mrf.mxu3 }
 0x215   :  { %v5925_v11 = vsel %vm5349_vm0, %v5061_v44, %v5637_v40  ;;  %11035 = vst [vmem:[#allocation30_spill] sm:$0xff] %v9169_v58  ;;  %v8198_v44 = vld [vmem:[%s11006_s0 + $0x478] sm:$0xff] }
 0x216   :  { %v6213_v31 = vpack.c.bf16 %v5925_v11, %v5925_v11  ;;  %v4119_v36 = vpop.f32.mrf.mxu2  ;;  %v1380_v9 = vpop.f32.mrf.mxu0  ;;  %v8250_v11 = vld [vmem:[%s11006_s0 + $0x130] sm:$0xff] }
 0x217   :  { %v4770_v60 = vadd.f32 %v4119_v36, %v2174_v42  ;;  %v2175_v24 = vpop.f32.mrf.mxu1 }
 0x218   :  { %6502 = vst.msk [vmem:[#allocation2 + $0xb4] sm:$0xf] %vm6456_vm1, %v6213_v31  ;;  %v2176_v6 = vadd.f32 %v2175_v24, %v1380_v9 }
 0x219   :  { %v5062_v20 = vadd.f32 %v9038_v48, %v4770_v60 }
 0x21b   :  { %vm5350_vm2 = vcmp.ge.f32.partialorder %v5062_v20, 0.0  ;;  %v5638_v17 = vmul.f32 0.0, %v5062_v20 }
 0x21c   :  { %v9173_v55 = vpop.f32.mrf.mxu3 }
 0x21d   :  { %v5926_v5 = vsel %vm5350_vm2, %v5062_v20, %v5638_v17  ;;  %11036 = vst [vmem:[#allocation31_spill] sm:$0xff] %v9173_v55 }
 0x21e   :  { %v6214_v41 = vpack.c.bf16 %v5926_v5, %v5926_v5  ;;  %v4121_v2 = vpop.f32.mrf.mxu2  ;;  %v1383_v42 = vpop.f32.mrf.mxu0 }
 0x21f   :  { %v4771_v40 = vadd.f32 %v4121_v2, %v2176_v6  ;;  %v2178_v31 = vpop.f32.mrf.mxu1 }
 0x220   :  { %6503 = vst.msk [vmem:[#allocation2 + $0xb8] sm:$0xf] %vm6456_vm1, %v6214_v41  ;;  %v2179_v60 = vadd.f32 %v2178_v31, %v1383_v42  ;;  %v9199_v31 = vld [vmem:[%s11006_s0 + $0x120] sm:$0xff] }
 0x221   :  { %v5063_v5 = vadd.f32 %v9038_v48, %v4771_v40  ;;  %1422 = vmatmul.bf16.gmra.mxu0 %v9178_v47  ;;  %1962 = vmatmul.bf16.gmra.mxu3 %v8198_v44 }
 0x222   :  { %2217 = vmatmul.bf16.gmra.mxu1 %v9115_v37 }
 0x223   :  { %vm5351_vm3 = vcmp.ge.f32.partialorder %v5063_v5, 0.0  ;;  %v5639_v36 = vmul.f32 0.0, %v5063_v5  ;;  %4163 = vmatmul.bf16.gmra.mxu2 %v8250_v11 }
 0x224   :  { %v9190_v9 = vpop.f32.mrf.mxu3 }
 0x225   :  { %v5927_v6 = vsel %vm5351_vm3, %v5063_v5, %v5639_v36  ;;  %11037 = vst [vmem:[#allocation32_spill] sm:$0xff] %v9190_v9  ;;  %v8207_v5 = vld [vmem:[%s11006_s0 + $0x480] sm:$0xff] }
 0x226   :  { %v6215_v24 = vpack.c.bf16 %v5927_v6, %v5927_v6  ;;  %v4124_v20 = vpop.f32.mrf.mxu2  ;;  %v1385_v2 = vpop.f32.mrf.mxu0  ;;  %v8251_v6 = vld [vmem:[%s11006_s0 + $0x138] sm:$0xff] }
 0x227   :  { %v4772_v17 = vadd.f32 %v4124_v20, %v2179_v60  ;;  %v2180_v41 = vpop.f32.mrf.mxu1 }
 0x228   :  { %6504 = vst.msk [vmem:[#allocation2 + $0xbc] sm:$0xf] %vm6456_vm1, %v6215_v24  ;;  %v2181_v58 = vadd.f32 %v2180_v41, %v1385_v2 }
 0x229   :  { %v5064_v40 = vadd.f32 %v9038_v48, %v4772_v17 }
 0x22b   :  { %vm5352_vm4 = vcmp.ge.f32.partialorder %v5064_v40, 0.0  ;;  %v5640_v44 = vmul.f32 0.0, %v5064_v40 }
 0x22c   :  { %v9194_v42 = vpop.f32.mrf.mxu3 }
 0x22d   :  { %v5928_v55 = vsel %vm5352_vm4, %v5064_v40, %v5640_v44  ;;  %11038 = vst [vmem:[#allocation33_spill] sm:$0xff] %v9194_v42 }
 0x22e   :  { %v6216_v37 = vpack.c.bf16 %v5928_v55, %v5928_v55  ;;  %v4126_v11 = vpop.f32.mrf.mxu2  ;;  %v1388_v60 = vpop.f32.mrf.mxu0 }
 0x22f   :  { %v4773_v36 = vadd.f32 %v4126_v11, %v2181_v58  ;;  %v2183_v24 = vpop.f32.mrf.mxu1 }
 0x230   :  { %6505 = vst.msk [vmem:[#allocation2 + $0xc0] sm:$0xf] %vm6456_vm1, %v6216_v37  ;;  %v2184_v17 = vadd.f32 %v2183_v24, %v1388_v60  ;;  %v9220_v24 = vld [vmem:[%s11006_s0 + $0x128] sm:$0xff] }
 0x231   :  { %v5065_v55 = vadd.f32 %v9038_v48, %v4773_v36  ;;  %1427 = vmatmul.bf16.gmra.mxu0 %v9199_v31  ;;  %1967 = vmatmul.bf16.gmra.mxu3 %v8207_v5 }
 0x232   :  { %2222 = vmatmul.bf16.gmra.mxu1 %v9136_v10 }
 0x233   :  { %vm5353_vm5 = vcmp.ge.f32.partialorder %v5065_v55, 0.0  ;;  %v5641_v20 = vmul.f32 0.0, %v5065_v55  ;;  %4168 = vmatmul.bf16.gmra.mxu2 %v8251_v6 }
 0x234   :  { %v9211_v2 = vpop.f32.mrf.mxu3 }
 0x235   :  { %v5929_v58 = vsel %vm5353_vm5, %v5065_v55, %v5641_v20  ;;  %11039 = vst [vmem:[#allocation34_spill] sm:$0xff] %v9211_v2  ;;  %v8208_v55 = vld [vmem:[%s11006_s0 + $0x488] sm:$0xff] }
 0x236   :  { %v6217_v41 = vpack.c.bf16 %v5929_v58, %v5929_v58  ;;  %v4129_v40 = vpop.f32.mrf.mxu2  ;;  %v1390_v11 = vpop.f32.mrf.mxu0  ;;  %v8252_v58 = vld [vmem:[%s11006_s0 + $0x140] sm:$0xff] }
 0x237   :  { %v4774_v44 = vadd.f32 %v4129_v40, %v2184_v17  ;;  %v2185_v37 = vpop.f32.mrf.mxu1 }
 0x238   :  { %6506 = vst.msk [vmem:[#allocation2 + $0xc4] sm:$0xf] %vm6456_vm1, %v6217_v41  ;;  %v2186_v9 = vadd.f32 %v2185_v37, %v1390_v11 }
 0x239   :  { %v5066_v36 = vadd.f32 %v9038_v48, %v4774_v44 }
 0x23b   :  { %vm5354_vm6 = vcmp.ge.f32.partialorder %v5066_v36, 0.0  ;;  %v5642_v5 = vmul.f32 0.0, %v5066_v36 }
 0x23c   :  { %v9215_v60 = vpop.f32.mrf.mxu3 }
 0x23d   :  { %v5930_v42 = vsel %vm5354_vm6, %v5066_v36, %v5642_v5  ;;  %11040 = vst [vmem:[#allocation35_spill] sm:$0xff] %v9215_v60 }
 0x23e   :  { %v6218_v10 = vpack.c.bf16 %v5930_v42, %v5930_v42  ;;  %v4131_v6 = vpop.f32.mrf.mxu2  ;;  %v1393_v17 = vpop.f32.mrf.mxu0 }
 0x23f   :  { %v4775_v20 = vadd.f32 %v4131_v6, %v2186_v9  ;;  %v2188_v41 = vpop.f32.mrf.mxu1 }
 0x240   :  { %6507 = vst.msk [vmem:[#allocation2 + $0xc8] sm:$0xf] %vm6456_vm1, %v6218_v10  ;;  %v2189_v44 = vadd.f32 %v2188_v41, %v1393_v17  ;;  %v9241_v41 = vld [vmem:[%s11006_s0 + $0x130] sm:$0xff] }
 0x241   :  { %v5067_v42 = vadd.f32 %v9038_v48, %v4775_v20  ;;  %1432 = vmatmul.bf16.gmra.mxu0 %v9220_v24  ;;  %1972 = vmatmul.bf16.gmra.mxu3 %v8208_v55 }
 0x242   :  { %2227 = vmatmul.bf16.gmra.mxu1 %v9157_v51 }
 0x243   :  { %vm5355_vm7 = vcmp.ge.f32.partialorder %v5067_v42, 0.0  ;;  %v5643_v40 = vmul.f32 0.0, %v5067_v42  ;;  %4173 = vmatmul.bf16.gmra.mxu2 %v8252_v58 }
 0x244   :  { %v9232_v11 = vpop.f32.mrf.mxu3 }
 0x245   :  { %v5931_v9 = vsel %vm5355_vm7, %v5067_v42, %v5643_v40  ;;  %11041 = vst [vmem:[#allocation36_spill] sm:$0xff] %v9232_v11  ;;  %v8209_v42 = vld [vmem:[%s11006_s0 + $0x490] sm:$0xff] }
 0x246   :  { %v6219_v37 = vpack.c.bf16 %v5931_v9, %v5931_v9  ;;  %v4134_v36 = vpop.f32.mrf.mxu2  ;;  %v1395_v6 = vpop.f32.mrf.mxu0  ;;  %v8253_v9 = vld [vmem:[%s11006_s0 + $0x148] sm:$0xff] }
 0x247   :  { %v4776_v5 = vadd.f32 %v4134_v36, %v2189_v44  ;;  %v2190_v10 = vpop.f32.mrf.mxu1 }
 0x248   :  { %6508 = vst.msk [vmem:[#allocation2 + $0xcc] sm:$0xf] %vm6456_vm1, %v6219_v37  ;;  %v2191_v2 = vadd.f32 %v2190_v10, %v1395_v6 }
 0x249   :  { %v5068_v20 = vadd.f32 %v9038_v48, %v4776_v5 }
 0x24b   :  { %vm5356_vm8 = vcmp.ge.f32.partialorder %v5068_v20, 0.0  ;;  %v5644_v55 = vmul.f32 0.0, %v5068_v20 }
 0x24c   :  { %v9236_v17 = vpop.f32.mrf.mxu3 }
 0x24d   :  { %v5932_v60 = vsel %vm5356_vm8, %v5068_v20, %v5644_v55  ;;  %11042 = vst [vmem:[#allocation37_spill] sm:$0xff] %v9236_v17 }
 0x24e   :  { %v6220_v51 = vpack.c.bf16 %v5932_v60, %v5932_v60  ;;  %v4136_v58 = vpop.f32.mrf.mxu2  ;;  %v1398_v44 = vpop.f32.mrf.mxu0 }
 0x24f   :  { %v4777_v40 = vadd.f32 %v4136_v58, %v2191_v2  ;;  %v2193_v37 = vpop.f32.mrf.mxu1 }
 0x250   :  { %6509 = vst.msk [vmem:[#allocation2 + $0xd0] sm:$0xf] %vm6456_vm1, %v6220_v51  ;;  %v2194_v5 = vadd.f32 %v2193_v37, %v1398_v44  ;;  %v9262_v37 = vld [vmem:[%s11006_s0 + $0x138] sm:$0xff] }
 0x251   :  { %v5069_v60 = vadd.f32 %v9038_v48, %v4777_v40  ;;  %1437 = vmatmul.bf16.gmra.mxu0 %v9241_v41  ;;  %1977 = vmatmul.bf16.gmra.mxu3 %v8209_v42 }
 0x252   :  { %2232 = vmatmul.bf16.gmra.mxu1 %v9178_v47 }
 0x253   :  { %vm5357_vm9 = vcmp.ge.f32.partialorder %v5069_v60, 0.0  ;;  %v5645_v36 = vmul.f32 0.0, %v5069_v60  ;;  %4178 = vmatmul.bf16.gmra.mxu2 %v8253_v9 }
 0x254   :  { %v9253_v6 = vpop.f32.mrf.mxu3 }
 0x255   :  { %v5933_v2 = vsel %vm5357_vm9, %v5069_v60, %v5645_v36  ;;  %11043 = vst [vmem:[#allocation38_spill] sm:$0xff] %v9253_v6  ;;  %v8163_v60 = vld [vmem:[%s11006_s0 + $0x360] sm:$0xff] }
 0x256   :  { %v6221_v10 = vpack.c.bf16 %v5933_v2, %v5933_v2  ;;  %v4139_v20 = vpop.f32.mrf.mxu2  ;;  %v1400_v58 = vpop.f32.mrf.mxu0  ;;  %v8254_v2 = vld [vmem:[%s11006_s0 + $0x150] sm:$0xff] }
 0x257   :  { %v4778_v55 = vadd.f32 %v4139_v20, %v2194_v5  ;;  %v2195_v51 = vpop.f32.mrf.mxu1 }
 0x258   :  { %6510 = vst.msk [vmem:[#allocation2 + $0xd4] sm:$0xf] %vm6456_vm1, %v6221_v10  ;;  %v2196_v11 = vadd.f32 %v2195_v51, %v1400_v58 }
 0x259   :  { %v5070_v40 = vadd.f32 %v9038_v48, %v4778_v55 }
 0x25b   :  { %vm5358_vm10 = vcmp.ge.f32.partialorder %v5070_v40, 0.0  ;;  %v5646_v42 = vmul.f32 0.0, %v5070_v40 }
 0x25c   :  { %v9257_v44 = vpop.f32.mrf.mxu3 }
 0x25d   :  { %v5934_v17 = vsel %vm5358_vm10, %v5070_v40, %v5646_v42  ;;  %11044 = vst [vmem:[#allocation39_spill] sm:$0xff] %v9257_v44 }
 0x25e   :  { %v6222_v47 = vpack.c.bf16 %v5934_v17, %v5934_v17  ;;  %v4141_v9 = vpop.f32.mrf.mxu2  ;;  %v1403_v5 = vpop.f32.mrf.mxu0 }
 0x25f   :  { %v4779_v36 = vadd.f32 %v4141_v9, %v2196_v11  ;;  %v2198_v10 = vpop.f32.mrf.mxu1 }
 0x260   :  { %6511 = vst.msk [vmem:[#allocation2 + $0xd8] sm:$0xf] %vm6456_vm1, %v6222_v47  ;;  %v2199_v55 = vadd.f32 %v2198_v10, %v1403_v5  ;;  %v9283_v10 = vld [vmem:[%s11006_s0 + $0x140] sm:$0xff] }
 0x261   :  { %v5071_v17 = vadd.f32 %v9038_v48, %v4779_v36  ;;  %1442 = vmatmul.bf16.gmra.mxu0 %v9262_v37  ;;  %2597 = vmatmul.bf16.vlgmr.msrb.gmra.mxu3 %v8163_v60 }
 0x262   :  { %2237 = vmatmul.bf16.gmra.mxu1 %v9199_v31 }
 0x263   :  { %vm5359_vm11 = vcmp.ge.f32.partialorder %v5071_v17, 0.0  ;;  %v5647_v20 = vmul.f32 0.0, %v5071_v17  ;;  %4183 = vmatmul.bf16.gmra.mxu2 %v8254_v2 }
 0x264   :  { %v9274_v58 = vpop.f32.mrf.mxu3 }
 0x265   :  { %v5935_v11 = vsel %vm5359_vm11, %v5071_v17, %v5647_v20  ;;  %11045 = vst [vmem:[#allocation40_spill] sm:$0xff] %v9274_v58  ;;  %v8164_v17 = vld [vmem:[%s11006_s0 + $0x368] sm:$0xff] }
 0x266   :  { %v6223_v51 = vpack.c.bf16 %v5935_v11, %v5935_v11  ;;  %v4144_v40 = vpop.f32.mrf.mxu2  ;;  %v1405_v9 = vpop.f32.mrf.mxu0  ;;  %v8255_v11 = vld [vmem:[%s11006_s0 + $0x158] sm:$0xff] }
 0x267   :  { %v4780_v42 = vadd.f32 %v4144_v40, %v2199_v55  ;;  %v2200_v47 = vpop.f32.mrf.mxu1 }
 0x268   :  { %6512 = vst.msk [vmem:[#allocation2 + $0xdc] sm:$0xf] %vm6456_vm1, %v6223_v51  ;;  %v2201_v6 = vadd.f32 %v2200_v47, %v1405_v9 }
 0x269   :  { %v5072_v36 = vadd.f32 %v9038_v48, %v4780_v42 }
 0x26b   :  { %vm5360_vm12 = vcmp.ge.f32.partialorder %v5072_v36, 0.0  ;;  %v5648_v60 = vmul.f32 0.0, %v5072_v36 }
 0x26c   :  { %v9278_v5 = vpop.f32.mrf.mxu3 }
 0x26d   :  { %v5936_v44 = vsel %vm5360_vm12, %v5072_v36, %v5648_v60  ;;  %11046 = vst [vmem:[#allocation41_spill] sm:$0xff] %v9278_v5 }
 0x26e   :  { %v6224_v31 = vpack.c.bf16 %v5936_v44, %v5936_v44  ;;  %v4146_v2 = vpop.f32.mrf.mxu2  ;;  %v1408_v55 = vpop.f32.mrf.mxu0 }
 0x26f   :  { %v4781_v20 = vadd.f32 %v4146_v2, %v2201_v6  ;;  %v2203_v51 = vpop.f32.mrf.mxu1 }
 0x270   :  { %6513 = vst.msk [vmem:[#allocation2 + $0xe0] sm:$0xf] %vm6456_vm1, %v6224_v31  ;;  %v2204_v42 = vadd.f32 %v2203_v51, %v1408_v55  ;;  %v9304_v51 = vld [vmem:[%s11006_s0 + $0x148] sm:$0xff] }
 0x271   :  { %v5073_v44 = vadd.f32 %v9038_v48, %v4781_v20  ;;  %1447 = vmatmul.bf16.gmra.mxu0 %v9283_v10  ;;  %2602 = vmatmul.bf16.gmra.mxu3 %v8164_v17 }
 0x272   :  { %2242 = vmatmul.bf16.gmra.mxu1 %v9220_v24 }
 0x273   :  { %vm5361_vm13 = vcmp.ge.f32.partialorder %v5073_v44, 0.0  ;;  %v5649_v40 = vmul.f32 0.0, %v5073_v44  ;;  %4188 = vmatmul.bf16.gmra.mxu2 %v8255_v11 }
 0x274   :  { %v9295_v9 = vpop.f32.mrf.mxu3 }
 0x275   :  { %v5937_v6 = vsel %vm5361_vm13, %v5073_v44, %v5649_v40  ;;  %11047 = vst [vmem:[#allocation42_spill] sm:$0xff] %v9295_v9  ;;  %v8165_v44 = vld [vmem:[%s11006_s0 + $0x370] sm:$0xff] }
 0x276   :  { %v6225_v47 = vpack.c.bf16 %v5937_v6, %v5937_v6  ;;  %v4149_v36 = vpop.f32.mrf.mxu2  ;;  %v1410_v2 = vpop.f32.mrf.mxu0  ;;  %v8256_v6 = vld [vmem:[%s11006_s0 + $0x160] sm:$0xff] }
 0x277   :  { %v4782_v60 = vadd.f32 %v4149_v36, %v2204_v42  ;;  %v2205_v31 = vpop.f32.mrf.mxu1 }
 0x278   :  { %6514 = vst.msk [vmem:[#allocation2 + $0xe4] sm:$0xf] %vm6456_vm1, %v6225_v47  ;;  %v2206_v58 = vadd.f32 %v2205_v31, %v1410_v2 }
 0x279   :  { %v5074_v20 = vadd.f32 %v9038_v48, %v4782_v60 }
 0x27b   :  { %vm5362_vm14 = vcmp.ge.f32.partialorder %v5074_v20, 0.0  ;;  %v5650_v17 = vmul.f32 0.0, %v5074_v20 }
 0x27c   :  { %v9299_v55 = vpop.f32.mrf.mxu3 }
 0x27d   :  { %v5938_v5 = vsel %vm5362_vm14, %v5074_v20, %v5650_v17  ;;  %11048 = vst [vmem:[#allocation43_spill] sm:$0xff] %v9299_v55 }
 0x27e   :  { %v6226_v24 = vpack.c.bf16 %v5938_v5, %v5938_v5  ;;  %v4151_v11 = vpop.f32.mrf.mxu2  ;;  %v1413_v42 = vpop.f32.mrf.mxu0 }
 0x27f   :  { %v4783_v40 = vadd.f32 %v4151_v11, %v2206_v58  ;;  %v2208_v47 = vpop.f32.mrf.mxu1 }
 0x280   :  { %6515 = vst.msk [vmem:[#allocation2 + $0xe8] sm:$0xf] %vm6456_vm1, %v6226_v24  ;;  %v2209_v60 = vadd.f32 %v2208_v47, %v1413_v42  ;;  %v9325_v47 = vld [vmem:[%s11006_s0 + $0x150] sm:$0xff] }
 0x281   :  { %v5075_v5 = vadd.f32 %v9038_v48, %v4783_v40  ;;  %1452 = vmatmul.bf16.gmra.mxu0 %v9304_v51  ;;  %2607 = vmatmul.bf16.gmra.mxu3 %v8165_v44 }
 0x282   :  { %2247 = vmatmul.bf16.gmra.mxu1 %v9241_v41 }
 0x283   :  { %vm5363_vm15 = vcmp.ge.f32.partialorder %v5075_v5, 0.0  ;;  %v5651_v36 = vmul.f32 0.0, %v5075_v5  ;;  %4193 = vmatmul.bf16.gmra.mxu2 %v8256_v6 }
 0x284   :  { %v9316_v2 = vpop.f32.mrf.mxu3 }
 0x285   :  { %v5939_v58 = vsel %vm5363_vm15, %v5075_v5, %v5651_v36  ;;  %11049 = vst [vmem:[#allocation44_spill] sm:$0xff] %v9316_v2 }
 0x286   :  { %v6227_v31 = vpack.c.bf16 %v5939_v58, %v5939_v58  ;;  %v4154_v20 = vpop.f32.mrf.mxu2  ;;  %v1415_v11 = vpop.f32.mrf.mxu0 }
 0x287   :  { %v4784_v17 = vadd.f32 %v4154_v20, %v2209_v60  ;;  %v2210_v24 = vpop.f32.mrf.mxu1  ;;  %v8257_v60 = vld [vmem:[%s11006_s0 + $0x168] sm:$0xff] }
 0x288   :  { %6516 = vst.msk [vmem:[#allocation2 + $0xec] sm:$0xf] %vm6456_vm1, %v6227_v31  ;;  %v2211_v9 = vadd.f32 %v2210_v24, %v1415_v11 }
 0x289   :  { %v5076_v40 = vadd.f32 %v9038_v48, %v4784_v17 }
 0x28b   :  { %vm5364_vm0 = vcmp.ge.f32.partialorder %v5076_v40, 0.0  ;;  %v5652_v44 = vmul.f32 0.0, %v5076_v40 }
 0x28c   :  { %v9320_v42 = vpop.f32.mrf.mxu3 }
 0x28d   :  { %v5940_v55 = vsel %vm5364_vm0, %v5076_v40, %v5652_v44  ;;  %11050 = vst [vmem:[#allocation45_spill] sm:$0xff] %v9320_v42 }
 0x28e   :  { %v6228_v41 = vpack.c.bf16 %v5940_v55, %v5940_v55  ;;  %v4156_v6 = vpop.f32.mrf.mxu2  ;;  %v1418_v36 = vpop.f32.mrf.mxu0  ;;  %v8399_v55 = vld [vmem:[%s11006_s0 + $0x378] sm:$0xff] }
 0x28f   :  { %v4785_v5 = vadd.f32 %v4156_v6, %v2211_v9  ;;  %v2213_v58 = vpop.f32.mrf.mxu1 }
 0x290   :  { %6517 = vst.msk [vmem:[#allocation2 + $0xf0] sm:$0xf] %vm6456_vm1, %v6228_v41  ;;  %v2214_v9 = vadd.f32 %v2213_v58, %v1418_v36  ;;  %v9346_v58 = vld [vmem:[%s11006_s0 + $0x158] sm:$0xff] }
 0x291   :  { %v5077_v31 = vadd.f32 %v9038_v48, %v4785_v5  ;;  %1457 = vmatmul.bf16.gmra.mxu0 %v9325_v47  ;;  %2612 = vmatmul.bf16.gmra.mxu3 %v8399_v55 }
 0x292   :  { %2252 = vmatmul.bf16.gmra.mxu1 %v9262_v37 }
 0x293   :  { %vm5365_vm2 = vcmp.ge.f32.partialorder %v5077_v31, 0.0  ;;  %v5653_v20 = vmul.f32 0.0, %v5077_v31  ;;  %4198 = vmatmul.bf16.gmra.mxu2 %v8257_v60 }
 0x294   :  { %v9337_v11 = vpop.f32.mrf.mxu3 }
 0x295   :  { %v5941_v17 = vsel %vm5365_vm2, %v5077_v31, %v5653_v20  ;;  %11051 = vst [vmem:[#allocation46_spill] sm:$0xff] %v9337_v11 }
 0x296   :  { %v6229_v24 = vpack.c.bf16 %v5941_v17, %v5941_v17  ;;  %v4159_v40 = vpop.f32.mrf.mxu2  ;;  %v1420_v41 = vpop.f32.mrf.mxu0 }
 0x297   :  { %v4786_v44 = vadd.f32 %v4159_v40, %v2214_v9  ;;  %v2215_v6 = vpop.f32.mrf.mxu1  ;;  %v8258_v9 = vld [vmem:[%s11006_s0 + $0x170] sm:$0xff] }
 0x298   :  { %6518 = vst.msk [vmem:[#allocation2 + $0xf4] sm:$0xf] %vm6456_vm1, %v6229_v24  ;;  %v2216_v2 = vadd.f32 %v2215_v6, %v1420_v41 }
 0x299   :  { %v5078_v5 = vadd.f32 %v9038_v48, %v4786_v44 }
 0x29b   :  { %vm5366_vm3 = vcmp.ge.f32.partialorder %v5078_v5, 0.0  ;;  %v5654_v55 = vmul.f32 0.0, %v5078_v5 }
 0x29c   :  { %v9341_v36 = vpop.f32.mrf.mxu3 }
 0x29d   :  { %v5942_v42 = vsel %vm5366_vm3, %v5078_v5, %v5654_v55  ;;  %11052 = vst [vmem:[#allocation47_spill] sm:$0xff] %v9341_v36 }
 0x29e   :  { %v6230_v37 = vpack.c.bf16 %v5942_v42, %v5942_v42  ;;  %v4161_v60 = vpop.f32.mrf.mxu2  ;;  %v1423_v20 = vpop.f32.mrf.mxu0  ;;  %v8400_v42 = vld [vmem:[%s11006_s0 + $0x380] sm:$0xff] }
 0x29f   :  { %v4787_v31 = vadd.f32 %v4161_v60, %v2216_v2  ;;  %v2218_v17 = vpop.f32.mrf.mxu1 }
 0x2a0   :  { %6519 = vst.msk [vmem:[#allocation2 + $0xf8] sm:$0xf] %vm6456_vm1, %v6230_v37  ;;  %v2219_v2 = vadd.f32 %v2218_v17, %v1423_v20  ;;  %v9367_v17 = vld [vmem:[%s11006_s0 + $0x160] sm:$0xff] }
 0x2a1   :  { %v5079_v24 = vadd.f32 %v9038_v48, %v4787_v31  ;;  %1462 = vmatmul.bf16.gmra.mxu0 %v9346_v58  ;;  %2617 = vmatmul.bf16.gmra.mxu3 %v8400_v42 }
 0x2a2   :  { %2257 = vmatmul.bf16.gmra.mxu1 %v9283_v10 }
 0x2a3   :  { %vm5367_vm4 = vcmp.ge.f32.partialorder %v5079_v24, 0.0  ;;  %v5655_v40 = vmul.f32 0.0, %v5079_v24  ;;  %4203 = vmatmul.bf16.gmra.mxu2 %v8258_v9 }
 0x2a4   :  { %v9358_v41 = vpop.f32.mrf.mxu3 }
 0x2a5   :  { %v5943_v44 = vsel %vm5367_vm4, %v5079_v24, %v5655_v40  ;;  %11053 = vst [vmem:[#allocation48_spill] sm:$0xff] %v9358_v41 }
 0x2a6   :  { %v6231_v6 = vpack.c.bf16 %v5943_v44, %v5943_v44  ;;  %v4164_v5 = vpop.f32.mrf.mxu2  ;;  %v1425_v37 = vpop.f32.mrf.mxu0 }
 0x2a7   :  { %v4788_v55 = vadd.f32 %v4164_v5, %v2219_v2  ;;  %v2220_v60 = vpop.f32.mrf.mxu1  ;;  %v8259_v2 = vld [vmem:[%s11006_s0 + $0x178] sm:$0xff] }
 0x2a8   :  { %6520 = vst.msk [vmem:[#allocation2 + $0xfc] sm:$0xf] %vm6456_vm1, %v6231_v6  ;;  %v2221_v11 = vadd.f32 %v2220_v60, %v1425_v37 }
 0x2a9   :  { %v5080_v31 = vadd.f32 %v9038_v48, %v4788_v55 }
 0x2ab   :  { %vm5368_vm5 = vcmp.ge.f32.partialorder %v5080_v31, 0.0  ;;  %v5656_v42 = vmul.f32 0.0, %v5080_v31 }
 0x2ac   :  { %v9362_v20 = vpop.f32.mrf.mxu3 }
 0x2ad   :  { %v5944_v36 = vsel %vm5368_vm5, %v5080_v31, %v5656_v42  ;;  %11054 = vst [vmem:[#allocation49_spill] sm:$0xff] %v9362_v20 }
 0x2ae   :  { %v6232_v10 = vpack.c.bf16 %v5944_v36, %v5944_v36  ;;  %v4166_v9 = vpop.f32.mrf.mxu2  ;;  %v1428_v40 = vpop.f32.mrf.mxu0  ;;  %v8401_v36 = vld [vmem:[%s11006_s0 + $0x388] sm:$0xff] }
 0x2af   :  { %v4789_v24 = vadd.f32 %v4166_v9, %v2221_v11  ;;  %v2223_v44 = vpop.f32.mrf.mxu1 }
 0x2b0   :  { %6521 = vst.msk [vmem:[#allocation2 + $0x100] sm:$0xf] %vm6456_vm1, %v6232_v10  ;;  %v2224_v11 = vadd.f32 %v2223_v44, %v1428_v40  ;;  %v9388_v44 = vld [vmem:[%s11006_s0 + $0x168] sm:$0xff] }
 0x2b1   :  { %v5081_v6 = vadd.f32 %v9038_v48, %v4789_v24  ;;  %1467 = vmatmul.bf16.gmra.mxu0 %v9367_v17  ;;  %2622 = vmatmul.bf16.gmra.mxu3 %v8401_v36 }
 0x2b2   :  { %2262 = vmatmul.bf16.gmra.mxu1 %v9304_v51 }
 0x2b3   :  { %vm5369_vm6 = vcmp.ge.f32.partialorder %v5081_v6, 0.0  ;;  %v5657_v5 = vmul.f32 0.0, %v5081_v6  ;;  %4208 = vmatmul.bf16.gmra.mxu2 %v8259_v2 }
 0x2b4   :  { %v9379_v37 = vpop.f32.mrf.mxu3 }
 0x2b5   :  { %v5945_v55 = vsel %vm5369_vm6, %v5081_v6, %v5657_v5  ;;  %11055 = vst [vmem:[#allocation50_spill] sm:$0xff] %v9379_v37 }
 0x2b6   :  { %v6233_v60 = vpack.c.bf16 %v5945_v55, %v5945_v55  ;;  %v4169_v31 = vpop.f32.mrf.mxu2  ;;  %v1430_v10 = vpop.f32.mrf.mxu0  ;;  %v9397_v55 = vld [vmem:[%s11008_s2] ss:$0 sm:$0xff] }
 0x2b7   :  { %v4790_v42 = vadd.f32 %v4169_v31, %v2224_v11  ;;  %v2225_v9 = vpop.f32.mrf.mxu1  ;;  %v8260_v11 = vld [vmem:[%s11006_s0 + $0x180] sm:$0xff] }
 0x2b8   :  { %6522 = vst.msk [vmem:[#allocation2 + $0x104] sm:$0xf] %vm6456_vm1, %v6233_v60  ;;  %v2226_v41 = vadd.f32 %v2225_v9, %v1430_v10 }
 0x2b9   :  { %v5082_v24 = vadd.f32 %v9038_v48, %v4790_v42 }
 0x2bb   :  { %vm5370_vm7 = vcmp.ge.f32.partialorder %v5082_v24, 0.0  ;;  %v5658_v36 = vmul.f32 0.0, %v5082_v24 }
 0x2bc   :  { %v9383_v40 = vpop.f32.mrf.mxu3 }
 0x2bd   :  { %v5946_v20 = vsel %vm5370_vm7, %v5082_v24, %v5658_v36  ;;  %11056 = vst [vmem:[#allocation51_spill] sm:$0xff] %v9383_v40 }
 0x2be   :  { %v6234_v51 = vpack.c.bf16 %v5946_v20, %v5946_v20  ;;  %v4171_v2 = vpop.f32.mrf.mxu2  ;;  %v1433_v5 = vpop.f32.mrf.mxu0 }
 0x2bf   :  { %v4791_v6 = vadd.f32 %v4171_v2, %v2226_v41  ;;  %v2228_v48 = vpop.f32.mrf.mxu1  ;;  %v8403_v41 = vld [vmem:[%s11006_s0 + $0x390] sm:$0xff] }
 0x2c0   :  { %6523 = vst.msk [vmem:[#allocation2 + $0x108] sm:$0xf] %vm6456_vm1, %v6234_v51  ;;  %v2229_v31 = vadd.f32 %v2228_v48, %v1433_v5  ;;  %v9414_v48 = vld [vmem:[%s11006_s0 + $0x170] sm:$0xff] }
 0x2c1   :  { %v5083_v20 = vadd.f32 %v9397_v55, %v4791_v6  ;;  %1472 = vmatmul.bf16.gmra.mxu0 %v9388_v44  ;;  %2627 = vmatmul.bf16.gmra.mxu3 %v8403_v41 }
 0x2c2   :  { %2267 = vmatmul.bf16.gmra.mxu1 %v9325_v47 }
 0x2c3   :  { %vm5371_vm8 = vcmp.ge.f32.partialorder %v5083_v20, 0.0  ;;  %v5659_v60 = vmul.f32 0.0, %v5083_v20  ;;  %4213 = vmatmul.bf16.gmra.mxu2 %v8260_v11 }
 0x2c4   :  { %v9405_v10 = vpop.f32.mrf.mxu3 }
 0x2c5   :  { %v5947_v42 = vsel %vm5371_vm8, %v5083_v20, %v5659_v60  ;;  %11057 = vst [vmem:[#allocation52_spill] sm:$0xff] %v9405_v10 }
 0x2c6   :  { %v6235_v9 = vpack.c.bf16 %v5947_v42, %v5947_v42  ;;  %v4174_v24 = vpop.f32.mrf.mxu2  ;;  %v1435_v51 = vpop.f32.mrf.mxu0 }
 0x2c7   :  { %v4792_v36 = vadd.f32 %v4174_v24, %v2229_v31  ;;  %v2230_v2 = vpop.f32.mrf.mxu1  ;;  %v8261_v31 = vld [vmem:[%s11006_s0 + $0x188] sm:$0xff] }
 0x2c8   :  { %6524 = vst.msk [vmem:[#allocation2 + $0x10c] sm:$0xf] %vm6456_vm1, %v6235_v9  ;;  %v2231_v37 = vadd.f32 %v2230_v2, %v1435_v51 }
 0x2c9   :  { %v5084_v6 = vadd.f32 %v9397_v55, %v4792_v36 }
 0x2cb   :  { %vm5372_vm9 = vcmp.ge.f32.partialorder %v5084_v6, 0.0  ;;  %v5660_v41 = vmul.f32 0.0, %v5084_v6 }
 0x2cc   :  { %v9409_v5 = vpop.f32.mrf.mxu3 }
 0x2cd   :  { %v5948_v40 = vsel %vm5372_vm9, %v5084_v6, %v5660_v41  ;;  %11058 = vst [vmem:[#allocation53_spill] sm:$0xff] %v9409_v5 }
 0x2ce   :  { %v6236_v47 = vpack.c.bf16 %v5948_v40, %v5948_v40  ;;  %v4176_v11 = vpop.f32.mrf.mxu2  ;;  %v1438_v60 = vpop.f32.mrf.mxu0  ;;  %v8404_v40 = vld [vmem:[%s11006_s0 + $0x398] sm:$0xff] }
 0x2cf   :  { %v4793_v20 = vadd.f32 %v4176_v11, %v2231_v37  ;;  %v2233_v42 = vpop.f32.mrf.mxu1 }
 0x2d0   :  { %6525 = vst.msk [vmem:[#allocation2 + $0x110] sm:$0xf] %vm6456_vm1, %v6236_v47  ;;  %v2234_v37 = vadd.f32 %v2233_v42, %v1438_v60  ;;  %v9435_v42 = vld [vmem:[%s11006_s0 + $0x178] sm:$0xff] }
 0x2d1   :  { %v5085_v9 = vadd.f32 %v9397_v55, %v4793_v20  ;;  %1477 = vmatmul.bf16.gmra.mxu0 %v9414_v48  ;;  %2632 = vmatmul.bf16.gmra.mxu3 %v8404_v40 }
 0x2d2   :  { %2272 = vmatmul.bf16.gmra.mxu1 %v9346_v58 }
 0x2d3   :  { %vm5373_vm10 = vcmp.ge.f32.partialorder %v5085_v9, 0.0  ;;  %v5661_v24 = vmul.f32 0.0, %v5085_v9  ;;  %4218 = vmatmul.bf16.gmra.mxu2 %v8261_v31 }
 0x2d4   :  { %v9426_v51 = vpop.f32.mrf.mxu3 }
 0x2d5   :  { %v5949_v36 = vsel %vm5373_vm10, %v5085_v9, %v5661_v24  ;;  %11059 = vst [vmem:[#allocation54_spill] sm:$0xff] %v9426_v51 }
 0x2d6   :  { %v6237_v2 = vpack.c.bf16 %v5949_v36, %v5949_v36  ;;  %v4179_v6 = vpop.f32.mrf.mxu2  ;;  %v1440_v47 = vpop.f32.mrf.mxu0 }
 0x2d7   :  { %v4794_v41 = vadd.f32 %v4179_v6, %v2234_v37  ;;  %v2235_v11 = vpop.f32.mrf.mxu1  ;;  %v8262_v37 = vld [vmem:[%s11006_s0 + $0x190] sm:$0xff] }
 0x2d8   :  { %6526 = vst.msk [vmem:[#allocation2 + $0x114] sm:$0xf] %vm6456_vm1, %v6237_v2  ;;  %v2236_v10 = vadd.f32 %v2235_v11, %v1440_v47 }
 0x2d9   :  { %v5086_v20 = vadd.f32 %v9397_v55, %v4794_v41 }
 0x2db   :  { %vm5374_vm11 = vcmp.ge.f32.partialorder %v5086_v20, 0.0  ;;  %v5662_v40 = vmul.f32 0.0, %v5086_v20 }
 0x2dc   :  { %v9430_v60 = vpop.f32.mrf.mxu3 }
 0x2dd   :  { %v5950_v5 = vsel %vm5374_vm11, %v5086_v20, %v5662_v40  ;;  %11060 = vst [vmem:[#allocation55_spill] sm:$0xff] %v9430_v60 }
 0x2de   :  { %v6238_v58 = vpack.c.bf16 %v5950_v5, %v5950_v5  ;;  %v4181_v31 = vpop.f32.mrf.mxu2  ;;  %v1443_v24 = vpop.f32.mrf.mxu0  ;;  %v8405_v5 = vld [vmem:[%s11006_s0 + $0x3a0] sm:$0xff] }
 0x2df   :  { %v4795_v9 = vadd.f32 %v4181_v31, %v2236_v10  ;;  %v2238_v36 = vpop.f32.mrf.mxu1 }
 0x2e0   :  { %6527 = vst.msk [vmem:[#allocation2 + $0x118] sm:$0xf] %vm6456_vm1, %v6238_v58  ;;  %v2239_v10 = vadd.f32 %v2238_v36, %v1443_v24  ;;  %v9456_v36 = vld [vmem:[%s11006_s0 + $0x180] sm:$0xff] }
 0x2e1   :  { %v5087_v2 = vadd.f32 %v9397_v55, %v4795_v9  ;;  %1482 = vmatmul.bf16.gmra.mxu0 %v9435_v42  ;;  %2637 = vmatmul.bf16.gmra.mxu3 %v8405_v5 }
 0x2e2   :  { %2277 = vmatmul.bf16.gmra.mxu1 %v9367_v17 }
 0x2e3   :  { %vm5375_vm12 = vcmp.ge.f32.partialorder %v5087_v2, 0.0  ;;  %v5663_v6 = vmul.f32 0.0, %v5087_v2  ;;  %4223 = vmatmul.bf16.gmra.mxu2 %v8262_v37 }
 0x2e4   :  { %v9447_v47 = vpop.f32.mrf.mxu3 }
 0x2e5   :  { %v5951_v41 = vsel %vm5375_vm12, %v5087_v2, %v5663_v6 }
 0x2e6   :  { %v6239_v11 = vpack.c.bf16 %v5951_v41, %v5951_v41  ;;  %v4184_v20 = vpop.f32.mrf.mxu2  ;;  %v1445_v58 = vpop.f32.mrf.mxu0 }
 0x2e7   :  { %v4796_v40 = vadd.f32 %v4184_v20, %v2239_v10  ;;  %v2240_v31 = vpop.f32.mrf.mxu1  ;;  %v8263_v10 = vld [vmem:[%s11006_s0 + $0x198] sm:$0xff] }
 0x2e8   :  { %6528 = vst.msk [vmem:[#allocation2 + $0x11c] sm:$0xf] %vm6456_vm1, %v6239_v11  ;;  %v2241_v51 = vadd.f32 %v2240_v31, %v1445_v58 }
 0x2e9   :  { %v5088_v9 = vadd.f32 %v9397_v55, %v4796_v40 }
 0x2eb   :  { %vm5376_vm13 = vcmp.ge.f32.partialorder %v5088_v9, 0.0  ;;  %v5664_v5 = vmul.f32 0.0, %v5088_v9 }
 0x2ec   :  { %v9451_v24 = vpop.f32.mrf.mxu3 }
 0x2ed   :  { %v5952_v60 = vsel %vm5376_vm13, %v5088_v9, %v5664_v5 }
 0x2ee   :  { %v6240_v17 = vpack.c.bf16 %v5952_v60, %v5952_v60  ;;  %v4186_v37 = vpop.f32.mrf.mxu2  ;;  %v1448_v6 = vpop.f32.mrf.mxu0  ;;  %v8406_v60 = vld [vmem:[%s11006_s0 + $0x3a8] sm:$0xff] }
 0x2ef   :  { %v4797_v2 = vadd.f32 %v4186_v37, %v2241_v51  ;;  %v2243_v41 = vpop.f32.mrf.mxu1 }
 0x2f0   :  { %6529 = vst.msk [vmem:[#allocation2 + $0x120] sm:$0xf] %vm6456_vm1, %v6240_v17  ;;  %v2244_v51 = vadd.f32 %v2243_v41, %v1448_v6  ;;  %v9477_v41 = vld [vmem:[%s11006_s0 + $0x188] sm:$0xff] }
 0x2f1   :  { %v5089_v11 = vadd.f32 %v9397_v55, %v4797_v2  ;;  %1487 = vmatmul.bf16.gmra.mxu0 %v9456_v36  ;;  %2642 = vmatmul.bf16.gmra.mxu3 %v8406_v60 }
 0x2f2   :  { %2282 = vmatmul.bf16.gmra.mxu1 %v9388_v44 }
 0x2f3   :  { %vm5377_vm14 = vcmp.ge.f32.partialorder %v5089_v11, 0.0  ;;  %v5665_v20 = vmul.f32 0.0, %v5089_v11  ;;  %4228 = vmatmul.bf16.gmra.mxu2 %v8263_v10 }
 0x2f4   :  { %v9468_v58 = vpop.f32.mrf.mxu3 }
 0x2f5   :  { %v5953_v40 = vsel %vm5377_vm14, %v5089_v11, %v5665_v20 }
 0x2f6   :  { %v6241_v31 = vpack.c.bf16 %v5953_v40, %v5953_v40  ;;  %v4189_v9 = vpop.f32.mrf.mxu2  ;;  %v1450_v17 = vpop.f32.mrf.mxu0 }
 0x2f7   :  { %v4798_v5 = vadd.f32 %v4189_v9, %v2244_v51  ;;  %v2245_v37 = vpop.f32.mrf.mxu1  ;;  %v8264_v51 = vld [vmem:[%s11006_s0 + $0x1a0] sm:$0xff] }
 0x2f8   :  { %6530 = vst.msk [vmem:[#allocation2 + $0x124] sm:$0xf] %vm6456_vm1, %v6241_v31  ;;  %v2246_v61 = vadd.f32 %v2245_v37, %v1450_v17 }
 0x2f9   :  { %v5090_v2 = vadd.f32 %v9397_v55, %v4798_v5 }
 0x2fb   :  { %vm5378_vm15 = vcmp.ge.f32.partialorder %v5090_v2, 0.0  ;;  %v5666_v60 = vmul.f32 0.0, %v5090_v2 }
 0x2fc   :  { %v9472_v6 = vpop.f32.mrf.mxu3 }
 0x2fd   :  { %v5954_v34 = vsel %vm5378_vm15, %v5090_v2, %v5666_v60 }
 0x2fe   :  { %v6242_v44 = vpack.c.bf16 %v5954_v34, %v5954_v34  ;;  %v4191_v10 = vpop.f32.mrf.mxu2  ;;  %v1453_v20 = vpop.f32.mrf.mxu0  ;;  %v8407_v34 = vld [vmem:[%s11006_s0 + $0x3b0] sm:$0xff] }
 0x2ff   :  { %v4799_v11 = vadd.f32 %v4191_v10, %v2246_v61  ;;  %v2248_v40 = vpop.f32.mrf.mxu1 }
 0x300   :  { %6531 = vst.msk [vmem:[#allocation2 + $0x128] sm:$0xf] %vm6456_vm1, %v6242_v44  ;;  %v2249_v61 = vadd.f32 %v2248_v40, %v1453_v20  ;;  %v9498_v40 = vld [vmem:[%s11006_s0 + $0x190] sm:$0xff] }
 0x301   :  { %v5091_v31 = vadd.f32 %v9397_v55, %v4799_v11  ;;  %1492 = vmatmul.bf16.gmra.mxu0 %v9477_v41  ;;  %2647 = vmatmul.bf16.gmra.mxu3 %v8407_v34 }
 0x302   :  { %2287 = vmatmul.bf16.gmra.mxu1 %v9414_v48 }
 0x303   :  { %vm5379_vm0 = vcmp.ge.f32.partialorder %v5091_v31, 0.0  ;;  %v5667_v9 = vmul.f32 0.0, %v5091_v31  ;;  %4233 = vmatmul.bf16.gmra.mxu2 %v8264_v51 }
 0x304   :  { %v9489_v17 = vpop.f32.mrf.mxu3 }
 0x305   :  { %v5955_v5 = vsel %vm5379_vm0, %v5091_v31, %v5667_v9 }
 0x306   :  { %v6243_v37 = vpack.c.bf16 %v5955_v5, %v5955_v5  ;;  %v4194_v2 = vpop.f32.mrf.mxu2  ;;  %v1455_v44 = vpop.f32.mrf.mxu0 }
 0x307   :  { %v4800_v60 = vadd.f32 %v4194_v2, %v2249_v61  ;;  %v2250_v10 = vpop.f32.mrf.mxu1  ;;  %v8265_v61 = vld [vmem:[%s11006_s0 + $0x1a8] sm:$0xff] }
 0x308   :  { %6532 = vst.msk [vmem:[#allocation2 + $0x12c] sm:$0xf] %vm6456_vm1, %v6243_v37  ;;  %v2251_v56 = vadd.f32 %v2250_v10, %v1455_v44 }
 0x309   :  { %v5092_v11 = vadd.f32 %v9397_v55, %v4800_v60 }
 0x30b   :  { %vm5380_vm2 = vcmp.ge.f32.partialorder %v5092_v11, 0.0  ;;  %v5668_v34 = vmul.f32 0.0, %v5092_v11 }
 0x30c   :  { %v9493_v20 = vpop.f32.mrf.mxu3 }
 0x30d   :  { %v5956_v0 = vsel %vm5380_vm2, %v5092_v11, %v5668_v34 }
 0x30e   :  { %v6244_v48 = vpack.c.bf16 %v5956_v0, %v5956_v0  ;;  %v4196_v51 = vpop.f32.mrf.mxu2  ;;  %v1458_v9 = vpop.f32.mrf.mxu0  ;;  %v8408_v0 = vld [vmem:[%s11006_s0 + $0x3b8] sm:$0xff] }
 0x30f   :  { %v4801_v31 = vadd.f32 %v4196_v51, %v2251_v56  ;;  %v2253_v5 = vpop.f32.mrf.mxu1 }
 0x310   :  { %6533 = vst.msk [vmem:[#allocation2 + $0x130] sm:$0xf] %vm6456_vm1, %v6244_v48  ;;  %v2254_v56 = vadd.f32 %v2253_v5, %v1458_v9  ;;  %v9519_v5 = vld [vmem:[%s11006_s0 + $0x198] sm:$0xff] }
 0x311   :  { %v5093_v37 = vadd.f32 %v9397_v55, %v4801_v31  ;;  %1497 = vmatmul.bf16.gmra.mxu0 %v9498_v40  ;;  %2652 = vmatmul.bf16.gmra.mxu3 %v8408_v0 }
 0x312   :  { %2292 = vmatmul.bf16.gmra.mxu1 %v9435_v42 }
 0x313   :  { %vm5381_vm3 = vcmp.ge.f32.partialorder %v5093_v37, 0.0  ;;  %v5669_v2 = vmul.f32 0.0, %v5093_v37  ;;  %4238 = vmatmul.bf16.gmra.mxu2 %v8265_v61 }
 0x314   :  { %v9510_v44 = vpop.f32.mrf.mxu3 }
 0x315   :  { %v5957_v60 = vsel %vm5381_vm3, %v5093_v37, %v5669_v2 }
 0x316   :  { %v6245_v10 = vpack.c.bf16 %v5957_v60, %v5957_v60  ;;  %v4199_v11 = vpop.f32.mrf.mxu2  ;;  %v1460_v48 = vpop.f32.mrf.mxu0 }
 0x317   :  { %v4802_v34 = vadd.f32 %v4199_v11, %v2254_v56  ;;  %v2255_v51 = vpop.f32.mrf.mxu1  ;;  %v8266_v56 = vld [vmem:[%s11006_s0 + $0x1b0] sm:$0xff] }
 0x318   :  { %6534 = vst.msk [vmem:[#allocation2 + $0x134] sm:$0xf] %vm6456_vm1, %v6245_v10  ;;  %v2256_v59 = vadd.f32 %v2255_v51, %v1460_v48 }
 0x319   :  { %v5094_v31 = vadd.f32 %v9397_v55, %v4802_v34 }
 0x31b   :  { %vm5382_vm4 = vcmp.ge.f32.partialorder %v5094_v31, 0.0  ;;  %v5670_v0 = vmul.f32 0.0, %v5094_v31 }
 0x31c   :  { %v9514_v9 = vpop.f32.mrf.mxu3 }
 0x31d   :  { %v5958_v21 = vsel %vm5382_vm4, %v5094_v31, %v5670_v0 }
 0x31e   :  { %v6246_v42 = vpack.c.bf16 %v5958_v21, %v5958_v21  ;;  %v4201_v61 = vpop.f32.mrf.mxu2  ;;  %v1463_v2 = vpop.f32.mrf.mxu0  ;;  %v8409_v21 = vld [vmem:[%s11006_s0 + $0x3c0] sm:$0xff] }
 0x31f   :  { %v4803_v37 = vadd.f32 %v4201_v61, %v2256_v59  ;;  %v2258_v60 = vpop.f32.mrf.mxu1 }
 0x320   :  { %6535 = vst.msk [vmem:[#allocation2 + $0x138] sm:$0xf] %vm6456_vm1, %v6246_v42  ;;  %v2259_v59 = vadd.f32 %v2258_v60, %v1463_v2  ;;  %v9540_v60 = vld [vmem:[%s11006_s0 + $0x1a0] sm:$0xff] }
 0x321   :  { %v5095_v10 = vadd.f32 %v9397_v55, %v4803_v37  ;;  %1502 = vmatmul.bf16.gmra.mxu0 %v9519_v5  ;;  %2657 = vmatmul.bf16.gmra.mxu3 %v8409_v21 }
 0x322   :  { %2297 = vmatmul.bf16.gmra.mxu1 %v9456_v36 }
 0x323   :  { %vm5383_vm5 = vcmp.ge.f32.partialorder %v5095_v10, 0.0  ;;  %v5671_v11 = vmul.f32 0.0, %v5095_v10  ;;  %4243 = vmatmul.bf16.gmra.mxu2 %v8266_v56 }
 0x324   :  { %v9531_v48 = vpop.f32.mrf.mxu3 }
 0x325   :  { %v5959_v34 = vsel %vm5383_vm5, %v5095_v10, %v5671_v11 }
 0x326   :  { %v6247_v51 = vpack.c.bf16 %v5959_v34, %v5959_v34  ;;  %v4204_v31 = vpop.f32.mrf.mxu2  ;;  %v1465_v42 = vpop.f32.mrf.mxu0 }
 0x327   :  { %v4804_v0 = vadd.f32 %v4204_v31, %v2259_v59  ;;  %v2260_v61 = vpop.f32.mrf.mxu1  ;;  %v8267_v59 = vld [vmem:[%s11006_s0 + $0x1b8] sm:$0xff] }
 0x328   :  { %6536 = vst.msk [vmem:[#allocation2 + $0x13c] sm:$0xf] %vm6456_vm1, %v6247_v51  ;;  %v2261_v7 = vadd.f32 %v2260_v61, %v1465_v42 }
 0x329   :  { %v5096_v37 = vadd.f32 %v9397_v55, %v4804_v0 }
 0x32b   :  { %vm5384_vm6 = vcmp.ge.f32.partialorder %v5096_v37, 0.0  ;;  %v5672_v21 = vmul.f32 0.0, %v5096_v37 }
 0x32c   :  { %v9535_v2 = vpop.f32.mrf.mxu3 }
 0x32d   :  { %v5960_v23 = vsel %vm5384_vm6, %v5096_v37, %v5672_v21 }
 0x32e   :  { %v6248_v36 = vpack.c.bf16 %v5960_v23, %v5960_v23  ;;  %v4206_v56 = vpop.f32.mrf.mxu2  ;;  %v1468_v11 = vpop.f32.mrf.mxu0  ;;  %v8410_v23 = vld [vmem:[%s11006_s0 + $0x3c8] sm:$0xff] }
 0x32f   :  { %v4805_v10 = vadd.f32 %v4206_v56, %v2261_v7  ;;  %v2263_v34 = vpop.f32.mrf.mxu1 }
 0x330   :  { %6537 = vst.msk [vmem:[#allocation2 + $0x140] sm:$0xf] %vm6456_vm1, %v6248_v36  ;;  %v2264_v7 = vadd.f32 %v2263_v34, %v1468_v11  ;;  %v9561_v34 = vld [vmem:[%s11006_s0 + $0x1a8] sm:$0xff] }
 0x331   :  { %v5097_v51 = vadd.f32 %v9397_v55, %v4805_v10  ;;  %1507 = vmatmul.bf16.gmra.mxu0 %v9540_v60  ;;  %2662 = vmatmul.bf16.gmra.mxu3 %v8410_v23 }
 0x332   :  { %2302 = vmatmul.bf16.gmra.mxu1 %v9477_v41 }
 0x333   :  { %vm5385_vm7 = vcmp.ge.f32.partialorder %v5097_v51, 0.0  ;;  %v5673_v31 = vmul.f32 0.0, %v5097_v51  ;;  %4248 = vmatmul.bf16.gmra.mxu2 %v8267_v59 }
 0x334   :  { %v9552_v42 = vpop.f32.mrf.mxu3 }
 0x335   :  { %v5961_v0 = vsel %vm5385_vm7, %v5097_v51, %v5673_v31 }
 0x336   :  { %v6249_v61 = vpack.c.bf16 %v5961_v0, %v5961_v0  ;;  %v4209_v37 = vpop.f32.mrf.mxu2  ;;  %v1470_v36 = vpop.f32.mrf.mxu0 }
 0x337   :  { %v4806_v21 = vadd.f32 %v4209_v37, %v2264_v7  ;;  %v2265_v56 = vpop.f32.mrf.mxu1  ;;  %v8268_v7 = vld [vmem:[%s11006_s0 + $0x1c0] sm:$0xff] }
 0x338   :  { %6538 = vst.msk [vmem:[#allocation2 + $0x144] sm:$0xf] %vm6456_vm1, %v6249_v61  ;;  %v2266_v12 = vadd.f32 %v2265_v56, %v1470_v36 }
 0x339   :  { %v5098_v10 = vadd.f32 %v9397_v55, %v4806_v21 }
 0x33b   :  { %vm5386_vm8 = vcmp.ge.f32.partialorder %v5098_v10, 0.0  ;;  %v5674_v23 = vmul.f32 0.0, %v5098_v10 }
 0x33c   :  { %v9556_v11 = vpop.f32.mrf.mxu3 }
 0x33d   :  { %v5962_v35 = vsel %vm5386_vm8, %v5098_v10, %v5674_v23 }
 0x33e   :  { %v6250_v41 = vpack.c.bf16 %v5962_v35, %v5962_v35  ;;  %v4211_v59 = vpop.f32.mrf.mxu2  ;;  %v1473_v31 = vpop.f32.mrf.mxu0  ;;  %v8411_v35 = vld [vmem:[%s11006_s0 + $0x3d0] sm:$0xff] }
 0x33f   :  { %v4807_v51 = vadd.f32 %v4211_v59, %v2266_v12  ;;  %v2268_v0 = vpop.f32.mrf.mxu1 }
 0x340   :  { %6539 = vst.msk [vmem:[#allocation2 + $0x148] sm:$0xf] %vm6456_vm1, %v6250_v41  ;;  %v2269_v12 = vadd.f32 %v2268_v0, %v1473_v31  ;;  %v9582_v0 = vld [vmem:[%s11006_s0 + $0x1b0] sm:$0xff] }
 0x341   :  { %v5099_v61 = vadd.f32 %v9397_v55, %v4807_v51  ;;  %1512 = vmatmul.bf16.gmra.mxu0 %v9561_v34  ;;  %2667 = vmatmul.bf16.gmra.mxu3 %v8411_v35 }
 0x342   :  { %2307 = vmatmul.bf16.gmra.mxu1 %v9498_v40 }
 0x343   :  { %vm5387_vm9 = vcmp.ge.f32.partialorder %v5099_v61, 0.0  ;;  %v5675_v37 = vmul.f32 0.0, %v5099_v61  ;;  %4253 = vmatmul.bf16.gmra.mxu2 %v8268_v7 }
 0x344   :  { %v9573_v36 = vpop.f32.mrf.mxu3 }
 0x345   :  { %v5963_v21 = vsel %vm5387_vm9, %v5099_v61, %v5675_v37 }
 0x346   :  { %v6251_v56 = vpack.c.bf16 %v5963_v21, %v5963_v21  ;;  %v4214_v10 = vpop.f32.mrf.mxu2  ;;  %v1475_v41 = vpop.f32.mrf.mxu0 }
 0x347   :  { %v4808_v23 = vadd.f32 %v4214_v10, %v2269_v12  ;;  %v2270_v59 = vpop.f32.mrf.mxu1  ;;  %v8269_v12 = vld [vmem:[%s11006_s0 + $0x1c8] sm:$0xff] }
 0x348   :  { %6540 = vst.msk [vmem:[#allocation2 + $0x14c] sm:$0xf] %vm6456_vm1, %v6251_v56  ;;  %v2271_v28 = vadd.f32 %v2270_v59, %v1475_v41 }
 0x349   :  { %v5100_v51 = vadd.f32 %v9397_v55, %v4808_v23 }
 0x34b   :  { %vm5388_vm10 = vcmp.ge.f32.partialorder %v5100_v51, 0.0  ;;  %v5676_v35 = vmul.f32 0.0, %v5100_v51 }
 0x34c   :  { %v9577_v31 = vpop.f32.mrf.mxu3 }
 0x34d   :  { %v5964_v49 = vsel %vm5388_vm10, %v5100_v51, %v5676_v35 }
 0x34e   :  { %v6252_v40 = vpack.c.bf16 %v5964_v49, %v5964_v49  ;;  %v4216_v7 = vpop.f32.mrf.mxu2  ;;  %v1478_v37 = vpop.f32.mrf.mxu0  ;;  %v8412_v49 = vld [vmem:[%s11006_s0 + $0x3d8] sm:$0xff] }
 0x34f   :  { %v4809_v61 = vadd.f32 %v4216_v7, %v2271_v28  ;;  %v2273_v21 = vpop.f32.mrf.mxu1 }
 0x350   :  { %6541 = vst.msk [vmem:[#allocation2 + $0x150] sm:$0xf] %vm6456_vm1, %v6252_v40  ;;  %v2274_v28 = vadd.f32 %v2273_v21, %v1478_v37  ;;  %v9603_v21 = vld [vmem:[%s11006_s0 + $0x1b8] sm:$0xff] }
 0x351   :  { %v5101_v56 = vadd.f32 %v9397_v55, %v4809_v61  ;;  %1517 = vmatmul.bf16.gmra.mxu0 %v9582_v0  ;;  %2672 = vmatmul.bf16.gmra.mxu3 %v8412_v49 }
 0x352   :  { %2312 = vmatmul.bf16.gmra.mxu1 %v9519_v5 }
 0x353   :  { %vm5389_vm11 = vcmp.ge.f32.partialorder %v5101_v56, 0.0  ;;  %v5677_v10 = vmul.f32 0.0, %v5101_v56  ;;  %4258 = vmatmul.bf16.gmra.mxu2 %v8269_v12 }
 0x354   :  { %v9594_v41 = vpop.f32.mrf.mxu3 }
 0x355   :  { %v5965_v23 = vsel %vm5389_vm11, %v5101_v56, %v5677_v10 }
 0x356   :  { %v6253_v59 = vpack.c.bf16 %v5965_v23, %v5965_v23  ;;  %v4219_v51 = vpop.f32.mrf.mxu2  ;;  %v1480_v40 = vpop.f32.mrf.mxu0 }
 0x357   :  { %v4810_v35 = vadd.f32 %v4219_v51, %v2274_v28  ;;  %v2275_v7 = vpop.f32.mrf.mxu1  ;;  %v8270_v28 = vld [vmem:[%s11006_s0 + $0x1d0] sm:$0xff] }
 0x358   :  { %6542 = vst.msk [vmem:[#allocation2 + $0x154] sm:$0xf] %vm6456_vm1, %v6253_v59  ;;  %v2276_v53 = vadd.f32 %v2275_v7, %v1480_v40 }
 0x359   :  { %v5102_v61 = vadd.f32 %v9397_v55, %v4810_v35 }
 0x35b   :  { %vm5390_vm12 = vcmp.ge.f32.partialorder %v5102_v61, 0.0  ;;  %v5678_v49 = vmul.f32 0.0, %v5102_v61 }
 0x35c   :  { %v9598_v37 = vpop.f32.mrf.mxu3 }
 0x35d   :  { %v5966_v63 = vsel %vm5390_vm12, %v5102_v61, %v5678_v49 }
 0x35e   :  { %v6254_v5 = vpack.c.bf16 %v5966_v63, %v5966_v63  ;;  %v4221_v12 = vpop.f32.mrf.mxu2  ;;  %v1483_v10 = vpop.f32.mrf.mxu0  ;;  %v8413_v63 = vld [vmem:[%s11006_s0 + $0x3e0] sm:$0xff] }
 0x35f   :  { %v4811_v56 = vadd.f32 %v4221_v12, %v2276_v53  ;;  %v2278_v23 = vpop.f32.mrf.mxu1 }
 0x360   :  { %6543 = vst.msk [vmem:[#allocation2 + $0x158] sm:$0xf] %vm6456_vm1, %v6254_v5  ;;  %v2279_v53 = vadd.f32 %v2278_v23, %v1483_v10  ;;  %v9624_v23 = vld [vmem:[%s11006_s0 + $0x1c0] sm:$0xff] }
 0x361   :  { %v5103_v59 = vadd.f32 %v9397_v55, %v4811_v56  ;;  %1522 = vmatmul.bf16.gmra.mxu0 %v9603_v21  ;;  %2677 = vmatmul.bf16.gmra.mxu3 %v8413_v63 }
 0x362   :  { %2317 = vmatmul.bf16.gmra.mxu1 %v9540_v60 }
 0x363   :  { %vm5391_vm13 = vcmp.ge.f32.partialorder %v5103_v59, 0.0  ;;  %v5679_v51 = vmul.f32 0.0, %v5103_v59  ;;  %4263 = vmatmul.bf16.gmra.mxu2 %v8270_v28 }
 0x364   :  { %v9615_v40 = vpop.f32.mrf.mxu3 }
 0x365   :  { %v5967_v35 = vsel %vm5391_vm13, %v5103_v59, %v5679_v51 }
 0x366   :  { %v6255_v7 = vpack.c.bf16 %v5967_v35, %v5967_v35  ;;  %v4224_v61 = vpop.f32.mrf.mxu2  ;;  %v1485_v5 = vpop.f32.mrf.mxu0 }
 0x367   :  { %v4812_v49 = vadd.f32 %v4224_v61, %v2279_v53  ;;  %v2280_v12 = vpop.f32.mrf.mxu1  ;;  %v8271_v53 = vld [vmem:[%s11006_s0 + $0x1d8] sm:$0xff] }
 0x368   :  { %6544 = vst.msk [vmem:[#allocation2 + $0x15c] sm:$0xf] %vm6456_vm1, %v6255_v7  ;;  %v2281_v29 = vadd.f32 %v2280_v12, %v1485_v5 }
 0x369   :  { %v5104_v56 = vadd.f32 %v9397_v55, %v4812_v49 }
 0x36b   :  { %vm5392_vm14 = vcmp.ge.f32.partialorder %v5104_v56, 0.0  ;;  %v5680_v63 = vmul.f32 0.0, %v5104_v56 }
 0x36c   :  { %v9619_v10 = vpop.f32.mrf.mxu3 }
 0x36d   :  { %v5968_v22 = vsel %vm5392_vm14, %v5104_v56, %v5680_v63 }
 0x36e   :  { %v6256_v60 = vpack.c.bf16 %v5968_v22, %v5968_v22  ;;  %v4226_v28 = vpop.f32.mrf.mxu2  ;;  %v1488_v51 = vpop.f32.mrf.mxu0  ;;  %v8414_v22 = vld [vmem:[%s11006_s0 + $0x3e8] sm:$0xff] }
 0x36f   :  { %v4813_v59 = vadd.f32 %v4226_v28, %v2281_v29  ;;  %v2283_v35 = vpop.f32.mrf.mxu1 }
 0x370   :  { %6545 = vst.msk [vmem:[#allocation2 + $0x160] sm:$0xf] %vm6456_vm1, %v6256_v60  ;;  %v2284_v29 = vadd.f32 %v2283_v35, %v1488_v51  ;;  %v9645_v35 = vld [vmem:[%s11006_s0 + $0x1c8] sm:$0xff] }
 0x371   :  { %v5105_v7 = vadd.f32 %v9397_v55, %v4813_v59  ;;  %1527 = vmatmul.bf16.gmra.mxu0 %v9624_v23  ;;  %2682 = vmatmul.bf16.gmra.mxu3 %v8414_v22 }
 0x372   :  { %2322 = vmatmul.bf16.gmra.mxu1 %v9561_v34 }
 0x373   :  { %vm5393_vm15 = vcmp.ge.f32.partialorder %v5105_v7, 0.0  ;;  %v5681_v61 = vmul.f32 0.0, %v5105_v7  ;;  %4268 = vmatmul.bf16.gmra.mxu2 %v8271_v53 }
 0x374   :  { %v9636_v5 = vpop.f32.mrf.mxu3 }
 0x375   :  { %v5969_v49 = vsel %vm5393_vm15, %v5105_v7, %v5681_v61 }
 0x376   :  { %v6257_v12 = vpack.c.bf16 %v5969_v49, %v5969_v49  ;;  %v4229_v56 = vpop.f32.mrf.mxu2  ;;  %v1490_v60 = vpop.f32.mrf.mxu0 }
 0x377   :  { %v4814_v63 = vadd.f32 %v4229_v56, %v2284_v29  ;;  %v2285_v28 = vpop.f32.mrf.mxu1  ;;  %v8272_v29 = vld [vmem:[%s11006_s0 + $0x1e0] sm:$0xff] }
 0x378   :  { %6546 = vst.msk [vmem:[#allocation2 + $0x164] sm:$0xf] %vm6456_vm1, %v6257_v12  ;;  %v2286_v25 = vadd.f32 %v2285_v28, %v1490_v60 }
 0x379   :  { %v5106_v59 = vadd.f32 %v9397_v55, %v4814_v63 }
 0x37b   :  { %vm5394_vm0 = vcmp.ge.f32.partialorder %v5106_v59, 0.0  ;;  %v5682_v22 = vmul.f32 0.0, %v5106_v59 }
 0x37c   :  { %v9640_v51 = vpop.f32.mrf.mxu3 }
 0x37d   :  { %v5970_v43 = vsel %vm5394_vm0, %v5106_v59, %v5682_v22 }
 0x37e   :  { %v6258_v34 = vpack.c.bf16 %v5970_v43, %v5970_v43  ;;  %v4231_v53 = vpop.f32.mrf.mxu2  ;;  %v1493_v61 = vpop.f32.mrf.mxu0  ;;  %v8415_v43 = vld [vmem:[%s11006_s0 + $0x3f0] sm:$0xff] }
 0x37f   :  { %v4815_v7 = vadd.f32 %v4231_v53, %v2286_v25  ;;  %v2288_v49 = vpop.f32.mrf.mxu1 }
 0x380   :  { %6547 = vst.msk [vmem:[#allocation2 + $0x168] sm:$0xf] %vm6456_vm1, %v6258_v34  ;;  %v2289_v25 = vadd.f32 %v2288_v49, %v1493_v61  ;;  %v9666_v49 = vld [vmem:[%s11006_s0 + $0x1d0] sm:$0xff] }
 0x381   :  { %v5107_v12 = vadd.f32 %v9397_v55, %v4815_v7  ;;  %1532 = vmatmul.bf16.gmra.mxu0 %v9645_v35  ;;  %2687 = vmatmul.bf16.gmra.mxu3 %v8415_v43 }
 0x382   :  { %2327 = vmatmul.bf16.gmra.mxu1 %v9582_v0 }
 0x383   :  { %vm5395_vm2 = vcmp.ge.f32.partialorder %v5107_v12, 0.0  ;;  %v5683_v56 = vmul.f32 0.0, %v5107_v12  ;;  %4273 = vmatmul.bf16.gmra.mxu2 %v8272_v29 }
 0x384   :  { %v9657_v60 = vpop.f32.mrf.mxu3 }
 0x385   :  { %v5971_v63 = vsel %vm5395_vm2, %v5107_v12, %v5683_v56 }
 0x386   :  { %v6259_v28 = vpack.c.bf16 %v5971_v63, %v5971_v63  ;;  %v4234_v59 = vpop.f32.mrf.mxu2  ;;  %v1495_v34 = vpop.f32.mrf.mxu0 }
 0x387   :  { %v4816_v22 = vadd.f32 %v4234_v59, %v2289_v25  ;;  %v2290_v53 = vpop.f32.mrf.mxu1  ;;  %v8273_v25 = vld [vmem:[%s11006_s0 + $0x1e8] sm:$0xff] }
 0x388   :  { %6548 = vst.msk [vmem:[#allocation2 + $0x16c] sm:$0xf] %vm6456_vm1, %v6259_v28  ;;  %v2291_v52 = vadd.f32 %v2290_v53, %v1495_v34 }
 0x389   :  { %v5108_v7 = vadd.f32 %v9397_v55, %v4816_v22 }
 0x38b   :  { %vm5396_vm3 = vcmp.ge.f32.partialorder %v5108_v7, 0.0  ;;  %v5684_v43 = vmul.f32 0.0, %v5108_v7 }
 0x38c   :  { %v9661_v61 = vpop.f32.mrf.mxu3 }
 0x38d   :  { %v5972_v8 = vsel %vm5396_vm3, %v5108_v7, %v5684_v43  ;;  %11061 = vst [vmem:[#allocation56_spill] sm:$0xff] %v9661_v61 }
 0x38e   :  { %v6260_v0 = vpack.c.bf16 %v5972_v8, %v5972_v8  ;;  %v4236_v29 = vpop.f32.mrf.mxu2  ;;  %v1498_v56 = vpop.f32.mrf.mxu0  ;;  %v8416_v8 = vld [vmem:[%s11006_s0 + $0x3f8] sm:$0xff] }
 0x38f   :  { %v4817_v12 = vadd.f32 %v4236_v29, %v2291_v52  ;;  %v2293_v63 = vpop.f32.mrf.mxu1 }
 0x390   :  { %6549 = vst.msk [vmem:[#allocation2 + $0x170] sm:$0xf] %vm6456_vm1, %v6260_v0  ;;  %v2294_v52 = vadd.f32 %v2293_v63, %v1498_v56  ;;  %v9687_v63 = vld [vmem:[%s11006_s0 + $0x1d8] sm:$0xff] }
 0x391   :  { %v5109_v28 = vadd.f32 %v9397_v55, %v4817_v12  ;;  %1537 = vmatmul.bf16.gmra.mxu0 %v9666_v49  ;;  %2692 = vmatmul.bf16.gmra.mxu3 %v8416_v8 }
 0x392   :  { %2332 = vmatmul.bf16.gmra.mxu1 %v9603_v21 }
 0x393   :  { %vm5397_vm4 = vcmp.ge.f32.partialorder %v5109_v28, 0.0  ;;  %v5685_v59 = vmul.f32 0.0, %v5109_v28  ;;  %4278 = vmatmul.bf16.gmra.mxu2 %v8273_v25 }
 0x394   :  { %v9678_v34 = vpop.f32.mrf.mxu3 }
 0x395   :  { %v5973_v22 = vsel %vm5397_vm4, %v5109_v28, %v5685_v59  ;;  %11062 = vst [vmem:[#allocation57_spill] sm:$0xff] %v9678_v34 }
 0x396   :  { %v6261_v53 = vpack.c.bf16 %v5973_v22, %v5973_v22  ;;  %v4239_v7 = vpop.f32.mrf.mxu2  ;;  %v1500_v0 = vpop.f32.mrf.mxu0 }
 0x397   :  { %v4818_v43 = vadd.f32 %v4239_v7, %v2294_v52  ;;  %v2295_v29 = vpop.f32.mrf.mxu1  ;;  %v8274_v52 = vld [vmem:[%s11006_s0 + $0x1f0] sm:$0xff] }
 0x398   :  { %6550 = vst.msk [vmem:[#allocation2 + $0x174] sm:$0xf] %vm6456_vm1, %v6261_v53  ;;  %v2296_v33 = vadd.f32 %v2295_v29, %v1500_v0 }
 0x399   :  { %v5110_v12 = vadd.f32 %v9397_v55, %v4818_v43 }
 0x39b   :  { %vm5398_vm5 = vcmp.ge.f32.partialorder %v5110_v12, 0.0  ;;  %v5686_v8 = vmul.f32 0.0, %v5110_v12 }
 0x39c   :  { %v9682_v56 = vpop.f32.mrf.mxu3 }
 0x39d   :  { %v5974_v61 = vsel %vm5398_vm5, %v5110_v12, %v5686_v8  ;;  %11063 = vst [vmem:[#allocation58_spill] sm:$0xff] %v9682_v56 }
 0x39e   :  { %v6262_v21 = vpack.c.bf16 %v5974_v61, %v5974_v61  ;;  %v4241_v25 = vpop.f32.mrf.mxu2  ;;  %v1503_v59 = vpop.f32.mrf.mxu0  ;;  %v8417_v61 = vld [vmem:[%s11006_s0 + $0x400] sm:$0xff] }
 0x39f   :  { %v4819_v28 = vadd.f32 %v4241_v25, %v2296_v33  ;;  %v2298_v22 = vpop.f32.mrf.mxu1 }
 0x3a0   :  { %6551 = vst.msk [vmem:[#allocation2 + $0x178] sm:$0xf] %vm6456_vm1, %v6262_v21  ;;  %v2299_v33 = vadd.f32 %v2298_v22, %v1503_v59  ;;  %v9708_v22 = vld [vmem:[%s11006_s0 + $0x1e0] sm:$0xff] }
 0x3a1   :  { %v5111_v53 = vadd.f32 %v9397_v55, %v4819_v28  ;;  %1542 = vmatmul.bf16.gmra.mxu0 %v9687_v63  ;;  %2697 = vmatmul.bf16.gmra.mxu3 %v8417_v61 }
 0x3a2   :  { %2337 = vmatmul.bf16.gmra.mxu1 %v9624_v23 }
 0x3a3   :  { %vm5399_vm6 = vcmp.ge.f32.partialorder %v5111_v53, 0.0  ;;  %v5687_v7 = vmul.f32 0.0, %v5111_v53  ;;  %4283 = vmatmul.bf16.gmra.mxu2 %v8274_v52 }
 0x3a4   :  { %v9699_v0 = vpop.f32.mrf.mxu3 }
 0x3a5   :  { %v5975_v43 = vsel %vm5399_vm6, %v5111_v53, %v5687_v7  ;;  %11064 = vst [vmem:[#allocation59_spill] sm:$0xff] %v9699_v0 }
 0x3a6   :  { %v6263_v29 = vpack.c.bf16 %v5975_v43, %v5975_v43  ;;  %v4244_v12 = vpop.f32.mrf.mxu2  ;;  %v1505_v21 = vpop.f32.mrf.mxu0 }
 0x3a7   :  { %v4820_v8 = vadd.f32 %v4244_v12, %v2299_v33  ;;  %v2300_v25 = vpop.f32.mrf.mxu1  ;;  %v8275_v33 = vld [vmem:[%s11006_s0 + $0x1f8] sm:$0xff] }
 0x3a8   :  { %6552 = vst.msk [vmem:[#allocation2 + $0x17c] sm:$0xf] %vm6456_vm1, %v6263_v29  ;;  %v2301_v34 = vadd.f32 %v2300_v25, %v1505_v21 }
 0x3a9   :  { %v5112_v28 = vadd.f32 %v9397_v55, %v4820_v8 }
 0x3ab   :  { %vm5400_vm7 = vcmp.ge.f32.partialorder %v5112_v28, 0.0  ;;  %v5688_v61 = vmul.f32 0.0, %v5112_v28 }
 0x3ac   :  { %v9703_v59 = vpop.f32.mrf.mxu3 }
 0x3ad   :  { %v5976_v56 = vsel %vm5400_vm7, %v5112_v28, %v5688_v61  ;;  %11065 = vst [vmem:[#allocation60_spill] sm:$0xff] %v9703_v59 }
 0x3ae   :  { %v6264_v23 = vpack.c.bf16 %v5976_v56, %v5976_v56  ;;  %v4246_v52 = vpop.f32.mrf.mxu2  ;;  %v1508_v7 = vpop.f32.mrf.mxu0  ;;  %v8418_v56 = vld [vmem:[%s11006_s0 + $0x408] sm:$0xff] }
 0x3af   :  { %v4821_v53 = vadd.f32 %v4246_v52, %v2301_v34  ;;  %v2303_v43 = vpop.f32.mrf.mxu1 }
 0x3b0   :  { %6553 = vst.msk [vmem:[#allocation2 + $0x180] sm:$0xf] %vm6456_vm1, %v6264_v23  ;;  %v2304_v34 = vadd.f32 %v2303_v43, %v1508_v7  ;;  %v9729_v43 = vld [vmem:[%s11006_s0 + $0x1e8] sm:$0xff] }
 0x3b1   :  { %v5113_v29 = vadd.f32 %v9397_v55, %v4821_v53  ;;  %1547 = vmatmul.bf16.gmra.mxu0 %v9708_v22  ;;  %2702 = vmatmul.bf16.gmra.mxu3 %v8418_v56 }
 0x3b2   :  { %2342 = vmatmul.bf16.gmra.mxu1 %v9645_v35 }
 0x3b3   :  { %vm5401_vm8 = vcmp.ge.f32.partialorder %v5113_v29, 0.0  ;;  %v5689_v12 = vmul.f32 0.0, %v5113_v29  ;;  %4288 = vmatmul.bf16.gmra.mxu2 %v8275_v33 }
 0x3b4   :  { %v9720_v21 = vpop.f32.mrf.mxu3 }
 0x3b5   :  { %v5977_v8 = vsel %vm5401_vm8, %v5113_v29, %v5689_v12  ;;  %11066 = vst [vmem:[#allocation61_spill] sm:$0xff] %v9720_v21 }
 0x3b6   :  { %v6265_v25 = vpack.c.bf16 %v5977_v8, %v5977_v8  ;;  %v4249_v28 = vpop.f32.mrf.mxu2  ;;  %v1510_v23 = vpop.f32.mrf.mxu0 }
 0x3b7   :  { %v4822_v61 = vadd.f32 %v4249_v28, %v2304_v34  ;;  %v2305_v52 = vpop.f32.mrf.mxu1  ;;  %v8276_v34 = vld [vmem:[%s11006_s0 + $0x200] sm:$0xff] }
 0x3b8   :  { %6554 = vst.msk [vmem:[#allocation2 + $0x184] sm:$0xf] %vm6456_vm1, %v6265_v25  ;;  %v2306_v0 = vadd.f32 %v2305_v52, %v1510_v23 }
 0x3b9   :  { %v5114_v53 = vadd.f32 %v9397_v55, %v4822_v61 }
 0x3bb   :  { %vm5402_vm9 = vcmp.ge.f32.partialorder %v5114_v53, 0.0  ;;  %v5690_v56 = vmul.f32 0.0, %v5114_v53 }
 0x3bc   :  { %v9724_v7 = vpop.f32.mrf.mxu3 }
 0x3bd   :  { %v5978_v59 = vsel %vm5402_vm9, %v5114_v53, %v5690_v56  ;;  %11067 = vst [vmem:[#allocation62_spill] sm:$0xff] %v9724_v7 }
 0x3be   :  { %v6266_v35 = vpack.c.bf16 %v5978_v59, %v5978_v59  ;;  %v4251_v33 = vpop.f32.mrf.mxu2  ;;  %v1513_v12 = vpop.f32.mrf.mxu0  ;;  %v8419_v59 = vld [vmem:[%s11006_s0 + $0x410] sm:$0xff] }
 0x3bf   :  { %v4823_v29 = vadd.f32 %v4251_v33, %v2306_v0  ;;  %v2308_v8 = vpop.f32.mrf.mxu1 }
 0x3c0   :  { %6555 = vst.msk [vmem:[#allocation2 + $0x188] sm:$0xf] %vm6456_vm1, %v6266_v35  ;;  %v2309_v0 = vadd.f32 %v2308_v8, %v1513_v12  ;;  %v9750_v8 = vld [vmem:[%s11006_s0 + $0x1f0] sm:$0xff] }
 0x3c1   :  { %v5115_v25 = vadd.f32 %v9397_v55, %v4823_v29  ;;  %1552 = vmatmul.bf16.gmra.mxu0 %v9729_v43  ;;  %2707 = vmatmul.bf16.gmra.mxu3 %v8419_v59 }
 0x3c2   :  { %2347 = vmatmul.bf16.gmra.mxu1 %v9666_v49 }
 0x3c3   :  { %vm5403_vm10 = vcmp.ge.f32.partialorder %v5115_v25, 0.0  ;;  %v5691_v28 = vmul.f32 0.0, %v5115_v25  ;;  %4293 = vmatmul.bf16.gmra.mxu2 %v8276_v34 }
 0x3c4   :  { %v9741_v23 = vpop.f32.mrf.mxu3 }
 0x3c5   :  { %v5979_v61 = vsel %vm5403_vm10, %v5115_v25, %v5691_v28  ;;  %11068 = vst [vmem:[#allocation63_spill] sm:$0xff] %v9741_v23 }
 0x3c6   :  { %v6267_v52 = vpack.c.bf16 %v5979_v61, %v5979_v61  ;;  %v4254_v53 = vpop.f32.mrf.mxu2  ;;  %v1515_v35 = vpop.f32.mrf.mxu0 }
 0x3c7   :  { %v4824_v56 = vadd.f32 %v4254_v53, %v2309_v0  ;;  %v2310_v33 = vpop.f32.mrf.mxu1  ;;  %v8277_v0 = vld [vmem:[%s11006_s0 + $0x208] sm:$0xff] }
 0x3c8   :  { %6556 = vst.msk [vmem:[#allocation2 + $0x18c] sm:$0xf] %vm6456_vm1, %v6267_v52  ;;  %v2311_v21 = vadd.f32 %v2310_v33, %v1515_v35 }
 0x3c9   :  { %v5116_v29 = vadd.f32 %v9397_v55, %v4824_v56 }
 0x3cb   :  { %vm5404_vm11 = vcmp.ge.f32.partialorder %v5116_v29, 0.0  ;;  %v5692_v59 = vmul.f32 0.0, %v5116_v29 }
 0x3cc   :  { %v9745_v12 = vpop.f32.mrf.mxu3 }
 0x3cd   :  { %v5980_v7 = vsel %vm5404_vm11, %v5116_v29, %v5692_v59  ;;  %11069 = vst [vmem:[#allocation64_spill] sm:$0xff] %v9745_v12 }
 0x3ce   :  { %v6268_v49 = vpack.c.bf16 %v5980_v7, %v5980_v7  ;;  %v4256_v34 = vpop.f32.mrf.mxu2  ;;  %v1518_v28 = vpop.f32.mrf.mxu0  ;;  %v8420_v7 = vld [vmem:[%s11006_s0 + $0x418] sm:$0xff] }
 0x3cf   :  { %v4825_v25 = vadd.f32 %v4256_v34, %v2311_v21  ;;  %v2313_v61 = vpop.f32.mrf.mxu1  ;;  %v9768_v34 = vld [vmem:[%s11008_s2] ss:$0 sm:$0xff] }
 0x3d0   :  { %6557 = vst.msk [vmem:[#allocation2 + $0x190] sm:$0xf] %vm6456_vm1, %v6268_v49  ;;  %v2314_v21 = vadd.f32 %v2313_v61, %v1518_v28 }
 0x3d1   :  { %v5117_v52 = vadd.f32 %v9397_v55, %v4825_v25  ;;  %1557 = vmatmul.bf16.gmra.mxu0 %v9750_v8  ;;  %2712 = vmatmul.bf16.gmra.mxu3 %v8420_v7 }
 0x3d2   :  { %2352 = vmatmul.bf16.gmra.mxu1 %v9687_v63 }
 0x3d3   :  { %vm5405_vm12 = vcmp.ge.f32.partialorder %v5117_v52, 0.0  ;;  %v5693_v53 = vmul.f32 0.0, %v5117_v52  ;;  %4298 = vmatmul.bf16.gmra.mxu2 %v8277_v0 }
 0x3d4   :  { %v9762_v35 = vpop.f32.mrf.mxu3 }
 0x3d5   :  { %v5981_v56 = vsel %vm5405_vm12, %v5117_v52, %v5693_v53  ;;  %11070 = vst [vmem:[#allocation65_spill] sm:$0xff] %v9762_v35  ;;  %v9776_v53 = vld [vmem:[%s11006_s0 + $0x1f8] sm:$0xff] }
 0x3d6   :  { %v6269_v33 = vpack.c.bf16 %v5981_v56, %v5981_v56  ;;  %v4259_v29 = vpop.f32.mrf.mxu2  ;;  %v1520_v55 = vpop.f32.mrf.mxu0 }
 0x3d7   :  { %v4826_v59 = vadd.f32 %v4259_v29, %v2314_v21  ;;  %v2315_v49 = vpop.f32.mrf.mxu1 }
 0x3d8   :  { %6558 = vst.msk [vmem:[#allocation2 + $0x194] sm:$0xf] %vm6456_vm1, %v6269_v33  ;;  %v2316_v0 = vadd.f32 %v2315_v49, %v1520_v55  ;;  %v8278_v33 = vld [vmem:[%s11006_s0 + $0x210] sm:$0xff]  ;;  %v8422_v55 = vld [vmem:[%s11006_s0 + $0x420] sm:$0xff] }
 0x3d9   :  { %v5118_v25 = vadd.f32 %v9768_v34, %v4826_v59 }
 0x3db   :  { %vm5406_vm13 = vcmp.ge.f32.partialorder %v5118_v25, 0.0  ;;  %v5694_v63 = vmul.f32 0.0, %v5118_v25 }
 0x3dc   :  { %v9771_v61 = vpop.f32.mrf.mxu3 }
 0x3dd   :  { %v5982_v28 = vsel %vm5406_vm13, %v5118_v25, %v5694_v63  ;;  %11071 = vst [vmem:[#allocation66_spill] sm:$0xff] %v9771_v61 }
 0x3de   :  { %v6270_v52 = vpack.c.bf16 %v5982_v28, %v5982_v28  ;;  %v4261_v7 = vpop.f32.mrf.mxu2  ;;  %v1523_v56 = vpop.f32.mrf.mxu0 }
 0x3df   :  { %v4827_v21 = vadd.f32 %v4261_v7, %v2316_v0  ;;  %v2318_v29 = vpop.f32.mrf.mxu1 }
 0x3e0   :  { %6559 = vst.msk [vmem:[#allocation2 + $0x198] sm:$0xf] %vm6456_vm1, %v6270_v52  ;;  %v2319_v25 = vadd.f32 %v2318_v29, %v1523_v56  ;;  %v9797_v29 = vld [vmem:[%s11006_s0 + $0x200] sm:$0xff] }
 0x3e1   :  { %v5119_v59 = vadd.f32 %v9768_v34, %v4827_v21  ;;  %1562 = vmatmul.bf16.gmra.mxu0 %v9776_v53  ;;  %2717 = vmatmul.bf16.gmra.mxu3 %v8422_v55 }
 0x3e2   :  { %2357 = vmatmul.bf16.gmra.mxu1 %v9708_v22 }
 0x3e3   :  { %vm5407_vm14 = vcmp.ge.f32.partialorder %v5119_v59, 0.0  ;;  %v5695_v49 = vmul.f32 0.0, %v5119_v59  ;;  %4303 = vmatmul.bf16.gmra.mxu2 %v8278_v33 }
 0x3e4   :  { %v9788_v28 = vpop.f32.mrf.mxu3 }
 0x3e5   :  { %v5983_v63 = vsel %vm5407_vm14, %v5119_v59, %v5695_v49  ;;  %11072 = vst [vmem:[#allocation67_spill] sm:$0xff] %v9788_v28 }
 0x3e6   :  { %v6271_v0 = vpack.c.bf16 %v5983_v63, %v5983_v63  ;;  %v4264_v52 = vpop.f32.mrf.mxu2  ;;  %v1525_v21 = vpop.f32.mrf.mxu0 }
 0x3e7   :  { %v4828_v7 = vadd.f32 %v4264_v52, %v2319_v25  ;;  %v2320_v61 = vpop.f32.mrf.mxu1  ;;  %v8279_v25 = vld [vmem:[%s11006_s0 + $0x218] sm:$0xff] }
 0x3e8   :  { %6560 = vst.msk [vmem:[#allocation2 + $0x19c] sm:$0xf] %vm6456_vm1, %v6271_v0  ;;  %v2321_v23 = vadd.f32 %v2320_v61, %v1525_v21 }
 0x3e9   :  { %v5120_v35 = vadd.f32 %v9768_v34, %v4828_v7 }
 0x3eb   :  { %vm5408_vm15 = vcmp.ge.f32.partialorder %v5120_v35, 0.0  ;;  %v5696_v55 = vmul.f32 0.0, %v5120_v35 }
 0x3ec   :  { %v9792_v56 = vpop.f32.mrf.mxu3 }
 0x3ed   :  { %v5984_v12 = vsel %vm5408_vm15, %v5120_v35, %v5696_v55  ;;  %11073 = vst [vmem:[#allocation68_spill] sm:$0xff] %v9792_v56 }
 0x3ee   :  { %v6272_v22 = vpack.c.bf16 %v5984_v12, %v5984_v12  ;;  %v4266_v33 = vpop.f32.mrf.mxu2  ;;  %v1528_v49 = vpop.f32.mrf.mxu0  ;;  %v8423_v12 = vld [vmem:[%s11006_s0 + $0x428] sm:$0xff] }
 0x3ef   :  { %v4829_v59 = vadd.f32 %v4266_v33, %v2321_v23  ;;  %v2323_v63 = vpop.f32.mrf.mxu1 }
 0x3f0   :  { %6561 = vst.msk [vmem:[#allocation2 + $0x1a0] sm:$0xf] %vm6456_vm1, %v6272_v22  ;;  %v2324_v23 = vadd.f32 %v2323_v63, %v1528_v49  ;;  %v9818_v63 = vld [vmem:[%s11006_s0 + $0x208] sm:$0xff] }
 0x3f1   :  { %v5121_v35 = vadd.f32 %v9768_v34, %v4829_v59  ;;  %1567 = vmatmul.bf16.gmra.mxu0 %v9797_v29  ;;  %2722 = vmatmul.bf16.gmra.mxu3 %v8423_v12 }
 0x3f2   :  { %2362 = vmatmul.bf16.gmra.mxu1 %v9729_v43 }
 0x3f3   :  { %vm5409_vm0 = vcmp.ge.f32.partialorder %v5121_v35, 0.0  ;;  %v5697_v61 = vmul.f32 0.0, %v5121_v35  ;;  %4308 = vmatmul.bf16.gmra.mxu2 %v8279_v25 }
 0x3f4   :  { %v9809_v52 = vpop.f32.mrf.mxu3 }
 0x3f5   :  { %v5985_v0 = vsel %vm5409_vm0, %v5121_v35, %v5697_v61  ;;  %11074 = vst [vmem:[#allocation69_spill] sm:$0xff] %v9809_v52 }
 0x3f6   :  { %v6273_v7 = vpack.c.bf16 %v5985_v0, %v5985_v0  ;;  %v4269_v21 = vpop.f32.mrf.mxu2  ;;  %v1530_v22 = vpop.f32.mrf.mxu0 }
 0x3f7   :  { %v4830_v55 = vadd.f32 %v4269_v21, %v2324_v23  ;;  %v2325_v33 = vpop.f32.mrf.mxu1  ;;  %v8280_v23 = vld [vmem:[%s11006_s0 + $0x220] sm:$0xff] }
 0x3f8   :  { %6562 = vst.msk [vmem:[#allocation2 + $0x1a4] sm:$0xf] %vm6456_vm1, %v6273_v7  ;;  %v2326_v28 = vadd.f32 %v2325_v33, %v1530_v22 }
 0x3f9   :  { %v5122_v59 = vadd.f32 %v9768_v34, %v4830_v55 }
 0x3fb   :  { %vm5410_vm2 = vcmp.ge.f32.partialorder %v5122_v59, 0.0  ;;  %v5698_v12 = vmul.f32 0.0, %v5122_v59 }
 0x3fc   :  { %v9813_v49 = vpop.f32.mrf.mxu3 }
 0x3fd   :  { %v5986_v56 = vsel %vm5410_vm2, %v5122_v59, %v5698_v12  ;;  %11075 = vst [vmem:[#allocation70_spill] sm:$0xff] %v9813_v49 }
 0x3fe   :  { %v6274_v43 = vpack.c.bf16 %v5986_v56, %v5986_v56  ;;  %v4271_v25 = vpop.f32.mrf.mxu2  ;;  %v1533_v61 = vpop.f32.mrf.mxu0  ;;  %v8424_v56 = vld [vmem:[%s11006_s0 + $0x430] sm:$0xff] }
 0x3ff   :  { %v4831_v35 = vadd.f32 %v4271_v25, %v2326_v28  ;;  %v2328_v0 = vpop.f32.mrf.mxu1 }
 0x400   :  { %6563 = vst.msk [vmem:[#allocation2 + $0x1a8] sm:$0xf] %vm6456_vm1, %v6274_v43  ;;  %v2329_v28 = vadd.f32 %v2328_v0, %v1533_v61  ;;  %v9839_v0 = vld [vmem:[%s11006_s0 + $0x210] sm:$0xff] }
 0x401   :  { %v5123_v7 = vadd.f32 %v9768_v34, %v4831_v35  ;;  %1572 = vmatmul.bf16.gmra.mxu0 %v9818_v63  ;;  %2727 = vmatmul.bf16.gmra.mxu3 %v8424_v56 }
 0x402   :  { %2367 = vmatmul.bf16.gmra.mxu1 %v9750_v8 }
 0x403   :  { %vm5411_vm3 = vcmp.ge.f32.partialorder %v5123_v7, 0.0  ;;  %v5699_v21 = vmul.f32 0.0, %v5123_v7  ;;  %4313 = vmatmul.bf16.gmra.mxu2 %v8280_v23 }
 0x404   :  { %v9830_v22 = vpop.f32.mrf.mxu3 }
 0x405   :  { %v5987_v55 = vsel %vm5411_vm3, %v5123_v7, %v5699_v21  ;;  %11076 = vst [vmem:[#allocation71_spill] sm:$0xff] %v9830_v22 }
 0x406   :  { %v6275_v33 = vpack.c.bf16 %v5987_v55, %v5987_v55  ;;  %v4274_v59 = vpop.f32.mrf.mxu2  ;;  %v1535_v43 = vpop.f32.mrf.mxu0 }
 0x407   :  { %v4832_v12 = vadd.f32 %v4274_v59, %v2329_v28  ;;  %v2330_v25 = vpop.f32.mrf.mxu1  ;;  %v8281_v28 = vld [vmem:[%s11006_s0 + $0x228] sm:$0xff] }
 0x408   :  { %6564 = vst.msk [vmem:[#allocation2 + $0x1ac] sm:$0xf] %vm6456_vm1, %v6275_v33  ;;  %v2331_v52 = vadd.f32 %v2330_v25, %v1535_v43 }
 0x409   :  { %v5124_v35 = vadd.f32 %v9768_v34, %v4832_v12 }
 0x40b   :  { %vm5412_vm4 = vcmp.ge.f32.partialorder %v5124_v35, 0.0  ;;  %v5700_v56 = vmul.f32 0.0, %v5124_v35 }
 0x40c   :  { %v9834_v61 = vpop.f32.mrf.mxu3 }
 0x40d   :  { %v5988_v49 = vsel %vm5412_vm4, %v5124_v35, %v5700_v56  ;;  %11077 = vst [vmem:[#allocation72_spill] sm:$0xff] %v9834_v61 }
 0x40e   :  { %v6276_v8 = vpack.c.bf16 %v5988_v49, %v5988_v49  ;;  %v4276_v23 = vpop.f32.mrf.mxu2  ;;  %v1538_v21 = vpop.f32.mrf.mxu0  ;;  %v8425_v49 = vld [vmem:[%s11006_s0 + $0x438] sm:$0xff] }
 0x40f   :  { %v4833_v7 = vadd.f32 %v4276_v23, %v2331_v52  ;;  %v2333_v55 = vpop.f32.mrf.mxu1 }
 0x410   :  { %6565 = vst.msk [vmem:[#allocation2 + $0x1b0] sm:$0xf] %vm6456_vm1, %v6276_v8  ;;  %v2334_v52 = vadd.f32 %v2333_v55, %v1538_v21  ;;  %v9860_v55 = vld [vmem:[%s11006_s0 + $0x218] sm:$0xff] }
 0x411   :  { %v5125_v33 = vadd.f32 %v9768_v34, %v4833_v7  ;;  %1577 = vmatmul.bf16.gmra.mxu0 %v9839_v0  ;;  %2732 = vmatmul.bf16.gmra.mxu3 %v8425_v49 }
 0x412   :  { %2372 = vmatmul.bf16.gmra.mxu1 %v9776_v53 }
 0x413   :  { %vm5413_vm5 = vcmp.ge.f32.partialorder %v5125_v33, 0.0  ;;  %v5701_v59 = vmul.f32 0.0, %v5125_v33  ;;  %4318 = vmatmul.bf16.gmra.mxu2 %v8281_v28 }
 0x414   :  { %v9851_v43 = vpop.f32.mrf.mxu3 }
 0x415   :  { %v5989_v12 = vsel %vm5413_vm5, %v5125_v33, %v5701_v59  ;;  %11078 = vst [vmem:[#allocation73_spill] sm:$0xff] %v9851_v43 }
 0x416   :  { %v6277_v25 = vpack.c.bf16 %v5989_v12, %v5989_v12  ;;  %v4279_v35 = vpop.f32.mrf.mxu2  ;;  %v1540_v8 = vpop.f32.mrf.mxu0 }
 0x417   :  { %v4834_v56 = vadd.f32 %v4279_v35, %v2334_v52  ;;  %v2335_v23 = vpop.f32.mrf.mxu1  ;;  %v8282_v52 = vld [vmem:[%s11006_s0 + $0x230] sm:$0xff] }
 0x418   :  { %6566 = vst.msk [vmem:[#allocation2 + $0x1b4] sm:$0xf] %vm6456_vm1, %v6277_v25  ;;  %v2336_v22 = vadd.f32 %v2335_v23, %v1540_v8 }
 0x419   :  { %v5126_v7 = vadd.f32 %v9768_v34, %v4834_v56 }
 0x41b   :  { %vm5414_vm6 = vcmp.ge.f32.partialorder %v5126_v7, 0.0  ;;  %v5702_v49 = vmul.f32 0.0, %v5126_v7 }
 0x41c   :  { %v9855_v21 = vpop.f32.mrf.mxu3 }
 0x41d   :  { %v5990_v61 = vsel %vm5414_vm6, %v5126_v7, %v5702_v49  ;;  %11079 = vst [vmem:[#allocation74_spill] sm:$0xff] %v9855_v21 }
 0x41e   :  { %v6278_v53 = vpack.c.bf16 %v5990_v61, %v5990_v61  ;;  %v4281_v28 = vpop.f32.mrf.mxu2  ;;  %v1543_v59 = vpop.f32.mrf.mxu0  ;;  %v8426_v61 = vld [vmem:[%s11006_s0 + $0x440] sm:$0xff] }
 0x41f   :  { %v4835_v33 = vadd.f32 %v4281_v28, %v2336_v22  ;;  %v2338_v12 = vpop.f32.mrf.mxu1 }
 0x420   :  { %6567 = vst.msk [vmem:[#allocation2 + $0x1b8] sm:$0xf] %vm6456_vm1, %v6278_v53  ;;  %v2339_v22 = vadd.f32 %v2338_v12, %v1543_v59  ;;  %v9881_v12 = vld [vmem:[%s11006_s0 + $0x220] sm:$0xff] }
 0x421   :  { %v5127_v25 = vadd.f32 %v9768_v34, %v4835_v33  ;;  %1582 = vmatmul.bf16.gmra.mxu0 %v9860_v55  ;;  %2737 = vmatmul.bf16.gmra.mxu3 %v8426_v61 }
 0x422   :  { %2377 = vmatmul.bf16.gmra.mxu1 %v9797_v29 }
 0x423   :  { %vm5415_vm7 = vcmp.ge.f32.partialorder %v5127_v25, 0.0  ;;  %v5703_v35 = vmul.f32 0.0, %v5127_v25  ;;  %4323 = vmatmul.bf16.gmra.mxu2 %v8282_v52 }
 0x424   :  { %v9872_v8 = vpop.f32.mrf.mxu3 }
 0x425   :  { %v5991_v56 = vsel %vm5415_vm7, %v5127_v25, %v5703_v35  ;;  %11080 = vst [vmem:[#allocation75_spill] sm:$0xff] %v9872_v8 }
 0x426   :  { %v6279_v23 = vpack.c.bf16 %v5991_v56, %v5991_v56  ;;  %v4284_v7 = vpop.f32.mrf.mxu2  ;;  %v1545_v53 = vpop.f32.mrf.mxu0 }
 0x427   :  { %v4836_v49 = vadd.f32 %v4284_v7, %v2339_v22  ;;  %v2340_v28 = vpop.f32.mrf.mxu1  ;;  %v8283_v22 = vld [vmem:[%s11006_s0 + $0x238] sm:$0xff] }
 0x428   :  { %6568 = vst.msk [vmem:[#allocation2 + $0x1bc] sm:$0xf] %vm6456_vm1, %v6279_v23  ;;  %v2341_v43 = vadd.f32 %v2340_v28, %v1545_v53 }
 0x429   :  { %v5128_v33 = vadd.f32 %v9768_v34, %v4836_v49 }
 0x42b   :  { %vm5416_vm8 = vcmp.ge.f32.partialorder %v5128_v33, 0.0  ;;  %v5704_v61 = vmul.f32 0.0, %v5128_v33 }
 0x42c   :  { %v9876_v59 = vpop.f32.mrf.mxu3 }
 0x42d   :  { %v5992_v21 = vsel %vm5416_vm8, %v5128_v33, %v5704_v61  ;;  %11081 = vst [vmem:[#allocation76_spill] sm:$0xff] %v9876_v59 }
 0x42e   :  { %v6280_v29 = vpack.c.bf16 %v5992_v21, %v5992_v21  ;;  %v4286_v52 = vpop.f32.mrf.mxu2  ;;  %v1548_v35 = vpop.f32.mrf.mxu0  ;;  %v8427_v21 = vld [vmem:[%s11006_s0 + $0x448] sm:$0xff] }
 0x42f   :  { %v4837_v25 = vadd.f32 %v4286_v52, %v2341_v43  ;;  %v2343_v56 = vpop.f32.mrf.mxu1 }
 0x430   :  { %6569 = vst.msk [vmem:[#allocation2 + $0x1c0] sm:$0xf] %vm6456_vm1, %v6280_v29  ;;  %v2344_v43 = vadd.f32 %v2343_v56, %v1548_v35  ;;  %v9902_v56 = vld [vmem:[%s11006_s0 + $0x228] sm:$0xff] }
 0x431   :  { %v5129_v23 = vadd.f32 %v9768_v34, %v4837_v25  ;;  %1587 = vmatmul.bf16.gmra.mxu0 %v9881_v12  ;;  %2742 = vmatmul.bf16.gmra.mxu3 %v8427_v21 }
 0x432   :  { %2382 = vmatmul.bf16.gmra.mxu1 %v9818_v63 }
 0x433   :  { %vm5417_vm9 = vcmp.ge.f32.partialorder %v5129_v23, 0.0  ;;  %v5705_v7 = vmul.f32 0.0, %v5129_v23  ;;  %4328 = vmatmul.bf16.gmra.mxu2 %v8283_v22 }
 0x434   :  { %v9893_v53 = vpop.f32.mrf.mxu3 }
 0x435   :  { %v5993_v49 = vsel %vm5417_vm9, %v5129_v23, %v5705_v7  ;;  %11082 = vst [vmem:[#allocation77_spill] sm:$0xff] %v9893_v53 }
 0x436   :  { %v6281_v28 = vpack.c.bf16 %v5993_v49, %v5993_v49  ;;  %v4289_v33 = vpop.f32.mrf.mxu2  ;;  %v1550_v29 = vpop.f32.mrf.mxu0 }
 0x437   :  { %v4838_v61 = vadd.f32 %v4289_v33, %v2344_v43  ;;  %v2345_v52 = vpop.f32.mrf.mxu1  ;;  %v8284_v43 = vld [vmem:[%s11006_s0 + $0x240] sm:$0xff] }
 0x438   :  { %6570 = vst.msk [vmem:[#allocation2 + $0x1c4] sm:$0xf] %vm6456_vm1, %v6281_v28  ;;  %v2346_v8 = vadd.f32 %v2345_v52, %v1550_v29 }
 0x439   :  { %v5130_v25 = vadd.f32 %v9768_v34, %v4838_v61 }
 0x43b   :  { %vm5418_vm10 = vcmp.ge.f32.partialorder %v5130_v25, 0.0  ;;  %v5706_v21 = vmul.f32 0.0, %v5130_v25 }
 0x43c   :  { %v9897_v35 = vpop.f32.mrf.mxu3 }
 0x43d   :  { %v5994_v59 = vsel %vm5418_vm10, %v5130_v25, %v5706_v21  ;;  %11083 = vst [vmem:[#allocation78_spill] sm:$0xff] %v9897_v35 }
 0x43e   :  { %v6282_v63 = vpack.c.bf16 %v5994_v59, %v5994_v59  ;;  %v4291_v22 = vpop.f32.mrf.mxu2  ;;  %v1553_v7 = vpop.f32.mrf.mxu0  ;;  %v8428_v59 = vld [vmem:[%s11006_s0 + $0x450] sm:$0xff] }
 0x43f   :  { %v4839_v23 = vadd.f32 %v4291_v22, %v2346_v8  ;;  %v2348_v49 = vpop.f32.mrf.mxu1 }
 0x440   :  { %6571 = vst.msk [vmem:[#allocation2 + $0x1c8] sm:$0xf] %vm6456_vm1, %v6282_v63  ;;  %v2349_v8 = vadd.f32 %v2348_v49, %v1553_v7  ;;  %v9923_v49 = vld [vmem:[%s11006_s0 + $0x230] sm:$0xff] }
 0x441   :  { %v5131_v28 = vadd.f32 %v9768_v34, %v4839_v23  ;;  %1592 = vmatmul.bf16.gmra.mxu0 %v9902_v56  ;;  %2747 = vmatmul.bf16.gmra.mxu3 %v8428_v59 }
 0x442   :  { %2387 = vmatmul.bf16.gmra.mxu1 %v9839_v0 }
 0x443   :  { %vm5419_vm11 = vcmp.ge.f32.partialorder %v5131_v28, 0.0  ;;  %v5707_v33 = vmul.f32 0.0, %v5131_v28  ;;  %4333 = vmatmul.bf16.gmra.mxu2 %v8284_v43 }
 0x444   :  { %v9914_v29 = vpop.f32.mrf.mxu3 }
 0x445   :  { %v5995_v61 = vsel %vm5419_vm11, %v5131_v28, %v5707_v33  ;;  %11084 = vst [vmem:[#allocation79_spill] sm:$0xff] %v9914_v29 }
 0x446   :  { %v6283_v52 = vpack.c.bf16 %v5995_v61, %v5995_v61  ;;  %v4294_v25 = vpop.f32.mrf.mxu2  ;;  %v1555_v63 = vpop.f32.mrf.mxu0 }
 0x447   :  { %v4840_v21 = vadd.f32 %v4294_v25, %v2349_v8  ;;  %v2350_v22 = vpop.f32.mrf.mxu1  ;;  %v8285_v8 = vld [vmem:[%s11006_s0 + $0x248] sm:$0xff] }
 0x448   :  { %6572 = vst.msk [vmem:[#allocation2 + $0x1cc] sm:$0xf] %vm6456_vm1, %v6283_v52  ;;  %v2351_v53 = vadd.f32 %v2350_v22, %v1555_v63 }
 0x449   :  { %v5132_v23 = vadd.f32 %v9768_v34, %v4840_v21 }
 0x44b   :  { %vm5420_vm12 = vcmp.ge.f32.partialorder %v5132_v23, 0.0  ;;  %v5708_v59 = vmul.f32 0.0, %v5132_v23 }
 0x44c   :  { %v9918_v7 = vpop.f32.mrf.mxu3 }
 0x44d   :  { %v5996_v35 = vsel %vm5420_vm12, %v5132_v23, %v5708_v59  ;;  %11085 = vst [vmem:[#allocation80_spill] sm:$0xff] %v9918_v7 }
 0x44e   :  { %v6284_v0 = vpack.c.bf16 %v5996_v35, %v5996_v35  ;;  %v4296_v43 = vpop.f32.mrf.mxu2  ;;  %v1558_v33 = vpop.f32.mrf.mxu0  ;;  %v8429_v35 = vld [vmem:[%s11006_s0 + $0x458] sm:$0xff] }
 0x44f   :  { %v4841_v28 = vadd.f32 %v4296_v43, %v2351_v53  ;;  %v2353_v61 = vpop.f32.mrf.mxu1 }
 0x450   :  { %6573 = vst.msk [vmem:[#allocation2 + $0x1d0] sm:$0xf] %vm6456_vm1, %v6284_v0  ;;  %v2354_v53 = vadd.f32 %v2353_v61, %v1558_v33  ;;  %v9944_v61 = vld [vmem:[%s11006_s0 + $0x238] sm:$0xff] }
 0x451   :  { %v5133_v52 = vadd.f32 %v9768_v34, %v4841_v28  ;;  %1597 = vmatmul.bf16.gmra.mxu0 %v9923_v49  ;;  %2752 = vmatmul.bf16.gmra.mxu3 %v8429_v35 }
 0x452   :  { %2392 = vmatmul.bf16.gmra.mxu1 %v9860_v55 }
 0x453   :  { %vm5421_vm13 = vcmp.ge.f32.partialorder %v5133_v52, 0.0  ;;  %v5709_v25 = vmul.f32 0.0, %v5133_v52  ;;  %4338 = vmatmul.bf16.gmra.mxu2 %v8285_v8 }
 0x454   :  { %v9935_v63 = vpop.f32.mrf.mxu3 }
 0x455   :  { %v5997_v21 = vsel %vm5421_vm13, %v5133_v52, %v5709_v25  ;;  %11086 = vst [vmem:[#allocation81_spill] sm:$0xff] %v9935_v63 }
 0x456   :  { %v6285_v22 = vpack.c.bf16 %v5997_v21, %v5997_v21  ;;  %v4299_v23 = vpop.f32.mrf.mxu2  ;;  %v1560_v0 = vpop.f32.mrf.mxu0 }
 0x457   :  { %v4842_v59 = vadd.f32 %v4299_v23, %v2354_v53  ;;  %v2355_v43 = vpop.f32.mrf.mxu1  ;;  %v8286_v53 = vld [vmem:[%s11006_s0 + $0x250] sm:$0xff] }
 0x458   :  { %6574 = vst.msk [vmem:[#allocation2 + $0x1d4] sm:$0xf] %vm6456_vm1, %v6285_v22  ;;  %v2356_v29 = vadd.f32 %v2355_v43, %v1560_v0 }
 0x459   :  { %v5134_v28 = vadd.f32 %v9768_v34, %v4842_v59 }
 0x45b   :  { %vm5422_vm14 = vcmp.ge.f32.partialorder %v5134_v28, 0.0  ;;  %v5710_v35 = vmul.f32 0.0, %v5134_v28 }
 0x45c   :  { %v9939_v33 = vpop.f32.mrf.mxu3 }
 0x45d   :  { %v5998_v7 = vsel %vm5422_vm14, %v5134_v28, %v5710_v35  ;;  %11087 = vst [vmem:[#allocation82_spill] sm:$0xff] %v9939_v33 }
 0x45e   :  { %v6286_v55 = vpack.c.bf16 %v5998_v7, %v5998_v7  ;;  %v4301_v8 = vpop.f32.mrf.mxu2  ;;  %v1563_v25 = vpop.f32.mrf.mxu0  ;;  %v8430_v7 = vld [vmem:[%s11006_s0 + $0x460] sm:$0xff] }
 0x45f   :  { %v4843_v52 = vadd.f32 %v4301_v8, %v2356_v29  ;;  %v2358_v21 = vpop.f32.mrf.mxu1 }
 0x460   :  { %6575 = vst.msk [vmem:[#allocation2 + $0x1d8] sm:$0xf] %vm6456_vm1, %v6286_v55  ;;  %v2359_v29 = vadd.f32 %v2358_v21, %v1563_v25  ;;  %v9965_v21 = vld [vmem:[%s11006_s0 + $0x240] sm:$0xff] }
 0x461   :  { %v5135_v22 = vadd.f32 %v9768_v34, %v4843_v52  ;;  %1602 = vmatmul.bf16.gmra.mxu0 %v9944_v61  ;;  %2757 = vmatmul.bf16.gmra.mxu3 %v8430_v7 }
 0x462   :  { %2397 = vmatmul.bf16.gmra.mxu1 %v9881_v12 }
 0x463   :  { %vm5423_vm15 = vcmp.ge.f32.partialorder %v5135_v22, 0.0  ;;  %v5711_v23 = vmul.f32 0.0, %v5135_v22  ;;  %4343 = vmatmul.bf16.gmra.mxu2 %v8286_v53 }
 0x464   :  { %v9956_v0 = vpop.f32.mrf.mxu3 }
 0x465   :  { %v5999_v59 = vsel %vm5423_vm15, %v5135_v22, %v5711_v23  ;;  %11088 = vst [vmem:[#allocation83_spill] sm:$0xff] %v9956_v0 }
 0x466   :  { %v6287_v43 = vpack.c.bf16 %v5999_v59, %v5999_v59  ;;  %v4304_v28 = vpop.f32.mrf.mxu2  ;;  %v1565_v55 = vpop.f32.mrf.mxu0 }
 0x467   :  { %v4844_v35 = vadd.f32 %v4304_v28, %v2359_v29  ;;  %v2360_v8 = vpop.f32.mrf.mxu1  ;;  %v8287_v29 = vld [vmem:[%s11006_s0 + $0x258] sm:$0xff] }
 0x468   :  { %6576 = vst.msk [vmem:[#allocation2 + $0x1dc] sm:$0xf] %vm6456_vm1, %v6287_v43  ;;  %v2361_v63 = vadd.f32 %v2360_v8, %v1565_v55 }
 0x469   :  { %v5136_v52 = vadd.f32 %v9768_v34, %v4844_v35 }
 0x46b   :  { %vm5424_vm0 = vcmp.ge.f32.partialorder %v5136_v52, 0.0  ;;  %v5712_v7 = vmul.f32 0.0, %v5136_v52 }
 0x46c   :  { %v9960_v25 = vpop.f32.mrf.mxu3 }
 0x46d   :  { %v6000_v33 = vsel %vm5424_vm0, %v5136_v52, %v5712_v7  ;;  %11089 = vst [vmem:[#allocation84_spill] sm:$0xff] %v9960_v25 }
 0x46e   :  { %v6288_v12 = vpack.c.bf16 %v6000_v33, %v6000_v33  ;;  %v4306_v53 = vpop.f32.mrf.mxu2  ;;  %v1568_v23 = vpop.f32.mrf.mxu0  ;;  %v8431_v33 = vld [vmem:[%s11006_s0 + $0x468] sm:$0xff] }
 0x46f   :  { %v4845_v22 = vadd.f32 %v4306_v53, %v2361_v63  ;;  %v2363_v59 = vpop.f32.mrf.mxu1 }
 0x470   :  { %6577 = vst.msk [vmem:[#allocation2 + $0x1e0] sm:$0xf] %vm6456_vm1, %v6288_v12  ;;  %v2364_v63 = vadd.f32 %v2363_v59, %v1568_v23  ;;  %v9986_v59 = vld [vmem:[%s11006_s0 + $0x248] sm:$0xff] }
 0x471   :  { %v5137_v43 = vadd.f32 %v9768_v34, %v4845_v22  ;;  %1607 = vmatmul.bf16.gmra.mxu0 %v9965_v21  ;;  %2762 = vmatmul.bf16.gmra.mxu3 %v8431_v33 }
 0x472   :  { %2402 = vmatmul.bf16.gmra.mxu1 %v9902_v56 }
 0x473   :  { %vm5425_vm2 = vcmp.ge.f32.partialorder %v5137_v43, 0.0  ;;  %v5713_v28 = vmul.f32 0.0, %v5137_v43  ;;  %4348 = vmatmul.bf16.gmra.mxu2 %v8287_v29 }
 0x474   :  { %v9977_v55 = vpop.f32.mrf.mxu3 }
 0x475   :  { %v6001_v35 = vsel %vm5425_vm2, %v5137_v43, %v5713_v28  ;;  %11090 = vst [vmem:[#allocation85_spill] sm:$0xff] %v9977_v55 }
 0x476   :  { %v6289_v8 = vpack.c.bf16 %v6001_v35, %v6001_v35  ;;  %v4309_v52 = vpop.f32.mrf.mxu2  ;;  %v1570_v12 = vpop.f32.mrf.mxu0 }
 0x477   :  { %v4846_v7 = vadd.f32 %v4309_v52, %v2364_v63  ;;  %v2365_v53 = vpop.f32.mrf.mxu1  ;;  %v8288_v63 = vld [vmem:[%s11006_s0 + $0x260] sm:$0xff] }
 0x478   :  { %6578 = vst.msk [vmem:[#allocation2 + $0x1e4] sm:$0xf] %vm6456_vm1, %v6289_v8  ;;  %v2366_v0 = vadd.f32 %v2365_v53, %v1570_v12 }
 0x479   :  { %v5138_v22 = vadd.f32 %v9768_v34, %v4846_v7 }
 0x47b   :  { %vm5426_vm3 = vcmp.ge.f32.partialorder %v5138_v22, 0.0  ;;  %v5714_v33 = vmul.f32 0.0, %v5138_v22 }
 0x47c   :  { %v9981_v23 = vpop.f32.mrf.mxu3 }
 0x47d   :  { %v6002_v25 = vsel %vm5426_vm3, %v5138_v22, %v5714_v33  ;;  %11091 = vst [vmem:[#allocation86_spill] sm:$0xff] %v9981_v23 }
 0x47e   :  { %v6290_v56 = vpack.c.bf16 %v6002_v25, %v6002_v25  ;;  %v4311_v29 = vpop.f32.mrf.mxu2  ;;  %v1573_v28 = vpop.f32.mrf.mxu0  ;;  %v8432_v25 = vld [vmem:[%s11006_s0 + $0x470] sm:$0xff] }
 0x47f   :  { %v4847_v43 = vadd.f32 %v4311_v29, %v2366_v0  ;;  %v2368_v35 = vpop.f32.mrf.mxu1 }
 0x480   :  { %6579 = vst.msk [vmem:[#allocation2 + $0x1e8] sm:$0xf] %vm6456_vm1, %v6290_v56  ;;  %v2369_v0 = vadd.f32 %v2368_v35, %v1573_v28  ;;  %v10007_v35 = vld [vmem:[%s11006_s0 + $0x250] sm:$0xff] }
 0x481   :  { %v5139_v8 = vadd.f32 %v9768_v34, %v4847_v43  ;;  %1612 = vmatmul.bf16.gmra.mxu0 %v9986_v59  ;;  %2767 = vmatmul.bf16.gmra.mxu3 %v8432_v25 }
 0x482   :  { %2407 = vmatmul.bf16.gmra.mxu1 %v9923_v49 }
 0x483   :  { %vm5427_vm4 = vcmp.ge.f32.partialorder %v5139_v8, 0.0  ;;  %v5715_v52 = vmul.f32 0.0, %v5139_v8  ;;  %4353 = vmatmul.bf16.gmra.mxu2 %v8288_v63 }
 0x484   :  { %v9998_v12 = vpop.f32.mrf.mxu3 }
 0x485   :  { %v6003_v7 = vsel %vm5427_vm4, %v5139_v8, %v5715_v52  ;;  %11092 = vst [vmem:[#allocation87_spill] sm:$0xff] %v9998_v12 }
 0x486   :  { %v6291_v53 = vpack.c.bf16 %v6003_v7, %v6003_v7  ;;  %v4314_v22 = vpop.f32.mrf.mxu2  ;;  %v1575_v56 = vpop.f32.mrf.mxu0 }
 0x487   :  { %v4848_v33 = vadd.f32 %v4314_v22, %v2369_v0  ;;  %v2370_v29 = vpop.f32.mrf.mxu1  ;;  %v8289_v0 = vld [vmem:[%s11006_s0 + $0x268] sm:$0xff] }
 0x488   :  { %6580 = vst.msk [vmem:[#allocation2 + $0x1ec] sm:$0xf] %vm6456_vm1, %v6291_v53  ;;  %v2371_v55 = vadd.f32 %v2370_v29, %v1575_v56 }
 0x489   :  { %v5140_v43 = vadd.f32 %v9768_v34, %v4848_v33 }
 0x48b   :  { %vm5428_vm5 = vcmp.ge.f32.partialorder %v5140_v43, 0.0  ;;  %v5716_v25 = vmul.f32 0.0, %v5140_v43 }
 0x48c   :  { %v10002_v28 = vpop.f32.mrf.mxu3 }
 0x48d   :  { %v6004_v23 = vsel %vm5428_vm5, %v5140_v43, %v5716_v25  ;;  %11093 = vst [vmem:[#allocation88_spill] sm:$0xff] %v10002_v28 }
 0x48e   :  { %v6292_v49 = vpack.c.bf16 %v6004_v23, %v6004_v23  ;;  %v4316_v63 = vpop.f32.mrf.mxu2  ;;  %v1578_v52 = vpop.f32.mrf.mxu0  ;;  %v8433_v23 = vld [vmem:[%s11006_s0 + $0x478] sm:$0xff] }
 0x48f   :  { %v4849_v8 = vadd.f32 %v4316_v63, %v2371_v55  ;;  %v2373_v7 = vpop.f32.mrf.mxu1 }
 0x490   :  { %6581 = vst.msk [vmem:[#allocation2 + $0x1f0] sm:$0xf] %vm6456_vm1, %v6292_v49  ;;  %v2374_v55 = vadd.f32 %v2373_v7, %v1578_v52  ;;  %v10028_v7 = vld [vmem:[%s11006_s0 + $0x258] sm:$0xff] }
 0x491   :  { %v5141_v53 = vadd.f32 %v9768_v34, %v4849_v8  ;;  %1617 = vmatmul.bf16.gmra.mxu0 %v10007_v35  ;;  %2772 = vmatmul.bf16.gmra.mxu3 %v8433_v23 }
 0x492   :  { %2412 = vmatmul.bf16.gmra.mxu1 %v9944_v61 }
 0x493   :  { %vm5429_vm6 = vcmp.ge.f32.partialorder %v5141_v53, 0.0  ;;  %v5717_v22 = vmul.f32 0.0, %v5141_v53  ;;  %4358 = vmatmul.bf16.gmra.mxu2 %v8289_v0 }
 0x494   :  { %v10019_v56 = vpop.f32.mrf.mxu3 }
 0x495   :  { %v6005_v33 = vsel %vm5429_vm6, %v5141_v53, %v5717_v22  ;;  %11094 = vst [vmem:[#allocation89_spill] sm:$0xff] %v10019_v56  ;;  %v8326_v53 = vld [vmem:[%s11006_s0 + $0x390] sm:$0xff] }
 0x496   :  { %v6293_v29 = vpack.c.bf16 %v6005_v33, %v6005_v33  ;;  %v4319_v43 = vpop.f32.mrf.mxu2  ;;  %v1580_v49 = vpop.f32.mrf.mxu0  ;;  %v8290_v33 = vld [vmem:[%s11006_s0 + $0x270] sm:$0xff] }
 0x497   :  { %v4850_v25 = vadd.f32 %v4319_v43, %v2374_v55  ;;  %v2375_v63 = vpop.f32.mrf.mxu1 }
 0x498   :  { %6582 = vst.msk [vmem:[#allocation2 + $0x1f4] sm:$0xf] %vm6456_vm1, %v6293_v29  ;;  %v2376_v12 = vadd.f32 %v2375_v63, %v1580_v49 }
 0x499   :  { %v5142_v8 = vadd.f32 %v9768_v34, %v4850_v25 }
 0x49b   :  { %vm5430_vm7 = vcmp.ge.f32.partialorder %v5142_v8, 0.0  ;;  %v5718_v23 = vmul.f32 0.0, %v5142_v8 }
 0x49c   :  { %v10023_v52 = vpop.f32.mrf.mxu3 }
 0x49d   :  { %v6006_v28 = vsel %vm5430_vm7, %v5142_v8, %v5718_v23  ;;  %11095 = vst [vmem:[#allocation90_spill] sm:$0xff] %v10023_v52 }
 0x49e   :  { %v6294_v61 = vpack.c.bf16 %v6006_v28, %v6006_v28  ;;  %v4321_v0 = vpop.f32.mrf.mxu2  ;;  %v1583_v55 = vpop.f32.mrf.mxu0 }
 0x49f   :  { %v4851_v22 = vadd.f32 %v4321_v0, %v2376_v12  ;;  %v2378_v29 = vpop.f32.mrf.mxu1 }
 0x4a0   :  { %6583 = vst.msk [vmem:[#allocation2 + $0x1f8] sm:$0xf] %vm6456_vm1, %v6294_v61  ;;  %v2379_v25 = vadd.f32 %v2378_v29, %v1583_v55  ;;  %v10049_v29 = vld [vmem:[%s11006_s0 + $0x260] sm:$0xff] }
 0x4a1   :  { %v5143_v28 = vadd.f32 %v9768_v34, %v4851_v22  ;;  %1622 = vmatmul.bf16.gmra.mxu0 %v10028_v7  ;;  %4543 = vmatmul.bf16.vlgmr.msra.gmra.mxu3 %v8326_v53 }
 0x4a2   :  { %2417 = vmatmul.bf16.gmra.mxu1 %v9965_v21 }
 0x4a3   :  { %vm5431_vm8 = vcmp.ge.f32.partialorder %v5143_v28, 0.0  ;;  %v5719_v43 = vmul.f32 0.0, %v5143_v28  ;;  %4363 = vmatmul.bf16.gmra.mxu2 %v8290_v33 }
 0x4a4   :  { %v10040_v49 = vpop.f32.mrf.mxu3 }
 0x4a5   :  { %v6007_v12 = vsel %vm5431_vm8, %v5143_v28, %v5719_v43  ;;  %11096 = vst [vmem:[#allocation91_spill] sm:$0xff] %v10040_v49  ;;  %v8327_v28 = vld [vmem:[%s11006_s0 + $0x398] sm:$0xff] }
 0x4a6   :  { %v6295_v63 = vpack.c.bf16 %v6007_v12, %v6007_v12  ;;  %v4324_v8 = vpop.f32.mrf.mxu2  ;;  %v1585_v0 = vpop.f32.mrf.mxu0  ;;  %v8291_v12 = vld [vmem:[%s11006_s0 + $0x278] sm:$0xff] }
 0x4a7   :  { %v4852_v23 = vadd.f32 %v4324_v8, %v2379_v25  ;;  %v2380_v61 = vpop.f32.mrf.mxu1 }
 0x4a8   :  { %6584 = vst.msk [vmem:[#allocation2 + $0x1fc] sm:$0xf] %vm6456_vm1, %v6295_v63  ;;  %v2381_v56 = vadd.f32 %v2380_v61, %v1585_v0 }
 0x4a9   :  { %v5144_v22 = vadd.f32 %v9768_v34, %v4852_v23 }
 0x4ab   :  { %vm5432_vm9 = vcmp.ge.f32.partialorder %v5144_v22, 0.0  ;;  %v5720_v53 = vmul.f32 0.0, %v5144_v22 }
 0x4ac   :  { %v10044_v55 = vpop.f32.mrf.mxu3 }
 0x4ad   :  { %v6008_v52 = vsel %vm5432_vm9, %v5144_v22, %v5720_v53  ;;  %11097 = vst [vmem:[#allocation92_spill] sm:$0xff] %v10044_v55 }
 0x4ae   :  { %v6296_v21 = vpack.c.bf16 %v6008_v52, %v6008_v52  ;;  %v4326_v33 = vpop.f32.mrf.mxu2  ;;  %v1588_v25 = vpop.f32.mrf.mxu0 }
 0x4af   :  { %v4853_v43 = vadd.f32 %v4326_v33, %v2381_v56  ;;  %v2383_v63 = vpop.f32.mrf.mxu1 }
 0x4b0   :  { %6585 = vst.msk [vmem:[#allocation2 + $0x200] sm:$0xf] %vm6456_vm1, %v6296_v21  ;;  %v2384_v23 = vadd.f32 %v2383_v63, %v1588_v25  ;;  %v10070_v63 = vld [vmem:[%s11006_s0 + $0x268] sm:$0xff] }
 0x4b1   :  { %v5145_v52 = vadd.f32 %v9768_v34, %v4853_v43  ;;  %1627 = vmatmul.bf16.gmra.mxu0 %v10049_v29  ;;  %4548 = vmatmul.bf16.gmra.mxu3 %v8327_v28 }
 0x4b2   :  { %2422 = vmatmul.bf16.gmra.mxu1 %v9986_v59 }
 0x4b3   :  { %vm5433_vm10 = vcmp.ge.f32.partialorder %v5145_v52, 0.0  ;;  %v5721_v8 = vmul.f32 0.0, %v5145_v52  ;;  %4368 = vmatmul.bf16.gmra.mxu2 %v8291_v12 }
 0x4b4   :  { %v10061_v0 = vpop.f32.mrf.mxu3 }
 0x4b5   :  { %v6009_v56 = vsel %vm5433_vm10, %v5145_v52, %v5721_v8  ;;  %11098 = vst [vmem:[#allocation93_spill] sm:$0xff] %v10061_v0  ;;  %v8328_v52 = vld [vmem:[%s11006_s0 + $0x3a0] sm:$0xff] }
 0x4b6   :  { %v6297_v61 = vpack.c.bf16 %v6009_v56, %v6009_v56  ;;  %v4329_v22 = vpop.f32.mrf.mxu2  ;;  %v1590_v33 = vpop.f32.mrf.mxu0  ;;  %v8292_v56 = vld [vmem:[%s11006_s0 + $0x280] sm:$0xff] }
 0x4b7   :  { %v4854_v53 = vadd.f32 %v4329_v22, %v2384_v23  ;;  %v2385_v21 = vpop.f32.mrf.mxu1 }
 0x4b8   :  { %6586 = vst.msk [vmem:[#allocation2 + $0x204] sm:$0xf] %vm6456_vm1, %v6297_v61  ;;  %v2386_v49 = vadd.f32 %v2385_v21, %v1590_v33 }
 0x4b9   :  { %v5146_v43 = vadd.f32 %v9768_v34, %v4854_v53 }
 0x4bb   :  { %vm5434_vm11 = vcmp.ge.f32.partialorder %v5146_v43, 0.0  ;;  %v5722_v28 = vmul.f32 0.0, %v5146_v43 }
 0x4bc   :  { %v10065_v25 = vpop.f32.mrf.mxu3 }
 0x4bd   :  { %v6010_v55 = vsel %vm5434_vm11, %v5146_v43, %v5722_v28  ;;  %11099 = vst [vmem:[#allocation94_spill] sm:$0xff] %v10065_v25 }
 0x4be   :  { %v6298_v59 = vpack.c.bf16 %v6010_v55, %v6010_v55  ;;  %v4331_v12 = vpop.f32.mrf.mxu2  ;;  %v1593_v23 = vpop.f32.mrf.mxu0 }
 0x4bf   :  { %v4855_v8 = vadd.f32 %v4331_v12, %v2386_v49  ;;  %v2388_v61 = vpop.f32.mrf.mxu1 }
 0x4c0   :  { %6587 = vst.msk [vmem:[#allocation2 + $0x208] sm:$0xf] %vm6456_vm1, %v6298_v59  ;;  %v2389_v53 = vadd.f32 %v2388_v61, %v1593_v23  ;;  %v10091_v61 = vld [vmem:[%s11006_s0 + $0x270] sm:$0xff] }
 0x4c1   :  { %v5147_v55 = vadd.f32 %v9768_v34, %v4855_v8  ;;  %1632 = vmatmul.bf16.gmra.mxu0 %v10070_v63  ;;  %4553 = vmatmul.bf16.gmra.mxu3 %v8328_v52 }
 0x4c2   :  { %2427 = vmatmul.bf16.gmra.mxu1 %v10007_v35 }
 0x4c3   :  { %vm5435_vm12 = vcmp.ge.f32.partialorder %v5147_v55, 0.0  ;;  %v5723_v22 = vmul.f32 0.0, %v5147_v55  ;;  %4373 = vmatmul.bf16.gmra.mxu2 %v8292_v56 }
 0x4c4   :  { %v10082_v33 = vpop.f32.mrf.mxu3 }
 0x4c5   :  { %v6011_v49 = vsel %vm5435_vm12, %v5147_v55, %v5723_v22  ;;  %11100 = vst [vmem:[#allocation95_spill] sm:$0xff] %v10082_v33  ;;  %v8329_v55 = vld [vmem:[%s11006_s0 + $0x3a8] sm:$0xff] }
 0x4c6   :  { %v6299_v21 = vpack.c.bf16 %v6011_v49, %v6011_v49  ;;  %v4334_v43 = vpop.f32.mrf.mxu2  ;;  %v1595_v12 = vpop.f32.mrf.mxu0  ;;  %v8293_v49 = vld [vmem:[%s11006_s0 + $0x288] sm:$0xff] }
 0x4c7   :  { %v4856_v28 = vadd.f32 %v4334_v43, %v2389_v53  ;;  %v2390_v59 = vpop.f32.mrf.mxu1 }
 0x4c8   :  { %6588 = vst.msk [vmem:[#allocation2 + $0x20c] sm:$0xf] %vm6456_vm1, %v6299_v21  ;;  %v2391_v0 = vadd.f32 %v2390_v59, %v1595_v12 }
 0x4c9   :  { %v5148_v8 = vadd.f32 %v9768_v34, %v4856_v28 }
 0x4cb   :  { %vm5436_vm13 = vcmp.ge.f32.partialorder %v5148_v8, 0.0  ;;  %v5724_v52 = vmul.f32 0.0, %v5148_v8 }
 0x4cc   :  { %v10086_v23 = vpop.f32.mrf.mxu3 }
 0x4cd   :  { %v6012_v25 = vsel %vm5436_vm13, %v5148_v8, %v5724_v52  ;;  %11101 = vst [vmem:[#allocation96_spill] sm:$0xff] %v10086_v23 }
 0x4ce   :  { %v6300_v35 = vpack.c.bf16 %v6012_v25, %v6012_v25  ;;  %v4336_v56 = vpop.f32.mrf.mxu2  ;;  %v1598_v53 = vpop.f32.mrf.mxu0 }
 0x4cf   :  { %v4857_v22 = vadd.f32 %v4336_v56, %v2391_v0  ;;  %v2393_v21 = vpop.f32.mrf.mxu1 }
 0x4d0   :  { %6589 = vst.msk [vmem:[#allocation2 + $0x210] sm:$0xf] %vm6456_vm1, %v6300_v35  ;;  %v2394_v28 = vadd.f32 %v2393_v21, %v1598_v53  ;;  %v10112_v21 = vld [vmem:[%s11006_s0 + $0x278] sm:$0xff] }
 0x4d1   :  { %v5149_v25 = vadd.f32 %v9768_v34, %v4857_v22  ;;  %1637 = vmatmul.bf16.gmra.mxu0 %v10091_v61  ;;  %4558 = vmatmul.bf16.gmra.mxu3 %v8329_v55 }
 0x4d2   :  { %2432 = vmatmul.bf16.gmra.mxu1 %v10028_v7 }
 0x4d3   :  { %vm5437_vm14 = vcmp.ge.f32.partialorder %v5149_v25, 0.0  ;;  %v5725_v43 = vmul.f32 0.0, %v5149_v25  ;;  %4378 = vmatmul.bf16.gmra.mxu2 %v8293_v49 }
 0x4d4   :  { %v10103_v12 = vpop.f32.mrf.mxu3 }
 0x4d5   :  { %v6013_v0 = vsel %vm5437_vm14, %v5149_v25, %v5725_v43  ;;  %11102 = vst [vmem:[#allocation97_spill] sm:$0xff] %v10103_v12  ;;  %v8330_v25 = vld [vmem:[%s11006_s0 + $0x3b0] sm:$0xff] }
 0x4d6   :  { %v6301_v59 = vpack.c.bf16 %v6013_v0, %v6013_v0  ;;  %v4339_v8 = vpop.f32.mrf.mxu2  ;;  %v1600_v56 = vpop.f32.mrf.mxu0  ;;  %v8294_v0 = vld [vmem:[%s11006_s0 + $0x290] sm:$0xff] }
 0x4d7   :  { %v4858_v52 = vadd.f32 %v4339_v8, %v2394_v28  ;;  %v2395_v35 = vpop.f32.mrf.mxu1 }
 0x4d8   :  { %6590 = vst.msk [vmem:[#allocation2 + $0x214] sm:$0xf] %vm6456_vm1, %v6301_v59  ;;  %v2396_v33 = vadd.f32 %v2395_v35, %v1600_v56 }
 0x4d9   :  { %v5150_v22 = vadd.f32 %v9768_v34, %v4858_v52 }
 0x4db   :  { %vm5438_vm15 = vcmp.ge.f32.partialorder %v5150_v22, 0.0  ;;  %v5726_v55 = vmul.f32 0.0, %v5150_v22 }
 0x4dc   :  { %v10107_v53 = vpop.f32.mrf.mxu3 }
 0x4dd   :  { %v6014_v23 = vsel %vm5438_vm15, %v5150_v22, %v5726_v55  ;;  %11103 = vst [vmem:[#allocation98_spill] sm:$0xff] %v10107_v53 }
 0x4de   :  { %v6302_v7 = vpack.c.bf16 %v6014_v23, %v6014_v23  ;;  %v4341_v49 = vpop.f32.mrf.mxu2  ;;  %v1603_v28 = vpop.f32.mrf.mxu0 }
 0x4df   :  { %v4859_v43 = vadd.f32 %v4341_v49, %v2396_v33  ;;  %v2398_v59 = vpop.f32.mrf.mxu1 }
 0x4e0   :  { %6591 = vst.msk [vmem:[#allocation2 + $0x218] sm:$0xf] %vm6456_vm1, %v6302_v7  ;;  %v2399_v52 = vadd.f32 %v2398_v59, %v1603_v28 }
 0x4e1   :  { %v5151_v23 = vadd.f32 %v9768_v34, %v4859_v43  ;;  %1642 = vmatmul.bf16.gmra.mxu0 %v10112_v21  ;;  %4563 = vmatmul.bf16.gmra.mxu3 %v8330_v25  ;;  %v10130_v34 = vld [vmem:[%s11008_s2] ss:$0 sm:$0xff] }
 0x4e2   :  { %2437 = vmatmul.bf16.gmra.mxu1 %v10049_v29 }
 0x4e3   :  { %vm5439_vm0 = vcmp.ge.f32.partialorder %v5151_v23, 0.0  ;;  %v5727_v8 = vmul.f32 0.0, %v5151_v23  ;;  %4383 = vmatmul.bf16.gmra.mxu2 %v8294_v0 }
 0x4e4   :  { %v10124_v56 = vpop.f32.mrf.mxu3 }
 0x4e5   :  { %v6015_v33 = vsel %vm5439_vm0, %v5151_v23, %v5727_v8  ;;  %11104 = vst [vmem:[#allocation99_spill] sm:$0xff] %v10124_v56  ;;  %v10138_v8 = vld [vmem:[%s11006_s0 + $0x280] sm:$0xff] }
 0x4e6   :  { %v6303_v35 = vpack.c.bf16 %v6015_v33, %v6015_v33  ;;  %v4344_v22 = vpop.f32.mrf.mxu2  ;;  %v1605_v49 = vpop.f32.mrf.mxu0 }
 0x4e7   :  { %v4860_v55 = vadd.f32 %v4344_v22, %v2399_v52  ;;  %v2400_v7 = vpop.f32.mrf.mxu1  ;;  %v8331_v52 = vld [vmem:[%s11006_s0 + $0x3b8] sm:$0xff] }
 0x4e8   :  { %6592 = vst.msk [vmem:[#allocation2 + $0x21c] sm:$0xf] %vm6456_vm1, %v6303_v35  ;;  %v2401_v28 = vadd.f32 %v2400_v7, %v1605_v49  ;;  %v8295_v22 = vld [vmem:[%s11006_s0 + $0x298] sm:$0xff] }
 0x4e9   :  { %v5152_v25 = vadd.f32 %v10130_v34, %v4860_v55 }
 0x4eb   :  { %vm5440_vm2 = vcmp.ge.f32.partialorder %v5152_v25, 0.0  ;;  %v5728_v29 = vmul.f32 0.0, %v5152_v25 }
 0x4ec   :  { %v10133_v0 = vpop.f32.mrf.mxu3 }
 0x4ed   :  { %v6016_v43 = vsel %vm5440_vm2, %v5152_v25, %v5728_v29  ;;  %11105 = vst [vmem:[#allocation100_spill] sm:$0xff] %v10133_v0 }
 0x4ee   :  { %v6304_v59 = vpack.c.bf16 %v6016_v43, %v6016_v43  ;;  %v4346_v23 = vpop.f32.mrf.mxu2  ;;  %v1608_v35 = vpop.f32.mrf.mxu0 }
 0x4ef   :  { %v4861_v33 = vadd.f32 %v4346_v23, %v2401_v28  ;;  %v2403_v55 = vpop.f32.mrf.mxu1 }
 0x4f0   :  { %6593 = vst.msk [vmem:[#allocation2 + $0x220] sm:$0xf] %vm6456_vm1, %v6304_v59  ;;  %v2404_v25 = vadd.f32 %v2403_v55, %v1608_v35  ;;  %v10159_v55 = vld [vmem:[%s11006_s0 + $0x288] sm:$0xff] }
 0x4f1   :  { %v5153_v49 = vadd.f32 %v10130_v34, %v4861_v33  ;;  %1647 = vmatmul.bf16.gmra.mxu0 %v10138_v8  ;;  %4568 = vmatmul.bf16.gmra.mxu3 %v8331_v52 }
 0x4f2   :  { %2442 = vmatmul.bf16.gmra.mxu1 %v10070_v63 }
 0x4f3   :  { %vm5441_vm3 = vcmp.ge.f32.partialorder %v5153_v49, 0.0  ;;  %v5729_v7 = vmul.f32 0.0, %v5153_v49  ;;  %4388 = vmatmul.bf16.gmra.mxu2 %v8295_v22 }
 0x4f4   :  { %v10150_v43 = vpop.f32.mrf.mxu3 }
 0x4f5   :  { %v6017_v29 = vsel %vm5441_vm3, %v5153_v49, %v5729_v7  ;;  %11106 = vst [vmem:[#allocation101_spill] sm:$0xff] %v10150_v43  ;;  %v8332_v49 = vld [vmem:[%s11006_s0 + $0x3c0] sm:$0xff] }
 0x4f6   :  { %v6305_v28 = vpack.c.bf16 %v6017_v29, %v6017_v29  ;;  %v4349_v23 = vpop.f32.mrf.mxu2  ;;  %v1610_v56 = vpop.f32.mrf.mxu0 }
 0x4f7   :  { %v4862_v0 = vadd.f32 %v4349_v23, %v2404_v25  ;;  %v2405_v59 = vpop.f32.mrf.mxu1 }
 0x4f8   :  { %6594 = vst.msk [vmem:[#allocation2 + $0x224] sm:$0xf] %vm6456_vm1, %v6305_v28  ;;  %v2406_v12 = vadd.f32 %v2405_v59, %v1610_v56 }
 0x4f9   :  { %v5154_v33 = vadd.f32 %v10130_v34, %v4862_v0  ;;  %v8296_v0 = vld [vmem:[%s11006_s0 + $0x2a0] sm:$0xff] }
 0x4fb   :  { %vm5442_vm4 = vcmp.ge.f32.partialorder %v5154_v33, 0.0  ;;  %v5730_v52 = vmul.f32 0.0, %v5154_v33 }
 0x4fc   :  { %v10154_v35 = vpop.f32.mrf.mxu3 }
 0x4fd   :  { %v6018_v53 = vsel %vm5442_vm4, %v5154_v33, %v5730_v52  ;;  %11107 = vst [vmem:[#allocation102_spill] sm:$0xff] %v10154_v35 }
 0x4fe   :  { %v6306_v63 = vpack.c.bf16 %v6018_v53, %v6018_v53  ;;  %v4351_v22 = vpop.f32.mrf.mxu2  ;;  %v1613_v25 = vpop.f32.mrf.mxu0 }
 0x4ff   :  { %v4863_v7 = vadd.f32 %v4351_v22, %v2406_v12  ;;  %v2408_v56 = vpop.f32.mrf.mxu1 }
 0x500   :  { %6595 = vst.msk [vmem:[#allocation2 + $0x228] sm:$0xf] %vm6456_vm1, %v6306_v63  ;;  %v2409_v28 = vadd.f32 %v2408_v56, %v1613_v25  ;;  %v10180_v56 = vld [vmem:[%s11006_s0 + $0x290] sm:$0xff] }
 0x501   :  { %v5155_v53 = vadd.f32 %v10130_v34, %v4863_v7  ;;  %1652 = vmatmul.bf16.gmra.mxu0 %v10159_v55  ;;  %4573 = vmatmul.bf16.gmra.mxu3 %v8332_v49 }
 0x502   :  { %2447 = vmatmul.bf16.gmra.mxu1 %v10091_v61 }
 0x503   :  { %vm5443_vm5 = vcmp.ge.f32.partialorder %v5155_v53, 0.0  ;;  %v5731_v29 = vmul.f32 0.0, %v5155_v53  ;;  %4393 = vmatmul.bf16.gmra.mxu2 %v8296_v0 }
 0x504   :  { %v10171_v23 = vpop.f32.mrf.mxu3 }
 0x505   :  { %v6019_v12 = vsel %vm5443_vm5, %v5155_v53, %v5731_v29  ;;  %11108 = vst [vmem:[#allocation103_spill] sm:$0xff] %v10171_v23  ;;  %v8333_v53 = vld [vmem:[%s11006_s0 + $0x3c8] sm:$0xff] }
 0x506   :  { %v6307_v59 = vpack.c.bf16 %v6019_v12, %v6019_v12  ;;  %v4354_v33 = vpop.f32.mrf.mxu2  ;;  %v1615_v22 = vpop.f32.mrf.mxu0  ;;  %v8297_v12 = vld [vmem:[%s11006_s0 + $0x2a8] sm:$0xff] }
 0x507   :  { %v4864_v52 = vadd.f32 %v4354_v33, %v2409_v28  ;;  %v2410_v63 = vpop.f32.mrf.mxu1 }
 0x508   :  { %6596 = vst.msk [vmem:[#allocation2 + $0x22c] sm:$0xf] %vm6456_vm1, %v6307_v59  ;;  %v2411_v43 = vadd.f32 %v2410_v63, %v1615_v22 }
 0x509   :  { %v5156_v7 = vadd.f32 %v10130_v34, %v4864_v52 }
 0x50b   :  { %vm5444_vm6 = vcmp.ge.f32.partialorder %v5156_v7, 0.0  ;;  %v5732_v49 = vmul.f32 0.0, %v5156_v7 }
 0x50c   :  { %v10175_v25 = vpop.f32.mrf.mxu3 }
 0x50d   :  { %v6020_v35 = vsel %vm5444_vm6, %v5156_v7, %v5732_v49  ;;  %11109 = vst [vmem:[#allocation104_spill] sm:$0xff] %v10175_v25 }
 0x50e   :  { %v6308_v61 = vpack.c.bf16 %v6020_v35, %v6020_v35  ;;  %v4356_v0 = vpop.f32.mrf.mxu2  ;;  %v1618_v28 = vpop.f32.mrf.mxu0 }
 0x50f   :  { %v4865_v29 = vadd.f32 %v4356_v0, %v2411_v43  ;;  %v2413_v59 = vpop.f32.mrf.mxu1 }
 0x510   :  { %6597 = vst.msk [vmem:[#allocation2 + $0x230] sm:$0xf] %vm6456_vm1, %v6308_v61  ;;  %v2414_v52 = vadd.f32 %v2413_v59, %v1618_v28  ;;  %v10201_v59 = vld [vmem:[%s11006_s0 + $0x298] sm:$0xff] }
 0x511   :  { %v5157_v35 = vadd.f32 %v10130_v34, %v4865_v29  ;;  %1657 = vmatmul.bf16.gmra.mxu0 %v10180_v56  ;;  %4578 = vmatmul.bf16.gmra.mxu3 %v8333_v53 }
 0x512   :  { %2452 = vmatmul.bf16.gmra.mxu1 %v10112_v21 }
 0x513   :  { %vm5445_vm7 = vcmp.ge.f32.partialorder %v5157_v35, 0.0  ;;  %v5733_v33 = vmul.f32 0.0, %v5157_v35  ;;  %4398 = vmatmul.bf16.gmra.mxu2 %v8297_v12 }
 0x514   :  { %v10192_v22 = vpop.f32.mrf.mxu3 }
 0x515   :  { %v6021_v43 = vsel %vm5445_vm7, %v5157_v35, %v5733_v33  ;;  %v8334_v35 = vld [vmem:[%s11006_s0 + $0x3d0] sm:$0xff] }
 0x516   :  { %v6309_v63 = vpack.c.bf16 %v6021_v43, %v6021_v43  ;;  %v4359_v7 = vpop.f32.mrf.mxu2  ;;  %v1620_v0 = vpop.f32.mrf.mxu0  ;;  %v8298_v43 = vld [vmem:[%s11006_s0 + $0x2b0] sm:$0xff] }
 0x517   :  { %v4866_v49 = vadd.f32 %v4359_v7, %v2414_v52  ;;  %v2415_v61 = vpop.f32.mrf.mxu1 }
 0x518   :  { %6598 = vst.msk [vmem:[#allocation2 + $0x234] sm:$0xf] %vm6456_vm1, %v6309_v63  ;;  %v2416_v23 = vadd.f32 %v2415_v61, %v1620_v0 }
 0x519   :  { %v5158_v29 = vadd.f32 %v10130_v34, %v4866_v49 }
 0x51b   :  { %vm5446_vm8 = vcmp.ge.f32.partialorder %v5158_v29, 0.0  ;;  %v5734_v53 = vmul.f32 0.0, %v5158_v29 }
 0x51c   :  { %v10196_v28 = vpop.f32.mrf.mxu3 }
 0x51d   :  { %v6022_v25 = vsel %vm5446_vm8, %v5158_v29, %v5734_v53  ;;  %11110 = vst [vmem:[#allocation105_spill] sm:$0xff] %v10196_v28 }
 0x51e   :  { %v6310_v21 = vpack.c.bf16 %v6022_v25, %v6022_v25  ;;  %v4361_v12 = vpop.f32.mrf.mxu2  ;;  %v1623_v52 = vpop.f32.mrf.mxu0 }
 0x51f   :  { %v4867_v33 = vadd.f32 %v4361_v12, %v2416_v23  ;;  %v2418_v63 = vpop.f32.mrf.mxu1  ;;  %v2599_v23 = vadd.f32 %v9447_v47, %v8678_v57  ;;  %v2601_v57 = vadd.f32 %v9451_v24, %v8686_v3 }
 0x520   :  { %6599 = vst.msk [vmem:[#allocation2 + $0x238] sm:$0xf] %vm6456_vm1, %v6310_v21  ;;  %v2419_v49 = vadd.f32 %v2418_v63, %v1623_v52 }
 0x521   :  { %v5159_v25 = vadd.f32 %v10130_v34, %v4867_v33  ;;  %1662 = vmatmul.bf16.gmra.mxu0 %v10201_v59  ;;  %4583 = vmatmul.bf16.gmra.mxu3 %v8334_v35 }
 0x522   :  { %2457 = vmatmul.bf16.gmra.mxu1 %v10138_v8 }
 0x523   :  { %vm5447_vm9 = vcmp.ge.f32.partialorder %v5159_v25, 0.0  ;;  %v5735_v7 = vmul.f32 0.0, %v5159_v25  ;;  %4403 = vmatmul.bf16.gmra.mxu2 %v8298_v43 }
 0x524   :  { %v4544_v61 = vpop.f32.mrf.mxu3 }
 0x525   :  { %v6023_v0 = vsel %vm5447_vm9, %v5159_v25, %v5735_v7  ;;  %v4940_v21 = vadd.f32 %v4544_v61, %v2599_v23 }
 0x526   :  { %v6311_v29 = vpack.c.bf16 %v6023_v0, %v6023_v0  ;;  %v4364_v53 = vpop.f32.mrf.mxu2  ;;  %v1625_v28 = vpop.f32.mrf.mxu0 }
 0x527   :  { %v4868_v12 = vadd.f32 %v4364_v53, %v2419_v49  ;;  %v5232_v35 = vadd.f32 %v10130_v34, %v4940_v21  ;;  %v2420_v33 = vpop.f32.mrf.mxu1  ;;  %v8335_v53 = vld [vmem:[%s11006_s0 + $0x3d8] sm:$0xff] }
 0x528   :  { %6600 = vst.msk [vmem:[#allocation2 + $0x23c] sm:$0xf] %vm6456_vm1, %v6311_v29  ;;  %v2421_v7 = vadd.f32 %v2420_v33, %v1625_v28  ;;  %v10223_v29 = vld [vmem:[%s11006_s0 + $0x2a0] sm:$0xff]  ;;  %v8299_v28 = vld [vmem:[%s11006_s0 + $0x2b8] sm:$0xff] }
 0x529   :  { %v5160_v52 = vadd.f32 %v10130_v34, %v4868_v12  ;;  %vm5520_vm10 = vcmp.ge.f32.partialorder %v5232_v35, 0.0  ;;  %v5808_v8 = vmul.f32 0.0, %v5232_v35 }
 0x52b   :  { %vm5448_vm11 = vcmp.ge.f32.partialorder %v5160_v52, 0.0  ;;  %v5736_v43 = vmul.f32 0.0, %v5160_v52  ;;  %v6096_v47 = vsel %vm5520_vm10, %v5232_v35, %v5808_v8 }
 0x52c   :  { %v6384_v25 = vpack.c.bf16 %v6096_v47, %v6096_v47  ;;  %v4546_v49 = vpop.f32.mrf.mxu3 }
 0x52d   :  { %v6024_v63 = vsel %vm5448_vm11, %v5160_v52, %v5736_v43  ;;  %v4941_v61 = vadd.f32 %v4546_v49, %v2601_v57  ;;  %v2604_v43 = vadd.f32 %v9468_v58, %v8702_v16 }
 0x52e   :  { %v6312_v23 = vpack.c.bf16 %v6024_v63, %v6024_v63  ;;  %v4366_v0 = vpop.f32.mrf.mxu2  ;;  %6673 = vst.msk [vmem:[#allocation2 + $0x360] sm:$0xf] %vm6456_vm1, %v6384_v25  ;;  %v1628_v24 = vpop.f32.mrf.mxu0 }
 0x52f   :  { %v4869_v3 = vadd.f32 %v4366_v0, %v2421_v7  ;;  %v5233_v21 = vadd.f32 %v10130_v34, %v4941_v61  ;;  %v2423_v12 = vpop.f32.mrf.mxu1 }
 0x530   :  { %6601 = vst.msk [vmem:[#allocation2 + $0x240] sm:$0xf] %vm6456_vm1, %v6312_v23  ;;  %v2424_v8 = vadd.f32 %v2423_v12, %v1628_v24  ;;  %v2606_v24 = vadd.f32 %v9472_v6, %v8706_v26 }
 0x531   :  { %v5161_v35 = vadd.f32 %v10130_v34, %v4869_v3  ;;  %vm5521_vm12 = vcmp.ge.f32.partialorder %v5233_v21, 0.0  ;;  %v5809_v33 = vmul.f32 0.0, %v5233_v21  ;;  %1667 = vmatmul.bf16.gmra.mxu0 %v10223_v29  ;;  %4588 = vmatmul.bf16.gmra.mxu3 %v8335_v53 }
 0x532   :  { %2462 = vmatmul.bf16.gmra.mxu1 %v10159_v55 }
 0x533   :  { %vm5449_vm13 = vcmp.ge.f32.partialorder %v5161_v35, 0.0  ;;  %v5737_v52 = vmul.f32 0.0, %v5161_v35  ;;  %4408 = vmatmul.bf16.gmra.mxu2 %v8299_v28  ;;  %v6097_v57 = vsel %vm5521_vm12, %v5233_v21, %v5809_v33 }
 0x534   :  { %v6385_v63 = vpack.c.bf16 %v6097_v57, %v6097_v57  ;;  %v4549_v25 = vpop.f32.mrf.mxu3  ;;  %v10248_v57 = vld [vmem:[%s11006_s0 + $0x2a8] sm:$0xff] }
 0x535   :  { %v6025_v47 = vsel %vm5449_vm13, %v5161_v35, %v5737_v52  ;;  %v4942_v23 = vadd.f32 %v4549_v25, %v2604_v43 }
 0x536   :  { %v6313_v7 = vpack.c.bf16 %v6025_v47, %v6025_v47  ;;  %v4369_v49 = vpop.f32.mrf.mxu2  ;;  %6674 = vst.msk [vmem:[#allocation2 + $0x364] sm:$0xf] %vm6456_vm1, %v6385_v63  ;;  %v1630_v61 = vpop.f32.mrf.mxu0  ;;  %v8336_v47 = vld [vmem:[%s11006_s0 + $0x3e0] sm:$0xff] }
 0x537   :  { %v4870_v0 = vadd.f32 %v4369_v49, %v2424_v8  ;;  %v5234_v53 = vadd.f32 %v10130_v34, %v4942_v23  ;;  %v2425_v55 = vpop.f32.mrf.mxu1  ;;  %v8300_v63 = vld [vmem:[%s11006_s0 + $0x2c0] sm:$0xff] }
 0x538   :  { %6602 = vst.msk [vmem:[#allocation2 + $0x244] sm:$0xf] %vm6456_vm1, %v6313_v7  ;;  %v2426_v35 = vadd.f32 %v2425_v55, %v1630_v61 }
 0x539   :  { %v5162_v3 = vadd.f32 %v10130_v34, %v4870_v0  ;;  %vm5522_vm14 = vcmp.ge.f32.partialorder %v5234_v53, 0.0  ;;  %v5810_v16 = vmul.f32 0.0, %v5234_v53 }
 0x53b   :  { %vm5450_vm15 = vcmp.ge.f32.partialorder %v5162_v3, 0.0  ;;  %v5738_v58 = vmul.f32 0.0, %v5162_v3  ;;  %v6098_v28 = vsel %vm5522_vm14, %v5234_v53, %v5810_v16  ;;  %v2609_v53 = vadd.f32 %v9489_v17, %v8723_v39 }
 0x53c   :  { %v6386_v12 = vpack.c.bf16 %v6098_v28, %v6098_v28  ;;  %v4551_v33 = vpop.f32.mrf.mxu3 }
 0x53d   :  { %v6026_v21 = vsel %vm5450_vm15, %v5162_v3, %v5738_v58  ;;  %v4943_v43 = vadd.f32 %v4551_v33, %v2606_v24 }
 0x53e   :  { %v6314_v52 = vpack.c.bf16 %v6026_v21, %v6026_v21  ;;  %v4371_v8 = vpop.f32.mrf.mxu2  ;;  %6675 = vst.msk [vmem:[#allocation2 + $0x368] sm:$0xf] %vm6456_vm1, %v6386_v12  ;;  %v1633_v6 = vpop.f32.mrf.mxu0 }
 0x53f   :  { %v4871_v26 = vadd.f32 %v4371_v8, %v2426_v35  ;;  %v5235_v25 = vadd.f32 %v10130_v34, %v4943_v43  ;;  %v2428_v7 = vpop.f32.mrf.mxu1  ;;  %v2611_v8 = vadd.f32 %v9493_v20, %v8727_v50 }
 0x540   :  { %6603 = vst.msk [vmem:[#allocation2 + $0x248] sm:$0xf] %vm6456_vm1, %v6314_v52  ;;  %v2429_v61 = vadd.f32 %v2428_v7, %v1633_v6 }
 0x541   :  { %v5163_v49 = vadd.f32 %v10130_v34, %v4871_v26  ;;  %vm5523_vm0 = vcmp.ge.f32.partialorder %v5235_v25, 0.0  ;;  %v5811_v23 = vmul.f32 0.0, %v5235_v25  ;;  %1672 = vmatmul.bf16.gmra.mxu0 %v10248_v57  ;;  %4593 = vmatmul.bf16.gmra.mxu3 %v8336_v47 }
 0x542   :  { %2467 = vmatmul.bf16.gmra.mxu1 %v10180_v56 }
 0x543   :  { %vm5451_vm2 = vcmp.ge.f32.partialorder %v5163_v49, 0.0  ;;  %v5739_v0 = vmul.f32 0.0, %v5163_v49  ;;  %4413 = vmatmul.bf16.gmra.mxu2 %v8300_v63  ;;  %v6099_v55 = vsel %vm5523_vm0, %v5235_v25, %v5811_v23  ;;  %v10273_v23 = vld [vmem:[%s11006_s0 + $0x2b0] sm:$0xff] }
 0x544   :  { %v6387_v16 = vpack.c.bf16 %v6099_v55, %v6099_v55  ;;  %v4554_v58 = vpop.f32.mrf.mxu3 }
 0x545   :  { %v6027_v3 = vsel %vm5451_vm2, %v5163_v49, %v5739_v0  ;;  %v4944_v21 = vadd.f32 %v4554_v58, %v2609_v53  ;;  %v8337_v0 = vld [vmem:[%s11006_s0 + $0x3e8] sm:$0xff] }
 0x546   :  { %v6315_v24 = vpack.c.bf16 %v6027_v3, %v6027_v3  ;;  %v4374_v28 = vpop.f32.mrf.mxu2  ;;  %6676 = vst.msk [vmem:[#allocation2 + $0x36c] sm:$0xf] %vm6456_vm1, %v6387_v16  ;;  %v1635_v35 = vpop.f32.mrf.mxu0 }
 0x547   :  { %v4872_v12 = vadd.f32 %v4374_v28, %v2429_v61  ;;  %v5236_v33 = vadd.f32 %v10130_v34, %v4944_v21  ;;  %v2430_v56 = vpop.f32.mrf.mxu1  ;;  %v8301_v61 = vld [vmem:[%s11006_s0 + $0x2c8] sm:$0xff]  ;;  %v2614_v28 = vadd.f32 %v9510_v44, %v8744_v1 }
 0x548   :  { %6604 = vst.msk [vmem:[#allocation2 + $0x24c] sm:$0xf] %vm6456_vm1, %v6315_v24  ;;  %v2431_v6 = vadd.f32 %v2430_v56, %v1635_v35 }
 0x549   :  { %v5164_v52 = vadd.f32 %v10130_v34, %v4872_v12  ;;  %vm5524_vm3 = vcmp.ge.f32.partialorder %v5236_v33, 0.0  ;;  %v5812_v39 = vmul.f32 0.0, %v5236_v33 }
 0x54b   :  { %vm5452_vm4 = vcmp.ge.f32.partialorder %v5164_v52, 0.0  ;;  %v5740_v17 = vmul.f32 0.0, %v5164_v52  ;;  %v6100_v43 = vsel %vm5524_vm3, %v5236_v33, %v5812_v39 }
 0x54c   :  { %v6388_v26 = vpack.c.bf16 %v6100_v43, %v6100_v43  ;;  %v4556_v63 = vpop.f32.mrf.mxu3 }
 0x54d   :  { %v6028_v47 = vsel %vm5452_vm4, %v5164_v52, %v5740_v17  ;;  %v4945_v49 = vadd.f32 %v4556_v63, %v2611_v8 }
 0x54e   :  { %v6316_v25 = vpack.c.bf16 %v6028_v47, %v6028_v47  ;;  %v4376_v7 = vpop.f32.mrf.mxu2  ;;  %6677 = vst.msk [vmem:[#allocation2 + $0x370] sm:$0xf] %vm6456_vm1, %v6388_v26  ;;  %v1638_v20 = vpop.f32.mrf.mxu0  ;;  %v2616_v26 = vadd.f32 %v9514_v9, %v8748_v13 }
 0x54f   :  { %v4873_v50 = vadd.f32 %v4376_v7, %v2431_v6  ;;  %v5237_v53 = vadd.f32 %v10130_v34, %v4945_v49  ;;  %v2433_v55 = vpop.f32.mrf.mxu1 }
 0x550   :  { %6605 = vst.msk [vmem:[#allocation2 + $0x250] sm:$0xf] %vm6456_vm1, %v6316_v25  ;;  %v2434_v24 = vadd.f32 %v2433_v55, %v1638_v20  ;;  %v8302_v55 = vld [vmem:[%s11006_s0 + $0x2d0] sm:$0xff] }
 0x551   :  { %v5165_v3 = vadd.f32 %v10130_v34, %v4873_v50  ;;  %vm5525_vm5 = vcmp.ge.f32.partialorder %v5237_v53, 0.0  ;;  %v5813_v16 = vmul.f32 0.0, %v5237_v53  ;;  %1677 = vmatmul.bf16.gmra.mxu0 %v10273_v23  ;;  %4598 = vmatmul.bf16.gmra.mxu3 %v8337_v0 }
 0x552   :  { %2472 = vmatmul.bf16.gmra.mxu1 %v10201_v59 }
 0x553   :  { %vm5453_vm6 = vcmp.ge.f32.partialorder %v5165_v3, 0.0  ;;  %v5741_v58 = vmul.f32 0.0, %v5165_v3  ;;  %4418 = vmatmul.bf16.gmra.mxu2 %v8301_v61  ;;  %v6101_v21 = vsel %vm5525_vm5, %v5237_v53, %v5813_v16  ;;  %v10298_v61 = vld [vmem:[%s11006_s0 + $0x2b8] sm:$0xff]  ;;  %v8338_v53 = vld [vmem:[%s11006_s0 + $0x3f0] sm:$0xff] }
 0x554   :  { %v6389_v35 = vpack.c.bf16 %v6101_v21, %v6101_v21  ;;  %v4559_v33 = vpop.f32.mrf.mxu3 }
 0x555   :  { %v6029_v12 = vsel %vm5453_vm6, %v5165_v3, %v5741_v58  ;;  %v4946_v39 = vadd.f32 %v4559_v33, %v2614_v28 }
 0x556   :  { %v6317_v56 = vpack.c.bf16 %v6029_v12, %v6029_v12  ;;  %v4379_v52 = vpop.f32.mrf.mxu2  ;;  %6678 = vst.msk [vmem:[#allocation2 + $0x374] sm:$0xf] %vm6456_vm1, %v6389_v35  ;;  %v1640_v8 = vpop.f32.mrf.mxu0  ;;  %v2619_v12 = vadd.f32 %v9531_v48, %v8765_v27 }
 0x557   :  { %v4874_v17 = vadd.f32 %v4379_v52, %v2434_v24  ;;  %v5238_v43 = vadd.f32 %v10130_v34, %v4946_v39  ;;  %v2435_v59 = vpop.f32.mrf.mxu1 }
 0x558   :  { %6606 = vst.msk [vmem:[#allocation2 + $0x254] sm:$0xf] %vm6456_vm1, %v6317_v56  ;;  %v2436_v7 = vadd.f32 %v2435_v59, %v1640_v8 }
 0x559   :  { %v5166_v47 = vadd.f32 %v10130_v34, %v4874_v17  ;;  %vm5526_vm7 = vcmp.ge.f32.partialorder %v5238_v43, 0.0  ;;  %v5814_v1 = vmul.f32 0.0, %v5238_v43 }
 0x55b   :  { %vm5454_vm8 = vcmp.ge.f32.partialorder %v5166_v47, 0.0  ;;  %v5742_v44 = vmul.f32 0.0, %v5166_v47  ;;  %v6102_v6 = vsel %vm5526_vm7, %v5238_v43, %v5814_v1 }
 0x55c   :  { %v6390_v25 = vpack.c.bf16 %v6102_v6, %v6102_v6  ;;  %v4561_v49 = vpop.f32.mrf.mxu3 }
 0x55d   :  { %v6030_v63 = vsel %vm5454_vm8, %v5166_v47, %v5742_v44  ;;  %v4947_v20 = vadd.f32 %v4561_v49, %v2616_v26  ;;  %v2621_v44 = vadd.f32 %v9535_v2, %v8769_v38 }
 0x55e   :  { %v6318_v0 = vpack.c.bf16 %v6030_v63, %v6030_v63  ;;  %v4381_v50 = vpop.f32.mrf.mxu2  ;;  %6679 = vst.msk [vmem:[#allocation2 + $0x378] sm:$0xf] %vm6456_vm1, %v6390_v25  ;;  %v1643_v9 = vpop.f32.mrf.mxu0 }
 0x55f   :  { %v4875_v13 = vadd.f32 %v4381_v50, %v2436_v7  ;;  %v5239_v3 = vadd.f32 %v10130_v34, %v4947_v20  ;;  %v2438_v16 = vpop.f32.mrf.mxu1  ;;  %v10323_v20 = vld [vmem:[%s11006_s0 + $0x2c0] sm:$0xff] }
 0x560   :  { %6607 = vst.msk [vmem:[#allocation2 + $0x258] sm:$0xf] %vm6456_vm1, %v6318_v0  ;;  %v2439_v21 = vadd.f32 %v2438_v16, %v1643_v9 }
 0x561   :  { %v5167_v58 = vadd.f32 %v10130_v34, %v4875_v13  ;;  %vm5527_vm9 = vcmp.ge.f32.partialorder %v5239_v3, 0.0  ;;  %v5815_v24 = vmul.f32 0.0, %v5239_v3  ;;  %1682 = vmatmul.bf16.gmra.mxu0 %v10298_v61  ;;  %4603 = vmatmul.bf16.gmra.mxu3 %v8338_v53  ;;  %v8339_v53 = vld [vmem:[%s11006_s0 + $0x3f8] sm:$0xff] }
 0x562   :  { %2477 = vmatmul.bf16.gmra.mxu1 %v10223_v29  ;;  %v8303_v13 = vld [vmem:[%s11006_s0 + $0x2d8] sm:$0xff] }
 0x563   :  { %vm5455_vm10 = vcmp.ge.f32.partialorder %v5167_v58, 0.0  ;;  %v5743_v28 = vmul.f32 0.0, %v5167_v58  ;;  %4423 = vmatmul.bf16.gmra.mxu2 %v8302_v55  ;;  %v6103_v35 = vsel %vm5527_vm9, %v5239_v3, %v5815_v24 }
 0x564   :  { %v6391_v56 = vpack.c.bf16 %v6103_v35, %v6103_v35  ;;  %v4564_v52 = vpop.f32.mrf.mxu3 }
 0x565   :  { %v6031_v33 = vsel %vm5455_vm10, %v5167_v58, %v5743_v28  ;;  %v4948_v8 = vadd.f32 %v4564_v52, %v2619_v12  ;;  %v2624_v28 = vadd.f32 %v9552_v42, %v8786_v54 }
 0x566   :  { %v6319_v39 = vpack.c.bf16 %v6031_v33, %v6031_v33  ;;  %v4384_v17 = vpop.f32.mrf.mxu2  ;;  %6680 = vst.msk [vmem:[#allocation2 + $0x37c] sm:$0xf] %vm6456_vm1, %v6391_v56  ;;  %v1645_v59 = vpop.f32.mrf.mxu0 }
 0x567   :  { %v4876_v43 = vadd.f32 %v4384_v17, %v2439_v21  ;;  %v5240_v47 = vadd.f32 %v10130_v34, %v4948_v8  ;;  %v2440_v29 = vpop.f32.mrf.mxu1 }
 0x568   :  { %6608 = vst.msk [vmem:[#allocation2 + $0x25c] sm:$0xf] %vm6456_vm1, %v6319_v39  ;;  %v2441_v25 = vadd.f32 %v2440_v29, %v1645_v59 }
 0x569   :  { %v5168_v1 = vadd.f32 %v10130_v34, %v4876_v43  ;;  %vm5528_vm11 = vcmp.ge.f32.partialorder %v5240_v47, 0.0  ;;  %v5816_v27 = vmul.f32 0.0, %v5240_v47 }
 0x56b   :  { %vm5456_vm12 = vcmp.ge.f32.partialorder %v5168_v1, 0.0  ;;  %v5744_v48 = vmul.f32 0.0, %v5168_v1  ;;  %v6104_v26 = vsel %vm5528_vm11, %v5240_v47, %v5816_v27  ;;  %v2626_v47 = vadd.f32 %v9556_v11, %v8790_v4 }
 0x56c   :  { %v6392_v63 = vpack.c.bf16 %v6104_v26, %v6104_v26  ;;  %v4566_v7 = vpop.f32.mrf.mxu3 }
 0x56d   :  { %v6032_v6 = vsel %vm5456_vm12, %v5168_v1, %v5744_v48  ;;  %v4949_v50 = vadd.f32 %v4566_v7, %v2621_v44  ;;  %v8340_v7 = vld [vmem:[%s11006_s0 + $0x400] sm:$0xff] }
 0x56e   :  { %v6320_v49 = vpack.c.bf16 %v6032_v6, %v6032_v6  ;;  %v4386_v0 = vpop.f32.mrf.mxu2  ;;  %6681 = vst.msk [vmem:[#allocation2 + $0x380] sm:$0xf] %vm6456_vm1, %v6392_v63  ;;  %v1648_v2 = vpop.f32.mrf.mxu0 }
 0x56f   :  { %v4877_v38 = vadd.f32 %v4386_v0, %v2441_v25  ;;  %v5241_v9 = vadd.f32 %v10130_v34, %v4949_v50  ;;  %v2443_v55 = vpop.f32.mrf.mxu1  ;;  %v10348_v25 = vld [vmem:[%s11006_s0 + $0x2c8] sm:$0xff] }
 0x570   :  { %6609 = vst.msk [vmem:[#allocation2 + $0x260] sm:$0xf] %vm6456_vm1, %v6320_v49  ;;  %v2444_v24 = vadd.f32 %v2443_v55, %v1648_v2  ;;  %v8304_v49 = vld [vmem:[%s11006_s0 + $0x2e0] sm:$0xff] }
 0x571   :  { %v5169_v3 = vadd.f32 %v10130_v34, %v4877_v38  ;;  %vm5529_vm13 = vcmp.ge.f32.partialorder %v5241_v9, 0.0  ;;  %v5817_v16 = vmul.f32 0.0, %v5241_v9  ;;  %1687 = vmatmul.bf16.gmra.mxu0 %v10323_v20  ;;  %4608 = vmatmul.bf16.gmra.mxu3 %v8339_v53 }
 0x572   :  { %2482 = vmatmul.bf16.gmra.mxu1 %v10248_v57 }
 0x573   :  { %vm5457_vm14 = vcmp.ge.f32.partialorder %v5169_v3, 0.0  ;;  %v5745_v58 = vmul.f32 0.0, %v5169_v3  ;;  %4428 = vmatmul.bf16.gmra.mxu2 %v8303_v13  ;;  %v6105_v21 = vsel %vm5529_vm13, %v5241_v9, %v5817_v16  ;;  %v2629_v9 = vadd.f32 %v9573_v36, %v8807_v19 }
 0x574   :  { %v6393_v35 = vpack.c.bf16 %v6105_v21, %v6105_v21  ;;  %v4569_v33 = vpop.f32.mrf.mxu3 }
 0x575   :  { %v6033_v12 = vsel %vm5457_vm14, %v5169_v3, %v5745_v58  ;;  %v4950_v39 = vadd.f32 %v4569_v33, %v2624_v28 }
 0x576   :  { %v6321_v56 = vpack.c.bf16 %v6033_v12, %v6033_v12  ;;  %v4389_v52 = vpop.f32.mrf.mxu2  ;;  %6682 = vst.msk [vmem:[#allocation2 + $0x384] sm:$0xf] %vm6456_vm1, %v6393_v35  ;;  %v1650_v8 = vpop.f32.mrf.mxu0 }
 0x577   :  { %v4878_v17 = vadd.f32 %v4389_v52, %v2444_v24  ;;  %v5242_v43 = vadd.f32 %v10130_v34, %v4950_v39  ;;  %v2445_v57 = vpop.f32.mrf.mxu1  ;;  %v2631_v52 = vadd.f32 %v9577_v31, %v8811_v32 }
 0x578   :  { %6610 = vst.msk [vmem:[#allocation2 + $0x264] sm:$0xf] %vm6456_vm1, %v6321_v56  ;;  %v2446_v48 = vadd.f32 %v2445_v57, %v1650_v8 }
 0x579   :  { %v5170_v59 = vadd.f32 %v10130_v34, %v4878_v17  ;;  %vm5530_vm15 = vcmp.ge.f32.partialorder %v5242_v43, 0.0  ;;  %v5818_v54 = vmul.f32 0.0, %v5242_v43 }
 0x57b   :  { %vm5458_vm0 = vcmp.ge.f32.partialorder %v5170_v59, 0.0  ;;  %v5746_v42 = vmul.f32 0.0, %v5170_v59  ;;  %v6106_v29 = vsel %vm5530_vm15, %v5242_v43, %v5818_v54 }
 0x57c   :  { %v6394_v27 = vpack.c.bf16 %v6106_v29, %v6106_v29  ;;  %v4571_v44 = vpop.f32.mrf.mxu3  ;;  %v8341_v29 = vld [vmem:[%s11006_s0 + $0x408] sm:$0xff] }
 0x57d   :  { %v6034_v1 = vsel %vm5458_vm0, %v5170_v59, %v5746_v42  ;;  %v4951_v63 = vadd.f32 %v4571_v44, %v2626_v47  ;;  %v10373_v47 = vld [vmem:[%s11006_s0 + $0x2d0] sm:$0xff] }
 0x57e   :  { %v6322_v26 = vpack.c.bf16 %v6034_v1, %v6034_v1  ;;  %v4391_v6 = vpop.f32.mrf.mxu2  ;;  %6683 = vst.msk [vmem:[#allocation2 + $0x388] sm:$0xf] %vm6456_vm1, %v6394_v27  ;;  %v1653_v11 = vpop.f32.mrf.mxu0  ;;  %v8305_v1 = vld [vmem:[%s11006_s0 + $0x2e8] sm:$0xff] }
 0x57f   :  { %v4879_v4 = vadd.f32 %v4391_v6, %v2446_v48  ;;  %v5243_v0 = vadd.f32 %v10130_v34, %v4951_v63  ;;  %v2448_v50 = vpop.f32.mrf.mxu1 }
 0x580   :  { %6611 = vst.msk [vmem:[#allocation2 + $0x268] sm:$0xf] %vm6456_vm1, %v6322_v26  ;;  %v2449_v13 = vadd.f32 %v2448_v50, %v1653_v11 }
 0x581   :  { %v5171_v53 = vadd.f32 %v10130_v34, %v4879_v4  ;;  %vm5531_vm2 = vcmp.ge.f32.partialorder %v5243_v0, 0.0  ;;  %v5819_v38 = vmul.f32 0.0, %v5243_v0  ;;  %1692 = vmatmul.bf16.gmra.mxu0 %v10348_v25  ;;  %4613 = vmatmul.bf16.gmra.mxu3 %v8340_v7  ;;  %v2634_v7 = vadd.f32 %v9594_v41, %v8828_v46 }
 0x582   :  { %2487 = vmatmul.bf16.gmra.mxu1 %v10273_v23 }
 0x583   :  { %vm5459_vm3 = vcmp.ge.f32.partialorder %v5171_v53, 0.0  ;;  %v5747_v2 = vmul.f32 0.0, %v5171_v53  ;;  %4433 = vmatmul.bf16.gmra.mxu2 %v8304_v49  ;;  %v6107_v55 = vsel %vm5531_vm2, %v5243_v0, %v5819_v38 }
 0x584   :  { %v6395_v16 = vpack.c.bf16 %v6107_v55, %v6107_v55  ;;  %v4574_v58 = vpop.f32.mrf.mxu3 }
 0x585   :  { %v6035_v3 = vsel %vm5459_vm3, %v5171_v53, %v5747_v2  ;;  %v4952_v21 = vadd.f32 %v4574_v58, %v2629_v9 }
 0x586   :  { %v6323_v24 = vpack.c.bf16 %v6035_v3, %v6035_v3  ;;  %v4394_v28 = vpop.f32.mrf.mxu2  ;;  %6684 = vst.msk [vmem:[#allocation2 + $0x38c] sm:$0xf] %vm6456_vm1, %v6395_v16  ;;  %v1655_v35 = vpop.f32.mrf.mxu0  ;;  %v2636_v3 = vadd.f32 %v9598_v37, %v8832_v62 }
 0x587   :  { %v4880_v12 = vadd.f32 %v4394_v28, %v2449_v13  ;;  %v5244_v33 = vadd.f32 %v10130_v34, %v4952_v21  ;;  %v2450_v23 = vpop.f32.mrf.mxu1 }
 0x588   :  { %6612 = vst.msk [vmem:[#allocation2 + $0x26c] sm:$0xf] %vm6456_vm1, %v6323_v24  ;;  %v2451_v43 = vadd.f32 %v2450_v23, %v1655_v35  ;;  %v10398_v23 = vld [vmem:[%s11006_s0 + $0x2d8] sm:$0xff] }
 0x589   :  { %v5172_v56 = vadd.f32 %v10130_v34, %v4880_v12  ;;  %vm5532_vm4 = vcmp.ge.f32.partialorder %v5244_v33, 0.0  ;;  %v5820_v19 = vmul.f32 0.0, %v5244_v33 }
 0x58b   :  { %vm5460_vm5 = vcmp.ge.f32.partialorder %v5172_v56, 0.0  ;;  %v5748_v36 = vmul.f32 0.0, %v5172_v56  ;;  %v6108_v39 = vsel %vm5532_vm4, %v5244_v33, %v5820_v19  ;;  %v8306_v19 = vld [vmem:[%s11006_s0 + $0x2f0] sm:$0xff] }
 0x58c   :  { %v6396_v8 = vpack.c.bf16 %v6108_v39, %v6108_v39  ;;  %v4576_v57 = vpop.f32.mrf.mxu3 }
 0x58d   :  { %v6036_v17 = vsel %vm5460_vm5, %v5172_v56, %v5748_v36  ;;  %v4953_v42 = vadd.f32 %v4576_v57, %v2631_v52  ;;  %v8342_v56 = vld [vmem:[%s11006_s0 + $0x410] sm:$0xff]  ;;  %v2639_v57 = vadd.f32 %v9615_v40, %v8849_v14 }
 0x58e   :  { %v6324_v59 = vpack.c.bf16 %v6036_v17, %v6036_v17  ;;  %v4396_v54 = vpop.f32.mrf.mxu2  ;;  %6685 = vst.msk [vmem:[#allocation2 + $0x390] sm:$0xf] %vm6456_vm1, %v6396_v8  ;;  %v1658_v31 = vpop.f32.mrf.mxu0 }
 0x58f   :  { %v4881_v32 = vadd.f32 %v4396_v54, %v2451_v43  ;;  %v5245_v27 = vadd.f32 %v10130_v34, %v4953_v42  ;;  %v2453_v48 = vpop.f32.mrf.mxu1 }
 0x590   :  { %6613 = vst.msk [vmem:[#allocation2 + $0x270] sm:$0xf] %vm6456_vm1, %v6324_v59  ;;  %v2454_v63 = vadd.f32 %v2453_v48, %v1658_v31 }
 0x591   :  { %v5173_v44 = vadd.f32 %v10130_v34, %v4881_v32  ;;  %vm5533_vm6 = vcmp.ge.f32.partialorder %v5245_v27, 0.0  ;;  %v5821_v26 = vmul.f32 0.0, %v5245_v27  ;;  %1697 = vmatmul.bf16.gmra.mxu0 %v10373_v47  ;;  %4618 = vmatmul.bf16.gmra.mxu3 %v8341_v29 }
 0x592   :  { %2492 = vmatmul.bf16.gmra.mxu1 %v10298_v61 }
 0x593   :  { %vm5461_vm7 = vcmp.ge.f32.partialorder %v5173_v44, 0.0  ;;  %v5749_v6 = vmul.f32 0.0, %v5173_v44  ;;  %4438 = vmatmul.bf16.gmra.mxu2 %v8305_v1  ;;  %v6109_v4 = vsel %vm5533_vm6, %v5245_v27, %v5821_v26 }
 0x594   :  { %v6397_v49 = vpack.c.bf16 %v6109_v4, %v6109_v4  ;;  %v4579_v0 = vpop.f32.mrf.mxu3 }
 0x595   :  { %v6037_v11 = vsel %vm5461_vm7, %v5173_v44, %v5749_v6  ;;  %v4954_v38 = vadd.f32 %v4579_v0, %v2634_v7  ;;  %v2641_v6 = vadd.f32 %v9619_v10, %v8853_v30 }
 0x596   :  { %v6325_v50 = vpack.c.bf16 %v6037_v11, %v6037_v11  ;;  %v4399_v53 = vpop.f32.mrf.mxu2  ;;  %6686 = vst.msk [vmem:[#allocation2 + $0x394] sm:$0xf] %vm6456_vm1, %v6397_v49  ;;  %v1660_v13 = vpop.f32.mrf.mxu0 }
 0x597   :  { %v4882_v2 = vadd.f32 %v4399_v53, %v2454_v63  ;;  %v5246_v9 = vadd.f32 %v10130_v34, %v4954_v38  ;;  %v2455_v61 = vpop.f32.mrf.mxu1  ;;  %v10423_v38 = vld [vmem:[%s11006_s0 + $0x2e0] sm:$0xff] }
 0x598   :  { %6614 = vst.msk [vmem:[#allocation2 + $0x274] sm:$0xf] %vm6456_vm1, %v6325_v50  ;;  %v2456_v28 = vadd.f32 %v2455_v61, %v1660_v13  ;;  %v10436_v13 = vld [vmem:[%s11008_s2] ss:$0 sm:$0xff] }
 0x599   :  { %v5174_v55 = vadd.f32 %v10130_v34, %v4882_v2  ;;  %vm5534_vm8 = vcmp.ge.f32.partialorder %v5246_v9, 0.0  ;;  %v5822_v46 = vmul.f32 0.0, %v5246_v9  ;;  %v8307_v2 = vld [vmem:[%s11006_s0 + $0x2f8] sm:$0xff] }
 0x59b   :  { %vm5462_vm9 = vcmp.ge.f32.partialorder %v5174_v55, 0.0  ;;  %v5750_v41 = vmul.f32 0.0, %v5174_v55  ;;  %v6110_v16 = vsel %vm5534_vm8, %v5246_v9, %v5822_v46 }
 0x59c   :  { %v6398_v24 = vpack.c.bf16 %v6110_v16, %v6110_v16  ;;  %v4581_v21 = vpop.f32.mrf.mxu3  ;;  %v2644_v16 = vadd.f32 %v9636_v5, %v8870_v45 }
 0x59d   :  { %v6038_v58 = vsel %vm5462_vm9, %v5174_v55, %v5750_v41  ;;  %v4955_v33 = vadd.f32 %v4581_v21, %v2636_v3 }
 0x59e   :  { %v6326_v12 = vpack.c.bf16 %v6038_v58, %v6038_v58  ;;  %v4401_v35 = vpop.f32.mrf.mxu2  ;;  %6687 = vst.msk [vmem:[#allocation2 + $0x398] sm:$0xf] %vm6456_vm1, %v6398_v24  ;;  %v1663_v37 = vpop.f32.mrf.mxu0 }
 0x59f   :  { %v4883_v62 = vadd.f32 %v4401_v35, %v2456_v28  ;;  %v5247_v36 = vadd.f32 %v10130_v34, %v4955_v33  ;;  %v2458_v52 = vpop.f32.mrf.mxu1 }
 0x5a0   :  { %6615 = vst.msk [vmem:[#allocation2 + $0x278] sm:$0xf] %vm6456_vm1, %v6326_v12  ;;  %v2459_v43 = vadd.f32 %v2458_v52, %v1663_v37 }
 0x5a1   :  { %v5175_v39 = vadd.f32 %v10130_v34, %v4883_v62  ;;  %vm5535_vm10 = vcmp.ge.f32.partialorder %v5247_v36, 0.0  ;;  %v5823_v17 = vmul.f32 0.0, %v5247_v36  ;;  %1702 = vmatmul.bf16.gmra.mxu0 %v10398_v23  ;;  %4623 = vmatmul.bf16.gmra.mxu3 %v8342_v56 }
 0x5a2   :  { %2497 = vmatmul.bf16.gmra.mxu1 %v10323_v20 }
 0x5a3   :  { %vm5463_vm11 = vcmp.ge.f32.partialorder %v5175_v39, 0.0  ;;  %v5751_v8 = vmul.f32 0.0, %v5175_v39  ;;  %4443 = vmatmul.bf16.gmra.mxu2 %v8306_v19  ;;  %v6111_v59 = vsel %vm5535_vm10, %v5247_v36, %v5823_v17  ;;  %v2646_v36 = vadd.f32 %v9640_v51, %v8874_v15 }
 0x5a4   :  { %v6399_v42 = vpack.c.bf16 %v6111_v59, %v6111_v59  ;;  %v4584_v29 = vpop.f32.mrf.mxu3 }
 0x5a5   :  { %v6039_v54 = vsel %vm5463_vm11, %v5175_v39, %v5751_v8  ;;  %v4956_v1 = vadd.f32 %v4584_v29, %v2639_v57  ;;  %v8344_v29 = vld [vmem:[%s11006_s0 + $0x420] sm:$0xff] }
 0x5a6   :  { %v6327_v32 = vpack.c.bf16 %v6039_v54, %v6039_v54  ;;  %v4404_v31 = vpop.f32.mrf.mxu2  ;;  %6688 = vst.msk [vmem:[#allocation2 + $0x39c] sm:$0xf] %vm6456_vm1, %v6399_v42  ;;  %v1665_v48 = vpop.f32.mrf.mxu0  ;;  %v10453_v42 = vld [vmem:[%s11006_s0 + $0x2e8] sm:$0xff] }
 0x5a7   :  { %v4884_v27 = vadd.f32 %v4404_v31, %v2459_v43  ;;  %v5248_v44 = vadd.f32 %v10130_v34, %v4956_v1  ;;  %v2460_v20 = vpop.f32.mrf.mxu1 }
 0x5a8   :  { %6616 = vst.msk [vmem:[#allocation2 + $0x27c] sm:$0xf] %vm6456_vm1, %v6327_v32  ;;  %v2461_v11 = vadd.f32 %v2460_v20, %v1665_v48  ;;  %v8308_v32 = vld [vmem:[%s11006_s0 + $0x300] sm:$0xff] }
 0x5a9   :  { %v5176_v26 = vadd.f32 %v10130_v34, %v4884_v27  ;;  %vm5536_vm12 = vcmp.ge.f32.partialorder %v5248_v44, 0.0  ;;  %v5824_v14 = vmul.f32 0.0, %v5248_v44  ;;  %v8343_v34 = vld [vmem:[%s11006_s0 + $0x418] sm:$0xff] }
 0x5ab   :  { %vm5464_vm13 = vcmp.ge.f32.partialorder %v5176_v26, 0.0  ;;  %v5752_v40 = vmul.f32 0.0, %v5176_v26  ;;  %v6112_v63 = vsel %vm5536_vm12, %v5248_v44, %v5824_v14 }
 0x5ac   :  { %v6400_v4 = vpack.c.bf16 %v6112_v63, %v6112_v63  ;;  %v4586_v49 = vpop.f32.mrf.mxu3 }
 0x5ad   :  { %v6040_v7 = vsel %vm5464_vm13, %v5176_v26, %v5752_v40  ;;  %v4957_v53 = vadd.f32 %v4586_v49, %v2641_v6  ;;  %v2649_v26 = vadd.f32 %v9657_v60, %v8891_v18 }
 0x5ae   :  { %v6328_v0 = vpack.c.bf16 %v6040_v7, %v6040_v7  ;;  %v4406_v50 = vpop.f32.mrf.mxu2  ;;  %6689 = vst.msk [vmem:[#allocation2 + $0x3a0] sm:$0xf] %vm6456_vm1, %v6400_v4  ;;  %v1668_v10 = vpop.f32.mrf.mxu0 }
 0x5af   :  { %v4885_v30 = vadd.f32 %v4406_v50, %v2461_v11  ;;  %v5249_v9 = vadd.f32 %v10436_v13, %v4957_v53  ;;  %v2463_v61 = vpop.f32.mrf.mxu1 }
 0x5b0   :  { %6617 = vst.msk [vmem:[#allocation2 + $0x280] sm:$0xf] %vm6456_vm1, %v6328_v0  ;;  %v2464_v3 = vadd.f32 %v2463_v61, %v1668_v10 }
 0x5b1   :  { %v5177_v55 = vadd.f32 %v10436_v13, %v4885_v30  ;;  %vm5537_vm14 = vcmp.ge.f32.partialorder %v5249_v9, 0.0  ;;  %v5825_v46 = vmul.f32 0.0, %v5249_v9  ;;  %1707 = vmatmul.bf16.gmra.mxu0 %v10423_v38  ;;  %4628 = vmatmul.bf16.gmra.mxu3 %v8343_v34  ;;  %v11111_v34 = vld [vmem:[#allocation5_spill] sm:$0xff]  ;;  %v11112_v30 = vld [vmem:[#allocation56_spill] sm:$0xff] }
 0x5b2   :  { %2502 = vmatmul.bf16.gmra.mxu1 %v10348_v25  ;;  %v2651_v10 = vadd.f32 %v11112_v30, %v11111_v34  ;;  %v11117_v30 = vld [vmem:[#allocation8_spill] sm:$0xff] }
 0x5b3   :  { %vm5465_vm15 = vcmp.ge.f32.partialorder %v5177_v55, 0.0  ;;  %v5753_v41 = vmul.f32 0.0, %v5177_v55  ;;  %4448 = vmatmul.bf16.gmra.mxu2 %v8307_v2  ;;  %v6113_v58 = vsel %vm5537_vm14, %v5249_v9, %v5825_v46 }
 0x5b4   :  { %v6401_v28 = vpack.c.bf16 %v6113_v58, %v6113_v58  ;;  %v4589_v21 = vpop.f32.mrf.mxu3  ;;  %v10478_v58 = vld [vmem:[%s11006_s0 + $0x2f0] sm:$0xff] }
 0x5b5   :  { %v6041_v24 = vsel %vm5465_vm15, %v5177_v55, %v5753_v41  ;;  %v4958_v33 = vadd.f32 %v4589_v21, %v2644_v16 }
 0x5b6   :  { %v6329_v12 = vpack.c.bf16 %v6041_v24, %v6041_v24  ;;  %v4409_v35 = vpop.f32.mrf.mxu2  ;;  %6690 = vst.msk [vmem:[#allocation2 + $0x3a4] sm:$0xf] %vm6456_vm1, %v6401_v28  ;;  %v1670_v62 = vpop.f32.mrf.mxu0  ;;  %v8345_v24 = vld [vmem:[%s11006_s0 + $0x428] sm:$0xff] }
 0x5b7   :  { %v4886_v56 = vadd.f32 %v4409_v35, %v2464_v3  ;;  %v5250_v37 = vadd.f32 %v10436_v13, %v4958_v33  ;;  %v2465_v25 = vpop.f32.mrf.mxu1 }
 0x5b8   :  { %6618 = vst.msk [vmem:[#allocation2 + $0x284] sm:$0xf] %vm6456_vm1, %v6329_v12  ;;  %v2466_v8 = vadd.f32 %v2465_v25, %v1670_v62  ;;  %v8309_v12 = vld [vmem:[%s11006_s0 + $0x308] sm:$0xff] }
 0x5b9   :  { %v5178_v19 = vadd.f32 %v10436_v13, %v4886_v56  ;;  %vm5538_vm0 = vcmp.ge.f32.partialorder %v5250_v37, 0.0  ;;  %v5826_v45 = vmul.f32 0.0, %v5250_v37 }
 0x5bb   :  { %vm5466_vm2 = vcmp.ge.f32.partialorder %v5178_v19, 0.0  ;;  %v5754_v5 = vmul.f32 0.0, %v5178_v19  ;;  %v6114_v52 = vsel %vm5538_vm0, %v5250_v37, %v5826_v45  ;;  %v11114_v45 = vld [vmem:[#allocation57_spill] sm:$0xff] }
 0x5bc   :  { %v6402_v17 = vpack.c.bf16 %v6114_v52, %v6114_v52  ;;  %v4591_v43 = vpop.f32.mrf.mxu3 }
 0x5bd   :  { %v6042_v39 = vsel %vm5466_vm2, %v5178_v19, %v5754_v5  ;;  %v4959_v54 = vadd.f32 %v4591_v43, %v2646_v36  ;;  %v11113_v19 = vld [vmem:[#allocation6_spill] sm:$0xff] }
 0x5be   :  { %v6330_v57 = vpack.c.bf16 %v6042_v39, %v6042_v39  ;;  %v4411_v59 = vpop.f32.mrf.mxu2  ;;  %6691 = vst.msk [vmem:[#allocation2 + $0x3a8] sm:$0xf] %vm6456_vm1, %v6402_v17  ;;  %v1673_v51 = vpop.f32.mrf.mxu0  ;;  %v2654_v5 = vadd.f32 %v11114_v45, %v11113_v19 }
 0x5bf   :  { %v4887_v15 = vadd.f32 %v4411_v59, %v2466_v8  ;;  %v5251_v31 = vadd.f32 %v10436_v13, %v4959_v54  ;;  %v2468_v1 = vpop.f32.mrf.mxu1 }
 0x5c0   :  { %6619 = vst.msk [vmem:[#allocation2 + $0x288] sm:$0xf] %vm6456_vm1, %v6330_v57  ;;  %v2469_v20 = vadd.f32 %v2468_v1, %v1673_v51  ;;  %v11116_v1 = vld [vmem:[#allocation58_spill] sm:$0xff] }
 0x5c1   :  { %v5179_v27 = vadd.f32 %v10436_v13, %v4887_v15  ;;  %vm5539_vm3 = vcmp.ge.f32.partialorder %v5251_v31, 0.0  ;;  %v5827_v48 = vmul.f32 0.0, %v5251_v31  ;;  %1712 = vmatmul.bf16.gmra.mxu0 %v10453_v42  ;;  %4633 = vmatmul.bf16.gmra.mxu3 %v8344_v29 }
 0x5c2   :  { %2507 = vmatmul.bf16.gmra.mxu1 %v10373_v47 }
 0x5c3   :  { %vm5467_vm4 = vcmp.ge.f32.partialorder %v5179_v27, 0.0  ;;  %v5755_v44 = vmul.f32 0.0, %v5179_v27  ;;  %4453 = vmatmul.bf16.gmra.mxu2 %v8308_v32  ;;  %v6115_v14 = vsel %vm5539_vm3, %v5251_v31, %v5827_v48  ;;  %v11115_v31 = vld [vmem:[#allocation7_spill] sm:$0xff] }
 0x5c4   :  { %v6403_v6 = vpack.c.bf16 %v6115_v14, %v6115_v14  ;;  %v4594_v63 = vpop.f32.mrf.mxu3 }
 0x5c5   :  { %v6043_v40 = vsel %vm5467_vm4, %v5179_v27, %v5755_v44  ;;  %v4960_v11 = vadd.f32 %v4594_v63, %v2649_v26  ;;  %v2656_v27 = vadd.f32 %v11116_v1, %v11115_v31  ;;  %v11121_v1 = vld [vmem:[#allocation10_spill] sm:$0xff] }
 0x5c6   :  { %v6331_v7 = vpack.c.bf16 %v6043_v40, %v6043_v40  ;;  %v4414_v4 = vpop.f32.mrf.mxu2  ;;  %6692 = vst.msk [vmem:[#allocation2 + $0x3ac] sm:$0xf] %vm6456_vm1, %v6403_v6  ;;  %v1675_v0 = vpop.f32.mrf.mxu0 }
 0x5c7   :  { %v4888_v49 = vadd.f32 %v4414_v4, %v2469_v20  ;;  %v5252_v50 = vadd.f32 %v10436_v13, %v4960_v11  ;;  %v2470_v47 = vpop.f32.mrf.mxu1  ;;  %v8346_v4 = vld [vmem:[%s11006_s0 + $0x430] sm:$0xff] }
 0x5c8   :  { %6620 = vst.msk [vmem:[#allocation2 + $0x28c] sm:$0xf] %vm6456_vm1, %v6331_v7  ;;  %v2471_v55 = vadd.f32 %v2470_v47, %v1675_v0  ;;  %v10503_v7 = vld [vmem:[%s11006_s0 + $0x2f8] sm:$0xff]  ;;  %v8310_v0 = vld [vmem:[%s11006_s0 + $0x310] sm:$0xff] }
 0x5c9   :  { %v5180_v53 = vadd.f32 %v10436_v13, %v4888_v49  ;;  %vm5540_vm5 = vcmp.ge.f32.partialorder %v5252_v50, 0.0  ;;  %v5828_v18 = vmul.f32 0.0, %v5252_v50 }
 0x5cb   :  { %vm5468_vm6 = vcmp.ge.f32.partialorder %v5180_v53, 0.0  ;;  %v5756_v60 = vmul.f32 0.0, %v5180_v53  ;;  %v6116_v2 = vsel %vm5540_vm5, %v5252_v50, %v5828_v18 }
 0x5cc   :  { %v6404_v61 = vpack.c.bf16 %v6116_v2, %v6116_v2  ;;  %v4596_v46 = vpop.f32.mrf.mxu3 }
 0x5cd   :  { %v6044_v9 = vsel %vm5468_vm6, %v5180_v53, %v5756_v60  ;;  %v4961_v16 = vadd.f32 %v4596_v46, %v2651_v10  ;;  %v11118_v10 = vld [vmem:[#allocation59_spill] sm:$0xff] }
 0x5ce   :  { %v6332_v41 = vpack.c.bf16 %v6044_v9, %v6044_v9  ;;  %v4416_v3 = vpop.f32.mrf.mxu2  ;;  %6693 = vst.msk [vmem:[#allocation2 + $0x3b0] sm:$0xf] %vm6456_vm1, %v6404_v61  ;;  %v1678_v21 = vpop.f32.mrf.mxu0  ;;  %v2659_v2 = vadd.f32 %v11118_v10, %v11117_v30 }
 0x5cf   :  { %v4889_v28 = vadd.f32 %v4416_v3, %v2471_v55  ;;  %v5253_v35 = vadd.f32 %v10436_v13, %v4961_v16  ;;  %v2473_v33 = vpop.f32.mrf.mxu1 }
 0x5d0   :  { %6621 = vst.msk [vmem:[#allocation2 + $0x290] sm:$0xf] %vm6456_vm1, %v6332_v41  ;;  %v2474_v25 = vadd.f32 %v2473_v33, %v1678_v21 }
 0x5d1   :  { %v5181_v56 = vadd.f32 %v10436_v13, %v4889_v28  ;;  %vm5541_vm7 = vcmp.ge.f32.partialorder %v5253_v35, 0.0  ;;  %v5829_v62 = vmul.f32 0.0, %v5253_v35  ;;  %1717 = vmatmul.bf16.gmra.mxu0 %v10478_v58  ;;  %4638 = vmatmul.bf16.gmra.mxu3 %v8345_v24 }
 0x5d2   :  { %2512 = vmatmul.bf16.gmra.mxu1 %v10398_v23 }
 0x5d3   :  { %vm5469_vm8 = vcmp.ge.f32.partialorder %v5181_v56, 0.0  ;;  %v5757_v37 = vmul.f32 0.0, %v5181_v56  ;;  %4458 = vmatmul.bf16.gmra.mxu2 %v8309_v12  ;;  %v6117_v36 = vsel %vm5541_vm7, %v5253_v35, %v5829_v62  ;;  %v11120_v62 = vld [vmem:[#allocation60_spill] sm:$0xff] }
 0x5d4   :  { %v6405_v39 = vpack.c.bf16 %v6117_v36, %v6117_v36  ;;  %v4599_v17 = vpop.f32.mrf.mxu3 }
 0x5d5   :  { %v6045_v52 = vsel %vm5469_vm8, %v5181_v56, %v5757_v37  ;;  %v4962_v57 = vadd.f32 %v4599_v17, %v2654_v5  ;;  %v11119_v56 = vld [vmem:[#allocation9_spill] sm:$0xff] }
 0x5d6   :  { %v6333_v8 = vpack.c.bf16 %v6045_v52, %v6045_v52  ;;  %v4419_v43 = vpop.f32.mrf.mxu2  ;;  %6694 = vst.msk [vmem:[#allocation2 + $0x3b4] sm:$0xf] %vm6456_vm1, %v6405_v39  ;;  %v1680_v54 = vpop.f32.mrf.mxu0  ;;  %v2661_v37 = vadd.f32 %v11120_v62, %v11119_v56  ;;  %v11125_v62 = vld [vmem:[#allocation12_spill] sm:$0xff] }
 0x5d7   :  { %v4890_v59 = vadd.f32 %v4419_v43, %v2474_v25  ;;  %v5254_v29 = vadd.f32 %v10436_v13, %v4962_v57  ;;  %v2475_v23 = vpop.f32.mrf.mxu1  ;;  %v8347_v43 = vld [vmem:[%s11006_s0 + $0x438] sm:$0xff] }
 0x5d8   :  { %6622 = vst.msk [vmem:[#allocation2 + $0x294] sm:$0xf] %vm6456_vm1, %v6333_v8  ;;  %v2476_v26 = vadd.f32 %v2475_v23, %v1680_v54  ;;  %v10528_v8 = vld [vmem:[%s11006_s0 + $0x300] sm:$0xff]  ;;  %v8311_v54 = vld [vmem:[%s11006_s0 + $0x318] sm:$0xff] }
 0x5d9   :  { %v5182_v15 = vadd.f32 %v10436_v13, %v4890_v59  ;;  %vm5542_vm9 = vcmp.ge.f32.partialorder %v5254_v29, 0.0  ;;  %v5830_v51 = vmul.f32 0.0, %v5254_v29 }
 0x5db   :  { %vm5470_vm10 = vcmp.ge.f32.partialorder %v5182_v15, 0.0  ;;  %v5758_v32 = vmul.f32 0.0, %v5182_v15  ;;  %v6118_v48 = vsel %vm5542_vm9, %v5254_v29, %v5830_v51 }
 0x5dc   :  { %v6406_v20 = vpack.c.bf16 %v6118_v48, %v6118_v48  ;;  %v4601_v14 = vpop.f32.mrf.mxu3 }
 0x5dd   :  { %v6046_v44 = vsel %vm5470_vm10, %v5182_v15, %v5758_v32  ;;  %v4963_v63 = vadd.f32 %v4601_v14, %v2656_v27  ;;  %v11122_v27 = vld [vmem:[#allocation61_spill] sm:$0xff] }
 0x5de   :  { %v6334_v40 = vpack.c.bf16 %v6046_v44, %v6046_v44  ;;  %v4421_v6 = vpop.f32.mrf.mxu2  ;;  %6695 = vst.msk [vmem:[#allocation2 + $0x3b8] sm:$0xf] %vm6456_vm1, %v6406_v20  ;;  %v1683_v49 = vpop.f32.mrf.mxu0  ;;  %v2664_v48 = vadd.f32 %v11122_v27, %v11121_v1 }
 0x5df   :  { %v4891_v11 = vadd.f32 %v4421_v6, %v2476_v26  ;;  %v5255_v50 = vadd.f32 %v10436_v13, %v4963_v63  ;;  %v2478_v47 = vpop.f32.mrf.mxu1 }
 0x5e0   :  { %6623 = vst.msk [vmem:[#allocation2 + $0x298] sm:$0xf] %vm6456_vm1, %v6334_v40  ;;  %v2479_v34 = vadd.f32 %v2478_v47, %v1683_v49 }
 0x5e1   :  { %v5183_v53 = vadd.f32 %v10436_v13, %v4891_v11  ;;  %vm5543_vm11 = vcmp.ge.f32.partialorder %v5255_v50, 0.0  ;;  %v5831_v18 = vmul.f32 0.0, %v5255_v50  ;;  %1722 = vmatmul.bf16.gmra.mxu0 %v10503_v7  ;;  %4643 = vmatmul.bf16.gmra.mxu3 %v8346_v4 }
 0x5e2   :  { %2517 = vmatmul.bf16.gmra.mxu1 %v10423_v38 }
 0x5e3   :  { %vm5471_vm12 = vcmp.ge.f32.partialorder %v5183_v53, 0.0  ;;  %v5759_v60 = vmul.f32 0.0, %v5183_v53  ;;  %4463 = vmatmul.bf16.gmra.mxu2 %v8310_v0  ;;  %v6119_v9 = vsel %vm5543_vm11, %v5255_v50, %v5831_v18  ;;  %v11124_v18 = vld [vmem:[#allocation62_spill] sm:$0xff] }
 0x5e4   :  { %v6407_v55 = vpack.c.bf16 %v6119_v9, %v6119_v9  ;;  %v4604_v46 = vpop.f32.mrf.mxu3 }
 0x5e5   :  { %v6047_v61 = vsel %vm5471_vm12, %v5183_v53, %v5759_v60  ;;  %v4964_v16 = vadd.f32 %v4604_v46, %v2659_v2  ;;  %v11123_v53 = vld [vmem:[#allocation11_spill] sm:$0xff] }
 0x5e6   :  { %v6335_v41 = vpack.c.bf16 %v6047_v61, %v6047_v61  ;;  %v4424_v3 = vpop.f32.mrf.mxu2  ;;  %6696 = vst.msk [vmem:[#allocation2 + $0x3bc] sm:$0xf] %vm6456_vm1, %v6407_v55  ;;  %v1685_v28 = vpop.f32.mrf.mxu0  ;;  %v2666_v60 = vadd.f32 %v11124_v18, %v11123_v53  ;;  %v11129_v18 = vld [vmem:[#allocation14_spill] sm:$0xff] }
 0x5e7   :  { %v4892_v24 = vadd.f32 %v4424_v3, %v2479_v34  ;;  %v5256_v21 = vadd.f32 %v10436_v13, %v4964_v16  ;;  %v2480_v38 = vpop.f32.mrf.mxu1  ;;  %v8348_v3 = vld [vmem:[%s11006_s0 + $0x440] sm:$0xff] }
 0x5e8   :  { %6624 = vst.msk [vmem:[#allocation2 + $0x29c] sm:$0xf] %vm6456_vm1, %v6335_v41  ;;  %v2481_v5 = vadd.f32 %v2480_v38, %v1685_v28  ;;  %v10553_v41 = vld [vmem:[%s11006_s0 + $0x308] sm:$0xff]  ;;  %v8312_v28 = vld [vmem:[%s11006_s0 + $0x320] sm:$0xff] }
 0x5e9   :  { %v5184_v12 = vadd.f32 %v10436_v13, %v4892_v24  ;;  %vm5544_vm13 = vcmp.ge.f32.partialorder %v5256_v21, 0.0  ;;  %v5832_v35 = vmul.f32 0.0, %v5256_v21 }
 0x5eb   :  { %vm5472_vm14 = vcmp.ge.f32.partialorder %v5184_v12, 0.0  ;;  %v5760_v33 = vmul.f32 0.0, %v5184_v12  ;;  %v6120_v25 = vsel %vm5544_vm13, %v5256_v21, %v5832_v35 }
 0x5ec   :  { %v6408_v45 = vpack.c.bf16 %v6120_v25, %v6120_v25  ;;  %v4606_v36 = vpop.f32.mrf.mxu3 }
 0x5ed   :  { %v6048_v19 = vsel %vm5472_vm14, %v5184_v12, %v5760_v33  ;;  %v4965_v17 = vadd.f32 %v4606_v36, %v2661_v37  ;;  %v11126_v37 = vld [vmem:[#allocation63_spill] sm:$0xff] }
 0x5ee   :  { %v6336_v52 = vpack.c.bf16 %v6048_v19, %v6048_v19  ;;  %v4426_v39 = vpop.f32.mrf.mxu2  ;;  %6697 = vst.msk [vmem:[#allocation2 + $0x3c0] sm:$0xf] %vm6456_vm1, %v6408_v45  ;;  %v1688_v59 = vpop.f32.mrf.mxu0  ;;  %v2669_v25 = vadd.f32 %v11126_v37, %v11125_v62 }
 0x5ef   :  { %v4893_v57 = vadd.f32 %v4426_v39, %v2481_v5  ;;  %v5257_v29 = vadd.f32 %v10436_v13, %v4965_v17  ;;  %v2483_v23 = vpop.f32.mrf.mxu1 }
 0x5f0   :  { %6625 = vst.msk [vmem:[#allocation2 + $0x2a0] sm:$0xf] %vm6456_vm1, %v6336_v52  ;;  %v2484_v31 = vadd.f32 %v2483_v23, %v1688_v59 }
 0x5f1   :  { %v5185_v15 = vadd.f32 %v10436_v13, %v4893_v57  ;;  %vm5545_vm15 = vcmp.ge.f32.partialorder %v5257_v29, 0.0  ;;  %v5833_v51 = vmul.f32 0.0, %v5257_v29  ;;  %1727 = vmatmul.bf16.gmra.mxu0 %v10528_v8  ;;  %4648 = vmatmul.bf16.gmra.mxu3 %v8347_v43 }
 0x5f2   :  { %2522 = vmatmul.bf16.gmra.mxu1 %v10453_v42 }
 0x5f3   :  { %vm5473_vm0 = vcmp.ge.f32.partialorder %v5185_v15, 0.0  ;;  %v5761_v32 = vmul.f32 0.0, %v5185_v15  ;;  %4468 = vmatmul.bf16.gmra.mxu2 %v8311_v54  ;;  %v6121_v44 = vsel %vm5545_vm15, %v5257_v29, %v5833_v51  ;;  %v11128_v51 = vld [vmem:[#allocation64_spill] sm:$0xff] }
 0x5f4   :  { %v6409_v26 = vpack.c.bf16 %v6121_v44, %v6121_v44  ;;  %v4609_v14 = vpop.f32.mrf.mxu3 }
 0x5f5   :  { %v6049_v20 = vsel %vm5473_vm0, %v5185_v15, %v5761_v32  ;;  %v4966_v63 = vadd.f32 %v4609_v14, %v2664_v48  ;;  %v11127_v15 = vld [vmem:[#allocation13_spill] sm:$0xff] }
 0x5f6   :  { %v6337_v40 = vpack.c.bf16 %v6049_v20, %v6049_v20  ;;  %v4429_v6 = vpop.f32.mrf.mxu2  ;;  %6698 = vst.msk [vmem:[#allocation2 + $0x3c4] sm:$0xf] %vm6456_vm1, %v6409_v26  ;;  %v1690_v11 = vpop.f32.mrf.mxu0  ;;  %v2671_v32 = vadd.f32 %v11128_v51, %v11127_v15  ;;  %v11133_v51 = vld [vmem:[#allocation16_spill] sm:$0xff] }
 0x5f7   :  { %v4894_v4 = vadd.f32 %v4429_v6, %v2484_v31  ;;  %v5258_v49 = vadd.f32 %v10436_v13, %v4966_v63  ;;  %v2485_v42 = vpop.f32.mrf.mxu1  ;;  %v8349_v6 = vld [vmem:[%s11006_s0 + $0x448] sm:$0xff] }
 0x5f8   :  { %6626 = vst.msk [vmem:[#allocation2 + $0x2a4] sm:$0xf] %vm6456_vm1, %v6337_v40  ;;  %v2486_v2 = vadd.f32 %v2485_v42, %v1690_v11  ;;  %v10578_v40 = vld [vmem:[%s11006_s0 + $0x310] sm:$0xff]  ;;  %v8313_v11 = vld [vmem:[%s11006_s0 + $0x328] sm:$0xff] }
 0x5f9   :  { %v5186_v0 = vadd.f32 %v10436_v13, %v4894_v4  ;;  %vm5546_vm2 = vcmp.ge.f32.partialorder %v5258_v49, 0.0  ;;  %v5834_v50 = vmul.f32 0.0, %v5258_v49 }
 0x5fb   :  { %vm5474_vm3 = vcmp.ge.f32.partialorder %v5186_v0, 0.0  ;;  %v5762_v47 = vmul.f32 0.0, %v5186_v0  ;;  %v6122_v34 = vsel %vm5546_vm2, %v5258_v49, %v5834_v50 }
 0x5fc   :  { %v6410_v10 = vpack.c.bf16 %v6122_v34, %v6122_v34  ;;  %v4611_v9 = vpop.f32.mrf.mxu3 }
 0x5fd   :  { %v6050_v30 = vsel %vm5474_vm3, %v5186_v0, %v5762_v47  ;;  %v4967_v46 = vadd.f32 %v4611_v9, %v2666_v60  ;;  %v11130_v60 = vld [vmem:[#allocation65_spill] sm:$0xff] }
 0x5fe   :  { %v6338_v61 = vpack.c.bf16 %v6050_v30, %v6050_v30  ;;  %v4431_v55 = vpop.f32.mrf.mxu2  ;;  %6699 = vst.msk [vmem:[#allocation2 + $0x3c8] sm:$0xf] %vm6456_vm1, %v6410_v10  ;;  %v1693_v24 = vpop.f32.mrf.mxu0  ;;  %v2674_v34 = vadd.f32 %v11130_v60, %v11129_v18 }
 0x5ff   :  { %v4895_v16 = vadd.f32 %v4431_v55, %v2486_v2  ;;  %v5259_v21 = vadd.f32 %v10436_v13, %v4967_v46  ;;  %v2488_v38 = vpop.f32.mrf.mxu1 }
 0x600   :  { %6627 = vst.msk [vmem:[#allocation2 + $0x2a8] sm:$0xf] %vm6456_vm1, %v6338_v61  ;;  %v2489_v56 = vadd.f32 %v2488_v38, %v1693_v24 }
 0x601   :  { %v5187_v12 = vadd.f32 %v10436_v13, %v4895_v16  ;;  %vm5547_vm4 = vcmp.ge.f32.partialorder %v5259_v21, 0.0  ;;  %v5835_v35 = vmul.f32 0.0, %v5259_v21  ;;  %1732 = vmatmul.bf16.gmra.mxu0 %v10553_v41  ;;  %4653 = vmatmul.bf16.gmra.mxu3 %v8348_v3 }
 0x602   :  { %2527 = vmatmul.bf16.gmra.mxu1 %v10478_v58 }
 0x603   :  { %vm5475_vm5 = vcmp.ge.f32.partialorder %v5187_v12, 0.0  ;;  %v5763_v33 = vmul.f32 0.0, %v5187_v12  ;;  %4473 = vmatmul.bf16.gmra.mxu2 %v8312_v28  ;;  %v6123_v19 = vsel %vm5547_vm4, %v5259_v21, %v5835_v35  ;;  %v11132_v35 = vld [vmem:[#allocation66_spill] sm:$0xff] }
 0x604   :  { %v6411_v5 = vpack.c.bf16 %v6123_v19, %v6123_v19  ;;  %v4614_v36 = vpop.f32.mrf.mxu3 }
 0x605   :  { %v6051_v45 = vsel %vm5475_vm5, %v5187_v12, %v5763_v33  ;;  %v4968_v17 = vadd.f32 %v4614_v36, %v2669_v25  ;;  %v11131_v12 = vld [vmem:[#allocation15_spill] sm:$0xff] }
 0x606   :  { %v6339_v52 = vpack.c.bf16 %v6051_v45, %v6051_v45  ;;  %v4434_v39 = vpop.f32.mrf.mxu2  ;;  %6700 = vst.msk [vmem:[#allocation2 + $0x3cc] sm:$0xf] %vm6456_vm1, %v6411_v5  ;;  %v1695_v57 = vpop.f32.mrf.mxu0  ;;  %v2676_v33 = vadd.f32 %v11132_v35, %v11131_v12  ;;  %v11137_v35 = vld [vmem:[#allocation18_spill] sm:$0xff] }
 0x607   :  { %v4896_v43 = vadd.f32 %v4434_v39, %v2489_v56  ;;  %v5260_v59 = vadd.f32 %v10436_v13, %v4968_v17  ;;  %v2490_v58 = vpop.f32.mrf.mxu1  ;;  %v8350_v39 = vld [vmem:[%s11006_s0 + $0x450] sm:$0xff] }
 0x608   :  { %6628 = vst.msk [vmem:[#allocation2 + $0x2ac] sm:$0xf] %vm6456_vm1, %v6339_v52  ;;  %v2491_v48 = vadd.f32 %v2490_v58, %v1695_v57  ;;  %v10603_v52 = vld [vmem:[%s11006_s0 + $0x318] sm:$0xff]  ;;  %v8314_v57 = vld [vmem:[%s11006_s0 + $0x330] sm:$0xff] }
 0x609   :  { %v5188_v54 = vadd.f32 %v10436_v13, %v4896_v43  ;;  %vm5548_vm6 = vcmp.ge.f32.partialorder %v5260_v59, 0.0  ;;  %v5836_v29 = vmul.f32 0.0, %v5260_v59 }
 0x60b   :  { %vm5476_vm7 = vcmp.ge.f32.partialorder %v5188_v54, 0.0  ;;  %v5764_v23 = vmul.f32 0.0, %v5188_v54  ;;  %v6124_v31 = vsel %vm5548_vm6, %v5260_v59, %v5836_v29 }
 0x60c   :  { %v6412_v27 = vpack.c.bf16 %v6124_v31, %v6124_v31  ;;  %v4616_v44 = vpop.f32.mrf.mxu3 }
 0x60d   :  { %v6052_v1 = vsel %vm5476_vm7, %v5188_v54, %v5764_v23  ;;  %v4969_v14 = vadd.f32 %v4616_v44, %v2671_v32  ;;  %v11134_v32 = vld [vmem:[#allocation67_spill] sm:$0xff] }
 0x60e   :  { %v6340_v20 = vpack.c.bf16 %v6052_v1, %v6052_v1  ;;  %v4436_v26 = vpop.f32.mrf.mxu2  ;;  %6701 = vst.msk [vmem:[#allocation2 + $0x3d0] sm:$0xf] %vm6456_vm1, %v6412_v27  ;;  %v1698_v4 = vpop.f32.mrf.mxu0  ;;  %v2679_v31 = vadd.f32 %v11134_v32, %v11133_v51 }
 0x60f   :  { %v4897_v63 = vadd.f32 %v4436_v26, %v2491_v48  ;;  %v5261_v49 = vadd.f32 %v10436_v13, %v4969_v14  ;;  %v2493_v42 = vpop.f32.mrf.mxu1 }
 0x610   :  { %6629 = vst.msk [vmem:[#allocation2 + $0x2b0] sm:$0xf] %vm6456_vm1, %v6340_v20  ;;  %v2494_v53 = vadd.f32 %v2493_v42, %v1698_v4 }
 0x611   :  { %v5189_v0 = vadd.f32 %v10436_v13, %v4897_v63  ;;  %vm5549_vm8 = vcmp.ge.f32.partialorder %v5261_v49, 0.0  ;;  %v5837_v50 = vmul.f32 0.0, %v5261_v49  ;;  %1737 = vmatmul.bf16.gmra.mxu0 %v10578_v40  ;;  %4658 = vmatmul.bf16.gmra.mxu3 %v8349_v6 }
 0x612   :  { %2532 = vmatmul.bf16.gmra.mxu1 %v10503_v7 }
 0x613   :  { %vm5477_vm9 = vcmp.ge.f32.partialorder %v5189_v0, 0.0  ;;  %v5765_v47 = vmul.f32 0.0, %v5189_v0  ;;  %4478 = vmatmul.bf16.gmra.mxu2 %v8313_v11  ;;  %v6125_v30 = vsel %vm5549_vm8, %v5261_v49, %v5837_v50  ;;  %v11136_v50 = vld [vmem:[#allocation68_spill] sm:$0xff] }
 0x614   :  { %v6413_v2 = vpack.c.bf16 %v6125_v30, %v6125_v30  ;;  %v4619_v9 = vpop.f32.mrf.mxu3 }
 0x615   :  { %v6053_v10 = vsel %vm5477_vm9, %v5189_v0, %v5765_v47  ;;  %v4970_v46 = vadd.f32 %v4619_v9, %v2674_v34  ;;  %v11135_v0 = vld [vmem:[#allocation17_spill] sm:$0xff] }
 0x616   :  { %v6341_v61 = vpack.c.bf16 %v6053_v10, %v6053_v10  ;;  %v4439_v55 = vpop.f32.mrf.mxu2  ;;  %6702 = vst.msk [vmem:[#allocation2 + $0x3d4] sm:$0xf] %vm6456_vm1, %v6413_v2  ;;  %v1700_v16 = vpop.f32.mrf.mxu0  ;;  %v2681_v47 = vadd.f32 %v11136_v50, %v11135_v0  ;;  %v11141_v50 = vld [vmem:[#allocation20_spill] sm:$0xff] }
 0x617   :  { %v4898_v3 = vadd.f32 %v4439_v55, %v2494_v53  ;;  %v5262_v24 = vadd.f32 %v10436_v13, %v4970_v46  ;;  %v2495_v7 = vpop.f32.mrf.mxu1  ;;  %v8351_v55 = vld [vmem:[%s11006_s0 + $0x458] sm:$0xff] }
 0x618   :  { %6630 = vst.msk [vmem:[#allocation2 + $0x2b4] sm:$0xf] %vm6456_vm1, %v6341_v61  ;;  %v2496_v25 = vadd.f32 %v2495_v7, %v1700_v16  ;;  %v10628_v61 = vld [vmem:[%s11006_s0 + $0x320] sm:$0xff]  ;;  %v8315_v16 = vld [vmem:[%s11006_s0 + $0x338] sm:$0xff] }
 0x619   :  { %v5190_v28 = vadd.f32 %v10436_v13, %v4898_v3  ;;  %vm5550_vm10 = vcmp.ge.f32.partialorder %v5262_v24, 0.0  ;;  %v5838_v21 = vmul.f32 0.0, %v5262_v24 }
 0x61b   :  { %vm5478_vm11 = vcmp.ge.f32.partialorder %v5190_v28, 0.0  ;;  %v5766_v38 = vmul.f32 0.0, %v5190_v28  ;;  %v6126_v56 = vsel %vm5550_vm10, %v5262_v24, %v5838_v21 }
 0x61c   :  { %v6414_v37 = vpack.c.bf16 %v6126_v56, %v6126_v56  ;;  %v4621_v19 = vpop.f32.mrf.mxu3 }
 0x61d   :  { %v6054_v62 = vsel %vm5478_vm11, %v5190_v28, %v5766_v38  ;;  %v4971_v36 = vadd.f32 %v4621_v19, %v2676_v33  ;;  %v11138_v33 = vld [vmem:[#allocation69_spill] sm:$0xff] }
 0x61e   :  { %v6342_v45 = vpack.c.bf16 %v6054_v62, %v6054_v62  ;;  %v4441_v5 = vpop.f32.mrf.mxu2  ;;  %6703 = vst.msk [vmem:[#allocation2 + $0x3d8] sm:$0xf] %vm6456_vm1, %v6414_v37  ;;  %v1703_v43 = vpop.f32.mrf.mxu0  ;;  %v2684_v56 = vadd.f32 %v11138_v33, %v11137_v35 }
 0x61f   :  { %v4899_v17 = vadd.f32 %v4441_v5, %v2496_v25  ;;  %v5263_v59 = vadd.f32 %v10436_v13, %v4971_v36  ;;  %v2498_v58 = vpop.f32.mrf.mxu1 }
 0x620   :  { %6631 = vst.msk [vmem:[#allocation2 + $0x2b8] sm:$0xf] %vm6456_vm1, %v6342_v45  ;;  %v2499_v15 = vadd.f32 %v2498_v58, %v1703_v43 }
 0x621   :  { %v5191_v54 = vadd.f32 %v10436_v13, %v4899_v17  ;;  %vm5551_vm12 = vcmp.ge.f32.partialorder %v5263_v59, 0.0  ;;  %v5839_v29 = vmul.f32 0.0, %v5263_v59  ;;  %1742 = vmatmul.bf16.gmra.mxu0 %v10603_v52  ;;  %4663 = vmatmul.bf16.gmra.mxu3 %v8350_v39 }
 0x622   :  { %2537 = vmatmul.bf16.gmra.mxu1 %v10528_v8 }
 0x623   :  { %vm5479_vm13 = vcmp.ge.f32.partialorder %v5191_v54, 0.0  ;;  %v5767_v23 = vmul.f32 0.0, %v5191_v54  ;;  %4483 = vmatmul.bf16.gmra.mxu2 %v8314_v57  ;;  %v6127_v1 = vsel %vm5551_vm12, %v5263_v59, %v5839_v29  ;;  %v11140_v29 = vld [vmem:[#allocation70_spill] sm:$0xff] }
 0x624   :  { %v6415_v48 = vpack.c.bf16 %v6127_v1, %v6127_v1  ;;  %v4624_v44 = vpop.f32.mrf.mxu3 }
 0x625   :  { %v6055_v27 = vsel %vm5479_vm13, %v5191_v54, %v5767_v23  ;;  %v4972_v14 = vadd.f32 %v4624_v44, %v2679_v31  ;;  %v11139_v54 = vld [vmem:[#allocation19_spill] sm:$0xff] }
 0x626   :  { %v6343_v20 = vpack.c.bf16 %v6055_v27, %v6055_v27  ;;  %v4444_v26 = vpop.f32.mrf.mxu2  ;;  %6704 = vst.msk [vmem:[#allocation2 + $0x3dc] sm:$0xf] %vm6456_vm1, %v6415_v48  ;;  %v1705_v63 = vpop.f32.mrf.mxu0  ;;  %v2686_v23 = vadd.f32 %v11140_v29, %v11139_v54  ;;  %v11145_v29 = vld [vmem:[#allocation22_spill] sm:$0xff] }
 0x627   :  { %v4900_v6 = vadd.f32 %v4444_v26, %v2499_v15  ;;  %v5264_v4 = vadd.f32 %v10436_v13, %v4972_v14  ;;  %v2500_v8 = vpop.f32.mrf.mxu1  ;;  %v8352_v26 = vld [vmem:[%s11006_s0 + $0x460] sm:$0xff] }
 0x628   :  { %6632 = vst.msk [vmem:[#allocation2 + $0x2bc] sm:$0xf] %vm6456_vm1, %v6343_v20  ;;  %v2501_v34 = vadd.f32 %v2500_v8, %v1705_v63  ;;  %v10653_v20 = vld [vmem:[%s11006_s0 + $0x328] sm:$0xff]  ;;  %v8316_v63 = vld [vmem:[%s11006_s0 + $0x340] sm:$0xff] }
 0x629   :  { %v5192_v11 = vadd.f32 %v10436_v13, %v4900_v6  ;;  %vm5552_vm14 = vcmp.ge.f32.partialorder %v5264_v4, 0.0  ;;  %v5840_v49 = vmul.f32 0.0, %v5264_v4 }
 0x62b   :  { %vm5480_vm15 = vcmp.ge.f32.partialorder %v5192_v11, 0.0  ;;  %v5768_v42 = vmul.f32 0.0, %v5192_v11  ;;  %v6128_v53 = vsel %vm5552_vm14, %v5264_v4, %v5840_v49 }
 0x62c   :  { %v6416_v60 = vpack.c.bf16 %v6128_v53, %v6128_v53  ;;  %v4626_v30 = vpop.f32.mrf.mxu3 }
 0x62d   :  { %v6056_v18 = vsel %vm5480_vm15, %v5192_v11, %v5768_v42  ;;  %v4973_v9 = vadd.f32 %v4626_v30, %v2681_v47  ;;  %v11142_v47 = vld [vmem:[#allocation71_spill] sm:$0xff] }
 0x62e   :  { %v6344_v10 = vpack.c.bf16 %v6056_v18, %v6056_v18  ;;  %v4446_v2 = vpop.f32.mrf.mxu2  ;;  %6705 = vst.msk [vmem:[#allocation2 + $0x3e0] sm:$0xf] %vm6456_vm1, %v6416_v60  ;;  %v1708_v3 = vpop.f32.mrf.mxu0  ;;  %v2689_v53 = vadd.f32 %v11142_v47, %v11141_v50 }
 0x62f   :  { %v4901_v46 = vadd.f32 %v4446_v2, %v2501_v34  ;;  %v5265_v24 = vadd.f32 %v10436_v13, %v4973_v9  ;;  %v2503_v7 = vpop.f32.mrf.mxu1 }
 0x630   :  { %6633 = vst.msk [vmem:[#allocation2 + $0x2c0] sm:$0xf] %vm6456_vm1, %v6344_v10  ;;  %v2504_v12 = vadd.f32 %v2503_v7, %v1708_v3 }
 0x631   :  { %v5193_v28 = vadd.f32 %v10436_v13, %v4901_v46  ;;  %vm5553_vm0 = vcmp.ge.f32.partialorder %v5265_v24, 0.0  ;;  %v5841_v21 = vmul.f32 0.0, %v5265_v24  ;;  %1747 = vmatmul.bf16.gmra.mxu0 %v10628_v61  ;;  %4668 = vmatmul.bf16.gmra.mxu3 %v8351_v55 }
 0x632   :  { %2542 = vmatmul.bf16.gmra.mxu1 %v10553_v41 }
 0x633   :  { %vm5481_vm2 = vcmp.ge.f32.partialorder %v5193_v28, 0.0  ;;  %v5769_v38 = vmul.f32 0.0, %v5193_v28  ;;  %4488 = vmatmul.bf16.gmra.mxu2 %v8315_v16  ;;  %v6129_v62 = vsel %vm5553_vm0, %v5265_v24, %v5841_v21  ;;  %v11144_v21 = vld [vmem:[#allocation72_spill] sm:$0xff] }
 0x634   :  { %v6417_v25 = vpack.c.bf16 %v6129_v62, %v6129_v62  ;;  %v4629_v19 = vpop.f32.mrf.mxu3 }
 0x635   :  { %v6057_v37 = vsel %vm5481_vm2, %v5193_v28, %v5769_v38  ;;  %v4974_v36 = vadd.f32 %v4629_v19, %v2684_v56  ;;  %v11143_v28 = vld [vmem:[#allocation21_spill] sm:$0xff] }
 0x636   :  { %v6345_v45 = vpack.c.bf16 %v6057_v37, %v6057_v37  ;;  %v4449_v5 = vpop.f32.mrf.mxu2  ;;  %6706 = vst.msk [vmem:[#allocation2 + $0x3e4] sm:$0xf] %vm6456_vm1, %v6417_v25  ;;  %v1710_v17 = vpop.f32.mrf.mxu0  ;;  %v2691_v38 = vadd.f32 %v11144_v21, %v11143_v28  ;;  %v11149_v21 = vld [vmem:[#allocation24_spill] sm:$0xff] }
 0x637   :  { %v4902_v39 = vadd.f32 %v4449_v5, %v2504_v12  ;;  %v5266_v43 = vadd.f32 %v10436_v13, %v4974_v36  ;;  %v2505_v41 = vpop.f32.mrf.mxu1  ;;  %v8353_v5 = vld [vmem:[%s11006_s0 + $0x468] sm:$0xff] }
 0x638   :  { %6634 = vst.msk [vmem:[#allocation2 + $0x2c4] sm:$0xf] %vm6456_vm1, %v6345_v45  ;;  %v2506_v31 = vadd.f32 %v2505_v41, %v1710_v17  ;;  %v10678_v45 = vld [vmem:[%s11006_s0 + $0x330] sm:$0xff]  ;;  %v8317_v17 = vld [vmem:[%s11006_s0 + $0x348] sm:$0xff] }
 0x639   :  { %v5194_v57 = vadd.f32 %v10436_v13, %v4902_v39  ;;  %vm5554_vm3 = vcmp.ge.f32.partialorder %v5266_v43, 0.0  ;;  %v5842_v59 = vmul.f32 0.0, %v5266_v43 }
 0x63b   :  { %vm5482_vm4 = vcmp.ge.f32.partialorder %v5194_v57, 0.0  ;;  %v5770_v58 = vmul.f32 0.0, %v5194_v57  ;;  %v6130_v15 = vsel %vm5554_vm3, %v5266_v43, %v5842_v59 }
 0x63c   :  { %v6418_v32 = vpack.c.bf16 %v6130_v15, %v6130_v15  ;;  %v4631_v1 = vpop.f32.mrf.mxu3 }
 0x63d   :  { %v6058_v51 = vsel %vm5482_vm4, %v5194_v57, %v5770_v58  ;;  %v4975_v44 = vadd.f32 %v4631_v1, %v2686_v23  ;;  %v11146_v23 = vld [vmem:[#allocation73_spill] sm:$0xff] }
 0x63e   :  { %v6346_v27 = vpack.c.bf16 %v6058_v51, %v6058_v51  ;;  %v4451_v48 = vpop.f32.mrf.mxu2  ;;  %6707 = vst.msk [vmem:[#allocation2 + $0x3e8] sm:$0xf] %vm6456_vm1, %v6418_v32  ;;  %v1713_v6 = vpop.f32.mrf.mxu0  ;;  %v2694_v15 = vadd.f32 %v11146_v23, %v11145_v29 }
 0x63f   :  { %v4903_v14 = vadd.f32 %v4451_v48, %v2506_v31  ;;  %v5267_v4 = vadd.f32 %v10436_v13, %v4975_v44  ;;  %v2508_v8 = vpop.f32.mrf.mxu1 }
 0x640   :  { %6635 = vst.msk [vmem:[#allocation2 + $0x2c8] sm:$0xf] %vm6456_vm1, %v6346_v27  ;;  %v2509_v0 = vadd.f32 %v2508_v8, %v1713_v6 }
 0x641   :  { %v5195_v11 = vadd.f32 %v10436_v13, %v4903_v14  ;;  %vm5555_vm5 = vcmp.ge.f32.partialorder %v5267_v4, 0.0  ;;  %v5843_v49 = vmul.f32 0.0, %v5267_v4  ;;  %1752 = vmatmul.bf16.gmra.mxu0 %v10653_v20  ;;  %4673 = vmatmul.bf16.gmra.mxu3 %v8352_v26 }
 0x642   :  { %2547 = vmatmul.bf16.gmra.mxu1 %v10578_v40 }
 0x643   :  { %vm5483_vm6 = vcmp.ge.f32.partialorder %v5195_v11, 0.0  ;;  %v5771_v42 = vmul.f32 0.0, %v5195_v11  ;;  %4493 = vmatmul.bf16.gmra.mxu2 %v8316_v63  ;;  %v6131_v18 = vsel %vm5555_vm5, %v5267_v4, %v5843_v49  ;;  %v11148_v49 = vld [vmem:[#allocation74_spill] sm:$0xff] }
 0x644   :  { %v6419_v34 = vpack.c.bf16 %v6131_v18, %v6131_v18  ;;  %v4634_v30 = vpop.f32.mrf.mxu3 }
 0x645   :  { %v6059_v60 = vsel %vm5483_vm6, %v5195_v11, %v5771_v42  ;;  %v4976_v9 = vadd.f32 %v4634_v30, %v2689_v53  ;;  %v11147_v11 = vld [vmem:[#allocation23_spill] sm:$0xff] }
 0x646   :  { %v6347_v10 = vpack.c.bf16 %v6059_v60, %v6059_v60  ;;  %v4454_v2 = vpop.f32.mrf.mxu2  ;;  %6708 = vst.msk [vmem:[#allocation2 + $0x3ec] sm:$0xf] %vm6456_vm1, %v6419_v34  ;;  %v1715_v46 = vpop.f32.mrf.mxu0  ;;  %v2696_v42 = vadd.f32 %v11148_v49, %v11147_v11  ;;  %v11153_v49 = vld [vmem:[#allocation26_spill] sm:$0xff] }
 0x647   :  { %v4904_v55 = vadd.f32 %v4454_v2, %v2509_v0  ;;  %v5268_v3 = vadd.f32 %v10436_v13, %v4976_v9  ;;  %v2510_v40 = vpop.f32.mrf.mxu1 }
 0x648   :  { %6636 = vst.msk [vmem:[#allocation2 + $0x2cc] sm:$0xf] %vm6456_vm1, %v6347_v10  ;;  %v2511_v56 = vadd.f32 %v2510_v40, %v1715_v46  ;;  %v10703_v10 = vld [vmem:[%s11006_s0 + $0x338] sm:$0xff]  ;;  %v10716_v46 = vld [vmem:[%s11008_s2] ss:$0 sm:$0xff] }
 0x649   :  { %v5196_v16 = vadd.f32 %v10436_v13, %v4904_v55  ;;  %vm5556_vm7 = vcmp.ge.f32.partialorder %v5268_v3, 0.0  ;;  %v5844_v24 = vmul.f32 0.0, %v5268_v3  ;;  %v8318_v55 = vld [vmem:[%s11006_s0 + $0x350] sm:$0xff] }
 0x64b   :  { %vm5484_vm8 = vcmp.ge.f32.partialorder %v5196_v16, 0.0  ;;  %v5772_v7 = vmul.f32 0.0, %v5196_v16  ;;  %v6132_v12 = vsel %vm5556_vm7, %v5268_v3, %v5844_v24 }
 0x64c   :  { %v6420_v33 = vpack.c.bf16 %v6132_v12, %v6132_v12  ;;  %v4636_v62 = vpop.f32.mrf.mxu3 }
 0x64d   :  { %v6060_v35 = vsel %vm5484_vm8, %v5196_v16, %v5772_v7  ;;  %v4977_v19 = vadd.f32 %v4636_v62, %v2691_v38  ;;  %v11150_v38 = vld [vmem:[#allocation75_spill] sm:$0xff] }
 0x64e   :  { %v6348_v37 = vpack.c.bf16 %v6060_v35, %v6060_v35  ;;  %v4456_v25 = vpop.f32.mrf.mxu2  ;;  %6709 = vst.msk [vmem:[#allocation2 + $0x3f0] sm:$0xf] %vm6456_vm1, %v6420_v33  ;;  %v1718_v39 = vpop.f32.mrf.mxu0  ;;  %v2699_v12 = vadd.f32 %v11150_v38, %v11149_v21 }
 0x64f   :  { %v4905_v36 = vadd.f32 %v4456_v25, %v2511_v56  ;;  %v5269_v43 = vadd.f32 %v10436_v13, %v4977_v19  ;;  %v2513_v41 = vpop.f32.mrf.mxu1 }
 0x650   :  { %6637 = vst.msk [vmem:[#allocation2 + $0x2d0] sm:$0xf] %vm6456_vm1, %v6348_v37  ;;  %v2514_v54 = vadd.f32 %v2513_v41, %v1718_v39 }
 0x651   :  { %v5197_v57 = vadd.f32 %v10436_v13, %v4905_v36  ;;  %vm5557_vm9 = vcmp.ge.f32.partialorder %v5269_v43, 0.0  ;;  %v5845_v59 = vmul.f32 0.0, %v5269_v43  ;;  %1757 = vmatmul.bf16.gmra.mxu0 %v10678_v45  ;;  %4678 = vmatmul.bf16.gmra.mxu3 %v8353_v5 }
 0x652   :  { %2552 = vmatmul.bf16.gmra.mxu1 %v10603_v52 }
 0x653   :  { %vm5485_vm10 = vcmp.ge.f32.partialorder %v5197_v57, 0.0  ;;  %v5773_v58 = vmul.f32 0.0, %v5197_v57  ;;  %4498 = vmatmul.bf16.gmra.mxu2 %v8317_v17  ;;  %v6133_v51 = vsel %vm5557_vm9, %v5269_v43, %v5845_v59  ;;  %v11152_v59 = vld [vmem:[#allocation76_spill] sm:$0xff] }
 0x654   :  { %v6421_v31 = vpack.c.bf16 %v6133_v51, %v6133_v51  ;;  %v4639_v1 = vpop.f32.mrf.mxu3 }
 0x655   :  { %v6061_v32 = vsel %vm5485_vm10, %v5197_v57, %v5773_v58  ;;  %v4978_v44 = vadd.f32 %v4639_v1, %v2694_v15  ;;  %v11151_v57 = vld [vmem:[#allocation25_spill] sm:$0xff] }
 0x656   :  { %v6349_v27 = vpack.c.bf16 %v6061_v32, %v6061_v32  ;;  %v4459_v48 = vpop.f32.mrf.mxu2  ;;  %6710 = vst.msk [vmem:[#allocation2 + $0x3f4] sm:$0xf] %vm6456_vm1, %v6421_v31  ;;  %v1720_v14 = vpop.f32.mrf.mxu0  ;;  %v2701_v58 = vadd.f32 %v11152_v59, %v11151_v57  ;;  %v11157_v59 = vld [vmem:[#allocation28_spill] sm:$0xff] }
 0x657   :  { %v4906_v26 = vadd.f32 %v4459_v48, %v2514_v54  ;;  %v5270_v6 = vadd.f32 %v10436_v13, %v4978_v44  ;;  %v2515_v52 = vpop.f32.mrf.mxu1  ;;  %v8355_v48 = vld [vmem:[%s11006_s0 + $0x478] sm:$0xff] }
 0x658   :  { %6638 = vst.msk [vmem:[#allocation2 + $0x2d4] sm:$0xf] %vm6456_vm1, %v6349_v27  ;;  %v2516_v53 = vadd.f32 %v2515_v52, %v1720_v14  ;;  %v10733_v27 = vld [vmem:[%s11006_s0 + $0x340] sm:$0xff]  ;;  %v8319_v14 = vld [vmem:[%s11006_s0 + $0x358] sm:$0xff] }
 0x659   :  { %v5198_v63 = vadd.f32 %v10436_v13, %v4906_v26  ;;  %vm5558_vm11 = vcmp.ge.f32.partialorder %v5270_v6, 0.0  ;;  %v5846_v4 = vmul.f32 0.0, %v5270_v6  ;;  %v8354_v13 = vld [vmem:[%s11006_s0 + $0x470] sm:$0xff] }
 0x65b   :  { %vm5486_vm12 = vcmp.ge.f32.partialorder %v5198_v63, 0.0  ;;  %v5774_v8 = vmul.f32 0.0, %v5198_v63  ;;  %v6134_v0 = vsel %vm5558_vm11, %v5270_v6, %v5846_v4 }
 0x65c   :  { %v6422_v47 = vpack.c.bf16 %v6134_v0, %v6134_v0  ;;  %v4641_v18 = vpop.f32.mrf.mxu3 }
 0x65d   :  { %v6062_v50 = vsel %vm5486_vm12, %v5198_v63, %v5774_v8  ;;  %v4979_v30 = vadd.f32 %v4641_v18, %v2696_v42  ;;  %v11154_v42 = vld [vmem:[#allocation77_spill] sm:$0xff] }
 0x65e   :  { %v6350_v60 = vpack.c.bf16 %v6062_v50, %v6062_v50  ;;  %v4461_v34 = vpop.f32.mrf.mxu2  ;;  %6711 = vst.msk [vmem:[#allocation2 + $0x3f8] sm:$0xf] %vm6456_vm1, %v6422_v47  ;;  %v1723_v9 = vpop.f32.mrf.mxu0  ;;  %v2704_v0 = vadd.f32 %v11154_v42, %v11153_v49 }
 0x65f   :  { %v4907_v2 = vadd.f32 %v4461_v34, %v2516_v53  ;;  %v5271_v3 = vadd.f32 %v10716_v46, %v4979_v30  ;;  %v2518_v40 = vpop.f32.mrf.mxu1 }
 0x660   :  { %6639 = vst.msk [vmem:[#allocation2 + $0x2d8] sm:$0xf] %vm6456_vm1, %v6350_v60  ;;  %v2519_v28 = vadd.f32 %v2518_v40, %v1723_v9 }
 0x661   :  { %v5199_v16 = vadd.f32 %v10716_v46, %v4907_v2  ;;  %vm5559_vm13 = vcmp.ge.f32.partialorder %v5271_v3, 0.0  ;;  %v5847_v24 = vmul.f32 0.0, %v5271_v3  ;;  %1762 = vmatmul.bf16.gmra.mxu0 %v10703_v10  ;;  %4683 = vmatmul.bf16.gmra.mxu3 %v8354_v13 }
 0x662   :  { %2557 = vmatmul.bf16.gmra.mxu1 %v10628_v61 }
 0x663   :  { %vm5487_vm14 = vcmp.ge.f32.partialorder %v5199_v16, 0.0  ;;  %v5775_v7 = vmul.f32 0.0, %v5199_v16  ;;  %4503 = vmatmul.bf16.gmra.mxu2 %v8318_v55  ;;  %v6135_v35 = vsel %vm5559_vm13, %v5271_v3, %v5847_v24  ;;  %v11156_v24 = vld [vmem:[#allocation78_spill] sm:$0xff] }
 0x664   :  { %v6423_v56 = vpack.c.bf16 %v6135_v35, %v6135_v35  ;;  %v4644_v62 = vpop.f32.mrf.mxu3 }
 0x665   :  { %v6063_v33 = vsel %vm5487_vm14, %v5199_v16, %v5775_v7  ;;  %v4980_v19 = vadd.f32 %v4644_v62, %v2699_v12  ;;  %v11155_v16 = vld [vmem:[#allocation27_spill] sm:$0xff] }
 0x666   :  { %v6351_v37 = vpack.c.bf16 %v6063_v33, %v6063_v33  ;;  %v4464_v25 = vpop.f32.mrf.mxu2  ;;  %6712 = vst.msk [vmem:[#allocation2 + $0x3fc] sm:$0xf] %vm6456_vm1, %v6423_v56  ;;  %v1725_v36 = vpop.f32.mrf.mxu0  ;;  %v2706_v7 = vadd.f32 %v11156_v24, %v11155_v16  ;;  %v11161_v24 = vld [vmem:[#allocation30_spill] sm:$0xff] }
 0x667   :  { %v4908_v5 = vadd.f32 %v4464_v25, %v2519_v28  ;;  %v5272_v39 = vadd.f32 %v10716_v46, %v4980_v19  ;;  %v2520_v61 = vpop.f32.mrf.mxu1  ;;  %v8356_v25 = vld [vmem:[%s11006_s0 + $0x480] sm:$0xff] }
 0x668   :  { %6640 = vst.msk [vmem:[#allocation2 + $0x2dc] sm:$0xf] %vm6456_vm1, %v6351_v37  ;;  %v2521_v15 = vadd.f32 %v2520_v61, %v1725_v36  ;;  %v10758_v37 = vld [vmem:[%s11006_s0 + $0x348] sm:$0xff]  ;;  %v8320_v36 = vld [vmem:[%s11006_s0 + $0x360] sm:$0xff] }
 0x669   :  { %v5200_v17 = vadd.f32 %v10716_v46, %v4908_v5  ;;  %vm5560_vm15 = vcmp.ge.f32.partialorder %v5272_v39, 0.0  ;;  %v5848_v43 = vmul.f32 0.0, %v5272_v39 }
 0x66b   :  { %vm5488_vm0 = vcmp.ge.f32.partialorder %v5200_v17, 0.0  ;;  %v5776_v41 = vmul.f32 0.0, %v5200_v17  ;;  %v6136_v54 = vsel %vm5560_vm15, %v5272_v39, %v5848_v43 }
 0x66c   :  { %v6424_v23 = vpack.c.bf16 %v6136_v54, %v6136_v54  ;;  %v4646_v51 = vpop.f32.mrf.mxu3 }
 0x66d   :  { %v6064_v29 = vsel %vm5488_vm0, %v5200_v17, %v5776_v41  ;;  %v4981_v1 = vadd.f32 %v4646_v51, %v2701_v58  ;;  %v11158_v58 = vld [vmem:[#allocation79_spill] sm:$0xff] }
 0x66e   :  { %v6352_v32 = vpack.c.bf16 %v6064_v29, %v6064_v29  ;;  %v4466_v31 = vpop.f32.mrf.mxu2  ;;  %6713 = vst.msk [vmem:[#allocation2 + $0x400] sm:$0xf] %vm6456_vm1, %v6424_v23  ;;  %v1728_v26 = vpop.f32.mrf.mxu0  ;;  %v2709_v54 = vadd.f32 %v11158_v58, %v11157_v59 }
 0x66f   :  { %v4909_v44 = vadd.f32 %v4466_v31, %v2521_v15  ;;  %v5273_v6 = vadd.f32 %v10716_v46, %v4981_v1  ;;  %v2523_v52 = vpop.f32.mrf.mxu1 }
 0x670   :  { %6641 = vst.msk [vmem:[#allocation2 + $0x2e0] sm:$0xf] %vm6456_vm1, %v6352_v32  ;;  %v2524_v11 = vadd.f32 %v2523_v52, %v1728_v26 }
 0x671   :  { %v5201_v63 = vadd.f32 %v10716_v46, %v4909_v44  ;;  %vm5561_vm2 = vcmp.ge.f32.partialorder %v5273_v6, 0.0  ;;  %v5849_v4 = vmul.f32 0.0, %v5273_v6  ;;  %1767 = vmatmul.bf16.gmra.mxu0 %v10733_v27  ;;  %4688 = vmatmul.bf16.gmra.mxu3 %v8355_v48 }
 0x672   :  { %2562 = vmatmul.bf16.gmra.mxu1 %v10653_v20 }
 0x673   :  { %vm5489_vm3 = vcmp.ge.f32.partialorder %v5201_v63, 0.0  ;;  %v5777_v8 = vmul.f32 0.0, %v5201_v63  ;;  %4508 = vmatmul.bf16.gmra.mxu2 %v8319_v14  ;;  %v6137_v50 = vsel %vm5561_vm2, %v5273_v6, %v5849_v4  ;;  %v11160_v4 = vld [vmem:[#allocation80_spill] sm:$0xff] }
 0x674   :  { %v6425_v53 = vpack.c.bf16 %v6137_v50, %v6137_v50  ;;  %v4649_v18 = vpop.f32.mrf.mxu3 }
 0x675   :  { %v6065_v47 = vsel %vm5489_vm3, %v5201_v63, %v5777_v8  ;;  %v4982_v30 = vadd.f32 %v4649_v18, %v2704_v0  ;;  %v11159_v63 = vld [vmem:[#allocation29_spill] sm:$0xff] }
 0x676   :  { %v6353_v60 = vpack.c.bf16 %v6065_v47, %v6065_v47  ;;  %v4469_v34 = vpop.f32.mrf.mxu2  ;;  %6714 = vst.msk [vmem:[#allocation2 + $0x404] sm:$0xf] %vm6456_vm1, %v6425_v53  ;;  %v1730_v2 = vpop.f32.mrf.mxu0  ;;  %v2711_v8 = vadd.f32 %v11160_v4, %v11159_v63  ;;  %v11165_v4 = vld [vmem:[#allocation32_spill] sm:$0xff] }
 0x677   :  { %v4910_v13 = vadd.f32 %v4469_v34, %v2524_v11  ;;  %v5274_v9 = vadd.f32 %v10716_v46, %v4982_v30  ;;  %v2525_v20 = vpop.f32.mrf.mxu1  ;;  %v8357_v34 = vld [vmem:[%s11006_s0 + $0x488] sm:$0xff] }
 0x678   :  { %6642 = vst.msk [vmem:[#allocation2 + $0x2e4] sm:$0xf] %vm6456_vm1, %v6353_v60  ;;  %v2526_v12 = vadd.f32 %v2525_v20, %v1730_v2  ;;  %v10783_v60 = vld [vmem:[%s11006_s0 + $0x350] sm:$0xff]  ;;  %v8321_v2 = vld [vmem:[%s11006_s0 + $0x368] sm:$0xff] }
 0x679   :  { %v5202_v55 = vadd.f32 %v10716_v46, %v4910_v13  ;;  %vm5562_vm4 = vcmp.ge.f32.partialorder %v5274_v9, 0.0  ;;  %v5850_v3 = vmul.f32 0.0, %v5274_v9 }
 0x67b   :  { %vm5490_vm5 = vcmp.ge.f32.partialorder %v5202_v55, 0.0  ;;  %v5778_v40 = vmul.f32 0.0, %v5202_v55  ;;  %v6138_v28 = vsel %vm5562_vm4, %v5274_v9, %v5850_v3 }
 0x67c   :  { %v6426_v38 = vpack.c.bf16 %v6138_v28, %v6138_v28  ;;  %v4651_v35 = vpop.f32.mrf.mxu3 }
 0x67d   :  { %v6066_v21 = vsel %vm5490_vm5, %v5202_v55, %v5778_v40  ;;  %v4983_v62 = vadd.f32 %v4651_v35, %v2706_v7  ;;  %v11162_v7 = vld [vmem:[#allocation81_spill] sm:$0xff] }
 0x67e   :  { %v6354_v33 = vpack.c.bf16 %v6066_v21, %v6066_v21  ;;  %v4471_v56 = vpop.f32.mrf.mxu2  ;;  %6715 = vst.msk [vmem:[#allocation2 + $0x408] sm:$0xf] %vm6456_vm1, %v6426_v38  ;;  %v1733_v5 = vpop.f32.mrf.mxu0  ;;  %v2714_v28 = vadd.f32 %v11162_v7, %v11161_v24 }
 0x67f   :  { %v4911_v19 = vadd.f32 %v4471_v56, %v2526_v12  ;;  %v5275_v39 = vadd.f32 %v10716_v46, %v4983_v62  ;;  %v2528_v61 = vpop.f32.mrf.mxu1 }
 0x680   :  { %6643 = vst.msk [vmem:[#allocation2 + $0x2e8] sm:$0xf] %vm6456_vm1, %v6354_v33  ;;  %v2529_v57 = vadd.f32 %v2528_v61, %v1733_v5 }
 0x681   :  { %v5203_v17 = vadd.f32 %v10716_v46, %v4911_v19  ;;  %vm5563_vm6 = vcmp.ge.f32.partialorder %v5275_v39, 0.0  ;;  %v5851_v43 = vmul.f32 0.0, %v5275_v39  ;;  %1772 = vmatmul.bf16.gmra.mxu0 %v10758_v37  ;;  %4693 = vmatmul.bf16.gmra.mxu3 %v8356_v25 }
 0x682   :  { %2567 = vmatmul.bf16.gmra.mxu1 %v10678_v45 }
 0x683   :  { %vm5491_vm7 = vcmp.ge.f32.partialorder %v5203_v17, 0.0  ;;  %v5779_v41 = vmul.f32 0.0, %v5203_v17  ;;  %4513 = vmatmul.bf16.gmra.mxu2 %v8320_v36  ;;  %v6139_v29 = vsel %vm5563_vm6, %v5275_v39, %v5851_v43  ;;  %v11164_v43 = vld [vmem:[#allocation82_spill] sm:$0xff] }
 0x684   :  { %v6427_v15 = vpack.c.bf16 %v6139_v29, %v6139_v29  ;;  %v4654_v51 = vpop.f32.mrf.mxu3 }
 0x685   :  { %v6067_v23 = vsel %vm5491_vm7, %v5203_v17, %v5779_v41  ;;  %v4984_v1 = vadd.f32 %v4654_v51, %v2709_v54  ;;  %v11163_v17 = vld [vmem:[#allocation31_spill] sm:$0xff] }
 0x686   :  { %v6355_v32 = vpack.c.bf16 %v6067_v23, %v6067_v23  ;;  %v4474_v31 = vpop.f32.mrf.mxu2  ;;  %6716 = vst.msk [vmem:[#allocation2 + $0x40c] sm:$0xf] %vm6456_vm1, %v6427_v15  ;;  %v1735_v44 = vpop.f32.mrf.mxu0  ;;  %v2716_v41 = vadd.f32 %v11164_v43, %v11163_v17  ;;  %v11169_v43 = vld [vmem:[#allocation34_spill] sm:$0xff] }
 0x687   :  { %v4912_v48 = vadd.f32 %v4474_v31, %v2529_v57  ;;  %v5276_v26 = vadd.f32 %v10716_v46, %v4984_v1  ;;  %v2530_v45 = vpop.f32.mrf.mxu1  ;;  %v8358_v31 = vld [vmem:[%s11006_s0 + $0x490] sm:$0xff] }
 0x688   :  { %6644 = vst.msk [vmem:[#allocation2 + $0x2ec] sm:$0xf] %vm6456_vm1, %v6355_v32  ;;  %v2531_v0 = vadd.f32 %v2530_v45, %v1735_v44  ;;  %v10808_v32 = vld [vmem:[%s11006_s0 + $0x358] sm:$0xff]  ;;  %v8322_v44 = vld [vmem:[%s11006_s0 + $0x370] sm:$0xff] }
 0x689   :  { %v5204_v14 = vadd.f32 %v10716_v46, %v4912_v48  ;;  %vm5564_vm8 = vcmp.ge.f32.partialorder %v5276_v26, 0.0  ;;  %v5852_v6 = vmul.f32 0.0, %v5276_v26 }
 0x68b   :  { %vm5492_vm9 = vcmp.ge.f32.partialorder %v5204_v14, 0.0  ;;  %v5780_v52 = vmul.f32 0.0, %v5204_v14  ;;  %v6140_v11 = vsel %vm5564_vm8, %v5276_v26, %v5852_v6 }
 0x68c   :  { %v6428_v42 = vpack.c.bf16 %v6140_v11, %v6140_v11  ;;  %v4656_v50 = vpop.f32.mrf.mxu3 }
 0x68d   :  { %v6068_v49 = vsel %vm5492_vm9, %v5204_v14, %v5780_v52  ;;  %v4985_v18 = vadd.f32 %v4656_v50, %v2711_v8  ;;  %v11166_v8 = vld [vmem:[#allocation83_spill] sm:$0xff] }
 0x68e   :  { %v6356_v47 = vpack.c.bf16 %v6068_v49, %v6068_v49  ;;  %v4476_v53 = vpop.f32.mrf.mxu2  ;;  %6717 = vst.msk [vmem:[#allocation2 + $0x410] sm:$0xf] %vm6456_vm1, %v6428_v42  ;;  %v1738_v13 = vpop.f32.mrf.mxu0  ;;  %v2719_v11 = vadd.f32 %v11166_v8, %v11165_v4 }
 0x68f   :  { %v4913_v30 = vadd.f32 %v4476_v53, %v2531_v0  ;;  %v5277_v9 = vadd.f32 %v10716_v46, %v4985_v18  ;;  %v2533_v20 = vpop.f32.mrf.mxu1 }
 0x690   :  { %6645 = vst.msk [vmem:[#allocation2 + $0x2f0] sm:$0xf] %vm6456_vm1, %v6356_v47  ;;  %v2534_v16 = vadd.f32 %v2533_v20, %v1738_v13 }
 0x691   :  { %v5205_v55 = vadd.f32 %v10716_v46, %v4913_v30  ;;  %vm5565_vm10 = vcmp.ge.f32.partialorder %v5277_v9, 0.0  ;;  %v5853_v3 = vmul.f32 0.0, %v5277_v9  ;;  %1777 = vmatmul.bf16.gmra.mxu0 %v10783_v60  ;;  %4698 = vmatmul.bf16.gmra.mxu3 %v8357_v34 }
 0x692   :  { %2572 = vmatmul.bf16.gmra.mxu1 %v10703_v10 }
 0x693   :  { %vm5493_vm11 = vcmp.ge.f32.partialorder %v5205_v55, 0.0  ;;  %v5781_v40 = vmul.f32 0.0, %v5205_v55  ;;  %4518 = vmatmul.bf16.gmra.mxu2 %v8321_v2  ;;  %v6141_v21 = vsel %vm5565_vm10, %v5277_v9, %v5853_v3  ;;  %v11168_v3 = vld [vmem:[#allocation84_spill] sm:$0xff] }
 0x694   :  { %v6429_v12 = vpack.c.bf16 %v6141_v21, %v6141_v21  ;;  %v4659_v35 = vpop.f32.mrf.mxu3 }
 0x695   :  { %v6069_v38 = vsel %vm5493_vm11, %v5205_v55, %v5781_v40  ;;  %v4986_v62 = vadd.f32 %v4659_v35, %v2714_v28  ;;  %v11167_v55 = vld [vmem:[#allocation33_spill] sm:$0xff] }
 0x696   :  { %v6357_v33 = vpack.c.bf16 %v6069_v38, %v6069_v38  ;;  %v4479_v56 = vpop.f32.mrf.mxu2  ;;  %6718 = vst.msk [vmem:[#allocation2 + $0x414] sm:$0xf] %vm6456_vm1, %v6429_v12  ;;  %v1740_v19 = vpop.f32.mrf.mxu0  ;;  %v2721_v40 = vadd.f32 %v11168_v3, %v11167_v55  ;;  %v11173_v3 = vld [vmem:[#allocation36_spill] sm:$0xff] }
 0x697   :  { %v4914_v25 = vadd.f32 %v4479_v56, %v2534_v16  ;;  %v5278_v5 = vadd.f32 %v10716_v46, %v4986_v62  ;;  %v2535_v10 = vpop.f32.mrf.mxu1 }
 0x698   :  { %6646 = vst.msk [vmem:[#allocation2 + $0x2f4] sm:$0xf] %vm6456_vm1, %v6357_v33  ;;  %v2536_v54 = vadd.f32 %v2535_v10, %v1740_v19  ;;  %v8359_v33 = vld [vmem:[%s11006_s0 + $0x498] sm:$0xff] }
 0x699   :  { %v5206_v36 = vadd.f32 %v10716_v46, %v4914_v25  ;;  %vm5566_vm12 = vcmp.ge.f32.partialorder %v5278_v5, 0.0  ;;  %v5854_v39 = vmul.f32 0.0, %v5278_v5  ;;  %v8323_v25 = vld [vmem:[%s11006_s0 + $0x378] sm:$0xff] }
 0x69b   :  { %vm5494_vm13 = vcmp.ge.f32.partialorder %v5206_v36, 0.0  ;;  %v5782_v61 = vmul.f32 0.0, %v5206_v36  ;;  %v6142_v57 = vsel %vm5566_vm12, %v5278_v5, %v5854_v39  ;;  %v8437_v39 = vld [vmem:[%s11006_s0 + $0x360] sm:$0xff] }
 0x69c   :  { %v6430_v58 = vpack.c.bf16 %v6142_v57, %v6142_v57  ;;  %v4661_v29 = vpop.f32.mrf.mxu3 }
 0x69d   :  { %v6070_v59 = vsel %vm5494_vm13, %v5206_v36, %v5782_v61  ;;  %v4987_v51 = vadd.f32 %v4661_v29, %v2716_v41  ;;  %v11170_v41 = vld [vmem:[#allocation85_spill] sm:$0xff] }
 0x69e   :  { %v6358_v23 = vpack.c.bf16 %v6070_v59, %v6070_v59  ;;  %v4481_v15 = vpop.f32.mrf.mxu2  ;;  %6719 = vst.msk [vmem:[#allocation2 + $0x418] sm:$0xf] %vm6456_vm1, %v6430_v58  ;;  %v1743_v48 = vpop.f32.mrf.mxu0  ;;  %v2724_v57 = vadd.f32 %v11170_v41, %v11169_v43 }
 0x69f   :  { %v4915_v1 = vadd.f32 %v4481_v15, %v2536_v54  ;;  %v5279_v26 = vadd.f32 %v10716_v46, %v4987_v51  ;;  %v2538_v45 = vpop.f32.mrf.mxu1 }
 0x6a0   :  { %6647 = vst.msk [vmem:[#allocation2 + $0x2f8] sm:$0xf] %vm6456_vm1, %v6358_v23  ;;  %v2539_v63 = vadd.f32 %v2538_v45, %v1743_v48 }
 0x6a1   :  { %v5207_v14 = vadd.f32 %v10716_v46, %v4915_v1  ;;  %vm5567_vm14 = vcmp.ge.f32.partialorder %v5279_v26, 0.0  ;;  %v5855_v6 = vmul.f32 0.0, %v5279_v26  ;;  %1782 = vmatmul.bf16.gmra.mxu0 %v10808_v32  ;;  %4703 = vmatmul.bf16.gmra.mxu3 %v8358_v31 }
 0x6a2   :  { %2577 = vmatmul.bf16.gmra.mxu1 %v10733_v27 }
 0x6a3   :  { %vm5495_vm15 = vcmp.ge.f32.partialorder %v5207_v14, 0.0  ;;  %v5783_v52 = vmul.f32 0.0, %v5207_v14  ;;  %4523 = vmatmul.bf16.gmra.mxu2 %v8322_v44  ;;  %v6143_v49 = vsel %vm5567_vm14, %v5279_v26, %v5855_v6  ;;  %v11172_v6 = vld [vmem:[#allocation86_spill] sm:$0xff] }
 0x6a4   :  { %v6431_v0 = vpack.c.bf16 %v6143_v49, %v6143_v49  ;;  %v4664_v50 = vpop.f32.mrf.mxu3 }
 0x6a5   :  { %v6071_v42 = vsel %vm5495_vm15, %v5207_v14, %v5783_v52  ;;  %v4988_v18 = vadd.f32 %v4664_v50, %v2719_v11  ;;  %v11171_v14 = vld [vmem:[#allocation35_spill] sm:$0xff] }
 0x6a6   :  { %v6359_v47 = vpack.c.bf16 %v6071_v42, %v6071_v42  ;;  %v4484_v53 = vpop.f32.mrf.mxu2  ;;  %6720 = vst.msk [vmem:[#allocation2 + $0x41c] sm:$0xf] %vm6456_vm1, %v6431_v0  ;;  %v1745_v30 = vpop.f32.mrf.mxu0  ;;  %v2726_v52 = vadd.f32 %v11172_v6, %v11171_v14  ;;  %v11177_v14 = vld [vmem:[#allocation38_spill] sm:$0xff]  ;;  %v11178_v6 = vld [vmem:[#allocation89_spill] sm:$0xff] }
 0x6a7   :  { %v4916_v34 = vadd.f32 %v4484_v53, %v2539_v63  ;;  %v5280_v13 = vadd.f32 %v10716_v46, %v4988_v18  ;;  %v2540_v27 = vpop.f32.mrf.mxu1 }
 0x6a8   :  { %6648 = vst.msk [vmem:[#allocation2 + $0x2fc] sm:$0xf] %vm6456_vm1, %v6359_v47  ;;  %v2541_v28 = vadd.f32 %v2540_v27, %v1745_v30  ;;  %v8360_v47 = vld [vmem:[%s11006_s0 + $0x4a0] sm:$0xff] }
 0x6a9   :  { %v5208_v2 = vadd.f32 %v10716_v46, %v4916_v34  ;;  %vm5568_vm0 = vcmp.ge.f32.partialorder %v5280_v13, 0.0  ;;  %v5856_v9 = vmul.f32 0.0, %v5280_v13  ;;  %v8324_v34 = vld [vmem:[%s11006_s0 + $0x380] sm:$0xff] }
 0x6ab   :  { %vm5496_vm2 = vcmp.ge.f32.partialorder %v5208_v2, 0.0  ;;  %v5784_v20 = vmul.f32 0.0, %v5208_v2  ;;  %v6144_v16 = vsel %vm5568_vm0, %v5280_v13, %v5856_v9  ;;  %v8438_v9 = vld [vmem:[%s11006_s0 + $0x368] sm:$0xff] }
 0x6ac   :  { %v6432_v7 = vpack.c.bf16 %v6144_v16, %v6144_v16  ;;  %v4666_v21 = vpop.f32.mrf.mxu3 }
 0x6ad   :  { %v6072_v24 = vsel %vm5496_vm2, %v5208_v2, %v5784_v20  ;;  %v4989_v35 = vadd.f32 %v4666_v21, %v2721_v40  ;;  %v11174_v40 = vld [vmem:[#allocation87_spill] sm:$0xff] }
 0x6ae   :  { %v6360_v38 = vpack.c.bf16 %v6072_v24, %v6072_v24  ;;  %v4486_v12 = vpop.f32.mrf.mxu2  ;;  %6721 = vst.msk [vmem:[#allocation2 + $0x420] sm:$0xf] %vm6456_vm1, %v6432_v7  ;;  %v1748_v62 = vpop.f32.mrf.mxu0  ;;  %v2729_v16 = vadd.f32 %v11174_v40, %v11173_v3 }
 0x6af   :  { %v4917_v56 = vadd.f32 %v4486_v12, %v2541_v28  ;;  %v5281_v19 = vadd.f32 %v10716_v46, %v4989_v35  ;;  %v2543_v5 = vpop.f32.mrf.mxu1 }
 0x6b0   :  { %6649 = vst.msk [vmem:[#allocation2 + $0x300] sm:$0xf] %vm6456_vm1, %v6360_v38  ;;  %v2544_v17 = vadd.f32 %v2543_v5, %v1748_v62 }
 0x6b1   :  { %v5209_v10 = vadd.f32 %v10716_v46, %v4917_v56  ;;  %vm5569_vm3 = vcmp.ge.f32.partialorder %v5281_v19, 0.0  ;;  %v5857_v36 = vmul.f32 0.0, %v5281_v19  ;;  %1787 = vmatmul.bf16.gmra.mxu0 %v8437_v39  ;;  %4708 = vmatmul.bf16.gmra.mxu3 %v8359_v33 }
 0x6b2   :  { %2582 = vmatmul.bf16.gmra.mxu1 %v10758_v37 }
 0x6b3   :  { %vm5497_vm4 = vcmp.ge.f32.partialorder %v5209_v10, 0.0  ;;  %v5785_v61 = vmul.f32 0.0, %v5209_v10  ;;  %4528 = vmatmul.bf16.gmra.mxu2 %v8323_v25  ;;  %v6145_v59 = vsel %vm5569_vm3, %v5281_v19, %v5857_v36  ;;  %v11176_v36 = vld [vmem:[#allocation88_spill] sm:$0xff] }
 0x6b4   :  { %v6433_v54 = vpack.c.bf16 %v6145_v59, %v6145_v59  ;;  %v4669_v29 = vpop.f32.mrf.mxu3 }
 0x6b5   :  { %v6073_v58 = vsel %vm5497_vm4, %v5209_v10, %v5785_v61  ;;  %v4990_v51 = vadd.f32 %v4669_v29, %v2724_v57  ;;  %v11175_v10 = vld [vmem:[#allocation37_spill] sm:$0xff]  ;;  %v8361_v29 = vld [vmem:[%s11006_s0 + $0x4a8] sm:$0xff] }
 0x6b6   :  { %v6361_v23 = vpack.c.bf16 %v6073_v58, %v6073_v58  ;;  %v4489_v15 = vpop.f32.mrf.mxu2  ;;  %6722 = vst.msk [vmem:[#allocation2 + $0x424] sm:$0xf] %vm6456_vm1, %v6433_v54  ;;  %v1750_v1 = vpop.f32.mrf.mxu0  ;;  %v2731_v39 = vadd.f32 %v11176_v36, %v11175_v10 }
 0x6b7   :  { %v4918_v31 = vadd.f32 %v4489_v15, %v2544_v17  ;;  %v5282_v48 = vadd.f32 %v10716_v46, %v4990_v51  ;;  %v2545_v37 = vpop.f32.mrf.mxu1  ;;  %v8325_v51 = vld [vmem:[%s11006_s0 + $0x388] sm:$0xff] }
 0x6b8   :  { %6650 = vst.msk [vmem:[#allocation2 + $0x304] sm:$0xf] %vm6456_vm1, %v6361_v23  ;;  %v2546_v11 = vadd.f32 %v2545_v37, %v1750_v1 }
 0x6b9   :  { %v5210_v44 = vadd.f32 %v10716_v46, %v4918_v31  ;;  %vm5570_vm5 = vcmp.ge.f32.partialorder %v5282_v48, 0.0  ;;  %v5858_v26 = vmul.f32 0.0, %v5282_v48 }
 0x6bb   :  { %vm5498_vm6 = vcmp.ge.f32.partialorder %v5210_v44, 0.0  ;;  %v5786_v45 = vmul.f32 0.0, %v5210_v44  ;;  %v6146_v63 = vsel %vm5570_vm5, %v5282_v48, %v5858_v26 }
 0x6bc   :  { %v6434_v8 = vpack.c.bf16 %v6146_v63, %v6146_v63  ;;  %v4671_v49 = vpop.f32.mrf.mxu3 }
 0x6bd   :  { %v6074_v4 = vsel %vm5498_vm6, %v5210_v44, %v5786_v45  ;;  %v4991_v50 = vadd.f32 %v4671_v49, %v2726_v52  ;;  %v8439_v44 = vld [vmem:[%s11006_s0 + $0x370] sm:$0xff]  ;;  %v2734_v52 = vadd.f32 %v11178_v6, %v11177_v14 }
 0x6be   :  { %v6362_v42 = vpack.c.bf16 %v6074_v4, %v6074_v4  ;;  %v4491_v0 = vpop.f32.mrf.mxu2  ;;  %6723 = vst.msk [vmem:[#allocation2 + $0x428] sm:$0xf] %vm6456_vm1, %v6434_v8  ;;  %v1753_v18 = vpop.f32.mrf.mxu0 }
 0x6bf   :  { %v4919_v53 = vadd.f32 %v4491_v0, %v2546_v11  ;;  %v5283_v30 = vadd.f32 %v10716_v46, %v4991_v50  ;;  %v2548_v13 = vpop.f32.mrf.mxu1 }
 0x6c0   :  { %6651 = vst.msk [vmem:[#allocation2 + $0x308] sm:$0xf] %vm6456_vm1, %v6362_v42  ;;  %v2549_v55 = vadd.f32 %v2548_v13, %v1753_v18  ;;  %v11179_v13 = vld [vmem:[#allocation39_spill] sm:$0xff] }
 0x6c1   :  { %v5211_v27 = vadd.f32 %v10716_v46, %v4919_v53  ;;  %vm5571_vm7 = vcmp.ge.f32.partialorder %v5283_v30, 0.0  ;;  %v5859_v2 = vmul.f32 0.0, %v5283_v30  ;;  %1792 = vmatmul.bf16.gmra.mxu0 %v8438_v9  ;;  %4713 = vmatmul.bf16.gmra.mxu3 %v8360_v47 }
 0x6c2   :  { %2587 = vmatmul.bf16.gmra.mxu1 %v10783_v60 }
 0x6c3   :  { %vm5499_vm8 = vcmp.ge.f32.partialorder %v5211_v27, 0.0  ;;  %v5787_v20 = vmul.f32 0.0, %v5211_v27  ;;  %4533 = vmatmul.bf16.gmra.mxu2 %v8324_v34  ;;  %v6147_v24 = vsel %vm5571_vm7, %v5283_v30, %v5859_v2 }
 0x6c4   :  { %v6435_v28 = vpack.c.bf16 %v6147_v24, %v6147_v24  ;;  %v4674_v21 = vpop.f32.mrf.mxu3 }
 0x6c5   :  { %v6075_v7 = vsel %vm5499_vm8, %v5211_v27, %v5787_v20  ;;  %v4992_v35 = vadd.f32 %v4674_v21, %v2729_v16  ;;  %v11180_v27 = vld [vmem:[#allocation90_spill] sm:$0xff] }
 0x6c6   :  { %v6363_v38 = vpack.c.bf16 %v6075_v7, %v6075_v7  ;;  %v4494_v12 = vpop.f32.mrf.mxu2  ;;  %6724 = vst.msk [vmem:[#allocation2 + $0x42c] sm:$0xf] %vm6456_vm1, %v6435_v28  ;;  %v1755_v56 = vpop.f32.mrf.mxu0  ;;  %v2736_v2 = vadd.f32 %v11180_v27, %v11179_v13 }
 0x6c7   :  { %v4920_v33 = vadd.f32 %v4494_v12, %v2549_v55  ;;  %v5284_v62 = vadd.f32 %v10716_v46, %v4992_v35  ;;  %v2550_v60 = vpop.f32.mrf.mxu1 }
 0x6c8   :  { %6652 = vst.msk [vmem:[#allocation2 + $0x30c] sm:$0xf] %vm6456_vm1, %v6363_v38  ;;  %v2551_v41 = vadd.f32 %v2550_v60, %v1755_v56  ;;  %v11181_v60 = vld [vmem:[#allocation40_spill] sm:$0xff] }
 0x6c9   :  { %v5212_v25 = vadd.f32 %v10716_v46, %v4920_v33  ;;  %vm5572_vm9 = vcmp.ge.f32.partialorder %v5284_v62, 0.0  ;;  %v5860_v19 = vmul.f32 0.0, %v5284_v62 }
 0x6cb   :  { %vm5500_vm10 = vcmp.ge.f32.partialorder %v5212_v25, 0.0  ;;  %v5788_v5 = vmul.f32 0.0, %v5212_v25  ;;  %v6148_v61 = vsel %vm5572_vm9, %v5284_v62, %v5860_v19 }
 0x6cc   :  { %v6436_v43 = vpack.c.bf16 %v6148_v61, %v6148_v61  ;;  %v4676_v57 = vpop.f32.mrf.mxu3 }
 0x6cd   :  { %v6076_v17 = vsel %vm5500_vm10, %v5212_v25, %v5788_v5  ;;  %v4993_v54 = vadd.f32 %v4676_v57, %v2731_v39  ;;  %v11182_v25 = vld [vmem:[#allocation91_spill] sm:$0xff] }
 0x6ce   :  { %v6364_v59 = vpack.c.bf16 %v6076_v17, %v6076_v17  ;;  %v4496_v58 = vpop.f32.mrf.mxu2  ;;  %6725 = vst.msk [vmem:[#allocation2 + $0x430] sm:$0xf] %vm6456_vm1, %v6436_v43  ;;  %v1758_v15 = vpop.f32.mrf.mxu0  ;;  %v2739_v19 = vadd.f32 %v11182_v25, %v11181_v60 }
 0x6cf   :  { %v4921_v23 = vadd.f32 %v4496_v58, %v2551_v41  ;;  %v5285_v31 = vadd.f32 %v10716_v46, %v4993_v54  ;;  %v2553_v1 = vpop.f32.mrf.mxu1 }
 0x6d0   :  { %6653 = vst.msk [vmem:[#allocation2 + $0x310] sm:$0xf] %vm6456_vm1, %v6364_v59  ;;  %v2554_v45 = vadd.f32 %v2553_v1, %v1758_v15  ;;  %v11183_v15 = vld [vmem:[#allocation41_spill] sm:$0xff] }
 0x6d1   :  { %v5213_v48 = vadd.f32 %v10716_v46, %v4921_v23  ;;  %vm5573_vm11 = vcmp.ge.f32.partialorder %v5285_v31, 0.0  ;;  %v5861_v37 = vmul.f32 0.0, %v5285_v31  ;;  %1797 = vmatmul.bf16.gmra.mxu0 %v8439_v44  ;;  %4718 = vmatmul.bf16.gmra.mxu3 %v8361_v29 }
 0x6d2   :  { %2592 = vmatmul.bf16.gmra.mxu1 %v10808_v32 }
 0x6d3   :  { %vm5501_vm12 = vcmp.ge.f32.partialorder %v5213_v48, 0.0  ;;  %v5789_v26 = vmul.f32 0.0, %v5213_v48  ;;  %4538 = vmatmul.bf16.gmra.mxu2 %v8325_v51  ;;  %v6149_v63 = vsel %vm5573_vm11, %v5285_v31, %v5861_v37  ;;  %v11184_v51 = vld [vmem:[#allocation92_spill] sm:$0xff] }
 0x6d4   :  { %v6437_v8 = vpack.c.bf16 %v6149_v63, %v6149_v63  ;;  %v4679_v11 = vpop.f32.mrf.mxu3  ;;  %v2741_v31 = vadd.f32 %v11184_v51, %v11183_v15 }
 0x6d5   :  { %v6077_v4 = vsel %vm5501_vm12, %v5213_v48, %v5789_v26  ;;  %v4994_v0 = vadd.f32 %v4679_v11, %v2734_v52 }
 0x6d6   :  { %v6365_v49 = vpack.c.bf16 %v6077_v4, %v6077_v4  ;;  %v4499_v42 = vpop.f32.mrf.mxu2  ;;  %6726 = vst.msk [vmem:[#allocation2 + $0x434] sm:$0xf] %vm6456_vm1, %v6437_v8  ;;  %v1760_v47 = vpop.f32.mrf.mxu0 }
 0x6d7   :  { %v4922_v50 = vadd.f32 %v4499_v42, %v2554_v45  ;;  %v5286_v53 = vadd.f32 %v10716_v46, %v4994_v0  ;;  %v2555_v32 = vpop.f32.mrf.mxu1 }
 0x6d8   :  { %6654 = vst.msk [vmem:[#allocation2 + $0x314] sm:$0xf] %vm6456_vm1, %v6365_v49  ;;  %v2556_v3 = vadd.f32 %v2555_v32, %v1760_v47  ;;  %v11186_v47 = vld [vmem:[#allocation93_spill] sm:$0xff] }
 0x6d9   :  { %v5214_v18 = vadd.f32 %v10716_v46, %v4922_v50  ;;  %vm5574_vm13 = vcmp.ge.f32.partialorder %v5286_v53, 0.0  ;;  %v5862_v34 = vmul.f32 0.0, %v5286_v53  ;;  %v11185_v50 = vld [vmem:[#allocation42_spill] sm:$0xff] }
 0x6db   :  { %vm5502_vm14 = vcmp.ge.f32.partialorder %v5214_v18, 0.0  ;;  %v5790_v30 = vmul.f32 0.0, %v5214_v18  ;;  %v6150_v9 = vsel %vm5574_vm13, %v5286_v53, %v5862_v34  ;;  %v2744_v53 = vadd.f32 %v11186_v47, %v11185_v50 }
 0x6dc   :  { %v6438_v55 = vpack.c.bf16 %v6150_v9, %v6150_v9  ;;  %v4681_v40 = vpop.f32.mrf.mxu3 }
 0x6dd   :  { %v6078_v20 = vsel %vm5502_vm14, %v5214_v18, %v5790_v30  ;;  %v4995_v7 = vadd.f32 %v4681_v40, %v2736_v2 }
 0x6de   :  { %v6366_v16 = vpack.c.bf16 %v6078_v20, %v6078_v20  ;;  %v4501_v24 = vpop.f32.mrf.mxu2  ;;  %6727 = vst.msk [vmem:[#allocation2 + $0x438] sm:$0xf] %vm6456_vm1, %v6438_v55  ;;  %v1763_v21 = vpop.f32.mrf.mxu0 }
 0x6df   :  { %v4923_v28 = vadd.f32 %v4501_v24, %v2556_v3  ;;  %v5287_v38 = vadd.f32 %v10716_v46, %v4995_v7  ;;  %v2558_v12 = vpop.f32.mrf.mxu1  ;;  %v11187_v7 = vld [vmem:[#allocation43_spill] sm:$0xff] }
 0x6e0   :  { %6655 = vst.msk [vmem:[#allocation2 + $0x318] sm:$0xf] %vm6456_vm1, %v6366_v16  ;;  %v2559_v62 = vadd.f32 %v2558_v12, %v1763_v21 }
 0x6e1   :  { %v5215_v35 = vadd.f32 %v10716_v46, %v4923_v28  ;;  %vm5575_vm15 = vcmp.ge.f32.partialorder %v5287_v38, 0.0  ;;  %v5863_v33 = vmul.f32 0.0, %v5287_v38  ;;  %v11188_v28 = vld [vmem:[#allocation94_spill] sm:$0xff] }
 0x6e2   :  { %v2746_v21 = vadd.f32 %v11188_v28, %v11187_v7 }
 0x6e3   :  { %vm5503_vm0 = vcmp.ge.f32.partialorder %v5215_v35, 0.0  ;;  %v5791_v56 = vmul.f32 0.0, %v5215_v35  ;;  %v6151_v5 = vsel %vm5575_vm15, %v5287_v38, %v5863_v33 }
 0x6e4   :  { %v6439_v36 = vpack.c.bf16 %v6151_v5, %v6151_v5  ;;  %v4684_v39 = vpop.f32.mrf.mxu3 }
 0x6e5   :  { %v6079_v10 = vsel %vm5503_vm0, %v5215_v35, %v5791_v56  ;;  %v4996_v43 = vadd.f32 %v4684_v39, %v2739_v19 }
 0x6e6   :  { %v6367_v61 = vpack.c.bf16 %v6079_v10, %v6079_v10  ;;  %v4504_v17 = vpop.f32.mrf.mxu2  ;;  %6728 = vst.msk [vmem:[#allocation2 + $0x43c] sm:$0xf] %vm6456_vm1, %v6439_v36  ;;  %v1765_v57 = vpop.f32.mrf.mxu0 }
 0x6e7   :  { %v4924_v41 = vadd.f32 %v4504_v17, %v2559_v62  ;;  %v5288_v59 = vadd.f32 %v10716_v46, %v4996_v43  ;;  %v2560_v58 = vpop.f32.mrf.mxu1 }
 0x6e8   :  { %6656 = vst.msk [vmem:[#allocation2 + $0x31c] sm:$0xf] %vm6456_vm1, %v6367_v61  ;;  %v2561_v44 = vadd.f32 %v2560_v58, %v1765_v57  ;;  %v11190_v57 = vld [vmem:[#allocation95_spill] sm:$0xff] }
 0x6e9   :  { %v5216_v54 = vadd.f32 %v10716_v46, %v4924_v41  ;;  %vm5576_vm2 = vcmp.ge.f32.partialorder %v5288_v59, 0.0  ;;  %v5864_v29 = vmul.f32 0.0, %v5288_v59  ;;  %v11189_v41 = vld [vmem:[#allocation44_spill] sm:$0xff] }
 0x6eb   :  { %vm5504_vm3 = vcmp.ge.f32.partialorder %v5216_v54, 0.0  ;;  %v5792_v23 = vmul.f32 0.0, %v5216_v54  ;;  %v6152_v1 = vsel %vm5576_vm2, %v5288_v59, %v5864_v29  ;;  %v2749_v59 = vadd.f32 %v11190_v57, %v11189_v41 }
 0x6ec   :  { %v6440_v37 = vpack.c.bf16 %v6152_v1, %v6152_v1  ;;  %v4686_v26 = vpop.f32.mrf.mxu3 }
 0x6ed   :  { %v6080_v48 = vsel %vm5504_vm3, %v5216_v54, %v5792_v23  ;;  %v4997_v6 = vadd.f32 %v4686_v26, %v2741_v31 }
 0x6ee   :  { %v6368_v45 = vpack.c.bf16 %v6080_v48, %v6080_v48  ;;  %v4506_v14 = vpop.f32.mrf.mxu2  ;;  %6729 = vst.msk [vmem:[#allocation2 + $0x440] sm:$0xf] %vm6456_vm1, %v6440_v37  ;;  %v1768_v63 = vpop.f32.mrf.mxu0 }
 0x6ef   :  { %v4925_v52 = vadd.f32 %v4506_v14, %v2561_v44  ;;  %v5289_v4 = vadd.f32 %v10716_v46, %v4997_v6  ;;  %v2563_v8 = vpop.f32.mrf.mxu1  ;;  %v11191_v6 = vld [vmem:[#allocation45_spill] sm:$0xff] }
 0x6f0   :  { %6657 = vst.msk [vmem:[#allocation2 + $0x320] sm:$0xf] %vm6456_vm1, %v6368_v45  ;;  %v2564_v0 = vadd.f32 %v2563_v8, %v1768_v63 }
 0x6f1   :  { %v5217_v11 = vadd.f32 %v10716_v46, %v4925_v52  ;;  %vm5577_vm4 = vcmp.ge.f32.partialorder %v5289_v4, 0.0  ;;  %v5865_v49 = vmul.f32 0.0, %v5289_v4  ;;  %v11192_v52 = vld [vmem:[#allocation96_spill] sm:$0xff] }
 0x6f2   :  { %v2751_v63 = vadd.f32 %v11192_v52, %v11191_v6 }
 0x6f3   :  { %vm5505_vm5 = vcmp.ge.f32.partialorder %v5217_v11, 0.0  ;;  %v5793_v42 = vmul.f32 0.0, %v5217_v11  ;;  %v6153_v32 = vsel %vm5577_vm4, %v5289_v4, %v5865_v49 }
 0x6f4   :  { %v6441_v34 = vpack.c.bf16 %v6153_v32, %v6153_v32  ;;  %v4689_v30 = vpop.f32.mrf.mxu3 }
 0x6f5   :  { %v6081_v18 = vsel %vm5505_vm5, %v5217_v11, %v5793_v42  ;;  %v4998_v2 = vadd.f32 %v4689_v30, %v2744_v53 }
 0x6f6   :  { %v6369_v13 = vpack.c.bf16 %v6081_v18, %v6081_v18  ;;  %v4509_v27 = vpop.f32.mrf.mxu2  ;;  %6730 = vst.msk [vmem:[#allocation2 + $0x444] sm:$0xf] %vm6456_vm1, %v6441_v34  ;;  %v1770_v20 = vpop.f32.mrf.mxu0 }
 0x6f7   :  { %v4926_v9 = vadd.f32 %v4509_v27, %v2564_v0  ;;  %v5290_v55 = vadd.f32 %v10716_v46, %v4998_v2  ;;  %v2565_v3 = vpop.f32.mrf.mxu1 }
 0x6f8   :  { %6658 = vst.msk [vmem:[#allocation2 + $0x324] sm:$0xf] %vm6456_vm1, %v6369_v13  ;;  %v2566_v33 = vadd.f32 %v2565_v3, %v1770_v20  ;;  %v11194_v20 = vld [vmem:[#allocation97_spill] sm:$0xff] }
 0x6f9   :  { %v5218_v40 = vadd.f32 %v10716_v46, %v4926_v9  ;;  %vm5578_vm6 = vcmp.ge.f32.partialorder %v5290_v55, 0.0  ;;  %v5866_v16 = vmul.f32 0.0, %v5290_v55  ;;  %v11193_v9 = vld [vmem:[#allocation46_spill] sm:$0xff] }
 0x6fb   :  { %vm5506_vm7 = vcmp.ge.f32.partialorder %v5218_v40, 0.0  ;;  %v5794_v24 = vmul.f32 0.0, %v5218_v40  ;;  %v6154_v38 = vsel %vm5578_vm6, %v5290_v55, %v5866_v16  ;;  %v2754_v55 = vadd.f32 %v11194_v20, %v11193_v9 }
 0x6fc   :  { %v6442_v35 = vpack.c.bf16 %v6154_v38, %v6154_v38  ;;  %v4691_v56 = vpop.f32.mrf.mxu3 }
 0x6fd   :  { %v6082_v12 = vsel %vm5506_vm7, %v5218_v40, %v5794_v24  ;;  %v4999_v25 = vadd.f32 %v4691_v56, %v2746_v21  ;;  %v10944_v56 = vld [vmem:[%s11008_s2] ss:$0 sm:$0xff]  ;;  %s8467_s2 = smov [#allocation2]  }
 0x6fe   :  { %v6370_v62 = vpack.c.bf16 %v6082_v12, %v6082_v12  ;;  %v4511_v60 = vpop.f32.mrf.mxu2  ;;  %6731 = vst.msk [vmem:[#allocation2 + $0x448] sm:$0xf] %vm6456_vm1, %v6442_v35  ;;  %v1773_v5 = vpop.f32.mrf.mxu0  ;;  %s6749_s30 = sshll.u32 %s8467_s2, 4  ;;  %s6750_s30 = int_to_ptr.vmem [resolvable:$true] %s6749_s30 }
 0x6ff   :  { %v4927_v19 = vadd.f32 %v4511_v60, %v2566_v33  ;;  %v5291_v10 = vadd.f32 %v10716_v46, %v4999_v25  ;;  %v2568_v36 = vpop.f32.mrf.mxu1 }
 0x700   :  { %6659 = vst.msk [vmem:[#allocation2 + $0x328] sm:$0xf] %vm6456_vm1, %v6370_v62  ;;  %v2569_v43 = vadd.f32 %v2568_v36, %v1773_v5  ;;  %v11196_v5 = vld [vmem:[#allocation98_spill] sm:$0xff] }
 0x701   :  { %v5219_v39 = vadd.f32 %v10716_v46, %v4927_v19  ;;  %vm5579_vm8 = vcmp.ge.f32.partialorder %v5291_v10, 0.0  ;;  %v5867_v61 = vmul.f32 0.0, %v5291_v10  ;;  %v11195_v19 = vld [vmem:[#allocation47_spill] sm:$0xff] }
 0x703   :  { %vm5507_vm9 = vcmp.ge.f32.partialorder %v5219_v39, 0.0  ;;  %v5795_v17 = vmul.f32 0.0, %v5219_v39  ;;  %v6155_v58 = vsel %vm5579_vm8, %v5291_v10, %v5867_v61  ;;  %v2756_v10 = vadd.f32 %v11196_v5, %v11195_v19 }
 0x704   :  { %v6443_v29 = vpack.c.bf16 %v6155_v58, %v6155_v58  ;;  %v4694_v23 = vpop.f32.mrf.mxu3 }
 0x705   :  { %v6083_v54 = vsel %vm5507_vm9, %v5219_v39, %v5795_v17  ;;  %v5000_v31 = vadd.f32 %v4694_v23, %v2749_v59 }
 0x706   :  { %v6371_v15 = vpack.c.bf16 %v6083_v54, %v6083_v54  ;;  %v4514_v51 = vpop.f32.mrf.mxu2  ;;  %6732 = vst.msk [vmem:[#allocation2 + $0x44c] sm:$0xf] %vm6456_vm1, %v6443_v29  ;;  %v1775_v48 = vpop.f32.mrf.mxu0 }
 0x707   :  { %v4928_v1 = vadd.f32 %v4514_v51, %v2569_v43  ;;  %v5292_v37 = vadd.f32 %v10716_v46, %v5000_v31  ;;  %v2570_v44 = vpop.f32.mrf.mxu1 }
 0x708   :  { %6660 = vst.msk [vmem:[#allocation2 + $0x32c] sm:$0xf] %vm6456_vm1, %v6371_v15  ;;  %v2571_v49 = vadd.f32 %v2570_v44, %v1775_v48  ;;  %v11198_v48 = vld [vmem:[#allocation99_spill] sm:$0xff] }
 0x709   :  { %v5220_v26 = vadd.f32 %v10716_v46, %v4928_v1  ;;  %vm5580_vm10 = vcmp.ge.f32.partialorder %v5292_v37, 0.0  ;;  %v5868_v45 = vmul.f32 0.0, %v5292_v37  ;;  %v11197_v1 = vld [vmem:[#allocation48_spill] sm:$0xff] }
 0x70b   :  { %vm5508_vm11 = vcmp.ge.f32.partialorder %v5220_v26, 0.0  ;;  %v5796_v14 = vmul.f32 0.0, %v5220_v26  ;;  %v6156_v4 = vsel %vm5580_vm10, %v5292_v37, %v5868_v45  ;;  %v2759_v37 = vadd.f32 %v11198_v48, %v11197_v1 }
 0x70c   :  { %v6444_v11 = vpack.c.bf16 %v6156_v4, %v6156_v4  ;;  %v4696_v42 = vpop.f32.mrf.mxu3 }
 0x70d   :  { %v6084_v8 = vsel %vm5508_vm11, %v5220_v26, %v5796_v14  ;;  %v5001_v47 = vadd.f32 %v4696_v42, %v2751_v63 }
 0x70e   :  { %v6372_v0 = vpack.c.bf16 %v6084_v8, %v6084_v8  ;;  %v4516_v50 = vpop.f32.mrf.mxu2  ;;  %6733 = vst.msk [vmem:[#allocation2 + $0x450] sm:$0xf] %vm6456_vm1, %v6444_v11  ;;  %v1778_v32 = vpop.f32.mrf.mxu0 }
 0x70f   :  { %v4929_v53 = vadd.f32 %v4516_v50, %v2571_v49  ;;  %v5293_v18 = vadd.f32 %v10716_v46, %v5001_v47  ;;  %v2573_v34 = vpop.f32.mrf.mxu1  ;;  %v11199_v47 = vld [vmem:[#allocation49_spill] sm:$0xff] }
 0x710   :  { %6661 = vst.msk [vmem:[#allocation2 + $0x330] sm:$0xf] %vm6456_vm1, %v6372_v0  ;;  %v2574_v2 = vadd.f32 %v2573_v34, %v1778_v32 }
 0x711   :  { %v5221_v30 = vadd.f32 %v10716_v46, %v4929_v53  ;;  %vm5581_vm12 = vcmp.ge.f32.partialorder %v5293_v18, 0.0  ;;  %v5869_v13 = vmul.f32 0.0, %v5293_v18  ;;  %v11200_v53 = vld [vmem:[#allocation100_spill] sm:$0xff] }
 0x712   :  { %v2761_v32 = vadd.f32 %v11200_v53, %v11199_v47 }
 0x713   :  { %vm5509_vm13 = vcmp.ge.f32.partialorder %v5221_v30, 0.0  ;;  %v5797_v27 = vmul.f32 0.0, %v5221_v30  ;;  %v6157_v3 = vsel %vm5581_vm12, %v5293_v18, %v5869_v13 }
 0x714   :  { %v6445_v16 = vpack.c.bf16 %v6157_v3, %v6157_v3  ;;  %v4699_v24 = vpop.f32.mrf.mxu3 }
 0x715   :  { %v6085_v40 = vsel %vm5509_vm13, %v5221_v30, %v5797_v27  ;;  %v5002_v21 = vadd.f32 %v4699_v24, %v2754_v55 }
 0x716   :  { %v6373_v7 = vpack.c.bf16 %v6085_v40, %v6085_v40  ;;  %v4519_v28 = vpop.f32.mrf.mxu2  ;;  %6734 = vst.msk [vmem:[#allocation2 + $0x454] sm:$0xf] %vm6456_vm1, %v6445_v16  ;;  %v1780_v12 = vpop.f32.mrf.mxu0 }
 0x717   :  { %v4930_v38 = vadd.f32 %v4519_v28, %v2574_v2  ;;  %v5294_v35 = vadd.f32 %v10716_v46, %v5002_v21  ;;  %v2575_v33 = vpop.f32.mrf.mxu1 }
 0x718   :  { %6662 = vst.msk [vmem:[#allocation2 + $0x334] sm:$0xf] %vm6456_vm1, %v6373_v7  ;;  %v2576_v17 = vadd.f32 %v2575_v33, %v1780_v12  ;;  %v11202_v12 = vld [vmem:[#allocation101_spill] sm:$0xff] }
 0x719   :  { %v5222_v62 = vadd.f32 %v10944_v56, %v4930_v38  ;;  %vm5582_vm14 = vcmp.ge.f32.partialorder %v5294_v35, 0.0  ;;  %v5870_v60 = vmul.f32 0.0, %v5294_v35  ;;  %v11201_v38 = vld [vmem:[#allocation50_spill] sm:$0xff] }
 0x71b   :  { %vm5510_vm15 = vcmp.ge.f32.partialorder %v5222_v62, 0.0  ;;  %v5798_v25 = vmul.f32 0.0, %v5222_v62  ;;  %v6158_v36 = vsel %vm5582_vm14, %v5294_v35, %v5870_v60  ;;  %v2764_v35 = vadd.f32 %v11202_v12, %v11201_v38 }
 0x71c   :  { %v6446_v61 = vpack.c.bf16 %v6158_v36, %v6158_v36  ;;  %v4701_v46 = vpop.f32.mrf.mxu3 }
 0x71d   :  { %v6086_v39 = vsel %vm5510_vm15, %v5222_v62, %v5798_v25  ;;  %v5003_v57 = vadd.f32 %v4701_v46, %v2756_v10 }
 0x71e   :  { %v6374_v43 = vpack.c.bf16 %v6086_v39, %v6086_v39  ;;  %v4521_v41 = vpop.f32.mrf.mxu2  ;;  %6735 = vst.msk [vmem:[#allocation2 + $0x458] sm:$0xf] %vm6456_vm1, %v6446_v61  ;;  %v1783_v58 = vpop.f32.mrf.mxu0 }
 0x71f   :  { %v4931_v59 = vadd.f32 %v4521_v41, %v2576_v17  ;;  %v5295_v54 = vadd.f32 %v10944_v56, %v5003_v57  ;;  %v2578_v29 = vpop.f32.mrf.mxu1  ;;  %v11203_v57 = vld [vmem:[#allocation51_spill] sm:$0xff] }
 0x720   :  { %6663 = vst.msk [vmem:[#allocation2 + $0x338] sm:$0xf] %vm6456_vm1, %v6374_v43  ;;  %v2579_v31 = vadd.f32 %v2578_v29, %v1783_v58 }
 0x721   :  { %v5223_v23 = vadd.f32 %v10944_v56, %v4931_v59  ;;  %vm5583_vm0 = vcmp.ge.f32.partialorder %v5295_v54, 0.0  ;;  %v5871_v15 = vmul.f32 0.0, %v5295_v54  ;;  %v11204_v59 = vld [vmem:[#allocation102_spill] sm:$0xff] }
 0x722   :  { %v2766_v58 = vadd.f32 %v11204_v59, %v11203_v57 }
 0x723   :  { %vm5511_vm2 = vcmp.ge.f32.partialorder %v5223_v23, 0.0  ;;  %v5799_v51 = vmul.f32 0.0, %v5223_v23  ;;  %v6159_v44 = vsel %vm5583_vm0, %v5295_v54, %v5871_v15 }
 0x724   :  { %v6447_v45 = vpack.c.bf16 %v6159_v44, %v6159_v44  ;;  %v4704_v14 = vpop.f32.mrf.mxu3 }
 0x725   :  { %v6087_v26 = vsel %vm5511_vm2, %v5223_v23, %v5799_v51  ;;  %v5004_v63 = vadd.f32 %v4704_v14, %v2759_v37 }
 0x726   :  { %v6375_v6 = vpack.c.bf16 %v6087_v26, %v6087_v26  ;;  %v4524_v52 = vpop.f32.mrf.mxu2  ;;  %6736 = vst.msk [vmem:[#allocation2 + $0x45c] sm:$0xf] %vm6456_vm1, %v6447_v45  ;;  %v1785_v8 = vpop.f32.mrf.mxu0 }
 0x727   :  { %v4932_v4 = vadd.f32 %v4524_v52, %v2579_v31  ;;  %v5296_v11 = vadd.f32 %v10944_v56, %v5004_v63  ;;  %v2580_v49 = vpop.f32.mrf.mxu1 }
 0x728   :  { %6664 = vst.msk [vmem:[#allocation2 + $0x33c] sm:$0xf] %vm6456_vm1, %v6375_v6  ;;  %v2581_v13 = vadd.f32 %v2580_v49, %v1785_v8  ;;  %v11206_v8 = vld [vmem:[#allocation103_spill] sm:$0xff] }
 0x729   :  { %v5224_v42 = vadd.f32 %v10944_v56, %v4932_v4  ;;  %vm5584_vm3 = vcmp.ge.f32.partialorder %v5296_v11, 0.0  ;;  %v5872_v0 = vmul.f32 0.0, %v5296_v11  ;;  %v11205_v4 = vld [vmem:[#allocation52_spill] sm:$0xff] }
 0x72b   :  { %vm5512_vm4 = vcmp.ge.f32.partialorder %v5224_v42, 0.0  ;;  %v5800_v50 = vmul.f32 0.0, %v5224_v42  ;;  %v6160_v18 = vsel %vm5584_vm3, %v5296_v11, %v5872_v0  ;;  %v2769_v11 = vadd.f32 %v11206_v8, %v11205_v4 }
 0x72c   :  { %v6448_v30 = vpack.c.bf16 %v6160_v18, %v6160_v18  ;;  %v4706_v27 = vpop.f32.mrf.mxu3 }
 0x72d   :  { %v6088_v34 = vsel %vm5512_vm4, %v5224_v42, %v5800_v50  ;;  %v5005_v20 = vadd.f32 %v4706_v27, %v2761_v32 }
 0x72e   :  { %v6376_v2 = vpack.c.bf16 %v6088_v34, %v6088_v34  ;;  %v4526_v9 = vpop.f32.mrf.mxu2  ;;  %6737 = vst.msk [vmem:[#allocation2 + $0x460] sm:$0xf] %vm6456_vm1, %v6448_v30  ;;  %v1788_v3 = vpop.f32.mrf.mxu0 }
 0x72f   :  { %v4933_v55 = vadd.f32 %v4526_v9, %v2581_v13  ;;  %v5297_v40 = vadd.f32 %v10944_v56, %v5005_v20  ;;  %v2583_v16 = vpop.f32.mrf.mxu1  ;;  %v11207_v20 = vld [vmem:[#allocation53_spill] sm:$0xff] }
 0x730   :  { %6665 = vst.msk [vmem:[#allocation2 + $0x340] sm:$0xf] %vm6456_vm1, %v6376_v2  ;;  %v2584_v21 = vadd.f32 %v2583_v16, %v1788_v3 }
 0x731   :  { %v5225_v24 = vadd.f32 %v10944_v56, %v4933_v55  ;;  %vm5585_vm5 = vcmp.ge.f32.partialorder %v5297_v40, 0.0  ;;  %v5873_v7 = vmul.f32 0.0, %v5297_v40  ;;  %v11208_v55 = vld [vmem:[#allocation104_spill] sm:$0xff] }
 0x732   :  { %v2771_v3 = vadd.f32 %v11208_v55, %v11207_v20 }
 0x733   :  { %vm5513_vm6 = vcmp.ge.f32.partialorder %v5225_v24, 0.0  ;;  %v5801_v28 = vmul.f32 0.0, %v5225_v24  ;;  %v6161_v33 = vsel %vm5585_vm5, %v5297_v40, %v5873_v7 }
 0x734   :  { %v6449_v60 = vpack.c.bf16 %v6161_v33, %v6161_v33  ;;  %v4709_v25 = vpop.f32.mrf.mxu3 }
 0x735   :  { %v6089_v62 = vsel %vm5513_vm6, %v5225_v24, %v5801_v28  ;;  %v5006_v10 = vadd.f32 %v4709_v25, %v2764_v35 }
 0x736   :  { %v6377_v19 = vpack.c.bf16 %v6089_v62, %v6089_v62  ;;  %v4529_v5 = vpop.f32.mrf.mxu2  ;;  %6738 = vst.msk [vmem:[#allocation2 + $0x464] sm:$0xf] %vm6456_vm1, %v6449_v60  ;;  %v1790_v39 = vpop.f32.mrf.mxu0 }
 0x737   :  { %v4934_v36 = vadd.f32 %v4529_v5, %v2584_v21  ;;  %v5298_v61 = vadd.f32 %v10944_v56, %v5006_v10  ;;  %v2585_v17 = vpop.f32.mrf.mxu1 }
 0x738   :  { %6666 = vst.msk [vmem:[#allocation2 + $0x344] sm:$0xf] %vm6456_vm1, %v6377_v19  ;;  %v2586_v15 = vadd.f32 %v2585_v17, %v1790_v39 }
 0x739   :  { %v5226_v46 = vadd.f32 %v10944_v56, %v4934_v36  ;;  %vm5586_vm7 = vcmp.ge.f32.partialorder %v5298_v61, 0.0  ;;  %v5874_v43 = vmul.f32 0.0, %v5298_v61  ;;  %v11209_v36 = vld [vmem:[#allocation54_spill] sm:$0xff] }
 0x73a   :  { %v2774_v39 = vadd.f32 %v10192_v22, %v11209_v36 }
 0x73b   :  { %vm5514_vm8 = vcmp.ge.f32.partialorder %v5226_v46, 0.0  ;;  %v5802_v41 = vmul.f32 0.0, %v5226_v46  ;;  %v6162_v54 = vsel %vm5586_vm7, %v5298_v61, %v5874_v43 }
 0x73c   :  { %v6450_v23 = vpack.c.bf16 %v6162_v54, %v6162_v54  ;;  %v4711_v51 = vpop.f32.mrf.mxu3 }
 0x73d   :  { %v6090_v29 = vsel %vm5514_vm8, %v5226_v46, %v5802_v41  ;;  %v5007_v48 = vadd.f32 %v4711_v51, %v2766_v58 }
 0x73e   :  { %v6378_v31 = vpack.c.bf16 %v6090_v29, %v6090_v29  ;;  %v4531_v1 = vpop.f32.mrf.mxu2  ;;  %6739 = vst.msk [vmem:[#allocation2 + $0x468] sm:$0xf] %vm6456_vm1, %v6450_v23  ;;  %v1793_v44 = vpop.f32.mrf.mxu0 }
 0x73f   :  { %v4935_v37 = vadd.f32 %v4531_v1, %v2586_v15  ;;  %v5299_v26 = vadd.f32 %v10944_v56, %v5007_v48  ;;  %v2588_v45 = vpop.f32.mrf.mxu1  ;;  %v11211_v1 = vld [vmem:[#allocation105_spill] sm:$0xff] }
 0x740   :  { %6667 = vst.msk [vmem:[#allocation2 + $0x348] sm:$0xf] %vm6456_vm1, %v6378_v31  ;;  %v2589_v63 = vadd.f32 %v2588_v45, %v1793_v44  ;;  %v11210_v31 = vld [vmem:[#allocation55_spill] sm:$0xff] }
 0x741   :  { %v5227_v14 = vadd.f32 %v10944_v56, %v4935_v37  ;;  %vm5587_vm9 = vcmp.ge.f32.partialorder %v5299_v26, 0.0  ;;  %v5875_v6 = vmul.f32 0.0, %v5299_v26  ;;  %v2776_v48 = vadd.f32 %v11211_v1, %v11210_v31 }
 0x743   :  { %vm5515_vm10 = vcmp.ge.f32.partialorder %v5227_v14, 0.0  ;;  %v5803_v52 = vmul.f32 0.0, %v5227_v14  ;;  %v6163_v49 = vsel %vm5587_vm9, %v5299_v26, %v5875_v6 }
 0x744   :  { %v6451_v0 = vpack.c.bf16 %v6163_v49, %v6163_v49  ;;  %v4714_v50 = vpop.f32.mrf.mxu3 }
 0x745   :  { %v6091_v42 = vsel %vm5515_vm10, %v5227_v14, %v5803_v52  ;;  %v5008_v32 = vadd.f32 %v4714_v50, %v2769_v11 }
 0x746   :  { %v6379_v47 = vpack.c.bf16 %v6091_v42, %v6091_v42  ;;  %v4534_v53 = vpop.f32.mrf.mxu2  ;;  %6740 = vst.msk [vmem:[#allocation2 + $0x46c] sm:$0xf] %vm6456_vm1, %v6451_v0  ;;  %v1795_v34 = vpop.f32.mrf.mxu0 }
 0x747   :  { %v4936_v18 = vadd.f32 %v4534_v53, %v2589_v63  ;;  %v5300_v30 = vadd.f32 %v10944_v56, %v5008_v32  ;;  %v2590_v13 = vpop.f32.mrf.mxu1 }
 0x748   :  { %6668 = vst.msk [vmem:[#allocation2 + $0x34c] sm:$0xf] %vm6456_vm1, %v6379_v47  ;;  %v2591_v7 = vadd.f32 %v2590_v13, %v1795_v34 }
 0x749   :  { %v5228_v27 = vadd.f32 %v10944_v56, %v4936_v18  ;;  %vm5588_vm11 = vcmp.ge.f32.partialorder %v5300_v30, 0.0  ;;  %v5876_v2 = vmul.f32 0.0, %v5300_v30 }
 0x74b   :  { %vm5516_vm12 = vcmp.ge.f32.partialorder %v5228_v27, 0.0  ;;  %v5804_v9 = vmul.f32 0.0, %v5228_v27  ;;  %v6164_v40 = vsel %vm5588_vm11, %v5300_v30, %v5876_v2 }
 0x74c   :  { %v6452_v24 = vpack.c.bf16 %v6164_v40, %v6164_v40  ;;  %v4716_v28 = vpop.f32.mrf.mxu3 }
 0x74d   :  { %v6092_v16 = vsel %vm5516_vm12, %v5228_v27, %v5804_v9  ;;  %v5009_v12 = vadd.f32 %v4716_v28, %v2771_v3 }
 0x74e   :  { %v6380_v21 = vpack.c.bf16 %v6092_v16, %v6092_v16  ;;  %v4536_v38 = vpop.f32.mrf.mxu2  ;;  %6741 = vst.msk [vmem:[#allocation2 + $0x470] sm:$0xf] %vm6456_vm1, %v6452_v24  ;;  %v1798_v62 = vpop.f32.mrf.mxu0 }
 0x74f   :  { %v4937_v35 = vadd.f32 %v4536_v38, %v2591_v7  ;;  %v5301_v33 = vadd.f32 %v10944_v56, %v5009_v12  ;;  %v2593_v60 = vpop.f32.mrf.mxu1 }
 0x750   :  { %6669 = vst.msk [vmem:[#allocation2 + $0x350] sm:$0xf] %vm6456_vm1, %v6380_v21  ;;  %v2594_v10 = vadd.f32 %v2593_v60, %v1798_v62 }
 0x751   :  { %v5229_v25 = vadd.f32 %v10944_v56, %v4937_v35  ;;  %vm5589_vm13 = vcmp.ge.f32.partialorder %v5301_v33, 0.0  ;;  %v5877_v19 = vmul.f32 0.0, %v5301_v33 }
 0x753   :  { %vm5517_vm14 = vcmp.ge.f32.partialorder %v5229_v25, 0.0  ;;  %v5805_v5 = vmul.f32 0.0, %v5229_v25  ;;  %v6165_v61 = vsel %vm5589_vm13, %v5301_v33, %v5877_v19 }
 0x754   :  { %v6453_v46 = vpack.c.bf16 %v6165_v61, %v6165_v61  ;;  %v4719_v43 = vpop.f32.mrf.mxu3 }
 0x755   :  { %v6093_v17 = vsel %vm5517_vm14, %v5229_v25, %v5805_v5  ;;  %v5010_v59 = vadd.f32 %v4719_v43, %v2774_v39 }
 0x756   :  { %v6381_v41 = vpack.c.bf16 %v6093_v17, %v6093_v17  ;;  %v4539_v57 = vpop.f32.mrf.mxu2  ;;  %6742 = vst.msk [vmem:[#allocation2 + $0x474] sm:$0xf] %vm6456_vm1, %v6453_v46  ;;  %v1800_v15 = vpop.f32.mrf.mxu0 }
 0x757   :  { %v4938_v58 = vadd.f32 %v4539_v57, %v2594_v10  ;;  %v5302_v54 = vadd.f32 %v10944_v56, %v5010_v59  ;;  %v2595_v22 = vpop.f32.mrf.mxu1 }
 0x758   :  { %6670 = vst.msk [vmem:[#allocation2 + $0x354] sm:$0xf] %vm6456_vm1, %v6381_v41  ;;  %v2596_v45 = vadd.f32 %v2595_v22, %v1800_v15 }
 0x759   :  { %v5230_v29 = vadd.f32 %v10944_v56, %v4938_v58  ;;  %vm5590_vm15 = vcmp.ge.f32.partialorder %v5302_v54, 0.0  ;;  %v5878_v23 = vmul.f32 0.0, %v5302_v54 }
 0x75b   :  { %vm5518_vm0 = vcmp.ge.f32.partialorder %v5230_v29, 0.0  ;;  %v5806_v51 = vmul.f32 0.0, %v5230_v29  ;;  %v6166_v37 = vsel %vm5590_vm15, %v5302_v54, %v5878_v23 }
 0x75c   :  { %v6454_v26 = vpack.c.bf16 %v6166_v37, %v6166_v37  ;;  %v4721_v14 = vpop.f32.mrf.mxu3 }
 0x75d   :  { %v6094_v44 = vsel %vm5518_vm0, %v5230_v29, %v5806_v51  ;;  %v5011_v63 = vadd.f32 %v4721_v14, %v2776_v48 }
 0x75e   :  { %v6382_v6 = vpack.c.bf16 %v6094_v44, %v6094_v44  ;;  %v4541_v52 = vpop.f32.mrf.mxu2  ;;  %6743 = vst.msk [vmem:[#allocation2 + $0x478] sm:$0xf] %vm6456_vm1, %v6454_v26 }
 0x75f   :  { %v4939_v4 = vadd.f32 %v4541_v52, %v2596_v45  ;;  %v5303_v8 = vadd.f32 %v10944_v56, %v5011_v63 }
 0x760   :  { %6671 = vst.msk [vmem:[#allocation2 + $0x358] sm:$0xf] %vm6456_vm1, %v6382_v6 }
 0x761   :  { %v5231_v11 = vadd.f32 %v10944_v56, %v4939_v4  ;;  %vm5591_vm2 = vcmp.ge.f32.partialorder %v5303_v8, 0.0  ;;  %v5879_v49 = vmul.f32 0.0, %v5303_v8 }
 0x763   :  { %vm5519_vm3 = vcmp.ge.f32.partialorder %v5231_v11, 0.0  ;;  %v5807_v42 = vmul.f32 0.0, %v5231_v11  ;;  %v6167_v0 = vsel %vm5591_vm2, %v5303_v8, %v5879_v49 }
 0x764   :  { %v6455_v47 = vpack.c.bf16 %v6167_v0, %v6167_v0 }
 0x765   :  { %v6095_v50 = vsel %vm5519_vm3, %v5231_v11, %v5807_v42 }
 0x766   :  { %v6383_v53 = vpack.c.bf16 %v6095_v50, %v6095_v50  ;;  %6744 = vst.msk [vmem:[#allocation2 + $0x47c] sm:$0xf] %vm6456_vm1, %v6455_v47 }
 0x768   :  { %6672 = vst.msk [vmem:[#allocation2 + $0x35c] sm:$0xf] %vm6456_vm1, %v6383_v53 }
 0x769   :  { %6757 = dma.vmem_to_hbm [thread:$0]  %s6750_s30, 18432, %s6752_s6, [#allocation3], %s8468_s7, %s8468_s7, %s8469_s8  }
 0x76a   :  { %8465 = dma.done.wait [#allocation3], 18432  }
 0x76b   :  { %8466 = vsyncadd [#allocation3], 4294948864 }
 0x76c   :  { %6762 = vsyncpa [#allocation3], 1 }

</bundles_post_ra>
